<compile_context>
chip_gen: v7x
topology: tpu7x:2x2x1
jax: 0.10.0
libtpu: 0.0.40
codegen_flags: <defaults>
</compile_context>

<pallas_src>
import functools

import jax
import jax.numpy as jnp
from jax import lax
from jax.experimental import pallas as pl
from jax.experimental.pallas import tpu as pltpu


def _cab_kernel(x_ref, w1_ref, b1_ref, w2_ref, b2_ref, o_ref,
                slab_s, acc_s, *, H, W, C):
    """One batch element per grid step.

    x_ref  : (1, H, W, C)     f32  input (also the residual)
    w*_ref : (3, 3*C, C)      bf16 fused conv weights:
                                w_fused[kw, kh*C + ci, co] = w[kh, kw, ci, co]
    b*_ref : (1, C)           f32  conv biases
    o_ref  : (1, H, W, C)     f32  output
    slab_s : (H, W+2, 3*C)    bf16 tap slab:
                                slab[h, w2, kh*C + ci] = src_pad[h+kh, w2, ci]
    acc_s  : (H*W, C)         f32  matmul accumulator
    """
    zcol = jnp.zeros((H, 1, 3 * C), jnp.bfloat16)
    zrow = jnp.zeros((1, W + 2, C), jnp.bfloat16)

    # Zero halo: columns w2=0 and w2=W+1 for all kh slots; row h=0 of the
    # kh=0 slot; row h=H-1 of the kh=2 slot.  Interior stores below never
    # write these regions.  Re-zeroed every step (cheap) -> megacore-safe.
    slab_s[:, 0:1, :] = zcol
    slab_s[:, W + 1:W + 2, :] = zcol
    slab_s[0:1, :, 0:C] = zrow
    slab_s[H - 1:H, :, 2 * C:3 * C] = zrow

    def build_slab(img_bf16):
        # img_bf16: (H, W, C) bf16 source image -> write slab interior.
        slab_s[1:H, 1:1 + W, 0:C] = img_bf16[0:H - 1]            # kh = 0
        slab_s[0:H, 1:1 + W, C:2 * C] = img_bf16                  # kh = 1
        slab_s[0:H - 1, 1:1 + W, 2 * C:3 * C] = img_bf16[1:H]     # kh = 2

    def conv3x3(w_ref):
        # 3 sublane-shifted (kw) operand reads, 3 K=3C matmuls, f32 VMEM acc.
        for kw in range(3):
            patch = slab_s[:, kw:kw + W, :].reshape(H * W, 3 * C)
            acc_s[...] += jnp.dot(patch, w_ref[kw],
                                  preferred_element_type=jnp.float32)

    # ---- conv1 + bias + ReLU ----
    build_slab(x_ref[0].astype(jnp.bfloat16))
    acc_s[...] = jnp.broadcast_to(b1_ref[...], (H * W, C))        # bias init
    conv3x3(w1_ref)
    y = jnp.maximum(acc_s[...], 0.0).astype(jnp.bfloat16)         # (H*W, C)

    # ---- conv2 + bias + residual ----
    build_slab(y.reshape(H, W, C))
    acc_s[...] = x_ref[0].reshape(H * W, C) + b2_ref[...]         # b2 + residual
    conv3x3(w2_ref)
    o_ref[0] = acc_s[...].reshape(H, W, C).astype(o_ref.dtype)


def cab_pallas(x_nchw, params):
    """x_nchw: (N, C, H, W) float32. Returns (N, C, H, W) float32."""
    N, C, H, W = x_nchw.shape
    (w1, b1), (w2, b2) = params

    # NHWC so channels sit in lanes.  (In an NHWC end-to-end model these two
    # transposes would be dropped entirely.)
    x = jnp.transpose(x_nchw, (0, 2, 3, 1))

    def fuse_w(w):  # (kh, kw, Cin, Cout) HWIO -> (kw, kh*Cin + ci, Cout), bf16
        return jnp.transpose(w, (1, 0, 2, 3)).reshape(3, 3 * C, C).astype(jnp.bfloat16)

    w1f, w2f = fuse_w(w1), fuse_w(w2)
    b1r = b1.reshape(1, C).astype(jnp.float32)
    b2r = b2.reshape(1, C).astype(jnp.float32)

    kernel = functools.partial(_cab_kernel, H=H, W=W, C=C)

    out_nhwc = pl.pallas_call(
        kernel,
        out_shape=jax.ShapeDtypeStruct((N, H, W, C), x.dtype),
        grid_spec=pltpu.PrefetchScalarGridSpec(
            num_scalar_prefetch=0,
            grid=(N,),
            in_specs=[
                pl.BlockSpec((1, H, W, C), lambda n: (n, 0, 0, 0)),
                pl.BlockSpec((3, 3 * C, C), lambda n: (0, 0, 0)),
                pl.BlockSpec((1, C), lambda n: (0, 0)),
                pl.BlockSpec((3, 3 * C, C), lambda n: (0, 0, 0)),
                pl.BlockSpec((1, C), lambda n: (0, 0)),
            ],
            out_specs=pl.BlockSpec((1, H, W, C), lambda n: (n, 0, 0, 0)),
            scratch_shapes=[
                pltpu.VMEM((H, W + 2, 3 * C), jnp.bfloat16),   # tap slab (shared by both convs)
                pltpu.VMEM((H * W, C), jnp.float32),           # f32 accumulator
            ]),
        compiler_params=pltpu.CompilerParams(
            dimension_semantics=("parallel",)),
    )(x, w1f, b1r, w2f, b2r)

    return jnp.transpose(out_nhwc, (0, 3, 1, 2))


def init_params(key, C):
    """Deterministic synthetic parameters. Weights stored HWIO (kh, kw, Cin, Cout)."""
    k1, k2, k3, k4 = jax.random.split(key, 4)
    s = 0.02
    w1 = jax.random.normal(k1, (3, 3, C, C), jnp.float32) * s
    b1 = jax.random.normal(k2, (C,), jnp.float32) * s
    w2 = jax.random.normal(k3, (3, 3, C, C), jnp.float32) * s
    b2 = jax.random.normal(k4, (C,), jnp.float32) * s
    return (w1, b1), (w2, b2)


def cab_reference(x_nchw, params):
    """Plain-JAX f32 reference (lax.conv) used only to validate the kernel."""
    (w1, b1), (w2, b2) = params
    x = jnp.transpose(x_nchw, (0, 2, 3, 1))             # NHWC

    def conv(v, w, b):
        y = lax.conv_general_dilated(
            v, w, window_strides=(1, 1), padding=[(1, 1), (1, 1)],
            dimension_numbers=("NHWC", "HWIO", "NHWC"),
            precision=lax.Precision.HIGHEST)
        return y + b.reshape(1, 1, 1, -1)

    y = jax.nn.relu(conv(x, w1, b1))
    out = conv(y, w2, b2) + x
    return jnp.transpose(out, (0, 3, 1, 2))


if __name__ == "__main__":
    key = jax.random.PRNGKey(0)
    k_x, k_p = jax.random.split(key)

    # C = 128 keeps matmuls / stores lane-dense (full MXU columns).
    N, C, H, W = 2, 128, 16, 16
    x = jax.random.normal(k_x, (N, C, H, W), jnp.float32)
    params = init_params(k_p, C)

    out = jax.block_until_ready(cab_pallas(x, params))
    ref = jax.block_until_ready(cab_reference(x, params))

    assert out.shape == (N, C, H, W)
    # bf16 MXU operands (and a bf16 round of the conv1 output) with f32
    # accumulation => small expected drift vs the f32 reference.
    assert jnp.allclose(out, ref, rtol=5e-2, atol=5e-2), "mismatch vs reference"

    print("KERNEL_OK")
</pallas_src>

<mosaic_0001>
module attributes {stable_mosaic.version = 11 : i64} {
  func.func @_cab_kernel(%arg0: i32, %arg1: memref<1x16x16x128xf32, #tpu.memory_space<vmem>>, %arg2: memref<3x384x128xbf16, #tpu.memory_space<vmem>>, %arg3: memref<1x128xf32, #tpu.memory_space<vmem>>, %arg4: memref<3x384x128xbf16, #tpu.memory_space<vmem>>, %arg5: memref<1x128xf32, #tpu.memory_space<vmem>>, %arg6: memref<1x16x16x128xf32, #tpu.memory_space<vmem>>, %arg7: memref<16x18x384xbf16, #tpu.memory_space<vmem>>, %arg8: memref<256x128xf32, #tpu.memory_space<vmem>>) attributes {dimension_semantics = [#tpu.dimension_semantics<parallel>], iteration_bounds = array<i64: 2>, scalar_prefetch = 0 : i64, scratch_operands = 2 : i64, tpu.core_type = #tpu.core_type<tc>, window_params = [{transform_indices = @transform_0, window_bounds = array<i64: 1, 16, 16, 128>}, {pipeline_mode = #tpu.pipeline_mode<synchronous>, transform_indices = @transform_1, window_bounds = array<i64: 3, 384, 128>}, {pipeline_mode = #tpu.pipeline_mode<synchronous>, transform_indices = @transform_2, window_bounds = array<i64: 1, 128>}, {pipeline_mode = #tpu.pipeline_mode<synchronous>, transform_indices = @transform_3, window_bounds = array<i64: 3, 384, 128>}, {pipeline_mode = #tpu.pipeline_mode<synchronous>, transform_indices = @transform_4, window_bounds = array<i64: 1, 128>}, {transform_indices = @transform_5, window_bounds = array<i64: 1, 16, 16, 128>}]} {
    %cst = arith.constant 0.000000e+00 : bf16
    %0 = vector.broadcast %cst : bf16 to vector<16x1x384xbf16>
    %cst_0 = arith.constant 0.000000e+00 : bf16
    %1 = vector.broadcast %cst_0 : bf16 to vector<1x18x128xbf16>
    %c0 = arith.constant 0 : index
    %c0_1 = arith.constant 0 : index
    %c0_2 = arith.constant 0 : index
    %2 = vector.load %arg7[%c0, %c0_1, %c0_2] : memref<16x18x384xbf16, #tpu.memory_space<vmem>>, vector<16x1x384xbf16>
    tpu.vector_store %arg7[%c0, %c0_1, %c0_2], %0 {strides = array<i32>} : memref<16x18x384xbf16, #tpu.memory_space<vmem>>, vector<16x1x384xbf16>,
    %c0_3 = arith.constant 0 : index
    %c17 = arith.constant 17 : index
    %c0_4 = arith.constant 0 : index
    %3 = vector.load %arg7[%c0_3, %c17, %c0_4] : memref<16x18x384xbf16, #tpu.memory_space<vmem>>, vector<16x1x384xbf16>
    tpu.vector_store %arg7[%c0_3, %c17, %c0_4], %0 {strides = array<i32>} : memref<16x18x384xbf16, #tpu.memory_space<vmem>>, vector<16x1x384xbf16>,
    %c0_5 = arith.constant 0 : index
    %c0_6 = arith.constant 0 : index
    %c0_7 = arith.constant 0 : index
    %4 = vector.load %arg7[%c0_5, %c0_6, %c0_7] : memref<16x18x384xbf16, #tpu.memory_space<vmem>>, vector<1x18x128xbf16>
    tpu.vector_store %arg7[%c0_5, %c0_6, %c0_7], %1 {strides = array<i32>} : memref<16x18x384xbf16, #tpu.memory_space<vmem>>, vector<1x18x128xbf16>,
    %c15 = arith.constant 15 : index
    %c0_8 = arith.constant 0 : index
    %c256 = arith.constant 256 : index
    %5 = vector.load %arg7[%c15, %c0_8, %c256] : memref<16x18x384xbf16, #tpu.memory_space<vmem>>, vector<1x18x128xbf16>
    tpu.vector_store %arg7[%c15, %c0_8, %c256], %1 {strides = array<i32>} : memref<16x18x384xbf16, #tpu.memory_space<vmem>>, vector<1x18x128xbf16>,
    %c0_9 = arith.constant 0 : index
    %c0_10 = arith.constant 0 : index
    %c0_11 = arith.constant 0 : index
    %c0_12 = arith.constant 0 : index
    %6 = vector.load %arg1[%c0_9, %c0_10, %c0_11, %c0_12] : memref<1x16x16x128xf32, #tpu.memory_space<vmem>>, vector<1x16x16x128xf32>
    %7 = vector.shape_cast %6 : vector<1x16x16x128xf32> to vector<16x16x128xf32>
    %8 = arith.truncf %7 : vector<16x16x128xf32> to vector<16x16x128xbf16>
    %9 = vector.extract_strided_slice %8 {offsets = [0, 0, 0], sizes = [15, 16, 128], strides = [1, 1, 1]} : vector<16x16x128xbf16> to vector<15x16x128xbf16>
    %c1 = arith.constant 1 : index
    %c1_13 = arith.constant 1 : index
    %c0_14 = arith.constant 0 : index
    %10 = vector.load %arg7[%c1, %c1_13, %c0_14] : memref<16x18x384xbf16, #tpu.memory_space<vmem>>, vector<15x16x128xbf16>
    tpu.vector_store %arg7[%c1, %c1_13, %c0_14], %9 {strides = array<i32>} : memref<16x18x384xbf16, #tpu.memory_space<vmem>>, vector<15x16x128xbf16>,
    %c0_15 = arith.constant 0 : index
    %c1_16 = arith.constant 1 : index
    %c128 = arith.constant 128 : index
    %11 = vector.load %arg7[%c0_15, %c1_16, %c128] : memref<16x18x384xbf16, #tpu.memory_space<vmem>>, vector<16x16x128xbf16>
    tpu.vector_store %arg7[%c0_15, %c1_16, %c128], %8 {strides = array<i32>} : memref<16x18x384xbf16, #tpu.memory_space<vmem>>, vector<16x16x128xbf16>,
    %12 = vector.extract_strided_slice %8 {offsets = [1, 0, 0], sizes = [15, 16, 128], strides = [1, 1, 1]} : vector<16x16x128xbf16> to vector<15x16x128xbf16>
    %c0_17 = arith.constant 0 : index
    %c1_18 = arith.constant 1 : index
    %c256_19 = arith.constant 256 : index
    %13 = vector.load %arg7[%c0_17, %c1_18, %c256_19] : memref<16x18x384xbf16, #tpu.memory_space<vmem>>, vector<15x16x128xbf16>
    tpu.vector_store %arg7[%c0_17, %c1_18, %c256_19], %12 {strides = array<i32>} : memref<16x18x384xbf16, #tpu.memory_space<vmem>>, vector<15x16x128xbf16>,
    %c0_20 = arith.constant 0 : index
    %c0_21 = arith.constant 0 : index
    %14 = vector.load %arg3[%c0_20, %c0_21] : memref<1x128xf32, #tpu.memory_space<vmem>>, vector<1x128xf32>
    %15 = vector.shape_cast %14 : vector<1x128xf32> to vector<1x128xf32>
    %16 = vector.broadcast %15 : vector<1x128xf32> to vector<256x128xf32>
    %c0_22 = arith.constant 0 : index
    %c0_23 = arith.constant 0 : index
    %17 = vector.load %arg8[%c0_22, %c0_23] : memref<256x128xf32, #tpu.memory_space<vmem>>, vector<256x128xf32>
    tpu.vector_store %arg8[%c0_22, %c0_23], %16 {strides = array<i32>} : memref<256x128xf32, #tpu.memory_space<vmem>>, vector<256x128xf32>,
    %c0_24 = arith.constant 0 : index
    %c0_25 = arith.constant 0 : index
    %c0_26 = arith.constant 0 : index
    %18 = vector.load %arg7[%c0_24, %c0_25, %c0_26] : memref<16x18x384xbf16, #tpu.memory_space<vmem>>, vector<16x16x384xbf16>
    %19 = vector.shape_cast %18 : vector<16x16x384xbf16> to vector<256x384xbf16>
    %c0_27 = arith.constant 0 : index
    %c0_28 = arith.constant 0 : index
    %20 = vector.load %arg8[%c0_27, %c0_28] : memref<256x128xf32, #tpu.memory_space<vmem>>, vector<256x128xf32>
    %c0_29 = arith.constant 0 : index
    %c0_30 = arith.constant 0 : index
    %c0_31 = arith.constant 0 : index
    %21 = vector.load %arg2[%c0_29, %c0_30, %c0_31] : memref<3x384x128xbf16, #tpu.memory_space<vmem>>, vector<1x384x128xbf16>
    %22 = vector.shape_cast %21 : vector<1x384x128xbf16> to vector<384x128xbf16>
    %cst_32 = arith.constant dense<0.000000e+00> : vector<256x128xf32>
    %23 = tpu.matmul %19, %22, %cst_32 {dimension_numbers = #tpu.dot_dimension_numbers<[1], [0], [0], [1], [0, 0, 1, 1], [], []>} : vector<256x384xbf16>, vector<384x128xbf16>, vector<256x128xf32> -> vector<256x128xf32>
    %24 = arith.addf %20, %23 : vector<256x128xf32>
    %c0_33 = arith.constant 0 : index
    %c0_34 = arith.constant 0 : index
    %25 = vector.load %arg8[%c0_33, %c0_34] : memref<256x128xf32, #tpu.memory_space<vmem>>, vector<256x128xf32>
    tpu.vector_store %arg8[%c0_33, %c0_34], %24 {strides = array<i32>} : memref<256x128xf32, #tpu.memory_space<vmem>>, vector<256x128xf32>,
    %c0_35 = arith.constant 0 : index
    %c1_36 = arith.constant 1 : index
    %c0_37 = arith.constant 0 : index
    %26 = vector.load %arg7[%c0_35, %c1_36, %c0_37] : memref<16x18x384xbf16, #tpu.memory_space<vmem>>, vector<16x16x384xbf16>
    %27 = vector.shape_cast %26 : vector<16x16x384xbf16> to vector<256x384xbf16>
    %c0_38 = arith.constant 0 : index
    %c0_39 = arith.constant 0 : index
    %28 = vector.load %arg8[%c0_38, %c0_39] : memref<256x128xf32, #tpu.memory_space<vmem>>, vector<256x128xf32>
    %c1_40 = arith.constant 1 : index
    %c0_41 = arith.constant 0 : index
    %c0_42 = arith.constant 0 : index
    %29 = vector.load %arg2[%c1_40, %c0_41, %c0_42] : memref<3x384x128xbf16, #tpu.memory_space<vmem>>, vector<1x384x128xbf16>
    %30 = vector.shape_cast %29 : vector<1x384x128xbf16> to vector<384x128xbf16>
    %cst_43 = arith.constant dense<0.000000e+00> : vector<256x128xf32>
    %31 = tpu.matmul %27, %30, %cst_43 {dimension_numbers = #tpu.dot_dimension_numbers<[1], [0], [0], [1], [0, 0, 1, 1], [], []>} : vector<256x384xbf16>, vector<384x128xbf16>, vector<256x128xf32> -> vector<256x128xf32>
    %32 = arith.addf %28, %31 : vector<256x128xf32>
    %c0_44 = arith.constant 0 : index
    %c0_45 = arith.constant 0 : index
    %33 = vector.load %arg8[%c0_44, %c0_45] : memref<256x128xf32, #tpu.memory_space<vmem>>, vector<256x128xf32>
    tpu.vector_store %arg8[%c0_44, %c0_45], %32 {strides = array<i32>} : memref<256x128xf32, #tpu.memory_space<vmem>>, vector<256x128xf32>,
    %c0_46 = arith.constant 0 : index
    %c2 = arith.constant 2 : index
    %c0_47 = arith.constant 0 : index
    %34 = vector.load %arg7[%c0_46, %c2, %c0_47] : memref<16x18x384xbf16, #tpu.memory_space<vmem>>, vector<16x16x384xbf16>
    %35 = vector.shape_cast %34 : vector<16x16x384xbf16> to vector<256x384xbf16>
    %c0_48 = arith.constant 0 : index
    %c0_49 = arith.constant 0 : index
    %36 = vector.load %arg8[%c0_48, %c0_49] : memref<256x128xf32, #tpu.memory_space<vmem>>, vector<256x128xf32>
    %c2_50 = arith.constant 2 : index
    %c0_51 = arith.constant 0 : index
    %c0_52 = arith.constant 0 : index
    %37 = vector.load %arg2[%c2_50, %c0_51, %c0_52] : memref<3x384x128xbf16, #tpu.memory_space<vmem>>, vector<1x384x128xbf16>
    %38 = vector.shape_cast %37 : vector<1x384x128xbf16> to vector<384x128xbf16>
    %cst_53 = arith.constant dense<0.000000e+00> : vector<256x128xf32>
    %39 = tpu.matmul %35, %38, %cst_53 {dimension_numbers = #tpu.dot_dimension_numbers<[1], [0], [0], [1], [0, 0, 1, 1], [], []>} : vector<256x384xbf16>, vector<384x128xbf16>, vector<256x128xf32> -> vector<256x128xf32>
    %40 = arith.addf %36, %39 : vector<256x128xf32>
    %c0_54 = arith.constant 0 : index
    %c0_55 = arith.constant 0 : index
    %41 = vector.load %arg8[%c0_54, %c0_55] : memref<256x128xf32, #tpu.memory_space<vmem>>, vector<256x128xf32>
    tpu.vector_store %arg8[%c0_54, %c0_55], %40 {strides = array<i32>} : memref<256x128xf32, #tpu.memory_space<vmem>>, vector<256x128xf32>,
    %c0_56 = arith.constant 0 : index
    %c0_57 = arith.constant 0 : index
    %42 = vector.load %arg8[%c0_56, %c0_57] : memref<256x128xf32, #tpu.memory_space<vmem>>, vector<256x128xf32>
    %cst_58 = arith.constant 0.000000e+00 : f32
    %43 = vector.broadcast %cst_58 : f32 to vector<256x128xf32>
    %44 = arith.maximumf %42, %43 : vector<256x128xf32>
    %45 = arith.truncf %44 : vector<256x128xf32> to vector<256x128xbf16>
    %46 = vector.shape_cast %45 : vector<256x128xbf16> to vector<16x16x128xbf16>
    %47 = vector.extract_strided_slice %46 {offsets = [0, 0, 0], sizes = [15, 16, 128], strides = [1, 1, 1]} : vector<16x16x128xbf16> to vector<15x16x128xbf16>
    %c1_59 = arith.constant 1 : index
    %c1_60 = arith.constant 1 : index
    %c0_61 = arith.constant 0 : index
    %48 = vector.load %arg7[%c1_59, %c1_60, %c0_61] : memref<16x18x384xbf16, #tpu.memory_space<vmem>>, vector<15x16x128xbf16>
    tpu.vector_store %arg7[%c1_59, %c1_60, %c0_61], %47 {strides = array<i32>} : memref<16x18x384xbf16, #tpu.memory_space<vmem>>, vector<15x16x128xbf16>,
    %c0_62 = arith.constant 0 : index
    %c1_63 = arith.constant 1 : index
    %c128_64 = arith.constant 128 : index
    %49 = vector.load %arg7[%c0_62, %c1_63, %c128_64] : memref<16x18x384xbf16, #tpu.memory_space<vmem>>, vector<16x16x128xbf16>
    tpu.vector_store %arg7[%c0_62, %c1_63, %c128_64], %46 {strides = array<i32>} : memref<16x18x384xbf16, #tpu.memory_space<vmem>>, vector<16x16x128xbf16>,
    %50 = vector.extract_strided_slice %46 {offsets = [1, 0, 0], sizes = [15, 16, 128], strides = [1, 1, 1]} : vector<16x16x128xbf16> to vector<15x16x128xbf16>
    %c0_65 = arith.constant 0 : index
    %c1_66 = arith.constant 1 : index
    %c256_67 = arith.constant 256 : index
    %51 = vector.load %arg7[%c0_65, %c1_66, %c256_67] : memref<16x18x384xbf16, #tpu.memory_space<vmem>>, vector<15x16x128xbf16>
    tpu.vector_store %arg7[%c0_65, %c1_66, %c256_67], %50 {strides = array<i32>} : memref<16x18x384xbf16, #tpu.memory_space<vmem>>, vector<15x16x128xbf16>,
    %c0_68 = arith.constant 0 : index
    %c0_69 = arith.constant 0 : index
    %c0_70 = arith.constant 0 : index
    %c0_71 = arith.constant 0 : index
    %52 = vector.load %arg1[%c0_68, %c0_69, %c0_70, %c0_71] : memref<1x16x16x128xf32, #tpu.memory_space<vmem>>, vector<1x16x16x128xf32>
    %53 = vector.shape_cast %52 : vector<1x16x16x128xf32> to vector<16x16x128xf32>
    %54 = vector.shape_cast %53 : vector<16x16x128xf32> to vector<256x128xf32>
    %c0_72 = arith.constant 0 : index
    %c0_73 = arith.constant 0 : index
    %55 = vector.load %arg5[%c0_72, %c0_73] : memref<1x128xf32, #tpu.memory_space<vmem>>, vector<1x128xf32>
    %56 = vector.broadcast %55 : vector<1x128xf32> to vector<256x128xf32>
    %57 = arith.addf %54, %56 : vector<256x128xf32>
    %c0_74 = arith.constant 0 : index
    %c0_75 = arith.constant 0 : index
    %58 = vector.load %arg8[%c0_74, %c0_75] : memref<256x128xf32, #tpu.memory_space<vmem>>, vector<256x128xf32>
    tpu.vector_store %arg8[%c0_74, %c0_75], %57 {strides = array<i32>} : memref<256x128xf32, #tpu.memory_space<vmem>>, vector<256x128xf32>,
    %c0_76 = arith.constant 0 : index
    %c0_77 = arith.constant 0 : index
    %c0_78 = arith.constant 0 : index
    %59 = vector.load %arg7[%c0_76, %c0_77, %c0_78] : memref<16x18x384xbf16, #tpu.memory_space<vmem>>, vector<16x16x384xbf16>
    %60 = vector.shape_cast %59 : vector<16x16x384xbf16> to vector<256x384xbf16>
    %c0_79 = arith.constant 0 : index
    %c0_80 = arith.constant 0 : index
    %61 = vector.load %arg8[%c0_79, %c0_80] : memref<256x128xf32, #tpu.memory_space<vmem>>, vector<256x128xf32>
    %c0_81 = arith.constant 0 : index
    %c0_82 = arith.constant 0 : index
    %c0_83 = arith.constant 0 : index
    %62 = vector.load %arg4[%c0_81, %c0_82, %c0_83] : memref<3x384x128xbf16, #tpu.memory_space<vmem>>, vector<1x384x128xbf16>
    %63 = vector.shape_cast %62 : vector<1x384x128xbf16> to vector<384x128xbf16>
    %cst_84 = arith.constant dense<0.000000e+00> : vector<256x128xf32>
    %64 = tpu.matmul %60, %63, %cst_84 {dimension_numbers = #tpu.dot_dimension_numbers<[1], [0], [0], [1], [0, 0, 1, 1], [], []>} : vector<256x384xbf16>, vector<384x128xbf16>, vector<256x128xf32> -> vector<256x128xf32>
    %65 = arith.addf %61, %64 : vector<256x128xf32>
    %c0_85 = arith.constant 0 : index
    %c0_86 = arith.constant 0 : index
    %66 = vector.load %arg8[%c0_85, %c0_86] : memref<256x128xf32, #tpu.memory_space<vmem>>, vector<256x128xf32>
    tpu.vector_store %arg8[%c0_85, %c0_86], %65 {strides = array<i32>} : memref<256x128xf32, #tpu.memory_space<vmem>>, vector<256x128xf32>,
    %c0_87 = arith.constant 0 : index
    %c1_88 = arith.constant 1 : index
    %c0_89 = arith.constant 0 : index
    %67 = vector.load %arg7[%c0_87, %c1_88, %c0_89] : memref<16x18x384xbf16, #tpu.memory_space<vmem>>, vector<16x16x384xbf16>
    %68 = vector.shape_cast %67 : vector<16x16x384xbf16> to vector<256x384xbf16>
    %c0_90 = arith.constant 0 : index
    %c0_91 = arith.constant 0 : index
    %69 = vector.load %arg8[%c0_90, %c0_91] : memref<256x128xf32, #tpu.memory_space<vmem>>, vector<256x128xf32>
    %c1_92 = arith.constant 1 : index
    %c0_93 = arith.constant 0 : index
    %c0_94 = arith.constant 0 : index
    %70 = vector.load %arg4[%c1_92, %c0_93, %c0_94] : memref<3x384x128xbf16, #tpu.memory_space<vmem>>, vector<1x384x128xbf16>
    %71 = vector.shape_cast %70 : vector<1x384x128xbf16> to vector<384x128xbf16>
    %cst_95 = arith.constant dense<0.000000e+00> : vector<256x128xf32>
    %72 = tpu.matmul %68, %71, %cst_95 {dimension_numbers = #tpu.dot_dimension_numbers<[1], [0], [0], [1], [0, 0, 1, 1], [], []>} : vector<256x384xbf16>, vector<384x128xbf16>, vector<256x128xf32> -> vector<256x128xf32>
    %73 = arith.addf %69, %72 : vector<256x128xf32>
    %c0_96 = arith.constant 0 : index
    %c0_97 = arith.constant 0 : index
    %74 = vector.load %arg8[%c0_96, %c0_97] : memref<256x128xf32, #tpu.memory_space<vmem>>, vector<256x128xf32>
    tpu.vector_store %arg8[%c0_96, %c0_97], %73 {strides = array<i32>} : memref<256x128xf32, #tpu.memory_space<vmem>>, vector<256x128xf32>,
    %c0_98 = arith.constant 0 : index
    %c2_99 = arith.constant 2 : index
    %c0_100 = arith.constant 0 : index
    %75 = vector.load %arg7[%c0_98, %c2_99, %c0_100] : memref<16x18x384xbf16, #tpu.memory_space<vmem>>, vector<16x16x384xbf16>
    %76 = vector.shape_cast %75 : vector<16x16x384xbf16> to vector<256x384xbf16>
    %c0_101 = arith.constant 0 : index
    %c0_102 = arith.constant 0 : index
    %77 = vector.load %arg8[%c0_101, %c0_102] : memref<256x128xf32, #tpu.memory_space<vmem>>, vector<256x128xf32>
    %c2_103 = arith.constant 2 : index
    %c0_104 = arith.constant 0 : index
    %c0_105 = arith.constant 0 : index
    %78 = vector.load %arg4[%c2_103, %c0_104, %c0_105] : memref<3x384x128xbf16, #tpu.memory_space<vmem>>, vector<1x384x128xbf16>
    %79 = vector.shape_cast %78 : vector<1x384x128xbf16> to vector<384x128xbf16>
    %cst_106 = arith.constant dense<0.000000e+00> : vector<256x128xf32>
    %80 = tpu.matmul %76, %79, %cst_106 {dimension_numbers = #tpu.dot_dimension_numbers<[1], [0], [0], [1], [0, 0, 1, 1], [], []>} : vector<256x384xbf16>, vector<384x128xbf16>, vector<256x128xf32> -> vector<256x128xf32>
    %81 = arith.addf %77, %80 : vector<256x128xf32>
    %c0_107 = arith.constant 0 : index
    %c0_108 = arith.constant 0 : index
    %82 = vector.load %arg8[%c0_107, %c0_108] : memref<256x128xf32, #tpu.memory_space<vmem>>, vector<256x128xf32>
    tpu.vector_store %arg8[%c0_107, %c0_108], %81 {strides = array<i32>} : memref<256x128xf32, #tpu.memory_space<vmem>>, vector<256x128xf32>,
    %c0_109 = arith.constant 0 : index
    %c0_110 = arith.constant 0 : index
    %83 = vector.load %arg8[%c0_109, %c0_110] : memref<256x128xf32, #tpu.memory_space<vmem>>, vector<256x128xf32>
    %84 = vector.shape_cast %83 : vector<256x128xf32> to vector<16x16x128xf32>
    %c0_111 = arith.constant 0 : index
    %c0_112 = arith.constant 0 : index
    %c0_113 = arith.constant 0 : index
    %c0_114 = arith.constant 0 : index
    %85 = vector.load %arg6[%c0_111, %c0_112, %c0_113, %c0_114] : memref<1x16x16x128xf32, #tpu.memory_space<vmem>>, vector<1x16x16x128xf32>
    %86 = vector.shape_cast %85 : vector<1x16x16x128xf32> to vector<16x16x128xf32>
    %87 = vector.shape_cast %84 : vector<16x16x128xf32> to vector<1x16x16x128xf32>
    tpu.vector_store %arg6[%c0_111, %c0_112, %c0_113, %c0_114], %87 {strides = array<i32>} : memref<1x16x16x128xf32, #tpu.memory_space<vmem>>, vector<1x16x16x128xf32>,
    return
  }
  func.func @transform_0(%arg0: i32) -> (i32, i32, i32, i32) {
    %c0_i32 = arith.constant 0 : i32
    %c0_i32_0 = arith.constant 0 : i32
    %c0_i32_1 = arith.constant 0 : i32
    %c0_i32_2 = arith.constant 0 : i32
    return %arg0, %c0_i32, %c0_i32_0, %c0_i32_1 : i32, i32, i32, i32
  }
  func.func @transform_1(%arg0: i32) -> (i32, i32, i32) {
    %c0_i32 = arith.constant 0 : i32
    %c0_i32_0 = arith.constant 0 : i32
    %c0_i32_1 = arith.constant 0 : i32
    %c0_i32_2 = arith.constant 0 : i32
    return %c0_i32, %c0_i32_0, %c0_i32_1 : i32, i32, i32
  }
  func.func @transform_2(%arg0: i32) -> (i32, i32) {
    %c0_i32 = arith.constant 0 : i32
    %c0_i32_0 = arith.constant 0 : i32
    %c0_i32_1 = arith.constant 0 : i32
    return %c0_i32, %c0_i32_0 : i32, i32
  }
  func.func @transform_3(%arg0: i32) -> (i32, i32, i32) {
    %c0_i32 = arith.constant 0 : i32
    %c0_i32_0 = arith.constant 0 : i32
    %c0_i32_1 = arith.constant 0 : i32
    %c0_i32_2 = arith.constant 0 : i32
    return %c0_i32, %c0_i32_0, %c0_i32_1 : i32, i32, i32
  }
  func.func @transform_4(%arg0: i32) -> (i32, i32) {
    %c0_i32 = arith.constant 0 : i32
    %c0_i32_0 = arith.constant 0 : i32
    %c0_i32_1 = arith.constant 0 : i32
    return %c0_i32, %c0_i32_0 : i32, i32
  }
  func.func @transform_5(%arg0: i32) -> (i32, i32, i32, i32) {
    %c0_i32 = arith.constant 0 : i32
    %c0_i32_0 = arith.constant 0 : i32
    %c0_i32_1 = arith.constant 0 : i32
    %c0_i32_2 = arith.constant 0 : i32
    return %arg0, %c0_i32, %c0_i32_0, %c0_i32_1 : i32, i32, i32, i32
  }
}

</mosaic_0001>

<bundles_post_ra>
// kernel: tpu_custom_call.1
= control target key start
LH: loop header
LB: loop body
LE: loop exit
PB: predicated region body
PF: predicated region fallthrough
CT: control target
= control target key end

     0   :  { %10 = vsyncpa [#allocation5], 0  ;;  %s16005_s0 = inlined_call_operand.hbm [shape: f32[2,16,16,128], index: 0, kind: input, shape index: {}]   ;;  %s16006_s1 = inlined_call_operand.hbm [shape: bf16[3,384,128], index: 1, kind: input, shape index: {}]   ;;  %s16007_s2 = inlined_call_operand.vmem [shape: f32[1,128], index: 2, kind: input, shape index: {}]   ;;  %s16008_s3 = inlined_call_operand.hbm [shape: bf16[3,384,128], index: 3, kind: input, shape index: {}]   ;;  %s16009_s4 = inlined_call_operand.vmem [shape: f32[1,128], index: 4, kind: input, shape index: {}]   ;;  %s16010_s5 = inlined_call_operand.hbm [shape: f32[2,16,16,128], index: 5, kind: output, shape index: {}]  }
   0x1   :  { %12 = vsyncpa [#allocation5 + $0x1], 0 }
   0x2   :  { %13 = vsyncpa [#allocation8], 0 }
   0x3   :  { %14 = vsyncpa [#allocation6], 0 }
   0x4   :  { %16 = vsyncpa [#allocation6 + $0x1], 0  ;;  %s12675_s18 = smov 0   ;;  %s12677_s19 = smov 0  }
   0x5   :  { %s12679_s20 = smov 0   ;;  %s12681_s21 = smov 0  }
   0x6 LB: > { %s12696_s22 = sadd.s32 4294967295, %s12632_s21   ;;  %s10011_s23 = sadd.s32 4294967294, %s12632_s21   ;;  %s12632_s21 = sphi %s12681_s21, %s16154_s21   ;;  %s12628_s20 = sphi %s12679_s20, %s16153_s20   ;;  %s12624_s19 = sphi %s12677_s19, %s16152_s19   ;;  %s12620_s18 = sphi %s12675_s18, %s16151_s18  }
   0x7   : > { %p42_p0 = scmp.ne.s32.totalorder %s12624_s19, %s12620_s18  ;;  %p16011_p1 = scmp.eq.s32.totalorder %s12696_s22, 0 }
   0x8   : > { %p156_p3 = scmp.eq.s32.totalorder %s10011_s23, 1  ;;  %p10012_p5 = scmp.ge.s32.totalorder %s12632_s21, 1 }
   0x9   : > { %p12705_p4 = por %p16011_p1, %p42_p0  ;;  %p163_p7 = scmp.lt.s32.totalorder %s12632_s21, 3 }
   0xa   : > { %p12710_p6 = por %p156_p3, %p42_p0  ;;  %s12634_s27 = smov [#allocation7]  }
   0xb   : > { %s16034_s24 = scalar_select %p12705_p4, 1, 0 }
   0xc   : > { %s16035_s25 = scalar_select %p12710_p6, 1, 0 }
   0xd   : > { %p12715_p8 = pnand %p10012_p5, %p163_p7  ;;  %s175_s28 = sshll.u32 %s12634_s27, 4  ;;  %s12719_s28 = int_to_ptr.vmem [resolvable:$true] %s175_s28 }
   0xe   : > { %s12635_s30 = smov [#allocation9]   ;;  %s12476_s9 = scalar_lea.hbm %s16006_s1, 9216 }
   0xf   : > { %p12157_p9 = pneg %p12715_p8  ;;  %s191_s6 = sshll.u32 %s12635_s30, 4  ;;  %s12730_s6 = int_to_ptr.vmem [resolvable:$true] %s191_s6 }
  0x10   : > { %p12477_p12 = scmp.ne.s32.totalorder %s16006_s1, %s12476_s9  ;;  %p12483_p5 = scmp.lt.u32.totalorder %s12476_s9, %s16006_s1 }
  0x11   : > { %p12726_p11 = pnand %p12157_p9, %p16011_p1 }
  0x13   : > { %p12478_p13 = pneg %p12726_p11 }
  0x15   : > { %p12479_p0 = pnand %p12478_p13, %p12477_p12 }
  0x17   : > { %p12480_p3 = pneg %p12479_p0 }
  0x19   : > { %p12485_p7 = pnand %p12483_p5, %p12480_p3 }
  0x1b   : > { %12488 = shalt.err (!%p12485_p7)
}
  0x1c   : > { %s12489_s14 = scalar_lea.vmem %s12719_s28, 9216  ;;  %p12497_p2 = scmp.lt.s32.totalorder %s12719_s28, %s12719_s28 }
  0x1d   : > { %p12490_p9 = scmp.ne.s32.totalorder %s12719_s28, %s12489_s14  ;;  %p12498_p12 = scmp.lt.s32.totalorder %s12489_s14, %s12489_s14 }
  0x1f   : > { %p12492_p10 = pnand %p12490_p9, %p12478_p13  ;;  %p12499_p0 = por %p12498_p12, %p12497_p2 }
  0x21   : > { %p12493_p1 = pneg %p12492_p10 }
  0x23   : > { %p12500_p6 = pnand %p12499_p0, %p12493_p1 }
  0x25   : > { %12503 = shalt.err (!%p12500_p6)
}
  0x26   : > { %s12636_s15 = smov 64   ;;  %s12637_s16 = smov 4  }
  0x27   : > { %12160 = dma.hbm_to_vmem [thread:$0]  (!%p12726_p11), %s16006_s1, 9216, %s12719_s28, [#allocation8], %s12636_s15, %s12636_s15, %s12637_s16  }
  0x28   : > { %s12504_s7 = scalar_lea.hbm %s16008_s3, 9216 }
  0x29   : > { %p12505_p2 = scmp.ne.s32.totalorder %s16008_s3, %s12504_s7  ;;  %p12511_p10 = scmp.lt.u32.totalorder %s12504_s7, %s16008_s3 }
  0x2b   : > { %p12507_p1 = pnand %p12505_p2, %p12478_p13 }
  0x2d   : > { %p12508_p6 = pneg %p12507_p1 }
  0x2f   : > { %p12513_p3 = pnand %p12511_p10, %p12508_p6 }
  0x31   : > { %12516 = shalt.err (!%p12513_p3)
}
  0x32   : > { %s12517_s28 = scalar_lea.vmem %s12730_s6, 9216  ;;  %p12525_p12 = scmp.lt.s32.totalorder %s12730_s6, %s12730_s6 }
  0x33   : > { %p12518_p5 = scmp.ne.s32.totalorder %s12730_s6, %s12517_s28  ;;  %p12526_p0 = scmp.lt.s32.totalorder %s12517_s28, %s12517_s28 }
  0x35   : > { %p12520_p7 = pnand %p12518_p5, %p12478_p13  ;;  %p12527_p2 = por %p12526_p0, %p12525_p12 }
  0x37   : > { %p12521_p9 = pneg %p12520_p7 }
  0x39   : > { %p12528_p1 = pnand %p12527_p2, %p12521_p9 }
  0x3b   : > { %12531 = shalt.err (!%p12528_p1)
}
  0x3c   : > { %12163 = dma.hbm_to_vmem [thread:$0]  (!%p12726_p11), %s16008_s3, 9216, %s12730_s6, [#allocation8], %s12636_s15, %s12636_s15, %s12637_s16  }
  0x3d   : > { %s12785_s14 = sadd.s32 1, %s12632_s21   ;;  %s29_s29 = sadd.s32 1, %s12628_s20 }
  0x3e   : > { %s26_s17 = ssub.s32 %s12632_s21, %s12785_s14  ;;  %p36_p13 = scmp.ne.s32.totalorder %s12628_s20, %s12624_s19 }
  0x3f   : > { %p27_p6 = scmp.eq.s32.totalorder %s26_s17, 0  ;;  %p37_p10 = scmp.eq.s32.totalorder %s12632_s21, 0 }
  0x40   : > { %p16038_p3 = scmp.eq.s32.totalorder %s12696_s22, 1  ;;  %p12174_p7 = scmp.lt.s32.totalorder %s12632_s21, 2 }
  0x41   : > { %s12801_s27 = scalar_select %p27_p6, %s12628_s20, %s29_s29  }
  0x42   : > { %p12795_p5 = por %p16038_p3, %p36_p13  ;;  %p38_p9 = por %p37_p10, %p36_p13 }
  0x43   : > { %s208_s30 = sand.u32 1, %s12628_s20   ;;  %s10591_s6 = sshll.u32 %s12632_s21, 12 }
  0x44   : > { %s16039_s23 = scalar_select %p12795_p5, 1, 0 }
  0x45   : > { %s10016_s7 = sshll.u32 %s208_s30, 8  ;;  %s12808_s8 = scalar_lea.hbm %s16005_s0, %s10591_s6 }
  0x46   : > { %s212_s9 = scalar_lea.vmem [#allocation4], %s10016_s7  ;;  %p12812_p11 = pnand %p12174_p7, %p38_p9 }
  0x47   : > { %s219_s10 = sshll.u32 %s212_s9, 4  ;;  %s12816_s28 = scalar_lea.sflag [#allocation5], %s208_s30  ;;  %s12810_s10 = int_to_ptr.vmem [resolvable:$true] %s219_s10 }
  0x48   : > { %s12532_s12 = scalar_lea.hbm %s12808_s8, 4096  ;;  %p12534_p0 = pneg %p12812_p11 }
  0x49   : > { %p12533_p12 = scmp.ne.s32.totalorder %s12808_s8, %s12532_s12  ;;  %s12537_s17 = scalar_lea.hbm %s16005_s0, 8192 }
  0x4a   : > { %p12538_p13 = scmp.lt.u32.totalorder %s12808_s8, %s16005_s0  ;;  %p12539_p6 = scmp.lt.u32.totalorder %s12537_s17, %s12532_s12 }
  0x4b   : > { %p12535_p2 = pnand %p12534_p0, %p12533_p12  ;;  %p12541_p3 = scmp.lt.u32.totalorder %s12532_s12, %s12808_s8 }
  0x4c   : > { %p12540_p10 = por %p12539_p6, %p12538_p13 }
  0x4d   : > { %p12536_p1 = pneg %p12535_p2 }
  0x4e   : > { %p12542_p7 = por %p12541_p3, %p12540_p10 }
  0x50   : > { %p12543_p9 = pnand %p12542_p7, %p12536_p1 }
  0x52   : > { %12546 = shalt.err (!%p12543_p9)
}
  0x53   : > { %s12547_s30 = scalar_lea.vmem %s12810_s10, 4096  ;;  %s12638_s15 = smov [#allocation4]  }
  0x54   : > { %p12548_p12 = scmp.ne.s32.totalorder %s12810_s10, %s12547_s30  ;;  %s12552_s16 = sshll.u32 %s12638_s15, 4  ;;  %s12553_s16 = int_to_ptr.vmem [resolvable:$false] %s12552_s16 }
  0x55   : > { %s12554_s9 = scalar_lea.vmem %s12553_s16, 8192  ;;  %p12555_p4 = scmp.lt.s32.totalorder %s12810_s10, %s12553_s16 }
  0x56   : > { %p12550_p2 = pnand %p12548_p12, %p12534_p0  ;;  %p12556_p13 = scmp.lt.s32.totalorder %s12554_s9, %s12547_s30 }
  0x58   : > { %p12551_p5 = pneg %p12550_p2  ;;  %p12557_p6 = por %p12556_p13, %p12555_p4 }
  0x5a   : > { %p12558_p10 = pnand %p12557_p6, %p12551_p5 }
  0x5c   : > { %12561 = shalt.err (!%p12558_p10)
}
  0x5d   : > { %s12639_s12 = smov 128   ;;  %s12640_s13 = smov 8  }
  0x5e   : > { %12167 = dma.hbm_to_vmem [thread:$0]  (!%p12812_p11), %s12808_s8, 4096, %s12810_s10, %s12816_s28, %s12639_s12, %s12639_s12, %s12640_s13  }
  0x5f   : > { %231 = sbr.rel (%p12715_p8) target bundleno = 1307 (0x51b), region = 40 }
  0x66   : > { %s12847_s29 = sand.u32 1, %s12624_s19   ;;  %p16041_p4 = scmp.ne.s32.totalorder %s16034_s24, 0 }
  0x67   : > { %s10020_s17 = sshll.u32 %s12847_s29, 8  ;;  %s234_s7 = scalar_lea.sflag [#allocation5], %s12847_s29 }
  0x68   : > { %s12853_s6 = scalar_lea.vmem [#allocation4], %s10020_s17 }
  0x69   : > { %12607 = dma.done.wait (%p16041_p4), %s234_s7, 4096  }
  0x6a   : > { %12609 = vsyncadd (%p16041_p4), %s234_s7, 4294963200  ;;  %p16042_p5 = scmp.eq.s32.totalorder %s12696_s22, 0 }
  0x6c   : > { %12611 = dma.done.wait (%p16042_p5), [#allocation8], 18432   ;;  %p16043_p8 = pmov %p16042_p5 }
  0x6d   : > { %v16015_v0 = vmov 0   ;;  %v12219_v1 = vld [vmem:[#allocation7 + $0x40] sm:$0xff]   ;;  %vm274_vm0 = vsmask.f32 256  ;;  %vm277_vm1 = vsmask.f32 4352 }
  0x6e   : > { %12613 = vsyncadd (%p16043_p8), [#allocation8], 4294948864  ;;  %478 = vst [vmem:[#allocation2 + $0xc] sm:$0xf] %v16015_v0  ;;  %v12220_v2 = vld [vmem:[#allocation7 + $0x100] sm:$0xff]   ;;  %10657 = vmatprep.subr.bf16.mxu0 %v12219_v1  ;;  %v12223_v5 = vld [vmem:[#allocation7 + $0x48] sm:$0xff]  }
  0x6f   : > { %482 = vst [vmem:[#allocation2 + $0x230] sm:$0xf] %v16015_v0  ;;  %vm376_vm2 = vsmask.f32 7938  ;;  %vm378_vm3 = vsmask.f32 7954  ;;  %10793 = vmatprep.subr.bf16.mxu1 %v12220_v2 }
  0x70   : > { %v12221_v3 = vld [vmem:[#allocation7] sm:$0xff]   ;;  %v12224_v6 = vld [vmem:[#allocation7 + $0x108] sm:$0xff]   ;;  %vm273_vm4 = vcmask 1040384   ;;  %v12227_v9 = vld [vmem:[#allocation7 + $0x50] sm:$0xff]   ;;  %vm276_vm5 = vcmask 1044484   ;;  %v16044_v13 = vmov 0 }
  0x71   : > { %v12222_v4 = vld [vmem:[#allocation7 + $0xc0] sm:$0xff]   ;;  %10658 = vmatpush3.bf16.msra.mxu0 %v12221_v3  ;;  %v12225_v7 = vld [vmem:[#allocation7 + $0x8] sm:$0xff]   ;;  %v12228_v10 = vld [vmem:[#allocation7 + $0x110] sm:$0xff]   ;;  %vm607_vm12 = vsmask.f32 4368  ;;  %vm910_vm13 = vcmask 1043456  }
  0x72   : > { %10794 = vmatpush3.bf16.msra.mxu1 %v12222_v4  ;;  %10659 = vmatprep.subr.bf16.mxu0 %v12223_v5  ;;  %v12226_v8 = vld [vmem:[#allocation7 + $0xc8] sm:$0xff]   ;;  %v12229_v11 = vld [vmem:[#allocation7 + $0x10] sm:$0xff]   ;;  %vm12866_vm6 = vmand %vm273_vm4, %vm274_vm0  ;;  %v16057_v3 = vmov 0  ;;  %s15890_s11 = scalar_lea.vmem [#allocation10], %s10020_s17  ;;  %s10656_s28 = sshll.u32 %s12696_s22, 12 }
  0x73   : > { %10795 = vmatprep.subr.bf16.mxu1 %v12224_v6  ;;  %v12230_v12 = vld [vmem:[#allocation7 + $0xd0] sm:$0xff]   ;;  %v16045_v13 = vsel %vm12866_vm6, 4294967295, %v16044_v13  ;;  %vm12871_vm7 = vmand %vm276_vm5, %vm277_vm1  ;;  %v12231_v15 = vld [vmem:[#allocation7 + $0x58] sm:$0xff]   ;;  %vm2325_vm1 = vsmask.f32 7440  ;;  %s9919_s30 = sshll.u32 %s15890_s11, 4  ;;  %s15955_s9 = scalar_lea.hbm %s16010_s5, %s10656_s28  ;;  %s15957_s30 = int_to_ptr.vmem [resolvable:$true] %s9919_s30 }
  0x74   : > { %16046 = vst [vmem:[#allocation14_spill] sm:$0xff] %v16045_v13  ;;  %vm12876_vm8 = vmand %vm273_vm4, %vm376_vm2  ;;  %v12232_v18 = vld [vmem:[#allocation7 + $0x118] sm:$0xff]   ;;  %v12235_v21 = vld [vmem:[#allocation7 + $0x60] sm:$0xff]   ;;  %vm4091_vm4 = vcmask 1046532   ;;  %s9906_s22 = scalar_lea.sflag [#allocation6], %s12847_s29  ;;  %s12562_s12 = scalar_lea.vmem %s15957_s30, 4096 }
  0x75   : > { %10660 = vmatpush3.bf16.msra.mxu0 %v12225_v7  ;;  %vm12881_vm9 = vmand %vm276_vm5, %vm378_vm3  ;;  %v12233_v19 = vld [vmem:[#allocation7 + $0x18] sm:$0xff]   ;;  %v12236_v22 = vld [vmem:[#allocation7 + $0x120] sm:$0xff]   ;;  %vm4090_vm3 = vcmask 1042432   ;;  %p12563_p11 = scmp.ne.s32.totalorder %s15957_s30, %s12562_s12  ;;  %p16148_p0 = scmp.ne.s32.totalorder %s16039_s23, 0 }
  0x76   : > { %10796 = vmatpush3.bf16.msra.mxu1 %v12226_v8  ;;  %10661 = vmatprep.subr.bf16.mxu0 %v12227_v9  ;;  %v12234_v20 = vld [vmem:[#allocation7 + $0xd8] sm:$0xff]   ;;  %v12237_v23 = vld [vmem:[#allocation7 + $0x20] sm:$0xff]   ;;  %v12239_v25 = vld [vmem:[#allocation7 + $0x68] sm:$0xff]   ;;  %s12642_s13 = smov [#allocation10]  }
  0x77   : > { %10797 = vmatprep.subr.bf16.mxu1 %v12228_v10  ;;  %v12238_v24 = vld [vmem:[#allocation7 + $0xe0] sm:$0xff]   ;;  %v12240_v26 = vld [vmem:[#allocation7 + $0x128] sm:$0xff]   ;;  %vm12889_vm10 = vmor %vm12871_vm7, %vm12866_vm6  ;;  %v16060_v10 = vmov 0  ;;  %p12564_p1 = pnand %p12563_p11, %p16148_p0  ;;  %s12566_s17 = sshll.u32 %s12642_s13, 4  ;;  %s12567_s17 = int_to_ptr.vmem [resolvable:$false] %s12566_s17 }
  0x78   : > { %v12241_v27 = vld [vmem:[#allocation7 + $0x28] sm:$0xff]   ;;  %vm12897_vm11 = vmor %vm12881_vm9, %vm12876_vm8  ;;  %v12243_v31 = vld [vmem:[#allocation7 + $0x70] sm:$0xff]   ;;  %s12568_s7 = scalar_lea.vmem %s12567_s17, 8192  ;;  %p12569_p7 = scmp.lt.s32.totalorder %s15957_s30, %s12567_s17 }
  0x79   : > { %10662 = vmatpush3.bf16.msra.mxu0 %v12229_v11  ;;  %v12242_v29 = vld [vmem:[#allocation7 + $0xe8] sm:$0xff]   ;;  %v12244_v32 = vld [vmem:[#allocation7 + $0x130] sm:$0xff]   ;;  %v12247_v35 = vld [vmem:[#allocation7 + $0x78] sm:$0xff]   ;;  %p12565_p3 = pneg %p12564_p1  ;;  %p12570_p9 = scmp.lt.s32.totalorder %s12568_s7, %s12562_s12 }
  0x7a   : > { %10798 = vmatpush3.bf16.msra.mxu1 %v12230_v12  ;;  %10663 = vmatprep.subr.bf16.mxu0 %v12231_v15  ;;  %v12245_v33 = vld [vmem:[#allocation7 + $0x30] sm:$0xff]   ;;  %v12248_v36 = vld [vmem:[#allocation7 + $0x138] sm:$0xff]   ;;  %v280_v39 = vld [vmem:[#allocation2] sm:$0x11] }
  0x7b   : > { %10799 = vmatprep.subr.bf16.mxu1 %v12232_v18  ;;  %v12246_v34 = vld [vmem:[#allocation7 + $0xf0] sm:$0xff]   ;;  %v12249_v37 = vld [vmem:[#allocation7 + $0x38] sm:$0xff]   ;;  %v484_v41 = vld [vmem:[%s12853_s6] sm:$0xff]  ;;  %v281_v42 = vsel %vm12889_vm10, 0, %v280_v39  ;;  %p12571_p12 = por %p12570_p9, %p12569_p7 }
  0x7c   : > { %v12250_v38 = vld [vmem:[#allocation7 + $0xf8] sm:$0xff]   ;;  %v485_v44 = vld [vmem:[%s12853_s6 + $0x8] sm:$0xff]  ;;  %v10592_v45 = vpack.c.bf16 %v484_v41, %v484_v41  ;;  %282 = vst [vmem:[#allocation2] sm:$0x11] %v281_v42  ;;  %v12910_v51 = vld [vmem:[#allocation7 + $0x80] sm:$0xff]  }
  0x7d   : > { %10664 = vmatpush3.bf16.msra.mxu0 %v12233_v19  ;;  %v387_v40 = vld [vmem:[#allocation2 + $0x3c] sm:$0x11]  ;;  %v10593_v47 = vpack.c.bf16 %v485_v44, %v485_v44  ;;  %477 = vst [vmem:[#allocation2] sm:$0xf] %v16015_v0  ;;  %v286_v52 = vld [vmem:[#allocation2 + $0x24] sm:$0x11]  ;;  %vm12922_vm14 = vmor %vm274_vm0, %vm607_vm12  ;;  %p12572_p2 = pnand %p12571_p12, %p12565_p3 }
  0x7e   : > { %10800 = vmatpush3.bf16.msra.mxu1 %v12234_v20  ;;  %10665 = vmatprep.subr.bf16.mxu0 %v12235_v21  ;;  %v388_v43 = vsel %vm12897_vm11, 0, %v387_v40  ;;  %v381_v46 = vld [vmem:[#allocation2 + $0x18] sm:$0x11]  ;;  %v610_v49 = vshrl.u32 %v10592_v45, 16  ;;  %v613_v50 = vshll.u32 %v10592_v45, 16  ;;  %v287_v55 = vsel %vm12889_vm10, 0, %v286_v52  ;;  %vm12934_vm15 = vmand %vm910_vm13, %vm376_vm2 }
  0x7f   : > { %10801 = vmatprep.subr.bf16.mxu1 %v12236_v22  ;;  %389 = vst [vmem:[#allocation2 + $0x3c] sm:$0x11] %v388_v43  ;;  %v382_v48 = vsel %vm12897_vm11, 0, %v381_v46  ;;  %v618_v53 = vshrl.u32 %v10593_v47, 16  ;;  %v621_v54 = vshll.u32 %v10593_v47, 16  ;;  %v486_v56 = vld [vmem:[%s12853_s6 + $0x10] sm:$0xff]  ;;  %vm13846_vm5 = vmor %vm4090_vm3, %vm4091_vm4 }
  0x80   : > { %383 = vst [vmem:[#allocation2 + $0x18] sm:$0x11] %v382_v48  ;;  %v487_v57 = vld [vmem:[%s12853_s6 + $0x18] sm:$0xff]  ;;  %v488_v58 = vld [vmem:[%s12853_s6 + $0x20] sm:$0xff]  ;;  %v612_v59 = vrot.slane %v610_v49, 7  ;;  %v10594_v60 = vpack.c.bf16 %v486_v56, %v486_v56  ;;  %v489_v1 = vld [vmem:[%s12853_s6 + $0x28] sm:$0xff] }
  0x81   : > { %10666 = vmatpush3.bf16.msra.mxu0 %v12237_v23  ;;  %479 = vst [vmem:[#allocation2 + $0x18] sm:$0x1] %v16015_v0  ;;  %288 = vst [vmem:[#allocation2 + $0x24] sm:$0x11] %v287_v55  ;;  %v10595_v61 = vpack.c.bf16 %v487_v57, %v487_v57  ;;  %v292_v62 = vld [vmem:[#allocation2 + $0x48] sm:$0x11]  ;;  %v10596_v2 = vpack.c.bf16 %v488_v58, %v488_v58  ;;  %v12930_v7 = vpack.c.bf16 %v489_v1, %v489_v1 }
  0x82   : > { %10802 = vmatpush3.bf16.msra.mxu1 %v12238_v24  ;;  %10667 = vmatprep.subr.bf16.mxu0 %v12239_v25  ;;  %v390_v63 = vld [vmem:[#allocation2 + $0x44] sm:$0x1]  ;;  %v16058_v3 = vsel %vm12922_vm14, 4294967295, %v16057_v3  ;;  %v620_v4 = vrot.slane %v618_v53, 7  ;;  %v293_v5 = vsel %vm12889_vm10, 0, %v292_v62  ;;  %v615_v8 = vor.u32 %v613_v50, %v612_v59  ;;  %v490_v14 = vld [vmem:[%s12853_s6 + $0x30] sm:$0xff] }
  0x83   : > { %10803 = vmatprep.subr.bf16.mxu1 %v12240_v26  ;;  %16059 = vst [vmem:[#allocation15_spill] sm:$0xff] %v16058_v3  ;;  %v391_v6 = vsel %vm12876_vm8, 0, %v390_v63  ;;  %v616_v9 = vrot.slane %v612_v59, 4  ;;  %v16061_v10 = vsel %vm12934_vm15, 4294967295, %v16060_v10  ;;  %v627_v11 = vshrl.u32 %v10594_v60, 16  ;;  %v491_v20 = vld [vmem:[%s12853_s6 + $0x38] sm:$0xff] }
  0x84   : > { %16062 = vst [vmem:[#allocation16_spill] sm:$0xff] %v16061_v10  ;;  %v630_v12 = vshll.u32 %v10594_v60, 16  ;;  %294 = vst [vmem:[#allocation2 + $0x48] sm:$0x11] %v293_v5  ;;  %v623_v15 = vor.u32 %v621_v54, %v620_v4  ;;  %v625_v17 = vrot.slane %v620_v4, 4  ;;  %v635_v18 = vshrl.u32 %v10595_v61, 16 }
  0x85   : > { %10668 = vmatpush3.bf16.msra.mxu0 %v12241_v27  ;;  %392 = vst [vmem:[#allocation2 + $0x44] sm:$0x1] %v391_v6  ;;  %v638_v19 = vshll.u32 %v10595_v61, 16  ;;  %v1042_v22 = vld [vmem:[#allocation2 + $0x4] sm:$0xf]  ;;  %v629_v23 = vrot.slane %v627_v11, 7  ;;  %v12940_v25 = vpack.c.bf16 %v490_v14, %v490_v14  ;;  %v12942_v26 = vpack.c.bf16 %v491_v20, %v491_v20 }
  0x86   : > { %10804 = vmatpush3.bf16.msra.mxu1 %v12242_v29  ;;  %10669 = vmatprep.subr.bf16.mxu0 %v12243_v31  ;;  %v916_v21 = vld [vmem:[#allocation2 + $0x3c] sm:$0x1]  ;;  %v644_v24 = vshrl.u32 %v10596_v2, 16  ;;  %v624_v27 = vsel %vm12922_vm14, %v616_v9, %v623_v15  ;;  %v1043_v31 = vsel %vm12934_vm15, %v615_v8, %v1042_v22  ;;  %v1053_v39 = vld [vmem:[#allocation2 + $0x40] sm:$0x1]  ;;  %v647_v46 = vshll.u32 %v10596_v2, 16 }
  0x87   : > { %10805 = vmatprep.subr.bf16.mxu1 %v12244_v32  ;;  %v917_v29 = vsel %vm12866_vm6, %v625_v17, %v916_v21  ;;  %v1046_v32 = vld [vmem:[#allocation2 + $0x1c] sm:$0x1]  ;;  %915 = vst [vmem:[#allocation2 + $0x30] sm:$0xf] %v624_v27  ;;  %1044 = vst [vmem:[#allocation2 + $0x4] sm:$0xf] %v1043_v31 }
  0x88   : > { %1045 = vst [vmem:[#allocation2 + $0x10] sm:$0xf] %v624_v27  ;;  %918 = vst [vmem:[#allocation2 + $0x3c] sm:$0x1] %v917_v29  ;;  %v12955_v40 = vrot.slane %v644_v24, 7  ;;  %v652_v52 = vshrl.u32 %v12930_v7, 16 }
  0x89   : > { %10670 = vmatpush3.bf16.msra.mxu0 %v12245_v33  ;;  %v637_v33 = vrot.slane %v635_v18, 7  ;;  %v298_v41 = vld [vmem:[#allocation2 + $0x6c] sm:$0x11]  ;;  %v912_v44 = vld [vmem:[#allocation2 + $0x24] sm:$0xf]  ;;  %v655_v57 = vshll.u32 %v12930_v7, 16 }
  0x8a   : > { %10806 = vmatpush3.bf16.msra.mxu1 %v12246_v34  ;;  %10671 = vmatprep.subr.bf16.mxu0 %v12247_v35  ;;  %v393_v34 = vld [vmem:[#allocation2 + $0x60] sm:$0x11]  ;;  %v1049_v45 = vld [vmem:[#allocation2 + $0x28] sm:$0xf]  ;;  %vm2324_vm0 = vsmask.f32 3328  ;;  %v913_v48 = vsel %vm12934_vm15, %v615_v8, %v912_v44  ;;  %v12974_v56 = vor.u32 %v647_v46, %v12955_v40 }
  0x8b   : > { %10807 = vmatprep.subr.bf16.mxu1 %v12248_v36  ;;  %v492_v35 = vld [vmem:[%s12853_s6 + $0x40] sm:$0xff]  ;;  %v1047_v36 = vsel %vm12866_vm6, %v625_v17, %v1046_v32  ;;  %v640_v42 = vor.u32 %v638_v19, %v637_v33  ;;  %v12957_v43 = vrot.slane %v637_v33, 4  ;;  %v650_v50 = vrot.slane %v12955_v40, 4  ;;  %914 = vst [vmem:[#allocation2 + $0x24] sm:$0xf] %v913_v48  ;;  %v493_v2 = vld [vmem:[%s12853_s6 + $0x48] sm:$0xff]  ;;  %vm13015_vm2 = vmor %vm2324_vm0, %vm2325_vm1 }
  0x8c   : > { %1048 = vst [vmem:[#allocation2 + $0x1c] sm:$0x1] %v1047_v36  ;;  %v12959_v47 = vpack.c.bf16 %v492_v35, %v492_v35  ;;  %v399_v53 = vld [vmem:[#allocation2 + $0x84] sm:$0x11]  ;;  %v1056_v59 = vld [vmem:[#allocation2 + $0x4c] sm:$0xf]  ;;  %v13002_v21 = vpack.c.bf16 %v493_v2, %v493_v2 }
  0x8d   : > { %10672 = vmatpush3.bf16.msra.mxu0 %v12249_v37  ;;  %v12953_v37 = vor.u32 %v630_v12, %v629_v23  ;;  %v1054_v55 = vsel %vm12866_vm6, %v12957_v43, %v1053_v39  ;;  %v919_v58 = vld [vmem:[#allocation2 + $0x48] sm:$0xf]  ;;  %v654_v60 = vrot.slane %v652_v52, 7  ;;  %v394_v62 = vsel %vm12897_vm11, 0, %v393_v34  ;;  %v304_v1 = vld [vmem:[#allocation2 + $0x90] sm:$0x11] }
  0x8e   : > { %10808 = vmatpush3.bf16.msra.mxu1 %v12250_v38  ;;  %11473 = vmatprep.subr.bf16.mxu0 %v12910_v51  ;;  %v633_v38 = vrot.slane %v629_v23, 4  ;;  %1055 = vst [vmem:[#allocation2 + $0x40] sm:$0x1] %v1054_v55  ;;  %v299_v63 = vsel %vm12889_vm10, 0, %v298_v41  ;;  %v1057_v4 = vsel %vm12934_vm15, %v12974_v56, %v1056_v59  ;;  %v1165_v5 = vld [vmem:[#allocation2 + $0x44] sm:$0x1] }
  0x8f   : > { %v1050_v49 = vsel %vm12934_vm15, %v12953_v37, %v1049_v45  ;;  %v920_v61 = vsel %vm12934_vm15, %v12953_v37, %v919_v58  ;;  %395 = vst [vmem:[#allocation2 + $0x60] sm:$0x11] %v394_v62  ;;  %300 = vst [vmem:[#allocation2 + $0x6c] sm:$0x11] %v299_v63  ;;  %v661_v6 = vshrl.u32 %v12940_v25, 16  ;;  %v664_v7 = vshll.u32 %v12940_v25, 16 }
  0x90   : > { %v641_v54 = vsel %vm12922_vm14, %v633_v38, %v640_v42  ;;  %1051 = vst [vmem:[#allocation2 + $0x28] sm:$0xf] %v1050_v49  ;;  %921 = vst [vmem:[#allocation2 + $0x48] sm:$0xf] %v920_v61  ;;  %v669_v8 = vshrl.u32 %v12942_v26, 16  ;;  %v657_v9 = vor.u32 %v655_v57, %v654_v60  ;;  %v12991_v11 = vrot.slane %v654_v60, 4 }
  0x91   : > { %1052 = vst [vmem:[#allocation2 + $0x34] sm:$0xf] %v641_v54  ;;  %922 = vst [vmem:[#allocation2 + $0x54] sm:$0xf] %v641_v54  ;;  %v672_v12 = vshll.u32 %v12942_v26, 16  ;;  %v400_v14 = vsel %vm12897_vm11, 0, %v399_v53 }
  0x92   : > { %1157 = vst [vmem:[#allocation2 + $0x14] sm:$0xf] %v641_v54  ;;  %1058 = vst [vmem:[#allocation2 + $0x4c] sm:$0xf] %v1057_v4  ;;  %v1298_v15 = vld [vmem:[#allocation2] sm:$0xff]  ;;  %v1300_v17 = vld [vmem:[#allocation2 + $0xc] sm:$0xff]  ;;  %v658_v33 = vsel %vm12922_vm14, %v650_v50, %v657_v9  ;;  %v1166_v40 = vsel %vm12866_vm6, %v12991_v11, %v1165_v5 }
  0x93   : > { %v12996_v18 = vrot.slane %v661_v6, 7  ;;  %v12998_v19 = vrot.slane %v669_v8, 7  ;;  %401 = vst [vmem:[#allocation2 + $0x84] sm:$0x11] %v400_v14  ;;  %v305_v20 = vsel %vm12889_vm10, 0, %v304_v1  ;;  %v10058_v22 = vcombine.high %v1298_v15, %v1300_v17  ;;  %v12258_v34 = vld [vmem:[#allocation7 + $0x88] sm:$0xff]  }
  0x94   : > { %v2232_v23 = vld [vmem:[#allocation2 + $0x18] sm:$0x11]  ;;  %v2328_v24 = vshrl.u32 %v1298_v15, 16  ;;  %v2331_v25 = vshll.u32 %v1298_v15, 16  ;;  %v2337_v27 = vshll.u32 %v1300_v17, 16  ;;  %v2355_v29 = vshrl.u32 %v1300_v17, 16 }
  0x95   : > { %306 = vst [vmem:[#allocation2 + $0x90] sm:$0x11] %v305_v20  ;;  %v2361_v31 = vshll.u32 %v2232_v23, 16  ;;  %v10057_v32 = vcombine.low %v1298_v15, %v1300_v17  ;;  %1874 = vmatprep.mubr.bf16.mxu0 %v10058_v22  ;;  %1059 = vst [vmem:[#allocation2 + $0x58] sm:$0xf] %v658_v33  ;;  %v13010_v48 = vor.u32 %v664_v7, %v12996_v18  ;;  %v12263_v55 = vld [vmem:[#allocation7 + $0x90] sm:$0xff]  }
  0x96   : > { %v2330_v35 = vrot.slane %v2328_v24, 4  ;;  %v2333_v36 = vrot.slane %v2331_v25, 5  ;;  %v2339_v38 = vrot.slane %v2337_v27, 5  ;;  %1164 = vst [vmem:[#allocation2 + $0x38] sm:$0xf] %v658_v33  ;;  %v2357_v41 = vrot.slane %v2355_v29, 4 }
  0x97   : > { %v1302_v39 = vld [vmem:[#allocation2 + $0x24] sm:$0xff]  ;;  %929 = vst [vmem:[#allocation2 + $0x78] sm:$0xf] %v658_v33  ;;  %v2363_v42 = vrot.slane %v2361_v31, 5  ;;  %1875 = vmatmul.mubr.bf16.vlgmr.msra.gmra.mrb[0].mxu0 %v10057_v32  ;;  %v2238_v45 = vld [vmem:[#allocation2 + $0x3c] sm:$0x11] }
  0x98   : > { %v1304_v44 = vld [vmem:[#allocation2 + $0x30] sm:$0xff]  ;;  %v2376_v46 = vshrl.u32 %v1302_v39, 16  ;;  %1167 = vst [vmem:[#allocation2 + $0x44] sm:$0x1] %v1166_v40  ;;  %v2334_v49 = vor.u32 %v2333_v36, %v2330_v35  ;;  %11474 = vmatpush3.bf16.msra.mxu0 %v12910_v51  ;;  %v2379_v52 = vshll.u32 %v1302_v39, 16  ;;  %v16063_v57 = vmov 0 }
  0x99   : > { %v10061_v50 = vcombine.high %v1302_v39, %v1304_v44  ;;  %v2385_v53 = vshll.u32 %v1304_v44, 16  ;;  %v923_v54 = vld [vmem:[#allocation2 + $0x60] sm:$0x1]  ;;  %v16064_v57 = vsel %vm13015_vm2, 4294967295, %v16063_v57  ;;  %v2358_v58 = vor.u32 %v2357_v41, %v2339_v38  ;;  %v13019_v62 = vld [vmem:[#allocation2 + $0x48] sm:$0xff]  ;;  %11475 = vmatprep.subr.bf16.mxu0 %v12258_v34  ;;  %v12268_v36 = vld [vmem:[#allocation7 + $0x98] sm:$0xff]  }
  0x9a   : > { %16065 = vst [vmem:[#allocation17_spill] sm:$0xff] %v16064_v57  ;;  %v2378_v59 = vrot.slane %v2376_v46, 4  ;;  %v2403_v60 = vshrl.u32 %v1304_v44, 16  ;;  %v2409_v61 = vshll.u32 %v2238_v45, 16  ;;  %v1060_v63 = vld [vmem:[#allocation2 + $0x64] sm:$0x1]  ;;  %v10060_v4 = vcombine.low %v1302_v39, %v1304_v44 }
  0x9b   : > { %v2335_v51 = vrot.slane %v2334_v49, 4  ;;  %1882 = vmatprep.mubr.bf16.mxu0 %v10061_v50  ;;  %v2381_v1 = vrot.slane %v2379_v52, 5  ;;  %v2387_v2 = vrot.slane %v2385_v53, 5  ;;  %v2359_v5 = vrot.slane %v2358_v58, 4  ;;  %v12271_v9 = vld [vmem:[#allocation7 + $0x140] sm:$0xff]  }
  0x9c   : > { %v2405_v6 = vrot.slane %v2403_v60, 4  ;;  %v2411_v7 = vrot.slane %v2409_v61, 5  ;;  %v924_v8 = vsel %vm12866_vm6, %v12957_v43, %v923_v54  ;;  %v1061_v17 = vsel %vm12866_vm6, %v12991_v11, %v1060_v63  ;;  %11476 = vmatpush3.bf16.msra.mxu0 %v12258_v34  ;;  %v13032_v24 = vld [vmem:[#allocation2 + $0x54] sm:$0xff]  ;;  %11521 = vmatprep.subr.bf16.mxu1 %v12271_v9  ;;  %v926_v34 = vld [vmem:[#allocation2 + $0x6c] sm:$0xf]  ;;  %v12274_v63 = vld [vmem:[#allocation7 + $0xa0] sm:$0xff]  }
  0x9d   : > { %v2340_v14 = vsel %vm13015_vm2, %v2335_v51, %v2339_v38  ;;  %v2382_v15 = vor.u32 %v2381_v1, %v2378_v59  ;;  %925 = vst [vmem:[#allocation2 + $0x60] sm:$0x1] %v924_v8  ;;  %v2424_v20 = vshrl.u32 %v13019_v62, 16  ;;  %v2364_v22 = vsel %vm13015_vm2, %v2359_v5, %v2363_v42  ;;  %1062 = vst [vmem:[#allocation2 + $0x64] sm:$0x1] %v1061_v17 }
  0x9e   : > { %v2406_v23 = vor.u32 %v2405_v6, %v2387_v2  ;;  %v2427_v25 = vshll.u32 %v13019_v62, 16  ;;  %v667_v27 = vrot.slane %v12996_v18, 4  ;;  %11477 = vmatprep.subr.bf16.mxu0 %v12263_v55  ;;  %v10129_v29 = vcombine.low %v2340_v14, %v2364_v22  ;;  %v1063_v35 = vld [vmem:[#allocation2 + $0x70] sm:$0xf]  ;;  %v930_v46 = vld [vmem:[#allocation2 + $0x84] sm:$0x1] }
  0x9f   : > { %v10130_v31 = vcombine.high %v2340_v14, %v2364_v22  ;;  %v2383_v32 = vrot.slane %v2382_v15, 4  ;;  %v10064_v33 = vcombine.high %v13019_v62, %v13032_v24  ;;  %1883 = vmatmul.mubr.bf16.gmra.mrb[4].mxu0 %v10060_v4  ;;  %v2426_v39 = vrot.slane %v2424_v20, 4  ;;  %v1067_v54 = vld [vmem:[#allocation2 + $0x88] sm:$0x1]  ;;  %v310_v61 = vld [vmem:[#allocation2 + $0xb4] sm:$0x11] }
  0xa0   : > { %v2407_v38 = vrot.slane %v2406_v23, 4  ;;  %v2429_v40 = vrot.slane %v2427_v25, 5  ;;  %v2433_v41 = vshll.u32 %v13032_v24, 16  ;;  %v2451_v42 = vshrl.u32 %v13032_v24, 16  ;;  %v405_v58 = vld [vmem:[#allocation2 + $0xa8] sm:$0x11]  ;;  %11478 = vmatpush3.bf16.msra.mxu0 %v12263_v55 }
  0xa1   : > { %3544 = vmatprep.mubr.bf16.mxu1 %v10130_v31  ;;  %v13041_v18 = vsel %vm13015_vm2, %v2383_v32, %v2387_v2  ;;  %1890 = vmatprep.mubr.bf16.mxu0 %v10064_v33  ;;  %v10063_v44 = vcombine.low %v13019_v62, %v13032_v24  ;;  %v674_v45 = vor.u32 %v672_v12, %v12998_v19  ;;  %v13054_v53 = vrot.slane %v12998_v19, 4  ;;  %v494_v62 = vld [vmem:[%s12853_s6 + $0x50] sm:$0xff]  ;;  %v12277_v4 = vld [vmem:[#allocation7 + $0x148] sm:$0xff]   ;;  %v495_v20 = vld [vmem:[%s12853_s6 + $0x58] sm:$0xff] }
  0xa2   : > { %3545 = vmatmul.mubr.bf16.vlgmr.msra.gmra.mrb[0].mxu1 %v10129_v29  ;;  %v13051_v49 = vsel %vm13015_vm2, %v2407_v38, %v2411_v7  ;;  %v2430_v50 = vor.u32 %v2429_v40, %v2426_v39  ;;  %v2435_v52 = vrot.slane %v2433_v41, 5  ;;  %v2453_v12 = vrot.slane %v2451_v42, 4  ;;  %11479 = vmatprep.subr.bf16.mxu0 %v12268_v36  ;;  %v933_v2 = vld [vmem:[#allocation2 + $0x90] sm:$0xf]  ;;  %v1070_v25 = vld [vmem:[#allocation2 + $0x94] sm:$0xf] }
  0xa3   : > { %v10133_v59 = vcombine.high %v13041_v18, %v13051_v49  ;;  %v10132_v26 = vcombine.low %v13041_v18, %v13051_v49  ;;  %v675_v60 = vsel %vm12922_vm14, %v667_v27, %v674_v45  ;;  %11522 = vmatpush3.bf16.msra.mxu1 %v12271_v9  ;;  %v927_v55 = vsel %vm12934_vm15, %v12974_v56, %v926_v34  ;;  %v411_v22 = vld [vmem:[#allocation2 + $0xcc] sm:$0x11] }
  0xa4   : > { %v2431_v19 = vrot.slane %v2430_v50, 4  ;;  %v1064_v51 = vsel %vm12934_vm15, %v13010_v48, %v1063_v35  ;;  %1066 = vst [vmem:[#allocation2 + $0x7c] sm:$0xf] %v675_v60  ;;  %936 = vst [vmem:[#allocation2 + $0x9c] sm:$0xf] %v675_v60  ;;  %v931_v1 = vsel %vm12866_vm6, %v12991_v11, %v930_v46  ;;  %v2454_v6 = vor.u32 %v2453_v12, %v2435_v52  ;;  %v12280_v33 = vld [vmem:[#allocation7 + $0xa8] sm:$0xff]  }
  0xa5   : > { %1171 = vst [vmem:[#allocation2 + $0x5c] sm:$0xf] %v675_v60  ;;  %3552 = vmatprep.mubr.bf16.mxu1 %v10133_v59  ;;  %v2244_v5 = vld [vmem:[#allocation2 + $0x60] sm:$0x11]  ;;  %928 = vst [vmem:[#allocation2 + $0x6c] sm:$0xf] %v927_v55  ;;  %v1068_v7 = vsel %vm12866_vm6, %v13054_v53, %v1067_v54  ;;  %11480 = vmatpush3.bf16.msra.mxu0 %v12268_v36  ;;  %v10602_v32 = vpack.c.bf16 %v494_v62, %v494_v62 }
  0xa6   : > { %1065 = vst [vmem:[#allocation2 + $0x70] sm:$0xf] %v1064_v51  ;;  %932 = vst [vmem:[#allocation2 + $0x84] sm:$0x1] %v931_v1  ;;  %v678_v8 = vshrl.u32 %v12959_v47, 16  ;;  %v681_v9 = vshll.u32 %v12959_v47, 16  ;;  %v13079_v11 = vsel %vm13015_vm2, %v2431_v19, %v2435_v52  ;;  %11523 = vmatprep.subr.bf16.mxu1 %v12277_v4  ;;  %v934_v47 = vsel %vm12934_vm15, %v13010_v48, %v933_v2 }
  0xa7   : > { %v2457_v14 = vshll.u32 %v2244_v5, 16  ;;  %1069 = vst [vmem:[#allocation2 + $0x88] sm:$0x1] %v1068_v7  ;;  %v686_v15 = vshrl.u32 %v13002_v21, 16  ;;  %v689_v17 = vshll.u32 %v13002_v21, 16  ;;  %v2455_v23 = vrot.slane %v2454_v6, 4  ;;  %11481 = vmatprep.subr.bf16.mxu0 %v12274_v63  ;;  %11524 = vmatpush3.bf16.msra.mxu1 %v12277_v4 }
  0xa8   : > { %v680_v24 = vrot.slane %v678_v8, 7  ;;  %v406_v27 = vsel %vm12897_vm11, 0, %v405_v58  ;;  %1891 = vmatmul.mubr.bf16.gmra.mrb[8].mxu0 %v10063_v44  ;;  %935 = vst [vmem:[#allocation2 + $0x90] sm:$0xf] %v934_v47  ;;  %v311_v21 = vsel %vm12889_vm10, 0, %v310_v61  ;;  %v13093_v36 = vpack.c.bf16 %v495_v20, %v495_v20  ;;  %v497_v12 = vld [vmem:[%s12853_s6 + $0x68] sm:$0xff] }
  0xa9   : > { %v2459_v29 = vrot.slane %v2457_v14, 5  ;;  %v688_v31 = vrot.slane %v686_v15, 7  ;;  %407 = vst [vmem:[#allocation2 + $0xa8] sm:$0x11] %v406_v27  ;;  %312 = vst [vmem:[#allocation2 + $0xb4] sm:$0x11] %v311_v21  ;;  %11482 = vmatpush3.bf16.msra.mxu0 %v12274_v63  ;;  %v13117_v14 = vpack.c.bf16 %v497_v12, %v497_v12 }
  0xaa   : > { %v13091_v34 = vor.u32 %v681_v9, %v680_v24  ;;  %v684_v35 = vrot.slane %v680_v24, 4  ;;  %v412_v38 = vsel %vm12897_vm11, 0, %v411_v22  ;;  %3553 = vmatmul.mubr.bf16.gmra.mrb[4].mxu1 %v10132_v26  ;;  %v695_v18 = vshrl.u32 %v10602_v32, 16  ;;  %11483 = vmatprep.subr.bf16.mxu0 %v12280_v33  ;;  %v496_v26 = vld [vmem:[%s12853_s6 + $0x60] sm:$0xff]  ;;  %v316_v4 = vld [vmem:[#allocation2 + $0xd8] sm:$0x11] }
  0xab   : > { %v2460_v39 = vsel %vm13015_vm2, %v2455_v23, %v2459_v29  ;;  %v691_v40 = vor.u32 %v689_v17, %v688_v31  ;;  %v13099_v41 = vrot.slane %v688_v31, 4  ;;  %413 = vst [vmem:[#allocation2 + $0xcc] sm:$0x11] %v412_v38  ;;  %v1312_v45 = vld [vmem:[#allocation2 + $0x78] sm:$0xff]  ;;  %v698_v49 = vshll.u32 %v10602_v32, 16  ;;  %v12283_v5 = vld [vmem:[#allocation7 + $0x150] sm:$0xff]  }
  0xac   : > { %v10136_v42 = vcombine.high %v13079_v11, %v2460_v39  ;;  %v10135_v44 = vcombine.low %v13079_v11, %v2460_v39  ;;  %v1071_v46 = vsel %vm12934_vm15, %v13091_v34, %v1070_v25  ;;  %v2481_v52 = vshll.u32 %v1312_v45, 16  ;;  %11525 = vmatprep.subr.bf16.mxu1 %v12283_v5  ;;  %v12286_v38 = vld [vmem:[#allocation7 + $0xb0] sm:$0xff]  }
  0xad   : > { %v1310_v50 = vld [vmem:[#allocation2 + $0x6c] sm:$0xff]  ;;  %v2499_v54 = vshrl.u32 %v1312_v45, 16  ;;  %v692_v58 = vsel %vm12922_vm14, %v684_v35, %v691_v40  ;;  %1072 = vst [vmem:[#allocation2 + $0x94] sm:$0xf] %v1071_v46  ;;  %v13108_v59 = vrot.slane %v695_v18, 7  ;;  %11484 = vmatpush3.bf16.msra.mxu0 %v12280_v33  ;;  %v13115_v11 = vpack.c.bf16 %v496_v26, %v496_v26  ;;  %11526 = vmatpush3.bf16.msra.mxu1 %v12283_v5  ;;  %v12289_v5 = vld [vmem:[#allocation7 + $0x158] sm:$0xff]  }
  0xae   : > { %3560 = vmatprep.mubr.bf16.mxu1 %v10136_v42  ;;  %v10067_v60 = vcombine.high %v1310_v50, %v1312_v45  ;;  %v2250_v61 = vld [vmem:[#allocation2 + $0x84] sm:$0x11]  ;;  %v2472_v62 = vshrl.u32 %v1310_v50, 16  ;;  %v2475_v63 = vshll.u32 %v1310_v50, 16  ;;  %v10066_v19 = vcombine.low %v1310_v50, %v1312_v45  ;;  %1073 = vst [vmem:[#allocation2 + $0xa0] sm:$0xf] %v692_v58  ;;  %11485 = vmatprep.subr.bf16.mxu0 %v12286_v38 }
  0xaf   : > { %943 = vst [vmem:[#allocation2 + $0xc0] sm:$0xf] %v692_v58  ;;  %1178 = vst [vmem:[#allocation2 + $0x80] sm:$0xf] %v692_v58  ;;  %v2483_v55 = vrot.slane %v2481_v52, 5  ;;  %v2501_v51 = vrot.slane %v2499_v54, 4  ;;  %v13113_v2 = vor.u32 %v698_v49, %v13108_v59  ;;  %11527 = vmatprep.subr.bf16.mxu1 %v12289_v5 }
  0xb0   : > { %v2505_v1 = vshll.u32 %v2250_v61, 16  ;;  %1898 = vmatprep.mubr.bf16.mxu0 %v10067_v60  ;;  %v2474_v6 = vrot.slane %v2472_v62, 4  ;;  %v2477_v7 = vrot.slane %v2475_v63, 5  ;;  %v937_v8 = vld [vmem:[#allocation2 + $0xa8] sm:$0x1]  ;;  %v701_v25 = vrot.slane %v13108_v59, 4 }
  0xb1   : > { %v1074_v9 = vld [vmem:[#allocation2 + $0xac] sm:$0x1]  ;;  %v2502_v15 = vor.u32 %v2501_v51, %v2483_v55  ;;  %1899 = vmatmul.mubr.bf16.gmra.mrb[12].mxu0 %v10066_v19  ;;  %v938_v20 = vsel %vm12866_vm6, %v13054_v53, %v937_v8  ;;  %v940_v23 = vld [vmem:[#allocation2 + $0xb4] sm:$0xf]  ;;  %v1077_v24 = vld [vmem:[#allocation2 + $0xb8] sm:$0xf]  ;;  %11528 = vmatpush3.bf16.msra.mxu1 %v12289_v5 }
  0xb2   : > { %v2507_v17 = vrot.slane %v2505_v1, 5  ;;  %v1075_v22 = vsel %vm12866_vm6, %v13099_v41, %v1074_v9  ;;  %v2478_v47 = vor.u32 %v2477_v7, %v2474_v6  ;;  %939 = vst [vmem:[#allocation2 + $0xa8] sm:$0x1] %v938_v20  ;;  %v703_v27 = vshrl.u32 %v13093_v36, 16  ;;  %v944_v31 = vld [vmem:[#allocation2 + $0xcc] sm:$0x1]  ;;  %3561 = vmatmul.mubr.bf16.gmra.mrb[8].mxu1 %v10135_v44  ;;  %11486 = vmatpush3.bf16.msra.mxu0 %v12286_v38 }
  0xb3   : > { %1076 = vst [vmem:[#allocation2 + $0xac] sm:$0x1] %v1075_v22  ;;  %v706_v29 = vshll.u32 %v13093_v36, 16  ;;  %v2503_v21 = vrot.slane %v2502_v15, 4  ;;  %v941_v32 = vsel %vm12934_vm15, %v13091_v34, %v940_v23  ;;  %v1078_v33 = vsel %vm12934_vm15, %v13113_v2, %v1077_v24  ;;  %v1081_v1 = vld [vmem:[#allocation2 + $0xd0] sm:$0x1] }
  0xb4   : > { %v945_v35 = vsel %vm12866_vm6, %v13099_v41, %v944_v31  ;;  %v2479_v39 = vrot.slane %v2478_v47, 4  ;;  %v1314_v40 = vld [vmem:[#allocation2 + $0x90] sm:$0xff]  ;;  %v705_v36 = vrot.slane %v703_v27, 7  ;;  %942 = vst [vmem:[#allocation2 + $0xb4] sm:$0xf] %v941_v32  ;;  %v317_v18 = vsel %vm12889_vm10, 0, %v316_v4 }
  0xb5   : > { %1079 = vst [vmem:[#allocation2 + $0xb8] sm:$0xf] %v1078_v33  ;;  %946 = vst [vmem:[#allocation2 + $0xcc] sm:$0x1] %v945_v35  ;;  %v712_v42 = vshrl.u32 %v13115_v11, 16  ;;  %v2508_v44 = vsel %vm13015_vm2, %v2503_v21, %v2507_v17  ;;  %v1316_v45 = vld [vmem:[#allocation2 + $0x9c] sm:$0xff] }
  0xb6   : > { %v2520_v46 = vshrl.u32 %v1314_v40, 16  ;;  %v2523_v49 = vshll.u32 %v1314_v40, 16  ;;  %318 = vst [vmem:[#allocation2 + $0xd8] sm:$0x11] %v317_v18  ;;  %v715_v50 = vshll.u32 %v13115_v11, 16  ;;  %v2484_v52 = vsel %vm13015_vm2, %v2479_v39, %v2483_v55  ;;  %v499_v31 = vld [vmem:[%s12853_s6 + $0x78] sm:$0xff] }
  0xb7   : > { %v10070_v54 = vcombine.high %v1314_v40, %v1316_v45  ;;  %v2529_v58 = vshll.u32 %v1316_v45, 16  ;;  %v2547_v59 = vshrl.u32 %v1316_v45, 16  ;;  %v10139_v26 = vcombine.high %v2484_v52, %v2508_v44  ;;  %v417_v4 = vld [vmem:[#allocation2 + $0xf0] sm:$0x11]  ;;  %v500_v39 = vld [vmem:[%s12853_s6 + $0x80] sm:$0xff]  ;;  %v501_v5 = vld [vmem:[%s12853_s6 + $0x88] sm:$0xff] }
  0xb8   : > { %v10138_v12 = vcombine.low %v2484_v52, %v2508_v44  ;;  %v2522_v60 = vrot.slane %v2520_v46, 4  ;;  %v2525_v61 = vrot.slane %v2523_v49, 5  ;;  %v10069_v19 = vcombine.low %v1314_v40, %v1316_v45  ;;  %v423_v38 = vld [vmem:[#allocation2 + $0x114] sm:$0x11]  ;;  %v328_v45 = vld [vmem:[#allocation2 + $0x120] sm:$0x11] }
  0xb9   : > { %1906 = vmatprep.mubr.bf16.mxu0 %v10070_v54  ;;  %v2531_v62 = vrot.slane %v2529_v58, 5  ;;  %v2549_v63 = vrot.slane %v2547_v59, 4  ;;  %v708_v51 = vor.u32 %v706_v29, %v705_v36  ;;  %3568 = vmatprep.mubr.bf16.mxu1 %v10139_v26  ;;  %v13145_v55 = vrot.slane %v705_v36, 4  ;;  %v322_v29 = vld [vmem:[#allocation2 + $0xfc] sm:$0x11] }
  0xba   : > { %v2256_v6 = vld [vmem:[#allocation2 + $0xa8] sm:$0x11]  ;;  %v2526_v7 = vor.u32 %v2525_v61, %v2522_v60  ;;  %v714_v8 = vrot.slane %v712_v42, 7  ;;  %v720_v9 = vshrl.u32 %v13117_v14, 16  ;;  %1907 = vmatmul.mubr.bf16.gmra.mrb[16].mxu0 %v10069_v19  ;;  %v723_v20 = vshll.u32 %v13117_v14, 16  ;;  %3569 = vmatmul.mubr.bf16.gmra.mrb[12].mxu1 %v10138_v12  ;;  %v12292_v12 = vld [vmem:[#allocation7 + $0xb8] sm:$0xff]  }
  0xbb   : > { %v2550_v11 = vor.u32 %v2549_v63, %v2531_v62  ;;  %v2553_v15 = vshll.u32 %v2256_v6, 16  ;;  %v709_v17 = vsel %vm12922_vm14, %v701_v25, %v708_v51  ;;  %v1082_v24 = vsel %vm12866_vm6, %v13145_v55, %v1081_v1  ;;  %v498_v25 = vld [vmem:[%s12853_s6 + $0x70] sm:$0xff]  ;;  %v12293_v19 = vld [vmem:[#allocation7 + $0x160] sm:$0xff]   ;;  %11487 = vmatprep.subr.bf16.mxu0 %v12292_v12 }
  0xbc   : > { %v2527_v22 = vrot.slane %v2526_v7, 4  ;;  %1080 = vst [vmem:[#allocation2 + $0xc4] sm:$0xf] %v709_v17  ;;  %v13151_v23 = vld [vmem:[#allocation2 + $0xb4] sm:$0xff]  ;;  %950 = vst [vmem:[#allocation2 + $0xe4] sm:$0xf] %v709_v17  ;;  %v13156_v47 = vor.u32 %v715_v50, %v714_v8  ;;  %v10607_v63 = vpack.c.bf16 %v499_v31, %v499_v31  ;;  %v13186_v6 = vpack.c.bf16 %v500_v39, %v500_v39 }
  0xbd   : > { %1185 = vst [vmem:[#allocation2 + $0xa4] sm:$0xf] %v709_v17  ;;  %v718_v27 = vrot.slane %v714_v8, 4  ;;  %v2551_v14 = vrot.slane %v2550_v11, 4  ;;  %v2555_v21 = vrot.slane %v2553_v15, 5  ;;  %v2568_v32 = vshrl.u32 %v13151_v23, 16  ;;  %11529 = vmatprep.subr.bf16.mxu1 %v12293_v19  ;;  %11488 = vmatpush3.bf16.msra.mxu0 %v12292_v12 }
  0xbe   : > { %1083 = vst [vmem:[#allocation2 + $0xd0] sm:$0x1] %v1082_v24  ;;  %v2571_v33 = vshll.u32 %v13151_v23, 16  ;;  %v947_v35 = vld [vmem:[#allocation2 + $0xd8] sm:$0xf]  ;;  %v2532_v40 = vsel %vm13015_vm2, %v2527_v22, %v2531_v62  ;;  %v722_v36 = vrot.slane %v720_v9, 7  ;;  %v10606_v62 = vpack.c.bf16 %v498_v25, %v498_v25  ;;  %11530 = vmatpush3.bf16.msra.mxu1 %v12293_v19 }
  0xbf   : > { %v948_v18 = vsel %vm12934_vm15, %v13113_v2, %v947_v35  ;;  %v1084_v42 = vld [vmem:[#allocation2 + $0xdc] sm:$0xf]  ;;  %v418_v44 = vsel %vm12897_vm11, 0, %v417_v4  ;;  %v2556_v46 = vsel %vm13015_vm2, %v2551_v14, %v2555_v21  ;;  %v2570_v49 = vrot.slane %v2568_v32, 4  ;;  %v12294_v7 = vld [vmem:[#allocation7 + $0x168] sm:$0xff]  }
  0xc0   : > { %v2573_v50 = vrot.slane %v2571_v33, 5  ;;  %949 = vst [vmem:[#allocation2 + $0xd8] sm:$0xf] %v948_v18  ;;  %v1085_v52 = vsel %vm12934_vm15, %v13156_v47, %v1084_v42  ;;  %419 = vst [vmem:[#allocation2 + $0xf0] sm:$0x11] %v418_v44  ;;  %v10142_v54 = vcombine.high %v2532_v40, %v2556_v46  ;;  %v10141_v58 = vcombine.low %v2532_v40, %v2556_v46  ;;  %v503_v31 = vld [vmem:[%s12853_s6 + $0x98] sm:$0xff] }
  0xc1   : > { %v725_v59 = vor.u32 %v723_v20, %v722_v36  ;;  %v13175_v26 = vrot.slane %v722_v36, 4  ;;  %1086 = vst [vmem:[#allocation2 + $0xdc] sm:$0xf] %v1085_v52  ;;  %v323_v61 = vsel %vm12889_vm10, 0, %v322_v29  ;;  %v424_v1 = vsel %vm12897_vm11, 0, %v423_v38  ;;  %v502_v20 = vld [vmem:[%s12853_s6 + $0x90] sm:$0xff]  ;;  %11531 = vmatprep.subr.bf16.mxu1 %v12294_v7 }
  0xc2   : > { %v2574_v60 = vor.u32 %v2573_v50, %v2570_v49  ;;  %3576 = vmatprep.mubr.bf16.mxu1 %v10142_v54  ;;  %324 = vst [vmem:[#allocation2 + $0xfc] sm:$0x11] %v323_v61  ;;  %v329_v4 = vsel %vm12889_vm10, 0, %v328_v45  ;;  %v729_v11 = vshrl.u32 %v10606_v62, 16  ;;  %v732_v15 = vshll.u32 %v10606_v62, 16  ;;  %v12297_v49 = vld [vmem:[#allocation7 + $0x170] sm:$0xff]   ;;  %11532 = vmatpush3.bf16.msra.mxu1 %v12294_v7 }
  0xc3   : > { %v726_v51 = vsel %vm12922_vm14, %v718_v27, %v725_v59  ;;  %v1320_v8 = vld [vmem:[#allocation2 + $0xc0] sm:$0xff]  ;;  %v737_v17 = vshrl.u32 %v10607_v63, 16  ;;  %425 = vst [vmem:[#allocation2 + $0x114] sm:$0x11] %v424_v1  ;;  %330 = vst [vmem:[#allocation2 + $0x120] sm:$0x11] %v329_v4  ;;  %3577 = vmatmul.mubr.bf16.gmra.mrb[16].mxu1 %v10141_v58  ;;  %v13192_v36 = vpack.c.bf16 %v501_v5, %v501_v5  ;;  %11533 = vmatprep.subr.bf16.mxu1 %v12297_v49 }
  0xc4   : > { %v2575_v9 = vrot.slane %v2574_v60, 4  ;;  %1087 = vst [vmem:[#allocation2 + $0xe8] sm:$0xf] %v726_v51  ;;  %957 = vst [vmem:[#allocation2 + $0x108] sm:$0xf] %v726_v51  ;;  %v10073_v22 = vcombine.high %v13151_v23, %v1320_v8  ;;  %v2577_v27 = vshll.u32 %v1320_v8, 16  ;;  %v10072_v25 = vcombine.low %v13151_v23, %v1320_v8 }
  0xc5   : > { %1192 = vst [vmem:[#allocation2 + $0xc8] sm:$0xf] %v726_v51  ;;  %v2262_v24 = vld [vmem:[#allocation2 + $0xcc] sm:$0x11]  ;;  %v2595_v29 = vshrl.u32 %v1320_v8, 16  ;;  %v731_v21 = vrot.slane %v729_v11, 7  ;;  %v13194_v18 = vpack.c.bf16 %v502_v20, %v502_v20 }
  0xc6   : > { %v2601_v14 = vshll.u32 %v2262_v24, 16  ;;  %v739_v32 = vrot.slane %v737_v17, 7  ;;  %v740_v33 = vshll.u32 %v10607_v63, 16  ;;  %1914 = vmatprep.mubr.bf16.mxu0 %v10073_v22  ;;  %v2579_v35 = vrot.slane %v2577_v27, 5  ;;  %11534 = vmatpush3.bf16.msra.mxu1 %v12297_v49 }
  0xc7   : > { %v2597_v38 = vrot.slane %v2595_v29, 4  ;;  %v951_v39 = vld [vmem:[#allocation2 + $0xf0] sm:$0x1]  ;;  %v1088_v40 = vld [vmem:[#allocation2 + $0xf4] sm:$0x1]  ;;  %1915 = vmatmul.mubr.bf16.gmra.mrb[20].mxu0 %v10072_v25  ;;  %v13202_v46 = vor.u32 %v732_v15, %v731_v21  ;;  %v735_v59 = vrot.slane %v731_v21, 4  ;;  %v13208_v63 = vpack.c.bf16 %v503_v31, %v503_v31 }
  0xc8   : > { %v2603_v42 = vrot.slane %v2601_v14, 5  ;;  %v1322_v44 = vld [vmem:[#allocation2 + $0xd8] sm:$0xff]  ;;  %v952_v23 = vsel %vm12866_vm6, %v13145_v55, %v951_v39  ;;  %v1089_v45 = vsel %vm12866_vm6, %v13175_v26, %v1088_v40  ;;  %v2580_v50 = vsel %vm13015_vm2, %v2575_v9, %v2579_v35 }
  0xc9   : > { %v2598_v52 = vor.u32 %v2597_v38, %v2579_v35  ;;  %953 = vst [vmem:[#allocation2 + $0xf0] sm:$0x1] %v952_v23  ;;  %1090 = vst [vmem:[#allocation2 + $0xf4] sm:$0x1] %v1089_v45  ;;  %v2616_v54 = vshrl.u32 %v1322_v44, 16  ;;  %v2619_v58 = vshll.u32 %v1322_v44, 16  ;;  %v742_v12 = vor.u32 %v740_v33, %v739_v32 }
  0xca   : > { %v13206_v60 = vrot.slane %v739_v32, 4  ;;  %v954_v61 = vld [vmem:[#allocation2 + $0xfc] sm:$0xf]  ;;  %v1091_v62 = vld [vmem:[#allocation2 + $0x100] sm:$0xf]  ;;  %v746_v39 = vshrl.u32 %v13186_v6, 16 }
  0xcb   : > { %v2599_v19 = vrot.slane %v2598_v52, 4  ;;  %v1324_v51 = vld [vmem:[#allocation2 + $0xe4] sm:$0xff]  ;;  %v2618_v1 = vrot.slane %v2616_v54, 4  ;;  %v2621_v4 = vrot.slane %v2619_v58, 5  ;;  %v955_v5 = vsel %vm12934_vm15, %v13156_v47, %v954_v61  ;;  %v958_v17 = vld [vmem:[#allocation2 + $0x114] sm:$0x1] }
  0xcc   : > { %v10076_v8 = vcombine.high %v1322_v44, %v1324_v51  ;;  %v2625_v9 = vshll.u32 %v1324_v51, 16  ;;  %v2643_v11 = vshrl.u32 %v1324_v51, 16  ;;  %v10075_v15 = vcombine.low %v1322_v44, %v1324_v51  ;;  %956 = vst [vmem:[#allocation2 + $0xfc] sm:$0xf] %v955_v5  ;;  %v1095_v20 = vld [vmem:[#allocation2 + $0x118] sm:$0x1] }
  0xcd   : > { %v2604_v22 = vsel %vm13015_vm2, %v2599_v19, %v2603_v42  ;;  %v2622_v7 = vor.u32 %v2621_v4, %v2618_v1  ;;  %v743_v24 = vsel %vm12922_vm14, %v735_v59, %v742_v12  ;;  %v1092_v27 = vsel %vm12934_vm15, %v13202_v46, %v1091_v62  ;;  %v12298_v29 = vld [vmem:[#allocation7 + $0x178] sm:$0xff]   ;;  %v961_v32 = vld [vmem:[#allocation2 + $0x120] sm:$0xf]  ;;  %v334_v42 = vld [vmem:[#allocation2 + $0x144] sm:$0x11] }
  0xce   : > { %v10145_v25 = vcombine.high %v2580_v50, %v2604_v22  ;;  %v10144_v31 = vcombine.low %v2580_v50, %v2604_v22  ;;  %1922 = vmatprep.mubr.bf16.mxu0 %v10076_v8  ;;  %v2627_v14 = vrot.slane %v2625_v9, 5  ;;  %v2645_v21 = vrot.slane %v2643_v11, 4  ;;  %1093 = vst [vmem:[#allocation2 + $0x100] sm:$0xf] %v1092_v27  ;;  %1094 = vst [vmem:[#allocation2 + $0x10c] sm:$0xf] %v743_v24 }
  0xcf   : > { %964 = vst [vmem:[#allocation2 + $0x12c] sm:$0xf] %v743_v24  ;;  %1199 = vst [vmem:[#allocation2 + $0xec] sm:$0xf] %v743_v24  ;;  %v2623_v33 = vrot.slane %v2622_v7, 4  ;;  %v959_v35 = vsel %vm12866_vm6, %v13175_v26, %v958_v17  ;;  %v1096_v38 = vsel %vm12866_vm6, %v13206_v60, %v1095_v20  ;;  %11535 = vmatprep.subr.bf16.mxu1 %v12298_v29  ;;  %1923 = vmatmul.mubr.bf16.gmra.mrb[24].mxu0 %v10075_v15  ;;  %v12301_v52 = vld [vmem:[#allocation7 + $0x1c0] sm:$0xff]  }
  0xd0   : > { %v429_v40 = vld [vmem:[#allocation2 + $0x138] sm:$0x11]  ;;  %3584 = vmatprep.mubr.bf16.mxu1 %v10145_v25  ;;  %v2268_v44 = vld [vmem:[#allocation2 + $0xf0] sm:$0x11]  ;;  %v2646_v23 = vor.u32 %v2645_v21, %v2627_v14  ;;  %960 = vst [vmem:[#allocation2 + $0x114] sm:$0x1] %v959_v35  ;;  %v962_v12 = vsel %vm12934_vm15, %v13202_v46, %v961_v32  ;;  %11536 = vmatpush3.bf16.msra.mxu1 %v12298_v29 }
  0xd1   : > { %1097 = vst [vmem:[#allocation2 + $0x118] sm:$0x1] %v1096_v38  ;;  %v749_v45 = vshll.u32 %v13186_v6, 16  ;;  %v754_v49 = vshrl.u32 %v13192_v36, 16  ;;  %v757_v50 = vshll.u32 %v13192_v36, 16  ;;  %3585 = vmatmul.mubr.bf16.gmra.mrb[20].mxu1 %v10144_v31  ;;  %v2628_v54 = vsel %vm13015_vm2, %v2623_v33, %v2627_v14  ;;  %10929 = vmatprep.subr.bf16.mxu0 %v12301_v52 }
  0xd2   : > { %v2649_v58 = vshll.u32 %v2268_v44, 16  ;;  %v748_v59 = vrot.slane %v746_v39, 7  ;;  %v2647_v61 = vrot.slane %v2646_v23, 4  ;;  %963 = vst [vmem:[#allocation2 + $0x120] sm:$0xf] %v962_v12  ;;  %v430_v6 = vsel %vm12897_vm11, 0, %v429_v40 }
  0xd3   : > { %v756_v62 = vrot.slane %v754_v49, 7  ;;  %v1098_v19 = vld [vmem:[#allocation2 + $0x124] sm:$0xf]  ;;  %v335_v36 = vsel %vm12889_vm10, 0, %v334_v42  ;;  %431 = vst [vmem:[#allocation2 + $0x138] sm:$0x11] %v430_v6 }
  0xd4   : > { %v2651_v51 = vrot.slane %v2649_v58, 5  ;;  %v13239_v1 = vor.u32 %v749_v45, %v748_v59  ;;  %v752_v4 = vrot.slane %v748_v59, 4  ;;  %336 = vst [vmem:[#allocation2 + $0x144] sm:$0x11] %v335_v36  ;;  %v763_v5 = vshrl.u32 %v13194_v18, 16  ;;  %v505_v39 = vld [vmem:[%s12853_s6 + $0xa8] sm:$0xff] }
  0xd5   : > { %v759_v8 = vor.u32 %v757_v50, %v756_v62  ;;  %v13242_v9 = vrot.slane %v756_v62, 4  ;;  %v766_v11 = vshll.u32 %v13194_v18, 16  ;;  %v771_v15 = vshrl.u32 %v13208_v63, 16  ;;  %v1326_v20 = vld [vmem:[#allocation2 + $0xfc] sm:$0xff]  ;;  %v1328_v22 = vld [vmem:[#allocation2 + $0x108] sm:$0xff] }
  0xd6   : > { %v2652_v17 = vsel %vm13015_vm2, %v2647_v61, %v2651_v51  ;;  %v1099_v7 = vsel %vm12934_vm15, %v13239_v1, %v1098_v19  ;;  %v765_v24 = vrot.slane %v763_v5, 7  ;;  %v774_v27 = vshll.u32 %v13208_v63, 16  ;;  %v504_v18 = vld [vmem:[%s12853_s6 + $0xa0] sm:$0xff] }
  0xd7   : > { %v10148_v29 = vcombine.high %v2628_v54, %v2652_v17  ;;  %v10147_v25 = vcombine.low %v2628_v54, %v2652_v17  ;;  %v10079_v31 = vcombine.high %v1326_v20, %v1328_v22  ;;  %v2664_v14 = vshrl.u32 %v1326_v20, 16  ;;  %1100 = vst [vmem:[#allocation2 + $0x124] sm:$0xf] %v1099_v7  ;;  %v435_v23 = vld [vmem:[#allocation2 + $0x15c] sm:$0x11] }
  0xd8   : > { %v2274_v21 = vld [vmem:[#allocation2 + $0x114] sm:$0x11]  ;;  %v2667_v32 = vshll.u32 %v1326_v20, 16  ;;  %v2673_v33 = vshll.u32 %v1328_v22, 16  ;;  %v2691_v35 = vshrl.u32 %v1328_v22, 16  ;;  %v10078_v38 = vcombine.low %v1326_v20, %v1328_v22 }
  0xd9   : > { %3592 = vmatprep.mubr.bf16.mxu1 %v10148_v29  ;;  %1930 = vmatprep.mubr.bf16.mxu0 %v10079_v31  ;;  %v2666_v40 = vrot.slane %v2664_v14, 4  ;;  %v2697_v42 = vshll.u32 %v2274_v21, 16  ;;  %v760_v44 = vsel %vm12922_vm14, %v752_v4, %v759_v8  ;;  %v13256_v63 = vor.u32 %v766_v11, %v765_v24  ;;  %v340_v54 = vld [vmem:[#allocation2 + $0x168] sm:$0x11]  ;;  %v441_v21 = vld [vmem:[#allocation2 + $0x180] sm:$0x11] }
  0xda   : > { %3593 = vmatmul.mubr.bf16.gmra.mrb[24].mxu1 %v10147_v25  ;;  %v2669_v45 = vrot.slane %v2667_v32, 5  ;;  %v2675_v49 = vrot.slane %v2673_v33, 5  ;;  %v2693_v50 = vrot.slane %v2691_v35, 4  ;;  %1931 = vmatmul.mubr.bf16.gmra.mrb[28].mxu0 %v10078_v38  ;;  %1101 = vst [vmem:[#allocation2 + $0x130] sm:$0xf] %v760_v44  ;;  %v769_v52 = vrot.slane %v765_v24, 4 }
  0xdb   : > { %971 = vst [vmem:[#allocation2 + $0x150] sm:$0xf] %v760_v44  ;;  %1206 = vst [vmem:[#allocation2 + $0x110] sm:$0xf] %v760_v44  ;;  %v2699_v58 = vrot.slane %v2697_v42, 5  ;;  %v773_v61 = vrot.slane %v771_v15, 7  ;;  %v10612_v62 = vpack.c.bf16 %v504_v18, %v504_v18  ;;  %v13258_v19 = vpack.c.bf16 %v505_v39, %v505_v39 }
  0xdc   : > { %v965_v59 = vld [vmem:[#allocation2 + $0x138] sm:$0x1]  ;;  %v1102_v12 = vld [vmem:[#allocation2 + $0x13c] sm:$0x1]  ;;  %v2670_v6 = vor.u32 %v2669_v45, %v2666_v40  ;;  %v2694_v36 = vor.u32 %v2693_v50, %v2675_v49  ;;  %v968_v5 = vld [vmem:[#allocation2 + $0x144] sm:$0xf] }
  0xdd   : > { %v966_v51 = vsel %vm12866_vm6, %v13206_v60, %v965_v59  ;;  %v1103_v4 = vsel %vm12866_vm6, %v13242_v9, %v1102_v12  ;;  %v1105_v8 = vld [vmem:[#allocation2 + $0x148] sm:$0xf]  ;;  %v776_v11 = vor.u32 %v774_v27, %v773_v61  ;;  %v13266_v17 = vrot.slane %v773_v61, 4  ;;  %v346_v32 = vld [vmem:[#allocation2 + $0x18c] sm:$0x11] }
  0xde   : > { %967 = vst [vmem:[#allocation2 + $0x138] sm:$0x1] %v966_v51  ;;  %1104 = vst [vmem:[#allocation2 + $0x13c] sm:$0x1] %v1103_v4  ;;  %v969_v15 = vsel %vm12934_vm15, %v13239_v1, %v968_v5  ;;  %v1106_v20 = vsel %vm12934_vm15, %v13256_v63, %v1105_v8  ;;  %v2671_v22 = vrot.slane %v2670_v6, 4  ;;  %v2695_v7 = vrot.slane %v2694_v36, 4 }
  0xdf   : > { %v1330_v24 = vld [vmem:[#allocation2 + $0x120] sm:$0xff]  ;;  %970 = vst [vmem:[#allocation2 + $0x144] sm:$0xf] %v969_v15  ;;  %1107 = vst [vmem:[#allocation2 + $0x148] sm:$0xf] %v1106_v20  ;;  %v436_v29 = vsel %vm12897_vm11, 0, %v435_v23  ;;  %v777_v14 = vsel %vm12922_vm14, %v769_v52, %v776_v11 }
  0xe0   : > { %v341_v27 = vsel %vm12889_vm10, 0, %v340_v54  ;;  %v2712_v25 = vshrl.u32 %v1330_v24, 16  ;;  %v2715_v31 = vshll.u32 %v1330_v24, 16  ;;  %437 = vst [vmem:[#allocation2 + $0x15c] sm:$0x11] %v436_v29  ;;  %v780_v18 = vshrl.u32 %v10612_v62, 16 }
  0xe1   : > { %342 = vst [vmem:[#allocation2 + $0x168] sm:$0x11] %v341_v27  ;;  %v2676_v33 = vsel %vm13015_vm2, %v2671_v22, %v2675_v49  ;;  %v2700_v35 = vsel %vm13015_vm2, %v2695_v7, %v2699_v58  ;;  %1108 = vst [vmem:[#allocation2 + $0x154] sm:$0xf] %v777_v14  ;;  %v783_v38 = vshll.u32 %v10612_v62, 16  ;;  %v788_v39 = vshrl.u32 %v13258_v19, 16 }
  0xe2   : > { %978 = vst [vmem:[#allocation2 + $0x174] sm:$0xf] %v777_v14  ;;  %1213 = vst [vmem:[#allocation2 + $0x134] sm:$0xf] %v777_v14  ;;  %v10151_v40 = vcombine.high %v2676_v33, %v2700_v35  ;;  %v10150_v42 = vcombine.low %v2676_v33, %v2700_v35  ;;  %v1332_v44 = vld [vmem:[#allocation2 + $0x12c] sm:$0xff]  ;;  %v2714_v23 = vrot.slane %v2712_v25, 4 }
  0xe3   : > { %v2717_v45 = vrot.slane %v2715_v31, 5  ;;  %v10082_v50 = vcombine.high %v1330_v24, %v1332_v44  ;;  %v2721_v52 = vshll.u32 %v1332_v44, 16  ;;  %v2739_v54 = vshrl.u32 %v1332_v44, 16 }
  0xe4   : > { %v10081_v59 = vcombine.low %v1330_v24, %v1332_v44  ;;  %3600 = vmatprep.mubr.bf16.mxu1 %v10151_v40  ;;  %v782_v12 = vrot.slane %v780_v18, 7  ;;  %v790_v61 = vrot.slane %v788_v39, 7  ;;  %v791_v58 = vshll.u32 %v13258_v19, 16  ;;  %v506_v40 = vld [vmem:[%s12853_s6 + $0xb0] sm:$0xff]  ;;  %v12318_v44 = vld [vmem:[#allocation7 + $0x200] sm:$0xff]  }
  0xe5   : > { %v2718_v49 = vor.u32 %v2717_v45, %v2714_v23  ;;  %3601 = vmatmul.mubr.bf16.gmra.mrb[28].mxu1 %v10150_v42  ;;  %1938 = vmatprep.mubr.bf16.mxu0 %v10082_v50  ;;  %v2280_v62 = vld [vmem:[#allocation2 + $0x138] sm:$0x11]  ;;  %v2723_v6 = vrot.slane %v2721_v52, 5  ;;  %v2741_v36 = vrot.slane %v2739_v54, 4  ;;  %v442_v51 = vsel %vm12897_vm11, 0, %v441_v21 }
  0xe6   : > { %v347_v4 = vsel %vm12889_vm10, 0, %v346_v32  ;;  %v2745_v8 = vshll.u32 %v2280_v62, 16  ;;  %1939 = vmatmul.mubr.bf16.gmra.mrb[32].mxu0 %v10081_v59  ;;  %v1334_v11 = vld [vmem:[#allocation2 + $0x144] sm:$0xff]  ;;  %v13290_v15 = vor.u32 %v783_v38, %v782_v12  ;;  %v786_v20 = vrot.slane %v782_v12, 4  ;;  %443 = vst [vmem:[#allocation2 + $0x180] sm:$0x11] %v442_v51  ;;  %11569 = vmatprep.subr.bf16.mxu1 %v12318_v44 }
  0xe7   : > { %v2719_v5 = vrot.slane %v2718_v49, 4  ;;  %348 = vst [vmem:[#allocation2 + $0x18c] sm:$0x11] %v347_v4  ;;  %v2742_v19 = vor.u32 %v2741_v36, %v2723_v6  ;;  %v972_v22 = vld [vmem:[#allocation2 + $0x15c] sm:$0x1]  ;;  %v2760_v24 = vshrl.u32 %v1334_v11, 16  ;;  %v793_v27 = vor.u32 %v791_v58, %v790_v61 }
  0xe8   : > { %v1109_v7 = vld [vmem:[#allocation2 + $0x160] sm:$0x1]  ;;  %v2763_v29 = vshll.u32 %v1334_v11, 16  ;;  %v2747_v31 = vrot.slane %v2745_v8, 5  ;;  %v1336_v14 = vld [vmem:[#allocation2 + $0x150] sm:$0xff]  ;;  %v973_v18 = vsel %vm12866_vm6, %v13242_v9, %v972_v22  ;;  %v507_v42 = vld [vmem:[%s12853_s6 + $0xb8] sm:$0xff] }
  0xe9   : > { %v2724_v25 = vsel %vm13015_vm2, %v2719_v5, %v2723_v6  ;;  %v1110_v21 = vsel %vm12866_vm6, %v13266_v17, %v1109_v7  ;;  %v975_v32 = vld [vmem:[#allocation2 + $0x168] sm:$0xf]  ;;  %v2743_v33 = vrot.slane %v2742_v19, 4  ;;  %v10085_v35 = vcombine.high %v1334_v11, %v1336_v14  ;;  %974 = vst [vmem:[#allocation2 + $0x15c] sm:$0x1] %v973_v18  ;;  %v508_v7 = vld [vmem:[%s12853_s6 + $0xc0] sm:$0xff] }
  0xea   : > { %1111 = vst [vmem:[#allocation2 + $0x160] sm:$0x1] %v1110_v21  ;;  %v2762_v38 = vrot.slane %v2760_v24, 4  ;;  %v2765_v39 = vrot.slane %v2763_v29, 5  ;;  %v2769_v23 = vshll.u32 %v1336_v14, 16  ;;  %v2787_v45 = vshrl.u32 %v1336_v14, 16 }
  0xeb   : > { %v10084_v50 = vcombine.low %v1334_v11, %v1336_v14  ;;  %v794_v52 = vsel %vm12922_vm14, %v786_v20, %v793_v27  ;;  %v1112_v54 = vld [vmem:[#allocation2 + $0x16c] sm:$0xf]  ;;  %v2748_v59 = vsel %vm13015_vm2, %v2743_v33, %v2747_v31  ;;  %1946 = vmatprep.mubr.bf16.mxu0 %v10085_v35  ;;  %v13306_v12 = vrot.slane %v790_v61, 4  ;;  %v447_v62 = vld [vmem:[#allocation2 + $0x1a4] sm:$0x11] }
  0xec   : > { %v2766_v49 = vor.u32 %v2765_v39, %v2762_v38  ;;  %v976_v58 = vsel %vm12934_vm15, %v13256_v63, %v975_v32  ;;  %1115 = vst [vmem:[#allocation2 + $0x178] sm:$0xf] %v794_v52  ;;  %985 = vst [vmem:[#allocation2 + $0x198] sm:$0xf] %v794_v52  ;;  %v352_v6 = vld [vmem:[#allocation2 + $0x1b0] sm:$0x11]  ;;  %v10154_v36 = vcombine.high %v2724_v25, %v2748_v59 }
  0xed   : > { %1220 = vst [vmem:[#allocation2 + $0x158] sm:$0xf] %v794_v52  ;;  %v10153_v51 = vcombine.low %v2724_v25, %v2748_v59  ;;  %v2771_v4 = vrot.slane %v2769_v23, 5  ;;  %v2789_v5 = vrot.slane %v2787_v45, 4  ;;  %977 = vst [vmem:[#allocation2 + $0x168] sm:$0xf] %v976_v58  ;;  %v1113_v61 = vsel %vm12934_vm15, %v13290_v15, %v1112_v54 }
  0xee   : > { %v2767_v8 = vrot.slane %v2766_v49, 4  ;;  %v979_v11 = vld [vmem:[#allocation2 + $0x180] sm:$0x1]  ;;  %v1116_v20 = vld [vmem:[#allocation2 + $0x184] sm:$0x1]  ;;  %v10614_v19 = vpack.c.bf16 %v506_v40, %v506_v40  ;;  %v10615_v22 = vpack.c.bf16 %v507_v42, %v507_v42  ;;  %3608 = vmatprep.mubr.bf16.mxu1 %v10154_v36  ;;  %1947 = vmatmul.mubr.bf16.gmra.mrb[36].mxu0 %v10084_v50  ;;  %v448_v14 = vsel %vm12897_vm11, 0, %v447_v62 }
  0xef   : > { %v453_v24 = vld [vmem:[#allocation2 + $0x1c8] sm:$0x11]  ;;  %v2790_v29 = vor.u32 %v2789_v5, %v2771_v4  ;;  %1114 = vst [vmem:[#allocation2 + $0x16c] sm:$0xf] %v1113_v61  ;;  %v980_v27 = vsel %vm12866_vm6, %v13266_v17, %v979_v11  ;;  %v1117_v25 = vsel %vm12866_vm6, %v13306_v12, %v1116_v20  ;;  %v358_v21 = vld [vmem:[#allocation2 + $0x1d4] sm:$0x11]  ;;  %3609 = vmatmul.mubr.bf16.gmra.mrb[32].mxu1 %v10153_v51 }
  0xf0   : > { %v982_v31 = vld [vmem:[#allocation2 + $0x18c] sm:$0xf]  ;;  %v2772_v32 = vsel %vm13015_vm2, %v2767_v8, %v2771_v4  ;;  %981 = vst [vmem:[#allocation2 + $0x180] sm:$0x1] %v980_v27  ;;  %1118 = vst [vmem:[#allocation2 + $0x184] sm:$0x1] %v1117_v25  ;;  %v13332_v59 = vpack.c.bf16 %v508_v7, %v508_v7 }
  0xf1   : > { %v509_v18 = vld [vmem:[%s12853_s6 + $0xc8] sm:$0xff]  ;;  %v797_v33 = vshrl.u32 %v10614_v19, 16  ;;  %v800_v35 = vshll.u32 %v10614_v19, 16  ;;  %v805_v38 = vshrl.u32 %v10615_v22, 16  ;;  %449 = vst [vmem:[#allocation2 + $0x1a4] sm:$0x11] %v448_v14  ;;  %v983_v23 = vsel %vm12934_vm15, %v13290_v15, %v982_v31 }
  0xf2   : > { %v510_v39 = vld [vmem:[%s12853_s6 + $0xd0] sm:$0xff]  ;;  %v2286_v40 = vld [vmem:[#allocation2 + $0x15c] sm:$0x11]  ;;  %v2791_v42 = vrot.slane %v2790_v29, 4  ;;  %v808_v44 = vshll.u32 %v10615_v22, 16  ;;  %v353_v45 = vsel %vm12889_vm10, 0, %v352_v6  ;;  %v13334_v62 = vpack.c.bf16 %v509_v18, %v509_v18 }
  0xf3   : > { %v2793_v50 = vshll.u32 %v2286_v40, 16  ;;  %v799_v52 = vrot.slane %v797_v33, 7  ;;  %v807_v54 = vrot.slane %v805_v38, 7  ;;  %984 = vst [vmem:[#allocation2 + $0x18c] sm:$0xf] %v983_v23  ;;  %v1340_v49 = vld [vmem:[#allocation2 + $0x174] sm:$0xff]  ;;  %v13340_v4 = vpack.c.bf16 %v510_v39, %v510_v39 }
  0xf4   : > { %354 = vst [vmem:[#allocation2 + $0x1b0] sm:$0x11] %v353_v45  ;;  %v1119_v58 = vld [vmem:[#allocation2 + $0x190] sm:$0xf]  ;;  %v454_v36 = vsel %vm12897_vm11, 0, %v453_v24  ;;  %v359_v51 = vsel %vm12889_vm10, 0, %v358_v21 }
  0xf5   : > { %v2795_v6 = vrot.slane %v2793_v50, 5  ;;  %v2817_v5 = vshll.u32 %v1340_v49, 16  ;;  %v2835_v8 = vshrl.u32 %v1340_v49, 16  ;;  %v13342_v61 = vor.u32 %v800_v35, %v799_v52  ;;  %455 = vst [vmem:[#allocation2 + $0x1c8] sm:$0x11] %v454_v36 }
  0xf6   : > { %360 = vst [vmem:[#allocation2 + $0x1d4] sm:$0x11] %v359_v51  ;;  %v803_v11 = vrot.slane %v799_v52, 4  ;;  %v810_v20 = vor.u32 %v808_v44, %v807_v54  ;;  %v13344_v19 = vrot.slane %v807_v54, 4  ;;  %v814_v22 = vshrl.u32 %v13332_v59, 16  ;;  %v1338_v24 = vld [vmem:[#allocation2 + $0x168] sm:$0xff] }
  0xf7   : > { %v2796_v7 = vsel %vm13015_vm2, %v2791_v42, %v2795_v6  ;;  %v13349_v29 = vrot.slane %v2817_v5, 5  ;;  %v2837_v27 = vrot.slane %v2835_v8, 4  ;;  %v1120_v25 = vsel %vm12934_vm15, %v13342_v61, %v1119_v58  ;;  %v2292_v21 = vld [vmem:[#allocation2 + $0x180] sm:$0x11]  ;;  %v511_v54 = vld [vmem:[%s12853_s6 + $0xd8] sm:$0xff] }
  0xf8   : > { %v10157_v31 = vcombine.high %v2772_v32, %v2796_v7  ;;  %v10156_v14 = vcombine.low %v2772_v32, %v2796_v7  ;;  %v10088_v18 = vcombine.high %v1338_v24, %v1340_v49  ;;  %v2808_v33 = vshrl.u32 %v1338_v24, 16  ;;  %1121 = vst [vmem:[#allocation2 + $0x190] sm:$0xf] %v1120_v25  ;;  %v986_v35 = vld [vmem:[#allocation2 + $0x1a4] sm:$0x1] }
  0xf9   : > { %v2811_v38 = vshll.u32 %v1338_v24, 16  ;;  %v2838_v39 = vor.u32 %v2837_v27, %v13349_v29  ;;  %v2841_v40 = vshll.u32 %v2292_v21, 16  ;;  %v10087_v42 = vcombine.low %v1338_v24, %v1340_v49  ;;  %v1123_v44 = vld [vmem:[#allocation2 + $0x1a8] sm:$0x1]  ;;  %v459_v58 = vld [vmem:[#allocation2 + $0x1ec] sm:$0x11] }
  0xfa   : > { %3616 = vmatprep.mubr.bf16.mxu1 %v10157_v31  ;;  %1954 = vmatprep.mubr.bf16.mxu0 %v10088_v18  ;;  %v2810_v23 = vrot.slane %v2808_v33, 4  ;;  %v811_v45 = vsel %vm12922_vm14, %v803_v11, %v810_v20  ;;  %v987_v32 = vsel %vm12866_vm6, %v13306_v12, %v986_v35  ;;  %v1124_v50 = vsel %vm12866_vm6, %v13344_v19, %v1123_v44  ;;  %v364_v36 = vld [vmem:[#allocation2 + $0x1f8] sm:$0x11] }
  0xfb   : > { %v989_v52 = vld [vmem:[#allocation2 + $0x1b0] sm:$0xf]  ;;  %3617 = vmatmul.mubr.bf16.gmra.mrb[36].mxu1 %v10156_v14  ;;  %v2813_v49 = vrot.slane %v2811_v38, 5  ;;  %v2839_v51 = vrot.slane %v2838_v39, 4  ;;  %v2843_v6 = vrot.slane %v2841_v40, 5  ;;  %1955 = vmatmul.mubr.bf16.gmra.mrb[40].mxu0 %v10087_v42  ;;  %v816_v5 = vrot.slane %v814_v22, 7 }
  0xfc   : > { %1122 = vst [vmem:[#allocation2 + $0x19c] sm:$0xf] %v811_v45  ;;  %992 = vst [vmem:[#allocation2 + $0x1bc] sm:$0xf] %v811_v45  ;;  %v817_v8 = vshll.u32 %v13332_v59, 16  ;;  %v822_v11 = vshrl.u32 %v13334_v62, 16  ;;  %v990_v7 = vsel %vm12934_vm15, %v13342_v61, %v989_v52 }
  0xfd   : > { %1227 = vst [vmem:[#allocation2 + $0x17c] sm:$0xf] %v811_v45  ;;  %988 = vst [vmem:[#allocation2 + $0x1a4] sm:$0x1] %v987_v32  ;;  %v825_v20 = vshll.u32 %v13334_v62, 16  ;;  %v2814_v27 = vor.u32 %v2813_v49, %v2810_v23  ;;  %v2844_v25 = vsel %vm13015_vm2, %v2839_v51, %v2843_v6  ;;  %v820_v31 = vrot.slane %v816_v5, 4 }
  0xfe   : > { %1125 = vst [vmem:[#allocation2 + $0x1a8] sm:$0x1] %v1124_v50  ;;  %v993_v24 = vld [vmem:[#allocation2 + $0x1c8] sm:$0x1]  ;;  %991 = vst [vmem:[#allocation2 + $0x1b0] sm:$0xf] %v990_v7  ;;  %v13375_v59 = vor.u32 %v817_v8, %v816_v5  ;;  %v10619_v62 = vpack.c.bf16 %v511_v54, %v511_v54 }
  0xff   : > { %v994_v22 = vsel %vm12866_vm6, %v13344_v19, %v993_v24  ;;  %v824_v14 = vrot.slane %v822_v11, 7  ;;  %v1126_v18 = vld [vmem:[#allocation2 + $0x1b4] sm:$0xf]  ;;  %v831_v21 = vshrl.u32 %v13340_v4, 16  ;;  %v2815_v33 = vrot.slane %v2814_v27, 4  ;;  %v1342_v35 = vld [vmem:[#allocation2 + $0x18c] sm:$0xff] }
 0x100   : > { %995 = vst [vmem:[#allocation2 + $0x1c8] sm:$0x1] %v994_v22  ;;  %v834_v38 = vshll.u32 %v13340_v4, 16  ;;  %v460_v39 = vsel %vm12897_vm11, 0, %v459_v58  ;;  %v365_v40 = vsel %vm12889_vm10, 0, %v364_v36  ;;  %v2856_v42 = vshrl.u32 %v1342_v35, 16 }
 0x101   : > { %v2859_v44 = vshll.u32 %v1342_v35, 16  ;;  %v827_v23 = vor.u32 %v825_v20, %v824_v14  ;;  %v13383_v45 = vrot.slane %v824_v14, 4  ;;  %v1130_v32 = vld [vmem:[#allocation2 + $0x1cc] sm:$0x1]  ;;  %461 = vst [vmem:[#allocation2 + $0x1ec] sm:$0x11] %v460_v39  ;;  %v2820_v50 = vsel %vm13015_vm2, %v2815_v33, %v13349_v29 }
 0x102   : > { %366 = vst [vmem:[#allocation2 + $0x1f8] sm:$0x11] %v365_v40  ;;  %v1127_v4 = vsel %vm12934_vm15, %v13375_v59, %v1126_v18  ;;  %v833_v52 = vrot.slane %v831_v21, 7  ;;  %v839_v54 = vshrl.u32 %v10619_v62, 16  ;;  %v10160_v58 = vcombine.high %v2820_v50, %v2844_v25  ;;  %v996_v8 = vld [vmem:[#allocation2 + $0x1d4] sm:$0xf] }
 0x103   : > { %v10159_v36 = vcombine.low %v2820_v50, %v2844_v25  ;;  %v1344_v49 = vld [vmem:[#allocation2 + $0x198] sm:$0xff]  ;;  %v2858_v6 = vrot.slane %v2856_v42, 4  ;;  %v2861_v5 = vrot.slane %v2859_v44, 5  ;;  %1128 = vst [vmem:[#allocation2 + $0x1b4] sm:$0xf] %v1127_v4  ;;  %v512_v29 = vld [vmem:[%s12853_s6 + $0xe0] sm:$0xff]  ;;  %v828_v14 = vsel %vm12922_vm14, %v820_v31, %v827_v23 }
 0x104   : > { %v10091_v11 = vcombine.high %v1342_v35, %v1344_v49  ;;  %v2865_v20 = vshll.u32 %v1344_v49, 16  ;;  %v2883_v7 = vshrl.u32 %v1344_v49, 16  ;;  %3624 = vmatprep.mubr.bf16.mxu1 %v10160_v58  ;;  %v10090_v22 = vcombine.low %v1342_v35, %v1344_v49  ;;  %v1133_v18 = vld [vmem:[#allocation2 + $0x1d8] sm:$0xf]  ;;  %1129 = vst [vmem:[#allocation2 + $0x1c0] sm:$0xf] %v828_v14 }
 0x105   : > { %v2298_v51 = vld [vmem:[#allocation2 + $0x1a4] sm:$0x11]  ;;  %v2862_v27 = vor.u32 %v2861_v5, %v2858_v6  ;;  %v1131_v25 = vsel %vm12866_vm6, %v13383_v45, %v1130_v32  ;;  %3625 = vmatmul.mubr.bf16.gmra.mrb[40].mxu1 %v10159_v36  ;;  %999 = vst [vmem:[#allocation2 + $0x1e0] sm:$0xf] %v828_v14  ;;  %1234 = vst [vmem:[#allocation2 + $0x1a0] sm:$0xf] %v828_v14  ;;  %v13397_v40 = vor.u32 %v834_v38, %v833_v52 }
 0x106   : > { %v2889_v24 = vshll.u32 %v2298_v51, 16  ;;  %1962 = vmatprep.mubr.bf16.mxu0 %v10091_v11  ;;  %v2867_v21 = vrot.slane %v2865_v20, 5  ;;  %v2885_v33 = vrot.slane %v2883_v7, 4  ;;  %1132 = vst [vmem:[#allocation2 + $0x1cc] sm:$0x1] %v1131_v25  ;;  %v837_v31 = vrot.slane %v833_v52, 4 }
 0x107   : > { %v2863_v35 = vrot.slane %v2862_v27, 4  ;;  %1963 = vmatmul.mubr.bf16.gmra.mrb[44].mxu0 %v10090_v22  ;;  %v841_v42 = vrot.slane %v839_v54, 7  ;;  %v842_v44 = vshll.u32 %v10619_v62, 16  ;;  %v513_v23 = vld [vmem:[%s12853_s6 + $0xe8] sm:$0xff]  ;;  %v997_v50 = vsel %vm12934_vm15, %v13375_v59, %v996_v8 }
 0x108   : > { %v2891_v39 = vrot.slane %v2889_v24, 5  ;;  %v2886_v32 = vor.u32 %v2885_v33, %v2867_v21  ;;  %v1134_v4 = vsel %vm12934_vm15, %v13397_v40, %v1133_v18  ;;  %v1000_v58 = vld [vmem:[#allocation2 + $0x1ec] sm:$0x1]  ;;  %v1137_v36 = vld [vmem:[#allocation2 + $0x1f0] sm:$0x1]  ;;  %v10620_v49 = vpack.c.bf16 %v512_v29, %v512_v29 }
 0x109   : > { %v2868_v38 = vsel %vm13015_vm2, %v2863_v35, %v2867_v21  ;;  %v844_v51 = vor.u32 %v842_v44, %v841_v42  ;;  %v13408_v52 = vrot.slane %v841_v42, 4  ;;  %998 = vst [vmem:[#allocation2 + $0x1d4] sm:$0xf] %v997_v50  ;;  %1135 = vst [vmem:[#allocation2 + $0x1d8] sm:$0xf] %v1134_v4  ;;  %v1001_v62 = vsel %vm12866_vm6, %v13383_v45, %v1000_v58 }
 0x10a   : > { %v2887_v54 = vrot.slane %v2886_v32, 4  ;;  %v1346_v6 = vld [vmem:[#allocation2 + $0x1b0] sm:$0xff]  ;;  %1002 = vst [vmem:[#allocation2 + $0x1ec] sm:$0x1] %v1001_v62  ;;  %v10621_v5 = vpack.c.bf16 %v513_v23, %v513_v23  ;;  %v848_v8 = vshrl.u32 %v10620_v49, 16  ;;  %v851_v11 = vshll.u32 %v10620_v49, 16 }
 0x10b   : > { %v2904_v20 = vshrl.u32 %v1346_v6, 16  ;;  %v2907_v7 = vshll.u32 %v1346_v6, 16  ;;  %v845_v24 = vsel %vm12922_vm14, %v837_v31, %v844_v51  ;;  %v1138_v29 = vsel %vm12866_vm6, %v13408_v52, %v1137_v36  ;;  %v1003_v18 = vld [vmem:[#allocation2 + $0x1f8] sm:$0xf]  ;;  %v1348_v35 = vld [vmem:[#allocation2 + $0x1bc] sm:$0xff] }
 0x10c   : > { %v2892_v27 = vsel %vm13015_vm2, %v2887_v54, %v2891_v39  ;;  %1136 = vst [vmem:[#allocation2 + $0x1e4] sm:$0xf] %v845_v24  ;;  %1006 = vst [vmem:[#allocation2 + $0x204] sm:$0xf] %v845_v24  ;;  %v850_v22 = vrot.slane %v848_v8, 7  ;;  %v856_v14 = vshrl.u32 %v10621_v5, 16  ;;  %v10094_v32 = vcombine.high %v1346_v6, %v1348_v35 }
 0x10d   : > { %1241 = vst [vmem:[#allocation2 + $0x1c4] sm:$0xf] %v845_v24  ;;  %1139 = vst [vmem:[#allocation2 + $0x1f0] sm:$0x1] %v1138_v29  ;;  %v859_v25 = vshll.u32 %v10621_v5, 16  ;;  %v10163_v21 = vcombine.high %v2868_v38, %v2892_v27  ;;  %v10162_v33 = vcombine.low %v2868_v38, %v2892_v27  ;;  %v2906_v31 = vrot.slane %v2904_v20, 4 }
 0x10e   : > { %v2304_v42 = vld [vmem:[#allocation2 + $0x1c8] sm:$0x11]  ;;  %v2909_v44 = vrot.slane %v2907_v7, 5  ;;  %v1140_v23 = vld [vmem:[#allocation2 + $0x1fc] sm:$0xf]  ;;  %v2913_v50 = vshll.u32 %v1348_v35, 16  ;;  %v10093_v49 = vcombine.low %v1346_v6, %v1348_v35  ;;  %v13420_v51 = vor.u32 %v851_v11, %v850_v22  ;;  %1970 = vmatprep.mubr.bf16.mxu0 %v10094_v32 }
 0x10f   : > { %v2931_v4 = vshrl.u32 %v1348_v35, 16  ;;  %v2937_v58 = vshll.u32 %v2304_v42, 16  ;;  %v465_v39 = vld [vmem:[#allocation2 + $0x210] sm:$0x11]  ;;  %3632 = vmatprep.mubr.bf16.mxu1 %v10163_v21  ;;  %v854_v62 = vrot.slane %v850_v22, 4  ;;  %v858_v20 = vrot.slane %v856_v14, 7 }
 0x110   : > { %v2910_v36 = vor.u32 %v2909_v44, %v2906_v31  ;;  %3633 = vmatmul.mubr.bf16.gmra.mrb[44].mxu1 %v10162_v33  ;;  %v2915_v54 = vrot.slane %v2913_v50, 5  ;;  %v1350_v8 = vld [vmem:[#allocation2 + $0x1d4] sm:$0xff]  ;;  %1971 = vmatmul.mubr.bf16.gmra.mrb[48].mxu0 %v10093_v49  ;;  %v1004_v27 = vsel %vm12934_vm15, %v13397_v40, %v1003_v18  ;;  %v370_v21 = vld [vmem:[#allocation2 + $0x21c] sm:$0x11]  ;;  %v1141_v22 = vsel %vm12934_vm15, %v13420_v51, %v1140_v23  ;;  %v283_v23 = vld [vmem:[#allocation2 + $0x8] sm:$0x1] }
 0x111   : > { %v2933_v38 = vrot.slane %v2931_v4, 4  ;;  %v2939_v5 = vrot.slane %v2937_v58, 5  ;;  %v2952_v24 = vshrl.u32 %v1350_v8, 16  ;;  %v2955_v29 = vshll.u32 %v1350_v8, 16  ;;  %1005 = vst [vmem:[#allocation2 + $0x1f8] sm:$0xf] %v1004_v27 }
 0x112   : > { %v2911_v7 = vrot.slane %v2910_v36, 4  ;;  %v861_v11 = vor.u32 %v859_v25, %v858_v20  ;;  %v13425_v35 = vrot.slane %v858_v20, 4  ;;  %1142 = vst [vmem:[#allocation2 + $0x1fc] sm:$0xf] %v1141_v22  ;;  %v466_v25 = vsel %vm12897_vm11, 0, %v465_v39  ;;  %v514_v36 = vld [vmem:[%s12853_s6 + $0xf0] sm:$0xff] }
 0x113   : > { %v2934_v6 = vor.u32 %v2933_v38, %v2915_v54  ;;  %v1352_v33 = vld [vmem:[#allocation2 + $0x1e0] sm:$0xff]  ;;  %v2954_v31 = vrot.slane %v2952_v24, 4  ;;  %v2957_v44 = vrot.slane %v2955_v29, 5  ;;  %v471_v18 = vld [vmem:[#allocation2 + $0x234] sm:$0x11]  ;;  %v284_v28 = vsel %vm12866_vm6, 0, %v283_v23 }
 0x114   : > { %16066 = vst [vmem:[#allocation18_spill] sm:$0xff] %v13425_v35  ;;  %v2916_v14 = vsel %vm13015_vm2, %v2911_v7, %v2915_v54  ;;  %v2310_v42 = vld [vmem:[#allocation2 + $0x1ec] sm:$0x11]  ;;  %v10097_v50 = vcombine.high %v1350_v8, %v1352_v33  ;;  %v2961_v4 = vshll.u32 %v1352_v33, 16  ;;  %v2979_v58 = vshrl.u32 %v1352_v33, 16  ;;  %v515_v7 = vld [vmem:[%s12853_s6 + $0xf8] sm:$0xff] }
 0x115   : > { %v2935_v32 = vrot.slane %v2934_v6, 4  ;;  %467 = vst [vmem:[#allocation2 + $0x210] sm:$0x11] %v466_v25  ;;  %v2958_v49 = vor.u32 %v2957_v44, %v2954_v31  ;;  %v2985_v38 = vshll.u32 %v2310_v42, 16  ;;  %v10096_v54 = vcombine.low %v1350_v8, %v1352_v33  ;;  %v384_v24 = vld [vmem:[#allocation2 + $0x20] sm:$0x1] }
 0x116   : > { %v862_v20 = vsel %vm12922_vm14, %v854_v62, %v861_v11  ;;  %1978 = vmatprep.mubr.bf16.mxu0 %v10097_v50  ;;  %v2963_v39 = vrot.slane %v2961_v4, 5  ;;  %v2981_v27 = vrot.slane %v2979_v58, 4  ;;  %v371_v6 = vsel %vm12889_vm10, 0, %v370_v21  ;;  %v13442_v22 = vld [vmem:[#allocation2 + $0x14] sm:$0xf] }
 0x117   : > { %v2940_v29 = vsel %vm13015_vm2, %v2935_v32, %v2939_v5  ;;  %1143 = vst [vmem:[#allocation2 + $0x208] sm:$0xf] %v862_v20  ;;  %1013 = vst [vmem:[#allocation2 + $0x228] sm:$0xf] %v862_v20  ;;  %v2959_v42 = vrot.slane %v2958_v49, 4  ;;  %v2987_v62 = vrot.slane %v2985_v38, 5  ;;  %v10622_v31 = vpack.c.bf16 %v514_v36, %v514_v36 }
 0x118   : > { %1248 = vst [vmem:[#allocation2 + $0x1e8] sm:$0xf] %v862_v20  ;;  %v10166_v8 = vcombine.high %v2916_v14, %v2940_v29  ;;  %v10165_v33 = vcombine.low %v2916_v14, %v2940_v29  ;;  %372 = vst [vmem:[#allocation2 + $0x21c] sm:$0x11] %v371_v6  ;;  %v2982_v11 = vor.u32 %v2981_v27, %v2963_v39  ;;  %v472_v5 = vsel %vm12897_vm11, 0, %v471_v18 }
 0x119   : > { %v13444_v44 = vpack.c.bf16 %v515_v7, %v515_v7  ;;  %v2964_v25 = vsel %vm13015_vm2, %v2959_v42, %v2963_v39  ;;  %1979 = vmatmul.mubr.bf16.gmra.mrb[52].mxu0 %v10096_v54  ;;  %473 = vst [vmem:[#allocation2 + $0x234] sm:$0x11] %v472_v5  ;;  %v385_v21 = vsel %vm12876_vm8, 0, %v384_v24  ;;  %v2351_v14 = vshll.u32 %v13442_v22, 16  ;;  %v1354_v50 = vld [vmem:[#allocation2 + $0x1f8] sm:$0xff] }
 0x11a   : > { %3640 = vmatprep.mubr.bf16.mxu1 %v10166_v8  ;;  %v2983_v32 = vrot.slane %v2982_v11, 4  ;;  %v1023_v4 = vshrl.u32 %v10622_v31, 16  ;;  %v1026_v30 = vshll.u32 %v10622_v31, 16  ;;  %285 = vst [vmem:[#allocation2 + $0x8] sm:$0x1] %v284_v28  ;;  %v3000_v49 = vshrl.u32 %v1354_v50, 16 }
 0x11b   : > { %3641 = vmatmul.mubr.bf16.gmra.mrb[48].mxu1 %v10165_v33  ;;  %v1031_v18 = vshrl.u32 %v13444_v44, 16  ;;  %386 = vst [vmem:[#allocation2 + $0x20] sm:$0x1] %v385_v21  ;;  %v3003_v38 = vshll.u32 %v1354_v50, 16  ;;  %v289_v5 = vld [vmem:[#allocation2 + $0x2c] sm:$0x1] }
 0x11c   : > { %v1007_v58 = vld [vmem:[#allocation2 + $0x210] sm:$0x1]  ;;  %v1144_v36 = vld [vmem:[#allocation2 + $0x214] sm:$0x1]  ;;  %v2988_v23 = vsel %vm13015_vm2, %v2983_v32, %v2987_v62  ;;  %v1025_v7 = vrot.slane %v1023_v4, 7  ;;  %v3002_v27 = vrot.slane %v3000_v49, 4 }
 0x11d   : > { %v1008_v54 = vsel %vm12866_vm6, %v13408_v52, %v1007_v58  ;;  %v1145_v20 = vsel %vm12866_vm6, %v13425_v35, %v1144_v36  ;;  %v10169_v24 = vcombine.high %v2964_v25, %v2988_v23  ;;  %v10168_v29 = vcombine.low %v2964_v25, %v2988_v23  ;;  %v2237_v4 = vld [vmem:[#allocation2 + $0x38] sm:$0xf]  ;;  %v2239_v23 = vld [vmem:[#allocation2 + $0x44] sm:$0x1] }
 0x11e   : > { %v1356_v39 = vld [vmem:[#allocation2 + $0x204] sm:$0xff]  ;;  %1009 = vst [vmem:[#allocation2 + $0x210] sm:$0x1] %v1008_v54  ;;  %1146 = vst [vmem:[#allocation2 + $0x214] sm:$0x1] %v1145_v20  ;;  %v3005_v6 = vrot.slane %v3003_v38, 5  ;;  %v13467_v32 = vor.u32 %v1026_v30, %v1025_v7 }
 0x11f   : > { %v10100_v8 = vcombine.high %v1354_v50, %v1356_v39  ;;  %v3009_v33 = vshll.u32 %v1356_v39, 16  ;;  %v3027_v42 = vshrl.u32 %v1356_v39, 16  ;;  %v10099_v62 = vcombine.low %v1354_v50, %v1356_v39  ;;  %v1010_v11 = vld [vmem:[#allocation2 + $0x21c] sm:$0xf]  ;;  %v1147_v31 = vld [vmem:[#allocation2 + $0x220] sm:$0xf]  ;;  %3648 = vmatprep.mubr.bf16.mxu1 %v10169_v24 }
 0x120   : > { %v3006_v28 = vor.u32 %v3005_v6, %v3002_v27  ;;  %v1011_v21 = vsel %vm12934_vm15, %v13420_v51, %v1010_v11  ;;  %16067 = vst [vmem:[#allocation19_spill] sm:$0xff] %v13467_v32  ;;  %v1029_v25 = vrot.slane %v1025_v7, 4  ;;  %v13469_v49 = vrot.slane %v1031_v18, 7  ;;  %v1014_v38 = vld [vmem:[#allocation2 + $0x234] sm:$0x1] }
 0x121   : > { %1986 = vmatprep.mubr.bf16.mxu0 %v10100_v8  ;;  %v3011_v58 = vrot.slane %v3009_v33, 5  ;;  %v3029_v36 = vrot.slane %v3027_v42, 4  ;;  %1012 = vst [vmem:[#allocation2 + $0x21c] sm:$0xf] %v1011_v21  ;;  %v1034_v50 = vshll.u32 %v13444_v44, 16  ;;  %v1148_v20 = vsel %vm12934_vm15, %v13467_v32, %v1147_v31 }
 0x122   : > { %16068 = vst [vmem:[#allocation20_spill] sm:$0xff] %v13469_v49  ;;  %v3007_v54 = vrot.slane %v3006_v28, 4  ;;  %1987 = vmatmul.mubr.bf16.gmra.mrb[56].mxu0 %v10099_v62  ;;  %v1015_v30 = vsel %vm12866_vm6, %v13425_v35, %v1014_v38  ;;  %v1151_v7 = vld [vmem:[#allocation2 + $0x238] sm:$0x1]  ;;  %v1154_v24 = vld [vmem:[#allocation2 + $0x8] sm:$0xf] }
 0x123   : > { %v13478_v39 = vrot.slane %v2351_v14, 5  ;;  %v295_v18 = vld [vmem:[#allocation2 + $0x50] sm:$0x1]  ;;  %v396_v27 = vld [vmem:[#allocation2 + $0x68] sm:$0x1]  ;;  %3649 = vmatmul.mubr.bf16.gmra.mrb[52].mxu1 %v10168_v29  ;;  %v3030_v44 = vor.u32 %v3029_v36, %v3011_v58  ;;  %v1036_v8 = vor.u32 %v1034_v50, %v13469_v49  ;;  %v16014_v33 = vrot.slane %v13469_v49, 4 }
 0x124   : > { %v13480_v6 = vld [vmem:[#allocation2 + $0x5c] sm:$0xf]  ;;  %1149 = vst [vmem:[#allocation2 + $0x220] sm:$0xf] %v1148_v20  ;;  %1016 = vst [vmem:[#allocation2 + $0x234] sm:$0x1] %v1015_v30  ;;  %v1155_v42 = vsel %vm12934_vm15, %v12953_v37, %v1154_v24  ;;  %v3012_v30 = vsel %vm13015_vm2, %v3007_v54, %v3011_v58 }
 0x125   : > { %v1158_v62 = vld [vmem:[#allocation2 + $0x20] sm:$0x1]  ;;  %1156 = vst [vmem:[#allocation2 + $0x8] sm:$0xf] %v1155_v42  ;;  %v2365_v11 = vshrl.u32 %v13442_v22, 16  ;;  %v290_v29 = vsel %vm12866_vm6, 0, %v289_v5  ;;  %v1037_v36 = vsel %vm12922_vm14, %v1029_v25, %v1036_v8  ;;  %v1152_v37 = vsel %vm12866_vm6, %v16014_v33, %v1151_v7 }
 0x126   : > { %v1159_v14 = vsel %vm12866_vm6, %v12957_v43, %v1158_v62  ;;  %v301_v31 = vld [vmem:[#allocation2 + $0x74] sm:$0x1]  ;;  %v3031_v21 = vrot.slane %v3030_v44, 4  ;;  %291 = vst [vmem:[#allocation2 + $0x2c] sm:$0x1] %v290_v29  ;;  %v2399_v50 = vshll.u32 %v2237_v4, 16 }
 0x127   : > { %v2316_v28 = vld [vmem:[#allocation2 + $0x210] sm:$0x11]  ;;  %1160 = vst [vmem:[#allocation2 + $0x20] sm:$0x1] %v1159_v14  ;;  %v402_v43 = vld [vmem:[#allocation2 + $0x8c] sm:$0x1] }
 0x128   : > { %v3033_v38 = vshll.u32 %v2316_v28, 16  ;;  %1150 = vst [vmem:[#allocation2 + $0x22c] sm:$0xf] %v1037_v36  ;;  %1255 = vst [vmem:[#allocation2 + $0x20c] sm:$0xf] %v1037_v36  ;;  %v2367_v22 = vrot.slane %v2365_v11, 4 }
 0x129   : > { %1153 = vst [vmem:[#allocation2 + $0x238] sm:$0x1] %v1152_v37  ;;  %v2413_v5 = vshrl.u32 %v2237_v4, 16  ;;  %v2419_v20 = vshll.u32 %v2239_v23, 16  ;;  %v296_v25 = vsel %vm12866_vm6, 0, %v295_v18  ;;  %v397_v7 = vsel %vm12876_vm8, 0, %v396_v27 }
 0x12a   : > { %v2447_v24 = vshll.u32 %v13480_v6, 16  ;;  %v13506_v44 = vld [vmem:[#allocation2 + $0x80] sm:$0xf]  ;;  %v3035_v8 = vrot.slane %v3033_v38, 5  ;;  %v2368_v42 = vor.u32 %v2367_v22, %v13478_v39  ;;  %v13509_v62 = vrot.slane %v2399_v50, 5 }
 0x12b   : > { %v2415_v4 = vrot.slane %v2413_v5, 4  ;;  %297 = vst [vmem:[#allocation2 + $0x50] sm:$0x1] %v296_v25  ;;  %398 = vst [vmem:[#allocation2 + $0x68] sm:$0x1] %v397_v7  ;;  %v13511_v23 = vrot.slane %v2419_v20, 5 }
 0x12c   : > { %v13513_v58 = vrot.slane %v2447_v24, 5  ;;  %v302_v54 = vsel %vm12866_vm6, 0, %v301_v31  ;;  %v403_v18 = vsel %vm12876_vm8, 0, %v402_v43  ;;  %v3036_v27 = vsel %vm13015_vm2, %v3031_v21, %v3035_v8  ;;  %v1358_v14 = vld [vmem:[#allocation2 + $0x21c] sm:$0xff]  ;;  %v2229_v31 = vld [vmem:[#allocation2 + $0x8] sm:$0xf] }
 0x12d   : > { %v13521_v11 = vrot.slane %v2368_v42, 4  ;;  %v2461_v29 = vshrl.u32 %v13480_v6, 16  ;;  %303 = vst [vmem:[#allocation2 + $0x74] sm:$0x1] %v302_v54  ;;  %404 = vst [vmem:[#allocation2 + $0x8c] sm:$0x1] %v403_v18  ;;  %v10172_v36 = vcombine.high %v3012_v30, %v3036_v27  ;;  %v10171_v37 = vcombine.low %v3012_v30, %v3036_v27 }
 0x12e   : > { %v2495_v28 = vshll.u32 %v13506_v44, 16  ;;  %v3048_v50 = vshrl.u32 %v1358_v14, 16  ;;  %v3051_v38 = vshll.u32 %v1358_v14, 16  ;;  %v2233_v22 = vld [vmem:[#allocation2 + $0x20] sm:$0x1]  ;;  %v2416_v43 = vor.u32 %v2415_v4, %v13509_v62 }
 0x12f   : > { %v1161_v5 = vld [vmem:[#allocation2 + $0x2c] sm:$0xf]  ;;  %3656 = vmatprep.mubr.bf16.mxu1 %v10172_v36  ;;  %v2342_v24 = vshrl.u32 %v2229_v31, 16  ;;  %v12299_v18 = vld [vmem:[#allocation2 + $0x8] ss:$12 sps:$4 sm:$0xff]   ;;  %v2345_v36 = vshll.u32 %v2229_v31, 16 }
 0x130   : > { %v1360_v21 = vld [vmem:[#allocation2 + $0x228] sm:$0xff]  ;;  %v2322_v20 = vld [vmem:[#allocation2 + $0x234] sm:$0x11]  ;;  %v3050_v25 = vrot.slane %v3048_v50, 4  ;;  %v3053_v7 = vrot.slane %v3051_v38, 5  ;;  %v1162_v6 = vsel %vm12934_vm15, %v12974_v56, %v1161_v5  ;;  %3657 = vmatmul.mubr.bf16.gmra.mrb[56].mxu1 %v10171_v37  ;;  %v2371_v32 = vshll.u32 %v2233_v22, 16 }
 0x131   : > { %v10103_v8 = vcombine.high %v1358_v14, %v1360_v21  ;;  %v3057_v30 = vshll.u32 %v1360_v21, 16  ;;  %v3075_v42 = vshrl.u32 %v1360_v21, 16  ;;  %v3081_v54 = vshll.u32 %v2322_v20, 16  ;;  %1163 = vst [vmem:[#allocation2 + $0x2c] sm:$0xf] %v1162_v6 }
 0x132   : > { %v3054_v27 = vor.u32 %v3053_v7, %v3050_v25  ;;  %v10102_v33 = vcombine.low %v1358_v14, %v1360_v21  ;;  %v2344_v4 = vrot.slane %v2342_v24, 4  ;;  %v1168_v0 = vld [vmem:[#allocation2 + $0x50] sm:$0xf]  ;;  %v1172_v3 = vld [vmem:[#allocation2 + $0x68] sm:$0x1]  ;;  %v2347_v56 = vrot.slane %v2345_v36, 5 }
 0x133   : > { %1994 = vmatprep.mubr.bf16.mxu0 %v10103_v8  ;;  %v3059_v50 = vrot.slane %v3057_v30, 5  ;;  %v3077_v38 = vrot.slane %v3075_v42, 4  ;;  %v3083_v49 = vrot.slane %v3081_v54, 5  ;;  %v13529_v37 = vrot.slane %v2416_v43, 4  ;;  %v307_v14 = vld [vmem:[#allocation2 + $0x98] sm:$0x1] }
 0x134   : > { %v3055_v35 = vrot.slane %v3054_v27, 4  ;;  %1995 = vmatmul.mubr.bf16.gmra.mrb[60].mxu0 %v10102_v33  ;;  %v1169_v5 = vsel %vm12934_vm15, %v13010_v48, %v1168_v0  ;;  %v1175_v20 = vld [vmem:[#allocation2 + $0x74] sm:$0xf]  ;;  %v2373_v31 = vrot.slane %v2371_v32, 5  ;;  %v1173_v25 = vsel %vm12866_vm6, %v13054_v53, %v1172_v3  ;;  %v1179_v7 = vld [vmem:[#allocation2 + $0x8c] sm:$0x1] }
 0x135   : > { %v3078_v21 = vor.u32 %v3077_v38, %v3059_v50  ;;  %11489 = vmatprep.mubr.bf16.mxu0 %v12299_v18  ;;  %1170 = vst [vmem:[#allocation2 + $0x50] sm:$0xf] %v1169_v5  ;;  %v2463_v22 = vrot.slane %v2461_v29, 4  ;;  %v2348_v33 = vor.u32 %v2347_v56, %v2344_v4  ;;  %1174 = vst [vmem:[#allocation2 + $0x68] sm:$0x1] %v1173_v25  ;;  %v13551_v8 = vrot.slane %v2495_v28, 5 }
 0x136   : > { %v1176_v43 = vsel %vm12934_vm15, %v13091_v34, %v1175_v20  ;;  %v408_v24 = vld [vmem:[#allocation2 + $0xb0] sm:$0x1]  ;;  %v3060_v0 = vsel %vm13015_vm2, %v3055_v35, %v3059_v50  ;;  %v1180_v3 = vsel %vm12866_vm6, %v13099_v41, %v1179_v7  ;;  %v13546_v53 = vld [vmem:[#allocation2 + $0xa4] sm:$0xf]  ;;  %v2374_v6 = vsel %vm13015_vm2, %v13521_v11, %v2373_v31  ;;  %v12305_v38 = vld [vmem:[#allocation7 + $0x1c8] sm:$0xff]  }
 0x137   : > { %v3079_v48 = vrot.slane %v3078_v21, 4  ;;  %v2464_v32 = vor.u32 %v2463_v22, %v13513_v58  ;;  %1177 = vst [vmem:[#allocation2 + $0x74] sm:$0xf] %v1176_v43  ;;  %v2349_v29 = vrot.slane %v2348_v33, 4  ;;  %1181 = vst [vmem:[#allocation2 + $0x8c] sm:$0x1] %v1180_v3 }
 0x138   : > { %v12300_v34 = vld [vmem:[#allocation2 + $0x2c] ss:$12 sps:$4 sm:$0xff]   ;;  %v12302_v42 = vld [vmem:[#allocation7 + $0x180] sm:$0xff]   ;;  %v2509_v41 = vshrl.u32 %v13506_v44, 16  ;;  %v308_v18 = vsel %vm12866_vm6, 0, %v307_v14  ;;  %v409_v5 = vsel %vm12876_vm8, 0, %v408_v24 }
 0x139   : > { %v3084_v35 = vsel %vm13015_vm2, %v3079_v48, %v3083_v49  ;;  %v2235_v30 = vld [vmem:[#allocation2 + $0x2c] sm:$0xf]  ;;  %v13555_v54 = vrot.slane %v2464_v32, 4  ;;  %v2354_v11 = vsel %vm13015_vm2, %v2349_v29, %v13478_v39  ;;  %309 = vst [vmem:[#allocation2 + $0x98] sm:$0x1] %v308_v18  ;;  %v2543_v14 = vshll.u32 %v13546_v53, 16 }
 0x13a   : > { %v10175_v27 = vcombine.high %v3060_v0, %v3084_v35  ;;  %v10174_v4 = vcombine.low %v3060_v0, %v3084_v35  ;;  %v2390_v28 = vshrl.u32 %v2235_v30, 16  ;;  %v10131_v36 = vcombine.low %v2354_v11, %v2374_v6  ;;  %v12306_v56 = vld [vmem:[#allocation7 + $0x188] sm:$0xff]   ;;  %410 = vst [vmem:[#allocation2 + $0xb0] sm:$0x1] %v409_v5  ;;  %v12309_v21 = vld [vmem:[#allocation7 + $0x1d0] sm:$0xff]  }
 0x13b   : > { %v2393_v50 = vshll.u32 %v2235_v30, 16  ;;  %v2511_v49 = vrot.slane %v2509_v41, 4  ;;  %v2557_v7 = vshrl.u32 %v13546_v53, 16  ;;  %v13568_v0 = vrot.slane %v2543_v14, 5  ;;  %v12310_v35 = vld [vmem:[#allocation7 + $0x190] sm:$0xff]  }
 0x13c   : > { %3664 = vmatprep.mubr.bf16.mxu1 %v10175_v27  ;;  %11490 = vmatmul.mubr.bf16.vlgmr.msra.gmra.mrb[64].mxu0 %v12300_v34  ;;  %v2392_v44 = vrot.slane %v2390_v28, 4  ;;  %v12303_v20 = vld [vmem:[#allocation2 + $0x50] ss:$12 sps:$4 sm:$0xff]   ;;  %v2245_v25 = vld [vmem:[#allocation2 + $0x68] sm:$0x1]  ;;  %v2422_v32 = vsel %vm13015_vm2, %v13529_v37, %v13511_v23 }
 0x13d   : > { %3665 = vmatmul.mubr.bf16.gmra.mrb[60].mxu1 %v10174_v4  ;;  %v2395_v39 = vrot.slane %v2393_v50, 5  ;;  %10930 = vmatpush3.bf16.msra.mxu0 %v12302_v42  ;;  %v2241_v31 = vld [vmem:[#allocation2 + $0x50] sm:$0xf]  ;;  %v2512_v22 = vor.u32 %v2511_v49, %v13551_v8  ;;  %v2467_v24 = vshll.u32 %v2245_v25, 16  ;;  %v313_v34 = vld [vmem:[#allocation2 + $0xbc] sm:$0x1] }
 0x13e   : > { %11537 = vmatprep.mubr.bf16.mxu1 %v10131_v36  ;;  %11493 = vmatprep.mubr.bf16.mxu0 %v12303_v20  ;;  %v2438_v33 = vshrl.u32 %v2241_v31, 16  ;;  %v2441_v43 = vshll.u32 %v2241_v31, 16  ;;  %v12304_v3 = vld [vmem:[#allocation2 + $0x74] ss:$12 sps:$4 sm:$0xff]   ;;  %v2251_v6 = vld [vmem:[#allocation2 + $0x8c] sm:$0x1] }
 0x13f   : > { %v2396_v48 = vor.u32 %v2395_v39, %v2392_v44  ;;  %v2247_v29 = vld [vmem:[#allocation2 + $0x74] sm:$0xf]  ;;  %10931 = vmatprep.subr.bf16.mxu0 %v12305_v38  ;;  %v2469_v42 = vrot.slane %v2467_v24, 5  ;;  %v13574_v11 = vrot.slane %v2512_v22, 4  ;;  %v2515_v28 = vshll.u32 %v2251_v6, 16  ;;  %v12313_v20 = vld [vmem:[#allocation7 + $0x1d8] sm:$0xff]  }
 0x140   : > { %v2440_v53 = vrot.slane %v2438_v33, 4  ;;  %v2443_v30 = vrot.slane %v2441_v43, 5  ;;  %v2486_v41 = vshrl.u32 %v2247_v29, 16  ;;  %v414_v18 = vld [vmem:[#allocation2 + $0xd4] sm:$0x1]  ;;  %v2489_v4 = vshll.u32 %v2247_v29, 16 }
 0x141   : > { %v2397_v27 = vrot.slane %v2396_v48, 4  ;;  %10932 = vmatpush3.bf16.msra.mxu0 %v12306_v56  ;;  %v1182_v36 = vld [vmem:[#allocation2 + $0x98] sm:$0xf]  ;;  %v2261_v50 = vld [vmem:[#allocation2 + $0xc8] sm:$0xf]  ;;  %v2470_v37 = vsel %vm13015_vm2, %v13555_v54, %v2469_v42  ;;  %v2517_v39 = vrot.slane %v2515_v28, 5 }
 0x142   : > { %v2444_v23 = vor.u32 %v2443_v30, %v2440_v53  ;;  %v2488_v49 = vrot.slane %v2486_v41, 4  ;;  %v1183_v38 = vsel %vm12934_vm15, %v13113_v2, %v1182_v36  ;;  %10933 = vmatprep.subr.bf16.mxu0 %v12309_v21  ;;  %v319_v5 = vld [vmem:[#allocation2 + $0xe0] sm:$0x1]  ;;  %v420_v44 = vld [vmem:[#allocation2 + $0xf8] sm:$0x1]  ;;  %v2491_v14 = vrot.slane %v2489_v4, 5 }
 0x143   : > { %v2402_v56 = vsel %vm13015_vm2, %v2397_v27, %v13509_v62  ;;  %1184 = vst [vmem:[#allocation2 + $0x98] sm:$0xf] %v1183_v38  ;;  %v1186_v31 = vld [vmem:[#allocation2 + $0xb0] sm:$0x1]  ;;  %v13585_v25 = vrot.slane %v2557_v7, 4  ;;  %v12320_v22 = vld [vmem:[#allocation7 + $0x208] sm:$0xff]   ;;  %v2518_v48 = vsel %vm13015_vm2, %v13574_v11, %v2517_v39 }
 0x144   : > { %v2267_v54 = vld [vmem:[#allocation2 + $0xec] sm:$0xf]  ;;  %v10134_v33 = vcombine.low %v2402_v56, %v2422_v32  ;;  %v2445_v43 = vrot.slane %v2444_v23, 4  ;;  %11494 = vmatmul.mubr.bf16.gmra.mrb[68].mxu0 %v12304_v3  ;;  %v1187_v2 = vsel %vm12866_vm6, %v13145_v55, %v1186_v31  ;;  %v314_v21 = vsel %vm12866_vm6, 0, %v313_v34  ;;  %v325_v24 = vld [vmem:[#allocation2 + $0x104] sm:$0x1] }
 0x145   : > { %v2492_v62 = vor.u32 %v2491_v14, %v2488_v49  ;;  %1188 = vst [vmem:[#allocation2 + $0xb0] sm:$0x1] %v1187_v2  ;;  %315 = vst [vmem:[#allocation2 + $0xbc] sm:$0x1] %v314_v21  ;;  %v415_v7 = vsel %vm12876_vm8, 0, %v414_v18  ;;  %10934 = vmatpush3.bf16.msra.mxu0 %v12310_v35  ;;  %v12314_v29 = vld [vmem:[#allocation7 + $0x198] sm:$0xff]   ;;  %v2560_v35 = vor.u32 %v13585_v25, %v13568_v0 }
 0x146   : > { %v426_v32 = vld [vmem:[#allocation2 + $0x11c] sm:$0x1]  ;;  %v13597_v3 = vld [vmem:[#allocation2 + $0x110] sm:$0xf]  ;;  %11538 = vmatmul.mubr.bf16.vlgmr.msra.gmra.mrb[64].mxu1 %v10134_v33  ;;  %v2450_v55 = vsel %vm13015_vm2, %v2445_v43, %v13513_v58  ;;  %416 = vst [vmem:[#allocation2 + $0xd4] sm:$0x1] %v415_v7  ;;  %10935 = vmatprep.subr.bf16.mxu0 %v12313_v20 }
 0x147   : > { %v2591_v6 = vshll.u32 %v2261_v50, 16  ;;  %v2605_v34 = vshrl.u32 %v2261_v50, 16  ;;  %v320_v53 = vsel %vm12866_vm6, 0, %v319_v5  ;;  %v12317_v30 = vld [vmem:[#allocation7 + $0x1e0] sm:$0xff]   ;;  %v10137_v42 = vcombine.low %v2450_v55, %v2470_v37  ;;  %v12324_v58 = vld [vmem:[#allocation7 + $0x210] sm:$0xff]   ;;  %v13618_v31 = vld [vmem:[#allocation7 + $0x218] sm:$0xff]  }
 0x148   : > { %v2493_v41 = vrot.slane %v2492_v62, 4  ;;  %321 = vst [vmem:[#allocation2 + $0xe0] sm:$0x1] %v320_v53  ;;  %v421_v18 = vsel %vm12876_vm8, 0, %v420_v44  ;;  %v12319_v27 = vld [vmem:[#allocation7 + $0x1a0] sm:$0xff]   ;;  %v2639_v36 = vshll.u32 %v2267_v54, 16 }
 0x149   : > { %v12475_v4 = vld [vmem:[#allocation7 + $0x200] sm:$0xff]   ;;  %v13608_v11 = vrot.slane %v2591_v6, 5  ;;  %v2607_v28 = vrot.slane %v2605_v34, 4  ;;  %422 = vst [vmem:[#allocation2 + $0xf8] sm:$0x1] %v421_v18  ;;  %v2653_v50 = vshrl.u32 %v2267_v54, 16  ;;  %11541 = vmatprep.mubr.bf16.mxu1 %v10137_v42  ;;  %10936 = vmatpush3.bf16.msra.mxu0 %v12314_v29 }
 0x14a   : > { %11570 = vmatpush3.bf16.msra.mxu1 %v12475_v4  ;;  %v2498_v23 = vsel %vm13015_vm2, %v2493_v41, %v13551_v8  ;;  %v326_v37 = vsel %vm12866_vm6, 0, %v325_v24  ;;  %v427_v49 = vsel %vm12876_vm8, 0, %v426_v32  ;;  %v2687_v38 = vshll.u32 %v13597_v3, 16  ;;  %v331_v5 = vld [vmem:[#allocation2 + $0x128] sm:$0x1]  ;;  %10937 = vmatprep.subr.bf16.mxu0 %v12317_v30 }
 0x14b   : > { %11571 = vmatprep.subr.bf16.mxu1 %v12320_v22  ;;  %v12323_v44 = vld [vmem:[#allocation7 + $0x1e8] sm:$0xff]   ;;  %v10140_v20 = vcombine.low %v2498_v23, %v2518_v48  ;;  %v12307_v56 = vld [vmem:[#allocation2 + $0x98] ss:$12 sps:$4 sm:$0xff]   ;;  %327 = vst [vmem:[#allocation2 + $0x104] sm:$0x1] %v326_v37  ;;  %v13620_v54 = vrot.slane %v2639_v36, 5  ;;  %v2608_v48 = vor.u32 %v2607_v28, %v13608_v11 }
 0x14c   : > { %v2253_v14 = vld [vmem:[#allocation2 + $0x98] sm:$0xf]  ;;  %428 = vst [vmem:[#allocation2 + $0x11c] sm:$0x1] %v427_v49  ;;  %v432_v39 = vld [vmem:[#allocation2 + $0x140] sm:$0x1]  ;;  %11497 = vmatprep.mubr.bf16.mxu0 %v12307_v56 }
 0x14d   : > { %v2534_v8 = vshrl.u32 %v2253_v14, 16  ;;  %v2537_v25 = vshll.u32 %v2253_v14, 16  ;;  %v2655_v33 = vrot.slane %v2653_v50, 4  ;;  %v13622_v43 = vld [vmem:[#allocation2 + $0x134] sm:$0xf]  ;;  %v12325_v2 = vld [vmem:[#allocation7 + $0x1a8] sm:$0xff]   ;;  %10938 = vmatpush3.bf16.msra.mxu0 %v12319_v27 }
 0x14e   : > { %11572 = vmatpush3.bf16.msra.mxu1 %v12320_v22  ;;  %v2257_v21 = vld [vmem:[#allocation2 + $0xb0] sm:$0x1]  ;;  %v2561_v24 = vrot.slane %v2560_v35, 4  ;;  %v1189_v62 = vld [vmem:[#allocation2 + $0xbc] sm:$0xf]  ;;  %v13625_v7 = vrot.slane %v2687_v38, 5  ;;  %10939 = vmatprep.subr.bf16.mxu0 %v12323_v44 }
 0x14f   : > { %11573 = vmatprep.subr.bf16.mxu1 %v12324_v58  ;;  %v2536_v32 = vrot.slane %v2534_v8, 4  ;;  %v2539_v29 = vrot.slane %v2537_v25, 5  ;;  %v2563_v55 = vshll.u32 %v2257_v21, 16  ;;  %v1190_v6 = vsel %vm12934_vm15, %v13156_v47, %v1189_v62  ;;  %v1193_v34 = vld [vmem:[#allocation2 + $0xd4] sm:$0x1]  ;;  %11542 = vmatmul.mubr.bf16.gmra.mrb[68].mxu1 %v10140_v20  ;;  %v12330_v47 = vld [vmem:[#allocation7 + $0x220] sm:$0xff]  }
 0x150   : > { %v12329_v22 = vld [vmem:[#allocation7 + $0x1f0] sm:$0xff]   ;;  %1191 = vst [vmem:[#allocation2 + $0xbc] sm:$0xf] %v1190_v6  ;;  %v1194_v53 = vsel %vm12866_vm6, %v13175_v26, %v1193_v34  ;;  %v1196_v30 = vld [vmem:[#allocation2 + $0xe0] sm:$0xf]  ;;  %v2656_v42 = vor.u32 %v2655_v33, %v13620_v54  ;;  %v2701_v41 = vshrl.u32 %v13597_v3, 16 }
 0x151   : > { %v332_v35 = vsel %vm12866_vm6, 0, %v331_v5  ;;  %v337_v18 = vld [vmem:[#allocation2 + $0x14c] sm:$0x1]  ;;  %v438_v4 = vld [vmem:[#allocation2 + $0x164] sm:$0x1]  ;;  %v2540_v27 = vor.u32 %v2539_v29, %v2536_v32  ;;  %v2565_v28 = vrot.slane %v2563_v55, 5  ;;  %v1197_v36 = vsel %vm12934_vm15, %v13202_v46, %v1196_v30  ;;  %10940 = vmatpush3.bf16.msra.mxu0 %v12325_v2 }
 0x152   : > { %1195 = vst [vmem:[#allocation2 + $0xd4] sm:$0x1] %v1194_v53  ;;  %v1200_v26 = vld [vmem:[#allocation2 + $0xf8] sm:$0x1]  ;;  %333 = vst [vmem:[#allocation2 + $0x128] sm:$0x1] %v332_v35  ;;  %11574 = vmatpush3.bf16.msra.mxu1 %v12324_v58  ;;  %10941 = vmatprep.subr.bf16.mxu0 %v12329_v22 }
 0x153   : > { %v433_v50 = vsel %vm12876_vm8, 0, %v432_v39  ;;  %v13642_v3 = vld [vmem:[#allocation2 + $0x158] sm:$0xf]  ;;  %v13644_v23 = vrot.slane %v2608_v48, 4  ;;  %1198 = vst [vmem:[#allocation2 + $0xe0] sm:$0xf] %v1197_v36  ;;  %v1201_v37 = vsel %vm12866_vm6, %v13206_v60, %v1200_v26  ;;  %11575 = vmatprep.subr.bf16.mxu1 %v13618_v31  ;;  %v2566_v44 = vsel %vm13015_vm2, %v2561_v24, %v2565_v28 }
 0x154   : > { %v2703_v49 = vrot.slane %v2701_v41, 4  ;;  %434 = vst [vmem:[#allocation2 + $0x140] sm:$0x1] %v433_v50  ;;  %v2735_v38 = vshll.u32 %v13622_v43, 16  ;;  %v12331_v46 = vld [vmem:[#allocation7 + $0x1b0] sm:$0xff]   ;;  %v2541_v5 = vrot.slane %v2540_v27, 4 }
 0x155   : > { %1202 = vst [vmem:[#allocation2 + $0xf8] sm:$0x1] %v1201_v37  ;;  %v1203_v58 = vld [vmem:[#allocation2 + $0x104] sm:$0xf]  ;;  %v1207_v20 = vld [vmem:[#allocation2 + $0x11c] sm:$0x1]  ;;  %10942 = vmatpush3.bf16.msra.mxu0 %v12331_v46 }
 0x156   : > { %v2749_v56 = vshrl.u32 %v13622_v43, 16  ;;  %v13654_v14 = vrot.slane %v2656_v42, 4  ;;  %v1204_v60 = vsel %vm12934_vm15, %v13239_v1, %v1203_v58  ;;  %v1208_v39 = vsel %vm12866_vm6, %v13242_v9, %v1207_v20  ;;  %v12335_v25 = vld [vmem:[#allocation7 + $0x1f8] sm:$0xff]   ;;  %11576 = vmatpush3.bf16.msra.mxu1 %v13618_v31  ;;  %v12332_v62 = vld [vmem:[#allocation7 + $0x228] sm:$0xff]   ;;  %v12336_v22 = vld [vmem:[#allocation7 + $0x230] sm:$0xff]  }
 0x157   : > { %v2704_v8 = vor.u32 %v2703_v49, %v13625_v7  ;;  %v2546_v33 = vsel %vm13015_vm2, %v2541_v5, %v13568_v0  ;;  %1205 = vst [vmem:[#allocation2 + $0x104] sm:$0xf] %v1204_v60  ;;  %1209 = vst [vmem:[#allocation2 + $0x11c] sm:$0x1] %v1208_v39  ;;  %v13666_v43 = vrot.slane %v2735_v38, 5  ;;  %v338_v2 = vsel %vm12866_vm6, 0, %v337_v18  ;;  %11577 = vmatprep.subr.bf16.mxu1 %v12330_v47 }
 0x158   : > { %v439_v1 = vsel %vm12876_vm8, 0, %v438_v4  ;;  %v10143_v9 = vcombine.low %v2546_v33, %v2566_v44  ;;  %v13675_v24 = vrot.slane %v2749_v56, 4  ;;  %339 = vst [vmem:[#allocation2 + $0x14c] sm:$0x1] %v338_v2  ;;  %v2783_v0 = vshll.u32 %v13642_v3, 16  ;;  %v12337_v48 = vld [vmem:[#allocation7 + $0x1b8] sm:$0xff]   ;;  %10943 = vmatprep.subr.bf16.mxu0 %v12335_v25 }
 0x159   : > { %v13673_v21 = vrot.slane %v2704_v8, 4  ;;  %440 = vst [vmem:[#allocation2 + $0x164] sm:$0x1] %v439_v1  ;;  %v12308_v32 = vld [vmem:[#allocation2 + $0xbc] ss:$12 sps:$4 sm:$0xff]   ;;  %v2797_v41 = vshrl.u32 %v13642_v3, 16  ;;  %10944 = vmatpush3.bf16.msra.mxu0 %v12337_v48 }
 0x15a   : > { %v2259_v29 = vld [vmem:[#allocation2 + $0xbc] sm:$0xf]  ;;  %11545 = vmatprep.mubr.bf16.mxu1 %v10143_v9  ;;  %v2263_v55 = vld [vmem:[#allocation2 + $0xd4] sm:$0x1]  ;;  %v1210_v31 = vld [vmem:[#allocation2 + $0x128] sm:$0xf]  ;;  %11498 = vmatmul.mubr.bf16.gmra.mrb[72].mxu0 %v12308_v32 }
 0x15b   : > { %v2582_v6 = vshrl.u32 %v2259_v29, 16  ;;  %v2585_v34 = vshll.u32 %v2259_v29, 16  ;;  %v2611_v53 = vshll.u32 %v2263_v55, 16  ;;  %v12311_v30 = vld [vmem:[#allocation2 + $0xe0] ss:$12 sps:$4 sm:$0xff]   ;;  %v1211_v42 = vsel %vm12934_vm15, %v13256_v63, %v1210_v31  ;;  %11578 = vmatpush3.bf16.msra.mxu1 %v12330_v47  ;;  %v12338_v60 = vld [vmem:[#allocation7 + $0x238] sm:$0xff]  }
 0x15c   : > { %v2265_v4 = vld [vmem:[#allocation2 + $0xe0] sm:$0xf]  ;;  %v2269_v27 = vld [vmem:[#allocation2 + $0xf8] sm:$0x1]  ;;  %1212 = vst [vmem:[#allocation2 + $0x128] sm:$0xf] %v1211_v42  ;;  %11579 = vmatprep.subr.bf16.mxu1 %v12332_v62  ;;  %11501 = vmatprep.mubr.bf16.mxu0 %v12311_v30  ;;  %v2752_v47 = vor.u32 %v13675_v24, %v13666_v43 }
 0x15d   : > { %v2584_v35 = vrot.slane %v2582_v6, 4  ;;  %v2587_v18 = vrot.slane %v2585_v34, 5  ;;  %v2613_v28 = vrot.slane %v2611_v53, 5  ;;  %v2630_v36 = vshrl.u32 %v2265_v4, 16  ;;  %v1214_v37 = vld [vmem:[#allocation2 + $0x140] sm:$0x1] }
 0x15e   : > { %v2633_v26 = vshll.u32 %v2265_v4, 16  ;;  %v2659_v50 = vshll.u32 %v2269_v27, 16  ;;  %v12312_v38 = vld [vmem:[#allocation2 + $0x104] ss:$12 sps:$4 sm:$0xff]   ;;  %v1215_v63 = vsel %vm12866_vm6, %v13266_v17, %v1214_v37  ;;  %v2275_v20 = vld [vmem:[#allocation2 + $0x11c] sm:$0x1] }
 0x15f   : > { %v2588_v49 = vor.u32 %v2587_v18, %v2584_v35  ;;  %v2271_v46 = vld [vmem:[#allocation2 + $0x104] sm:$0xf]  ;;  %v2614_v3 = vsel %vm13015_vm2, %v13644_v23, %v2613_v28  ;;  %v2632_v5 = vrot.slane %v2630_v36, 4  ;;  %1216 = vst [vmem:[#allocation2 + $0x140] sm:$0x1] %v1215_v63  ;;  %11580 = vmatpush3.bf16.msra.mxu1 %v12332_v62  ;;  %v2707_v33 = vshll.u32 %v2275_v20, 16 }
 0x160   : > { %v2635_v44 = vrot.slane %v2633_v26, 5  ;;  %v2661_v58 = vrot.slane %v2659_v50, 5  ;;  %v343_v56 = vld [vmem:[#allocation2 + $0x170] sm:$0x1]  ;;  %v2678_v8 = vshrl.u32 %v2271_v46, 16  ;;  %v2681_v25 = vshll.u32 %v2271_v46, 16  ;;  %11581 = vmatprep.subr.bf16.mxu1 %v12336_v22 }
 0x161   : > { %v2589_v39 = vrot.slane %v2588_v49, 4  ;;  %v1217_v17 = vld [vmem:[#allocation2 + $0x14c] sm:$0xf]  ;;  %v1221_v9 = vld [vmem:[#allocation2 + $0x164] sm:$0x1]  ;;  %v13696_v24 = vrot.slane %v2783_v0, 5 }
 0x162   : > { %v2636_v2 = vor.u32 %v2635_v44, %v2632_v5  ;;  %v2662_v1 = vsel %vm13015_vm2, %v13654_v14, %v2661_v58  ;;  %v1218_v23 = vsel %vm12934_vm15, %v13290_v15, %v1217_v17  ;;  %v444_v62 = vld [vmem:[#allocation2 + $0x188] sm:$0x1]  ;;  %v2680_v32 = vrot.slane %v2678_v8, 4  ;;  %v2291_v6 = vld [vmem:[#allocation2 + $0x17c] sm:$0xf]  ;;  %11502 = vmatmul.mubr.bf16.gmra.mrb[76].mxu0 %v12312_v38 }
 0x163   : > { %v2594_v48 = vsel %vm13015_vm2, %v2589_v39, %v13608_v11  ;;  %v2683_v29 = vrot.slane %v2681_v25, 5  ;;  %v2709_v55 = vrot.slane %v2707_v33, 5  ;;  %1219 = vst [vmem:[#allocation2 + $0x14c] sm:$0xf] %v1218_v23  ;;  %v12315_v14 = vld [vmem:[#allocation2 + $0x128] ss:$12 sps:$4 sm:$0xff]   ;;  %v1222_v15 = vsel %vm12866_vm6, %v13306_v12, %v1221_v9  ;;  %11582 = vmatpush3.bf16.msra.mxu1 %v12336_v22 }
 0x164   : > { %v10146_v34 = vcombine.low %v2594_v48, %v2614_v3  ;;  %v2637_v31 = vrot.slane %v2636_v2, 4  ;;  %v2799_v0 = vrot.slane %v2797_v41, 4  ;;  %v349_v53 = vld [vmem:[#allocation2 + $0x194] sm:$0x1]  ;;  %v2277_v42 = vld [vmem:[#allocation2 + $0x128] sm:$0xf]  ;;  %11583 = vmatprep.subr.bf16.mxu1 %v12338_v60  ;;  %11505 = vmatprep.mubr.bf16.mxu0 %v12315_v14 }
 0x165   : > { %v2684_v30 = vor.u32 %v2683_v29, %v2680_v32  ;;  %v13704_v35 = vrot.slane %v2752_v47, 4  ;;  %1223 = vst [vmem:[#allocation2 + $0x164] sm:$0x1] %v1222_v15  ;;  %v344_v11 = vsel %vm12866_vm6, 0, %v343_v56  ;;  %v445_v18 = vsel %vm12876_vm8, 0, %v444_v62 }
 0x166   : > { %11546 = vmatmul.mubr.bf16.gmra.mrb[72].mxu1 %v10146_v34  ;;  %v2642_v12 = vsel %vm13015_vm2, %v2637_v31, %v13620_v54  ;;  %v2710_v22 = vsel %vm13015_vm2, %v13673_v21, %v2709_v55  ;;  %v2726_v41 = vshrl.u32 %v2277_v42, 16  ;;  %v2729_v4 = vshll.u32 %v2277_v42, 16  ;;  %345 = vst [vmem:[#allocation2 + $0x170] sm:$0x1] %v344_v11  ;;  %446 = vst [vmem:[#allocation2 + $0x188] sm:$0x1] %v445_v18 }
 0x167   : > { %v450_v27 = vld [vmem:[#allocation2 + $0x1ac] sm:$0x1]  ;;  %v2297_v28 = vld [vmem:[#allocation2 + $0x1a0] sm:$0xf]  ;;  %v10149_v36 = vcombine.low %v2642_v12, %v2662_v1  ;;  %v2685_v26 = vrot.slane %v2684_v30, 4  ;;  %v2831_v37 = vshll.u32 %v2291_v6, 16  ;;  %v2800_v54 = vor.u32 %v2799_v0, %v13696_v24  ;;  %11584 = vmatpush3.bf16.msra.mxu1 %v12338_v60 }
 0x168   : > { %v2281_v50 = vld [vmem:[#allocation2 + $0x140] sm:$0x1]  ;;  %v2845_v49 = vshrl.u32 %v2291_v6, 16  ;;  %v2728_v38 = vrot.slane %v2726_v41, 4  ;;  %v2731_v46 = vrot.slane %v2729_v4, 5  ;;  %v350_v44 = vsel %vm12866_vm6, 0, %v349_v53 }
 0x169   : > { %v2755_v63 = vshll.u32 %v2281_v50, 16  ;;  %v355_v47 = vld [vmem:[#allocation2 + $0x1b8] sm:$0x1]  ;;  %11549 = vmatprep.mubr.bf16.mxu1 %v10149_v36  ;;  %v2690_v21 = vsel %vm13015_vm2, %v2685_v26, %v13625_v7  ;;  %v13720_v3 = vrot.slane %v2831_v37, 5  ;;  %351 = vst [vmem:[#allocation2 + $0x194] sm:$0x1] %v350_v44 }
 0x16a   : > { %v13722_v5 = vrot.slane %v2845_v49, 4  ;;  %v10152_v58 = vcombine.low %v2690_v21, %v2710_v22  ;;  %v2732_v20 = vor.u32 %v2731_v46, %v2728_v38  ;;  %v12316_v39 = vld [vmem:[#allocation2 + $0x14c] ss:$12 sps:$4 sm:$0xff]   ;;  %v451_v60 = vsel %vm12876_vm8, 0, %v450_v27  ;;  %v456_v17 = vld [vmem:[#allocation2 + $0x1d0] sm:$0x1] }
 0x16b   : > { %v2757_v56 = vrot.slane %v2755_v63, 5  ;;  %v2283_v8 = vld [vmem:[#allocation2 + $0x14c] sm:$0xf]  ;;  %452 = vst [vmem:[#allocation2 + $0x1ac] sm:$0x1] %v451_v60  ;;  %v2879_v25 = vshll.u32 %v2297_v28, 16  ;;  %11506 = vmatmul.mubr.bf16.gmra.mrb[80].mxu0 %v12316_v39 }
 0x16c   : > { %v2893_v33 = vshrl.u32 %v2297_v28, 16  ;;  %v356_v7 = vsel %vm12866_vm6, 0, %v355_v47  ;;  %v2303_v2 = vld [vmem:[#allocation2 + $0x1c4] sm:$0xf]  ;;  %v2733_v1 = vrot.slane %v2732_v20, 4  ;;  %v2774_v62 = vshrl.u32 %v2283_v8, 16 }
 0x16d   : > { %v2758_v23 = vsel %vm13015_vm2, %v13704_v35, %v2757_v56  ;;  %v2287_v9 = vld [vmem:[#allocation2 + $0x164] sm:$0x1]  ;;  %v2777_v48 = vshll.u32 %v2283_v8, 16  ;;  %357 = vst [vmem:[#allocation2 + $0x1b8] sm:$0x1] %v356_v7  ;;  %v2801_v32 = vrot.slane %v2800_v54, 4  ;;  %v2848_v34 = vor.u32 %v13722_v5, %v13720_v3 }
 0x16e   : > { %v2803_v29 = vshll.u32 %v2287_v9, 16  ;;  %v1224_v55 = vld [vmem:[#allocation2 + $0x170] sm:$0xf]  ;;  %v1228_v6 = vld [vmem:[#allocation2 + $0x188] sm:$0x1]  ;;  %11550 = vmatmul.mubr.bf16.gmra.mrb[76].mxu1 %v10152_v58  ;;  %v2738_v31 = vsel %vm13015_vm2, %v2733_v1, %v13666_v43  ;;  %v2776_v14 = vrot.slane %v2774_v62, 4 }
 0x16f   : > { %v2779_v15 = vrot.slane %v2777_v48, 5  ;;  %v1225_v0 = vsel %vm12934_vm15, %v13342_v61, %v1224_v55  ;;  %v361_v53 = vld [vmem:[#allocation2 + $0x1dc] sm:$0x1]  ;;  %v462_v30 = vld [vmem:[#allocation2 + $0x1f4] sm:$0x1]  ;;  %v10155_v42 = vcombine.low %v2738_v31, %v2758_v23  ;;  %v1229_v11 = vsel %vm12866_vm6, %v13344_v19, %v1228_v6 }
 0x170   : > { %v2805_v35 = vrot.slane %v2803_v29, 5  ;;  %1226 = vst [vmem:[#allocation2 + $0x170] sm:$0xf] %v1225_v0  ;;  %v13744_v18 = vrot.slane %v2879_v25, 5  ;;  %v2309_v12 = vld [vmem:[#allocation2 + $0x1e8] sm:$0xf] }
 0x171   : > { %v2780_v22 = vor.u32 %v2779_v15, %v2776_v14  ;;  %1230 = vst [vmem:[#allocation2 + $0x188] sm:$0x1] %v1229_v11  ;;  %v2895_v43 = vrot.slane %v2893_v33, 4  ;;  %v457_v41 = vsel %vm12876_vm8, 0, %v456_v17  ;;  %v2927_v4 = vshll.u32 %v2303_v2, 16  ;;  %11553 = vmatprep.mubr.bf16.mxu1 %v10155_v42 }
 0x172   : > { %v367_v61 = vld [vmem:[#allocation2 + $0x200] sm:$0x1]  ;;  %v2806_v27 = vsel %vm13015_vm2, %v2801_v32, %v2805_v35  ;;  %v1231_v28 = vld [vmem:[#allocation2 + $0x194] sm:$0xf]  ;;  %458 = vst [vmem:[#allocation2 + $0x1d0] sm:$0x1] %v457_v41 }
 0x173   : > { %v2941_v36 = vshrl.u32 %v2303_v2, 16  ;;  %v362_v19 = vsel %vm12866_vm6, 0, %v361_v53  ;;  %v463_v26 = vsel %vm12876_vm8, 0, %v462_v30  ;;  %v2781_v50 = vrot.slane %v2780_v22, 4  ;;  %v1235_v49 = vld [vmem:[#allocation2 + $0x1ac] sm:$0x1] }
 0x174   : > { %v1232_v37 = vsel %vm12934_vm15, %v13375_v59, %v1231_v28  ;;  %v2896_v38 = vor.u32 %v2895_v43, %v13744_v18  ;;  %v13758_v46 = vrot.slane %v2927_v4, 5  ;;  %363 = vst [vmem:[#allocation2 + $0x1dc] sm:$0x1] %v362_v19  ;;  %464 = vst [vmem:[#allocation2 + $0x1f4] sm:$0x1] %v463_v26  ;;  %v1236_v63 = vsel %vm12866_vm6, %v13383_v45, %v1235_v49  ;;  %v16069_v30 = vld [vmem:[#allocation18_spill] sm:$0xff] }
 0x175   : > { %1233 = vst [vmem:[#allocation2 + $0x194] sm:$0xf] %v1232_v37  ;;  %v1238_v54 = vld [vmem:[#allocation2 + $0x1b8] sm:$0xf]  ;;  %v2943_v47 = vrot.slane %v2941_v36, 4  ;;  %v2975_v21 = vshll.u32 %v2309_v12, 16  ;;  %v2786_v59 = vsel %vm13015_vm2, %v2781_v50, %v13696_v24 }
 0x176   : > { %v2989_v5 = vshrl.u32 %v2309_v12, 16  ;;  %1237 = vst [vmem:[#allocation2 + $0x1ac] sm:$0x1] %v1236_v63  ;;  %v1239_v44 = vsel %vm12934_vm15, %v13397_v40, %v1238_v54  ;;  %v368_v58 = vsel %vm12866_vm6, 0, %v367_v61  ;;  %v10158_v20 = vcombine.low %v2786_v59, %v2806_v27  ;;  %v468_v39 = vld [vmem:[#allocation2 + $0x218] sm:$0x1] }
 0x177   : > { %v13771_v56 = vrot.slane %v2848_v34, 4  ;;  %v13773_v45 = vrot.slane %v2896_v38, 4  ;;  %1240 = vst [vmem:[#allocation2 + $0x1b8] sm:$0xf] %v1239_v44  ;;  %369 = vst [vmem:[#allocation2 + $0x200] sm:$0x1] %v368_v58  ;;  %v2944_v24 = vor.u32 %v2943_v47, %v13758_v46 }
 0x178   : > { %v2315_v60 = vld [vmem:[#allocation2 + $0x20c] sm:$0xf]  ;;  %v12321_v8 = vld [vmem:[#allocation2 + $0x170] ss:$12 sps:$4 sm:$0xff]   ;;  %11554 = vmatmul.mubr.bf16.gmra.mrb[80].mxu1 %v10158_v20  ;;  %v2293_v33 = vld [vmem:[#allocation2 + $0x188] sm:$0x1] }
 0x179   : > { %v2289_v25 = vld [vmem:[#allocation2 + $0x170] sm:$0xf]  ;;  %v13776_v17 = vrot.slane %v2975_v21, 5  ;;  %v2991_v2 = vrot.slane %v2989_v5, 4  ;;  %11509 = vmatprep.mubr.bf16.mxu0 %v12321_v8  ;;  %v2851_v1 = vshll.u32 %v2293_v33, 16  ;;  %v469_v9 = vsel %vm12876_vm8, 0, %v468_v39 }
 0x17a   : > { %v2822_v7 = vshrl.u32 %v2289_v25, 16  ;;  %v2825_v40 = vshll.u32 %v2289_v25, 16  ;;  %v1242_v23 = vld [vmem:[#allocation2 + $0x1d0] sm:$0x1]  ;;  %v3023_v62 = vshll.u32 %v2315_v60, 16  ;;  %v3037_v48 = vshrl.u32 %v2315_v60, 16 }
 0x17b   : > { %v373_v32 = vld [vmem:[#allocation2 + $0x224] sm:$0x1]  ;;  %v1243_v6 = vsel %vm12866_vm6, %v13408_v52, %v1242_v23  ;;  %v1245_v34 = vld [vmem:[#allocation2 + $0x1dc] sm:$0xf]  ;;  %v1249_v31 = vld [vmem:[#allocation2 + $0x1f4] sm:$0x1]  ;;  %v2992_v52 = vor.u32 %v2991_v2, %v13776_v17 }
 0x17c   : > { %v2824_v29 = vrot.slane %v2822_v7, 4  ;;  %v2827_v55 = vrot.slane %v2825_v40, 5  ;;  %470 = vst [vmem:[#allocation2 + $0x218] sm:$0x1] %v469_v9  ;;  %v2853_v14 = vrot.slane %v2851_v1, 5  ;;  %v13783_v0 = vrot.slane %v2944_v24, 4 }
 0x17d   : > { %v12322_v15 = vld [vmem:[#allocation2 + $0x194] ss:$12 sps:$4 sm:$0xff]   ;;  %1244 = vst [vmem:[#allocation2 + $0x1d0] sm:$0x1] %v1243_v6  ;;  %v1246_v53 = vsel %vm12934_vm15, %v13420_v51, %v1245_v34  ;;  %v1250_v42 = vsel %vm12866_vm6, %v16069_v30, %v1249_v31  ;;  %v2299_v12 = vld [vmem:[#allocation2 + $0x1ac] sm:$0x1] }
 0x17e   : > { %v2828_v35 = vor.u32 %v2827_v55, %v2824_v29  ;;  %v2295_v11 = vld [vmem:[#allocation2 + $0x194] sm:$0xf]  ;;  %1247 = vst [vmem:[#allocation2 + $0x1dc] sm:$0xf] %v1246_v53  ;;  %1251 = vst [vmem:[#allocation2 + $0x1f4] sm:$0x1] %v1250_v42  ;;  %11510 = vmatmul.mubr.bf16.gmra.mrb[84].mxu0 %v12322_v15  ;;  %v2854_v19 = vsel %vm13015_vm2, %v13771_v56, %v2853_v14 }
 0x17f   : > { %v13792_v22 = vrot.slane %v3023_v62, 5  ;;  %v3039_v43 = vrot.slane %v3037_v48, 4  ;;  %v2870_v41 = vshrl.u32 %v2295_v11, 16  ;;  %v2873_v4 = vshll.u32 %v2295_v11, 16  ;;  %v474_v27 = vld [vmem:[#allocation2 + $0x23c] sm:$0x1] }
 0x180   : > { %v2899_v61 = vshll.u32 %v2299_v12, 16  ;;  %v2321_v51 = vld [vmem:[#allocation2 + $0x230] sm:$0xf]  ;;  %v10673_v28 = vpop.f32.mrb[0].mxu0  ;;  %v2829_v36 = vrot.slane %v2828_v35, 4  ;;  %v374_v49 = vsel %vm12866_vm6, 0, %v373_v32 }
 0x181   : > { %v12327_v26 = vld [vmem:[#allocation2 + $0x1b8] ss:$12 sps:$4 sm:$0xff]   ;;  %v3040_v37 = vor.u32 %v3039_v43, %v13792_v22  ;;  %v2872_v38 = vrot.slane %v2870_v41, 4  ;;  %v2875_v63 = vrot.slane %v2873_v4, 5  ;;  %v1252_v21 = vld [vmem:[#allocation2 + $0x200] sm:$0xf] }
 0x182   : > { %v2301_v50 = vld [vmem:[#allocation2 + $0x1b8] sm:$0xf]  ;;  %v2901_v54 = vrot.slane %v2899_v61, 5  ;;  %375 = vst [vmem:[#allocation2 + $0x224] sm:$0x1] %v374_v49  ;;  %v2834_v5 = vsel %vm13015_vm2, %v2829_v36, %v13720_v3  ;;  %11513 = vmatprep.mubr.bf16.mxu0 %v12327_v26  ;;  %v13803_v44 = vrot.slane %v2992_v52, 4 }
 0x183   : > { %v2918_v47 = vshrl.u32 %v2301_v50, 16  ;;  %v2921_v59 = vshll.u32 %v2301_v50, 16  ;;  %v16070_v58 = vld [vmem:[#allocation19_spill] sm:$0xff]  ;;  %v16071_v56 = vmov 0   ;;  %v10161_v39 = vcombine.low %v2834_v5, %v2854_v19  ;;  %v1256_v25 = vld [vmem:[#allocation2 + $0x218] sm:$0x1] }
 0x184   : > { %v1253_v20 = vsel %vm12934_vm15, %v16070_v58, %v1252_v21  ;;  %481 = vst [vmem:[#allocation2 + $0x224] sm:$0xf] %v16071_v56  ;;  %v2876_v60 = vor.u32 %v2875_v63, %v2872_v38  ;;  %v13809_v24 = vrot.slane %v3040_v37, 4  ;;  %v10674_v33 = vpop.f32.mrb[1].mxu0  ;;  %v2305_v7 = vld [vmem:[#allocation2 + $0x1d0] sm:$0x1]  ;;  %v2902_v32 = vsel %vm13015_vm2, %v13773_v45, %v2901_v54 }
 0x185   : > { %v2920_v8 = vrot.slane %v2918_v47, 4  ;;  %1254 = vst [vmem:[#allocation2 + $0x200] sm:$0xf] %v1253_v20  ;;  %v2923_v3 = vrot.slane %v2921_v59, 5  ;;  %v16072_v40 = vld [vmem:[#allocation20_spill] sm:$0xff]  ;;  %v475_v23 = vsel %vm12876_vm8, 0, %v474_v27  ;;  %11557 = vmatprep.mubr.bf16.mxu1 %v10161_v39  ;;  %v13820_v6 = vadd.f32 %v10674_v33, %v10673_v28 }
 0x186   : > { %v16073_v2 = vrot.slane %v16072_v40, 4  ;;  %v3071_v9 = vshll.u32 %v2321_v51, 16  ;;  %v10676_v62 = vpop.f32.mrb[2].mxu0  ;;  %v2877_v48 = vrot.slane %v2876_v60, 4  ;;  %v2947_v29 = vshll.u32 %v2305_v7, 16  ;;  %v3900_v37 = vld [vmem:[#allocation2 + $0xc] sm:$0xff] }
 0x187   : > { %v12328_v55 = vld [vmem:[#allocation2 + $0x1dc] ss:$12 sps:$4 sm:$0xff]   ;;  %476 = vst [vmem:[#allocation2 + $0x23c] sm:$0x1] %v475_v23  ;;  %16074 = vst [vmem:[#allocation18_spill] sm:$0xff] %v13820_v6  ;;  %v2924_v34 = vor.u32 %v2923_v3, %v2920_v8  ;;  %v3085_v15 = vshrl.u32 %v2321_v51, 16 }
 0x188   : > { %v1257_v1 = vsel %vm12866_vm6, %v16073_v2, %v1256_v25  ;;  %v2307_v31 = vld [vmem:[#allocation2 + $0x1dc] sm:$0xf]  ;;  %v2311_v14 = vld [vmem:[#allocation2 + $0x1f4] sm:$0x1]  ;;  %483 = vst [vmem:[#allocation2 + $0x23c] sm:$0x1] %v16071_v56  ;;  %v2882_v53 = vsel %vm13015_vm2, %v2877_v48, %v13744_v18  ;;  %11514 = vmatmul.mubr.bf16.gmra.mrb[88].mxu0 %v12328_v55 }
 0x189   : > { %1258 = vst [vmem:[#allocation2 + $0x218] sm:$0x1] %v1257_v1  ;;  %v13823_v16 = vrot.slane %v3071_v9, 5  ;;  %v2949_v30 = vrot.slane %v2947_v29, 5  ;;  %v2966_v45 = vshrl.u32 %v2307_v31, 16  ;;  %v2969_v42 = vshll.u32 %v2307_v31, 16 }
 0x18a   : > { %v10677_v35 = vpop.f32.mrb[3].mxu0  ;;  %v10164_v11 = vcombine.low %v2882_v53, %v2902_v32  ;;  %v2925_v12 = vrot.slane %v2924_v34, 4  ;;  %v2995_v52 = vshll.u32 %v2311_v14, 16  ;;  %v3087_v43 = vrot.slane %v3085_v15, 4  ;;  %v3898_v41 = vld [vmem:[#allocation2] sm:$0xee] }
 0x18b   : > { %v13828_v4 = vpop.f32.mrb[4].mxu0  ;;  %v2950_v61 = vsel %vm13015_vm2, %v13783_v0, %v2949_v30  ;;  %v2968_v27 = vrot.slane %v2966_v45, 4  ;;  %v2971_v51 = vrot.slane %v2969_v42, 5  ;;  %v12334_v28 = vld [vmem:[#allocation2 + $0x224] ss:$12 sps:$4 sm:$0xff]   ;;  %v13833_v18 = vadd.f32 %v10677_v35, %v10676_v62 }
 0x18c   : > { %11558 = vmatmul.mubr.bf16.gmra.mrb[84].mxu1 %v10164_v11  ;;  %v2930_v36 = vsel %vm13015_vm2, %v2925_v12, %v13758_v46  ;;  %v2997_v19 = vrot.slane %v2995_v52, 5  ;;  %v12333_v26 = vld [vmem:[#allocation2 + $0x200] ss:$12 sps:$4 sm:$0xff]   ;;  %v3088_v50 = vor.u32 %v3087_v43, %v13823_v16  ;;  %v2319_v0 = vld [vmem:[#allocation2 + $0x224] sm:$0xf]  ;;  %v10201_v47 = vrot.slane %v3898_v41, 9 }
 0x18d   : > { %16075 = vst [vmem:[#allocation19_spill] sm:$0xff] %v13833_v18  ;;  %v10167_v49 = vcombine.low %v2930_v36, %v2950_v61  ;;  %v2972_v38 = vor.u32 %v2971_v51, %v2968_v27  ;;  %v2313_v63 = vld [vmem:[#allocation2 + $0x200] sm:$0xf]  ;;  %v3902_v54 = vld [vmem:[#allocation2 + $0x18] sm:$0x11]  ;;  %11517 = vmatprep.mubr.bf16.mxu0 %v12333_v26  ;;  %v3062_v58 = vshrl.u32 %v2319_v0, 16 }
 0x18e   : > { %v2998_v21 = vsel %vm13015_vm2, %v13803_v44, %v2997_v19  ;;  %v3014_v46 = vshrl.u32 %v2313_v63, 16  ;;  %v3017_v59 = vshll.u32 %v2313_v63, 16  ;;  %v13842_v20 = vpop.f32.mrb[5].mxu0  ;;  %v3065_v8 = vshll.u32 %v2319_v0, 16  ;;  %v3899_v2 = vld [vmem:[#allocation2 + $0x8] sm:$0xe] }
 0x18f   : > { %11561 = vmatprep.mubr.bf16.mxu1 %v10167_v49  ;;  %v2973_v56 = vrot.slane %v2972_v38, 4  ;;  %v2323_v60 = vld [vmem:[#allocation2 + $0x23c] sm:$0x1]  ;;  %v3089_v25 = vrot.slane %v3088_v50, 4  ;;  %v3064_v3 = vrot.slane %v3062_v58, 4  ;;  %v16076_v44 = vmov 0 }
 0x190   : > { %v2317_v5 = vld [vmem:[#allocation2 + $0x218] sm:$0x1]  ;;  %v3016_v33 = vrot.slane %v3014_v46, 4  ;;  %v3019_v7 = vrot.slane %v3017_v59, 5  ;;  %v3091_v40 = vshll.u32 %v2323_v60, 16  ;;  %v16077_v44 = vsel %vm13846_vm5, 4294967295, %v16076_v44  ;;  %11518 = vmatmul.mubr.bf16.gmra.mrb[92].mxu0 %v12334_v28 }
 0x191   : > { %v3043_v39 = vshll.u32 %v2317_v5, 16  ;;  %16078 = vst [vmem:[#allocation20_spill] sm:$0xff] %v16077_v44  ;;  %v2978_v1 = vsel %vm13015_vm2, %v2973_v56, %v13776_v17  ;;  %v3067_v9 = vrot.slane %v3065_v8, 5  ;;  %v4095_v62 = vrot.slane %v3900_v37, 5  ;;  %v3901_v48 = vld [vmem:[#allocation2 + $0x14] sm:$0xf] }
 0x192   : > { %v13853_v32 = vpop.f32.mrb[6].mxu0  ;;  %v10170_v29 = vcombine.low %v2978_v1, %v2998_v21  ;;  %v3020_v55 = vor.u32 %v3019_v7, %v3016_v33  ;;  %v3093_v34 = vrot.slane %v3091_v40, 5  ;;  %v4102_v31 = vrot.slane %v3902_v54, 5  ;;  %v3903_v14 = vld [vmem:[#allocation2 + $0x20] sm:$0x1]  ;;  %v3906_v35 = vld [vmem:[#allocation2 + $0x30] sm:$0xff] }
 0x193   : > { %v3045_v23 = vrot.slane %v3043_v39, 5  ;;  %v3905_v15 = vld [vmem:[#allocation2 + $0x2c] sm:$0xe]  ;;  %v3068_v30 = vor.u32 %v3067_v9, %v3064_v3  ;;  %v4096_v17 = vsel %vm13846_vm5, %v10201_v47, %v4095_v62  ;;  %v4101_v45 = vrot.slane %v4095_v62, 4  ;;  %v3907_v42 = vld [vmem:[#allocation2 + $0x38] sm:$0xf] }
 0x194   : > { %v13860_v11 = vpop.f32.mrb[7].mxu0  ;;  %11562 = vmatmul.mubr.bf16.gmra.mrb[88].mxu1 %v10170_v29  ;;  %v3021_v12 = vrot.slane %v3020_v55, 4  ;;  %v3094_v52 = vsel %vm13015_vm2, %v3089_v25, %v3093_v34  ;;  %v10202_v43 = vrot.slane %v3899_v2, 9  ;;  %v4099_v41 = vrot.slane %v3901_v48, 5  ;;  %v3909_v61 = vld [vmem:[#allocation2 + $0x44] sm:$0x1] }
 0x195   : > { %v3046_v53 = vsel %vm13015_vm2, %v13809_v24, %v3045_v23  ;;  %v13864_v27 = vpop.f32.mrb[8].mxu0  ;;  %v3069_v24 = vrot.slane %v3068_v30, 4  ;;  %v4103_v51 = vsel %vm13846_vm5, %v4101_v45, %v4102_v31  ;;  %v4105_v28 = vrot.slane %v3903_v14, 5  ;;  %v3904_v19 = vld [vmem:[#allocation2 + $0x24] sm:$0xee]  ;;  %v13884_v3 = vpop.f32.mrb[0].mxu1 }
 0x196   : > { %v10204_v36 = vrot.slane %v3905_v15, 9  ;;  %v13868_v26 = vpop.f32.mrb[9].mxu0  ;;  %v3026_v50 = vsel %vm13015_vm2, %v3021_v12, %v13792_v22  ;;  %v10233_v37 = vcombine.low %v4096_v17, %v4103_v51  ;;  %v10234_v49 = vcombine.high %v4096_v17, %v4103_v51  ;;  %v3908_v63 = vld [vmem:[#allocation2 + $0x3c] sm:$0x11]  ;;  %v3911_v5 = vld [vmem:[#allocation2 + $0x50] sm:$0xe] }
 0x197   : > { %v4100_v38 = vsel %vm13846_vm5, %v10202_v43, %v4099_v41  ;;  %v10173_v0 = vcombine.low %v3026_v50, %v3046_v53  ;;  %v3074_v54 = vsel %vm13015_vm2, %v3069_v24, %v13823_v16  ;;  %v4104_v47 = vrot.slane %v4099_v41, 4  ;;  %v3913_v46 = vld [vmem:[#allocation2 + $0x5c] sm:$0xf]  ;;  %v3915_v39 = vld [vmem:[#allocation2 + $0x68] sm:$0x1]  ;;  %v13878_v60 = vpop.f32.mrb[10].mxu0 }
 0x198   : > { %v4113_v21 = vrot.slane %v3907_v42, 5  ;;  %v10176_v59 = vcombine.low %v3074_v54, %v3094_v52  ;;  %4766 = vmatprep.mubr.bf16.mxu0 %v10234_v49  ;;  %v4119_v58 = vrot.slane %v3909_v61, 5  ;;  %v10203_v56 = vrot.slane %v3904_v19, 9  ;;  %v3919_v16 = vld [vmem:[#allocation2 + $0x80] sm:$0xf]  ;;  %v13882_v7 = vpop.f32.mrb[11].mxu0 }
 0x199   : > { %v4109_v22 = vrot.slane %v3906_v35, 5  ;;  %11565 = vmatprep.mubr.bf16.mxu1 %v10173_v0  ;;  %v4106_v8 = vsel %vm13846_vm5, %v4104_v47, %v4105_v28  ;;  %4767 = vmatmul.mubr.bf16.vlgmr.msra.gmra.mrb[96].mxu0 %v10233_v37  ;;  %v4116_v33 = vrot.slane %v3908_v63, 5  ;;  %v10206_v23 = vrot.slane %v3911_v5, 9  ;;  %v3917_v9 = vld [vmem:[#allocation2 + $0x74] sm:$0xe]  ;;  %v13888_v31 = vpop.f32.mrb[12].mxu0 }
 0x19a   : > { %v4118_v25 = vrot.slane %v4113_v21, 4  ;;  %v10235_v40 = vcombine.low %v4100_v38, %v4106_v8  ;;  %v3921_v62 = vld [vmem:[#allocation2 + $0x8c] sm:$0x1]  ;;  %v4127_v48 = vrot.slane %v3913_v46, 5  ;;  %v4133_v29 = vrot.slane %v3915_v39, 5  ;;  %v3912_v34 = vld [vmem:[#allocation2 + $0x54] sm:$0xff] }
 0x19b   : > { %v4110_v2 = vsel %vm13846_vm5, %v10203_v56, %v4109_v22  ;;  %v4115_v1 = vrot.slane %v4109_v22, 4  ;;  %v3910_v55 = vld [vmem:[#allocation2 + $0x48] sm:$0xee]  ;;  %v4114_v14 = vsel %vm13846_vm5, %v10204_v36, %v4113_v21  ;;  %v4141_v30 = vrot.slane %v3919_v16, 5  ;;  %v3914_v17 = vld [vmem:[#allocation2 + $0x60] sm:$0x11] }
 0x19c   : > { %11566 = vmatmul.mubr.bf16.gmra.mrb[92].mxu1 %v10176_v59  ;;  %v4120_v15 = vsel %vm13846_vm5, %v4118_v25, %v4119_v58  ;;  %v3925_v45 = vld [vmem:[#allocation2 + $0xa4] sm:$0xf]  ;;  %v4132_v35 = vrot.slane %v4127_v48, 4  ;;  %v10208_v52 = vrot.slane %v3917_v9, 9  ;;  %v3923_v43 = vld [vmem:[#allocation2 + $0x98] sm:$0xe]  ;;  %v4128_v61 = vsel %vm13846_vm5, %v10206_v23, %v4127_v48 }
 0x19d   : > { %v4117_v53 = vsel %vm13846_vm5, %v4115_v1, %v4116_v33  ;;  %11585 = vmatprep.mubr.bf16.mxu1 %v10235_v40  ;;  %v13896_v41 = vpop.f32.mrb[13].mxu0  ;;  %v4147_v24 = vrot.slane %v3921_v62, 5  ;;  %v10205_v51 = vrot.slane %v3910_v55, 9  ;;  %v4123_v28 = vrot.slane %v3912_v34, 5  ;;  %v3927_v36 = vld [vmem:[#allocation2 + $0xb0] sm:$0x1] }
 0x19e   : > { %v10237_v42 = vcombine.high %v4110_v2, %v4117_v53  ;;  %v10236_v12 = vcombine.low %v4110_v2, %v4117_v53  ;;  %v13900_v19 = vpop.f32.mrb[14].mxu0  ;;  %v4134_v50 = vsel %vm13846_vm5, %v4132_v35, %v4133_v29  ;;  %v4146_v37 = vrot.slane %v4141_v30, 4  ;;  %v3916_v5 = vld [vmem:[#allocation2 + $0x6c] sm:$0xee]  ;;  %v13908_v46 = vpop.f32.mrb[1].mxu1  ;;  %v3918_v39 = vld [vmem:[#allocation2 + $0x78] sm:$0xff] }
 0x19f   : > { %v4130_v49 = vrot.slane %v3914_v17, 5  ;;  %v4155_v38 = vrot.slane %v3925_v45, 5  ;;  %v13904_v63 = vpop.f32.mrb[15].mxu0  ;;  %v10238_v0 = vcombine.low %v4114_v14, %v4120_v15  ;;  %v4124_v54 = vsel %vm13846_vm5, %v10205_v51, %v4123_v28  ;;  %v3931_v22 = vld [vmem:[#allocation2 + $0xc8] sm:$0xf]  ;;  %v13928_v53 = vpop.f32.mrb[2].mxu1 }
 0x1a0   : > { %4774 = vmatprep.mubr.bf16.mxu0 %v10237_v42  ;;  %v4129_v47 = vrot.slane %v4123_v28, 4  ;;  %v10210_v21 = vrot.slane %v3923_v43, 9  ;;  %v10241_v59 = vcombine.low %v4128_v61, %v4134_v50  ;;  %v4161_v56 = vrot.slane %v3927_v36, 5  ;;  %v3920_v25 = vld [vmem:[#allocation2 + $0x84] sm:$0x11]  ;;  %v13914_v16 = vpop.f32.mrb[16].mxu0 }
 0x1a1   : > { %4775 = vmatmul.mubr.bf16.gmra.mrb[100].mxu0 %v10236_v12  ;;  %v4160_v58 = vrot.slane %v4155_v38, 4  ;;  %v13912_v33 = vld [vmem:[#allocation2 + $0xec] sm:$0xf]  ;;  %v4142_v40 = vsel %vm13846_vm5, %v10208_v52, %v4141_v30  ;;  %v4148_v2 = vsel %vm13846_vm5, %v4146_v37, %v4147_v24  ;;  %v3929_v23 = vld [vmem:[#allocation2 + $0xbc] sm:$0xe]  ;;  %v10207_v9 = vrot.slane %v3916_v5, 9 }
 0x1a2   : > { %v4131_v8 = vsel %vm13846_vm5, %v4129_v47, %v4130_v49  ;;  %v13920_v62 = vpop.f32.mrb[17].mxu0  ;;  %v4156_v48 = vsel %vm13846_vm5, %v10210_v21, %v4155_v38  ;;  %v3933_v55 = vld [vmem:[#allocation2 + $0xd4] sm:$0x1]  ;;  %v4169_v34 = vrot.slane %v3931_v22, 5  ;;  %v4137_v14 = vrot.slane %v3918_v39, 5  ;;  %v13933_v35 = vpop.f32.mrb[3].mxu1 }
 0x1a3   : > { %v10240_v1 = vcombine.high %v4124_v54, %v4131_v8  ;;  %v4162_v29 = vsel %vm13846_vm5, %v4160_v58, %v4161_v56  ;;  %v13926_v15 = vpop.f32.mrb[18].mxu0  ;;  %v10239_v30 = vcombine.low %v4124_v54, %v4131_v8  ;;  %v4144_v17 = vrot.slane %v3920_v25, 5  ;;  %v3935_v43 = vld [vmem:[#allocation2 + $0xe0] sm:$0xe]  ;;  %v3939_v61 = vld [vmem:[#allocation2 + $0xf8] sm:$0x1] }
 0x1a4   : > { %11586 = vmatmul.mubr.bf16.vlgmr.msra.gmra.mrb[64].mxu1 %v10238_v0  ;;  %v4183_v45 = vrot.slane %v13912_v33, 5  ;;  %v13931_v42 = vpop.f32.mrb[19].mxu0  ;;  %v13937_v12 = vsel %vm13846_vm5, %v10207_v9, %v4137_v14  ;;  %v4143_v52 = vrot.slane %v4137_v14, 4  ;;  %v10244_v24 = vcombine.low %v4142_v40, %v4148_v2  ;;  %v3922_v50 = vld [vmem:[#allocation2 + $0x90] sm:$0xee]  ;;  %v3924_v37 = vld [vmem:[#allocation2 + $0x9c] sm:$0xff] }
 0x1a5   : > { %11589 = vmatprep.mubr.bf16.mxu1 %v10241_v59  ;;  %4782 = vmatprep.mubr.bf16.mxu0 %v10240_v1  ;;  %v10247_v51 = vcombine.low %v4156_v48, %v4162_v29  ;;  %v10212_v28 = vrot.slane %v3929_v23, 9  ;;  %v4175_v36 = vrot.slane %v3933_v55, 5  ;;  %v4174_v49 = vrot.slane %v4169_v34, 4  ;;  %v3926_v47 = vld [vmem:[#allocation2 + $0xa8] sm:$0x11]  ;;  %v13949_v21 = vpop.f32.mrb[4].mxu1 }
 0x1a6   : > { %v4145_v38 = vsel %vm13846_vm5, %v4143_v52, %v4144_v17  ;;  %v13943_v0 = vadd.f32 %v13842_v20, %v13828_v4  ;;  %v13947_v54 = vadd.f32 %v13860_v11, %v13853_v32  ;;  %v10214_v59 = vrot.slane %v3935_v43, 9  ;;  %v3943_v22 = vld [vmem:[#allocation2 + $0x110] sm:$0xf]  ;;  %v13952_v25 = vpop.f32.mrb[5].mxu1  ;;  %v3941_v20 = vld [vmem:[#allocation2 + $0x104] sm:$0xe] }
 0x1a7   : > { %v10243_v5 = vcombine.high %v13937_v12, %v4145_v38  ;;  %v4188_v58 = vrot.slane %v4183_v45, 4  ;;  %v4189_v56 = vrot.slane %v3939_v61, 5  ;;  %v10209_v39 = vrot.slane %v3922_v50, 9  ;;  %v13956_v11 = vld [vmem:[#allocation2 + $0x134] sm:$0xf]  ;;  %v13969_v17 = vpop.f32.mrb[6].mxu1 }
 0x1a8   : > { %16079 = vst [vmem:[#allocation21_spill] sm:$0xff] %v13943_v0  ;;  %16080 = vst [vmem:[#allocation22_spill] sm:$0xff] %v13947_v54  ;;  %v4151_v8 = vrot.slane %v3924_v37, 5  ;;  %v4170_v4 = vsel %vm13846_vm5, %v10212_v28, %v4169_v34  ;;  %v4158_v32 = vrot.slane %v3926_v47, 5  ;;  %v4176_v33 = vsel %vm13846_vm5, %v4174_v49, %v4175_v36  ;;  %v3945_v40 = vld [vmem:[#allocation2 + $0x11c] sm:$0x1] }
 0x1a9   : > { %4783 = vmatmul.mubr.bf16.gmra.mrb[104].mxu0 %v10239_v30  ;;  %v4197_v2 = vrot.slane %v3943_v22, 5  ;;  %v3947_v9 = vld [vmem:[#allocation2 + $0x128] sm:$0xe]  ;;  %v4184_v48 = vsel %vm13846_vm5, %v10214_v59, %v4183_v45  ;;  %v4190_v29 = vsel %vm13846_vm5, %v4188_v58, %v4189_v56  ;;  %v10242_v55 = vcombine.low %v13937_v12, %v4145_v38  ;;  %v3951_v34 = vld [vmem:[#allocation2 + $0x140] sm:$0x1] }
 0x1aa   : > { %4790 = vmatprep.mubr.bf16.mxu0 %v10243_v5  ;;  %v13962_v1 = vsel %vm13846_vm5, %v10209_v39, %v4151_v8  ;;  %v4157_v23 = vrot.slane %v4151_v8, 4  ;;  %v3928_v14 = vld [vmem:[#allocation2 + $0xb4] sm:$0xee]  ;;  %v3930_v30 = vld [vmem:[#allocation2 + $0xc0] sm:$0xff]  ;;  %v4211_v43 = vrot.slane %v13956_v11, 5  ;;  %v13978_v61 = vadd.f32 %v13868_v26, %v13864_v27 }
 0x1ab   : > { %v13982_v45 = vadd.f32 %v13882_v7, %v13878_v60  ;;  %v3932_v12 = vld [vmem:[#allocation2 + $0xcc] sm:$0x11]  ;;  %v10250_v28 = vcombine.low %v4170_v4, %v4176_v33  ;;  %v10216_v36 = vrot.slane %v3941_v20, 9  ;;  %v13990_v37 = vld [vmem:[#allocation2 + $0x158] sm:$0xf]  ;;  %v4202_v26 = vrot.slane %v4197_v2, 4 }
 0x1ac   : > { %11590 = vmatmul.mubr.bf16.gmra.mrb[68].mxu1 %v10244_v24  ;;  %v13973_v52 = vsel %vm13846_vm5, %v4157_v23, %v4158_v32  ;;  %16081 = vst [vmem:[#allocation23_spill] sm:$0xff] %v13978_v61  ;;  %v13984_v24 = vpop.f32.mrb[20].mxu0  ;;  %v4203_v38 = vrot.slane %v3945_v40, 5  ;;  %v10211_v60 = vrot.slane %v3928_v14, 9  ;;  %v4165_v7 = vrot.slane %v3930_v30, 5  ;;  %v14002_v39 = vld [vmem:[#allocation2 + $0xe4] sm:$0xff] }
 0x1ad   : > { %11593 = vmatprep.mubr.bf16.mxu1 %v10247_v51  ;;  %16082 = vst [vmem:[#allocation24_spill] sm:$0xff] %v13982_v45  ;;  %v13986_v51 = vpop.f32.mrb[7].mxu1  ;;  %v10246_v50 = vcombine.high %v13962_v1, %v13973_v52  ;;  %v13992_v49 = vpop.f32.mrb[21].mxu0  ;;  %v10253_v59 = vcombine.low %v4184_v48, %v4190_v29  ;;  %v10218_v58 = vrot.slane %v3947_v9, 9  ;;  %v14000_v56 = vld [vmem:[#allocation2 + $0x14c] sm:$0xe]  ;;  %v14014_v23 = vsel %vm13846_vm5, %v10216_v36, %v4197_v2 }
 0x1ae   : > { %v13994_v27 = vpop.f32.mrb[8].mxu1  ;;  %v13996_v47 = vpop.f32.mrb[22].mxu0  ;;  %v4172_v22 = vrot.slane %v3932_v12, 5  ;;  %v4216_v20 = vrot.slane %v4211_v43, 4  ;;  %v4217_v32 = vrot.slane %v3951_v34, 5  ;;  %v4171_v11 = vrot.slane %v4165_v7, 4 }
 0x1af   : > { %v13998_v5 = vpop.f32.mrb[9].mxu1  ;;  %v14004_v8 = vpop.f32.mrb[23].mxu0  ;;  %v14008_v33 = vld [vmem:[#allocation2 + $0x17c] sm:$0xf]  ;;  %v3957_v9 = vld [vmem:[#allocation2 + $0x164] sm:$0x1]  ;;  %v14019_v29 = vsel %vm13846_vm5, %v10211_v60, %v4165_v7  ;;  %v4204_v34 = vsel %vm13846_vm5, %v4202_v26, %v4203_v38  ;;  %v14033_v2 = vadd.f32 %v13896_v41, %v13888_v31  ;;  %v14037_v12 = vadd.f32 %v13904_v63, %v13900_v19 }
 0x1b0   : > { %v14006_v4 = vpop.f32.mrb[10].mxu1  ;;  %v4225_v48 = vrot.slane %v13990_v37, 5  ;;  %v14029_v30 = vsel %vm13846_vm5, %v4171_v11, %v4172_v22  ;;  %v3934_v36 = vld [vmem:[#allocation2 + $0xd8] sm:$0xee]  ;;  %v10245_v26 = vcombine.low %v13962_v1, %v13973_v52  ;;  %v10220_v38 = vrot.slane %v14000_v56, 9  ;;  %v14058_v52 = vpop.f32.mrb[24].mxu0 }
 0x1b1   : > { %4791 = vmatmul.mubr.bf16.gmra.mrb[108].mxu0 %v10242_v55  ;;  %v14010_v40 = vpop.f32.mrb[11].mxu1  ;;  %v14021_v55 = vld [vmem:[#allocation2 + $0x170] sm:$0xe]  ;;  %16083 = vst [vmem:[#allocation25_spill] sm:$0xff] %v14033_v2  ;;  %16084 = vst [vmem:[#allocation26_spill] sm:$0xff] %v14037_v12  ;;  %v4239_v31 = vrot.slane %v14008_v33, 5  ;;  %v4218_v19 = vsel %vm13846_vm5, %v4216_v20, %v4217_v32  ;;  %v10249_v7 = vcombine.high %v14019_v29, %v14029_v30 }
 0x1b2   : > { %4798 = vmatprep.mubr.bf16.mxu0 %v10246_v50  ;;  %v14023_v14 = vpop.f32.mrb[12].mxu1  ;;  %v3938_v50 = vld [vmem:[#allocation2 + $0xf0] sm:$0x11]  ;;  %v3963_v60 = vld [vmem:[#allocation2 + $0x188] sm:$0x1]  ;;  %v4231_v63 = vrot.slane %v3957_v9, 5 }
 0x1b3   : > { %v14039_v37 = vpop.f32.mrb[13].mxu1  ;;  %v4179_v1 = vrot.slane %v14002_v39, 5  ;;  %v4230_v56 = vrot.slane %v4225_v48, 4  ;;  %v10222_v22 = vrot.slane %v14021_v55, 9  ;;  %v14063_v11 = vld [vmem:[#allocation2 + $0x1ac] sm:$0x1]  ;;  %v10256_v39 = vcombine.low %v14014_v23, %v4204_v34 }
 0x1b4   : > { %11594 = vmatmul.mubr.bf16.gmra.mrb[72].mxu1 %v10250_v28  ;;  %v4212_v28 = vsel %vm13846_vm5, %v10218_v58, %v4211_v43  ;;  %v14047_v41 = vpop.f32.mrb[14].mxu1  ;;  %v14055_v43 = vld [vmem:[#allocation2 + $0x1a0] sm:$0xf]  ;;  %v10213_v20 = vrot.slane %v3934_v36, 9  ;;  %v4186_v32 = vrot.slane %v3938_v50, 5  ;;  %v14067_v9 = vld [vmem:[#allocation2 + $0x108] sm:$0xff] }
 0x1b5   : > { %11597 = vmatprep.mubr.bf16.mxu1 %v10253_v59  ;;  %v14053_v59 = vld [vmem:[#allocation2 + $0x194] sm:$0xe]  ;;  %v14060_v58 = vpop.f32.mrb[15].mxu1  ;;  %v14065_v33 = vld [vmem:[#allocation2 + $0x1c4] sm:$0xf]  ;;  %v14069_v57 = vpop.f32.mrb[25].mxu0  ;;  %v10259_v36 = vcombine.low %v4212_v28, %v4218_v19  ;;  %v14097_v28 = vadd.f32 %v13920_v62, %v13914_v16  ;;  %v4232_v0 = vsel %vm13846_vm5, %v4230_v56, %v4231_v63 }
 0x1b6   : > { %v14071_v13 = vpop.f32.mrb[16].mxu1  ;;  %v4245_v10 = vrot.slane %v3963_v60, 5  ;;  %v4185_v45 = vrot.slane %v4179_v1, 4  ;;  %v14074_v12 = vld [vmem:[#allocation2 + $0x1b8] sm:$0xe]  ;;  %v14076_v61 = vpop.f32.mrb[26].mxu0  ;;  %v14093_v60 = vsel %vm13846_vm5, %v10220_v38, %v4225_v48  ;;  %v14110_v48 = vsel %vm13846_vm5, %v10213_v20, %v4179_v1 }
 0x1b7   : > { %v14078_v55 = vpop.f32.mrb[17].mxu1  ;;  %v4244_v50 = vrot.slane %v4239_v31, 4  ;;  %v4253_v2 = vrot.slane %v14055_v43, 5  ;;  %v14081_v18 = vld [vmem:[#allocation2 + $0x1d0] sm:$0x1]  ;;  %v14087_v23 = vpop.f32.mrb[27].mxu0  ;;  %v10248_v1 = vcombine.low %v14019_v29, %v14029_v30  ;;  %v10262_v29 = vcombine.low %v14093_v60, %v4232_v0 }
 0x1b8   : > { %v14083_v54 = vld [vmem:[#allocation2 + $0x1e8] sm:$0xf]  ;;  %v14085_v6 = vld [vmem:[#allocation2 + $0xfc] sm:$0xee]  ;;  %v14089_v34 = vpop.f32.mrb[18].mxu1  ;;  %16086 = vst [vmem:[#allocation28_spill] sm:$0xff] %v14097_v28  ;;  %v14114_v16 = vsel %vm13846_vm5, %v4185_v45, %v4186_v32  ;;  %v14161_v0 = vadd.f32 %v14004_v8, %v13996_v47 }
 0x1b9   : > { %4799 = vmatmul.mubr.bf16.gmra.mrb[112].mxu0 %v10245_v26  ;;  %16085 = vst [vmem:[#allocation27_spill] sm:$0xff] %v14089_v34  ;;  %v14101_v26 = vadd.f32 %v13931_v42, %v13926_v15  ;;  %v3944_v19 = vld [vmem:[#allocation2 + $0x114] sm:$0x11]  ;;  %v14103_v43 = vpop.f32.mrb[19].mxu1  ;;  %v10224_v34 = vrot.slane %v14053_v59, 9  ;;  %v4240_v42 = vsel %vm13846_vm5, %v10222_v22, %v4239_v31  ;;  %v4259_v38 = vrot.slane %v14063_v11, 5 }
 0x1ba   : > { %4806 = vmatprep.mubr.bf16.mxu0 %v10249_v7  ;;  %v14116_v62 = vld [vmem:[#allocation2 + $0x1dc] sm:$0xe]  ;;  %v14118_v15 = vpop.f32.mrb[20].mxu1  ;;  %v4267_v63 = vrot.slane %v14065_v33, 5  ;;  %v4193_v7 = vrot.slane %v14067_v9, 5  ;;  %v4246_v45 = vsel %vm13846_vm5, %v4244_v50, %v4245_v10  ;;  %v4258_v56 = vrot.slane %v4253_v2, 4 }
 0x1bb   : > { %16087 = vst [vmem:[#allocation29_spill] sm:$0xff] %v14101_v26  ;;  %v14125_v59 = vpop.f32.mrb[21].mxu1  ;;  %v10226_v20 = vrot.slane %v14074_v12, 9  ;;  %v14132_v32 = vld [vmem:[#allocation2 + $0x1f4] sm:$0x1]  ;;  %v14134_v31 = vld [vmem:[#allocation2 + $0x12c] sm:$0xff]  ;;  %v10252_v11 = vcombine.high %v14110_v48, %v14114_v16 }
 0x1bc   : > { %11598 = vmatmul.mubr.bf16.gmra.mrb[76].mxu1 %v10256_v39  ;;  %16088 = vst [vmem:[#allocation30_spill] sm:$0xff] %v14125_v59  ;;  %v14136_v22 = vpop.f32.mrb[22].mxu1  ;;  %v4273_v33 = vrot.slane %v14081_v18, 5  ;;  %v10215_v10 = vrot.slane %v14085_v6, 9  ;;  %v4199_v30 = vrot.slane %v4193_v7, 4  ;;  %v4200_v12 = vrot.slane %v3944_v19, 5 }
 0x1bd   : > { %11601 = vmatprep.mubr.bf16.mxu1 %v10259_v36  ;;  %16089 = vst [vmem:[#allocation31_spill] sm:$0xff] %v14136_v22  ;;  %v14143_v39 = vpop.f32.mrb[23].mxu1  ;;  %v14146_v36 = vld [vmem:[#allocation2 + $0x200] sm:$0xe]  ;;  %v14148_v50 = vld [vmem:[#allocation2 + $0x20c] sm:$0xf]  ;;  %v14157_v6 = vadd.f32 %v13992_v49, %v13984_v24  ;;  %v14171_v18 = vsel %vm13846_vm5, %v4258_v56, %v4259_v38  ;;  %v14177_v47 = vsel %vm13846_vm5, %v10226_v20, %v4267_v63 }
 0x1be   : > { %16090 = vst [vmem:[#allocation32_spill] sm:$0xff] %v14143_v39  ;;  %v10715_v26 = vpop.f32.mrb[28].mxu0  ;;  %v14150_v28 = vpop.f32.mrb[24].mxu1  ;;  %v4272_v22 = vrot.slane %v4267_v63, 4  ;;  %v14153_v59 = vld [vmem:[#allocation2 + $0x218] sm:$0x1]  ;;  %v10265_v39 = vcombine.low %v4240_v42, %v4246_v45  ;;  %v14195_v63 = vsel %vm13846_vm5, %v4199_v30, %v4200_v12 }
 0x1bf   : > { %16091 = vst [vmem:[#allocation33_spill] sm:$0xff] %v14150_v28  ;;  %16092 = vst [vmem:[#allocation34_spill] sm:$0xff] %v14161_v0  ;;  %v3946_v60 = vld [vmem:[#allocation2 + $0x120] sm:$0xee]  ;;  %v10716_v19 = vpop.f32.mrb[29].mxu0  ;;  %v14163_v9 = vpop.f32.mrb[25].mxu1  ;;  %v14167_v28 = vsel %vm13846_vm5, %v10224_v34, %v4253_v2 }
 0x1c0   : > { %v10718_v24 = vpop.f32.mrb[30].mxu0  ;;  %v14173_v49 = vpop.f32.mrb[26].mxu1  ;;  %v16093_v8 = vrot.slane %v14083_v54, 5  ;;  %v4287_v45 = vrot.slane %v14132_v32, 5  ;;  %v4207_v2 = vrot.slane %v14134_v31, 5  ;;  %v14185_v34 = vld [vmem:[#allocation2 + $0x150] sm:$0xff]  ;;  %v14205_v31 = vadd.f32 %v14087_v23, %v14076_v61 }
 0x1c1   : > { %4807 = vmatmul.mubr.bf16.gmra.mrb[116].mxu0 %v10248_v1  ;;  %v14182_v1 = vld [vmem:[#allocation2 + $0x224] sm:$0xe]  ;;  %v10719_v38 = vpop.f32.mrb[31].mxu0  ;;  %v14187_v56 = vpop.f32.mrb[27].mxu1  ;;  %v14197_v20 = vld [vmem:[#allocation2 + $0x230] sm:$0xf]  ;;  %v14218_v61 = vadd.f32 %v10716_v19, %v10715_v26  ;;  %v14237_v19 = vadd.f32 %v13933_v35, %v13928_v53 }
 0x1c2   : > { %4814 = vmatprep.mubr.bf16.mxu0 %v10252_v11  ;;  %v4286_v42 = vrot.slane %v16093_v8, 4  ;;  %v14191_v11 = vsel %vm13846_vm5, %v10215_v10, %v4193_v7  ;;  %v3950_v32 = vld [vmem:[#allocation2 + $0x138] sm:$0x11]  ;;  %v14201_v8 = vadd.f32 %v14069_v57, %v14058_v52  ;;  %v4274_v7 = vsel %vm13846_vm5, %v4272_v22, %v4273_v33 }
 0x1c3   : > { %v10251_v10 = vcombine.low %v14110_v48, %v14114_v16  ;;  %v10230_v30 = vrot.slane %v14146_v36, 9  ;;  %v4295_v12 = vrot.slane %v14148_v50, 5  ;;  %v14213_v0 = vld [vmem:[#allocation2 + $0x23c] sm:$0x1]  ;;  %v4301_v57 = vrot.slane %v14153_v59, 5 }
 0x1c4   : > { %16094 = vst [vmem:[#allocation35_spill] sm:$0xff] %v14201_v8  ;;  %11602 = vmatmul.mubr.bf16.gmra.mrb[80].mxu1 %v10262_v29  ;;  %v10217_v52 = vrot.slane %v3946_v60, 9  ;;  %v14216_v8 = vld [vmem:[#allocation2 + $0x144] sm:$0xee]  ;;  %v14220_v23 = vadd.f32 %v10719_v38, %v10718_v24  ;;  %v10255_v22 = vcombine.high %v14191_v11, %v14195_v63  ;;  %v4213_v48 = vrot.slane %v4207_v2, 4  ;;  %v14233_v60 = vld [vmem:[#allocation2 + $0x174] sm:$0xff] }
 0x1c5   : > { %11605 = vmatprep.mubr.bf16.mxu1 %v10265_v39  ;;  %v4214_v16 = vrot.slane %v3950_v32, 5  ;;  %v3956_v33 = vld [vmem:[#allocation2 + $0x15c] sm:$0x11]  ;;  %v14226_v29 = vadd.f32 %v13908_v46, %v13884_v3  ;;  %v10268_v59 = vcombine.low %v14167_v28, %v14171_v18  ;;  %v4221_v26 = vrot.slane %v14185_v34, 5  ;;  %v14245_v18 = vpop.f32.mrb[28].mxu1 }
 0x1c6   : > { %v4300_v36 = vrot.slane %v4295_v12, 4  ;;  %v16028_v50 = vrot.slane %v14197_v20, 5  ;;  %v14241_v3 = vadd.f32 %v13952_v25, %v13949_v21  ;;  %v10271_v46 = vcombine.low %v14177_v47, %v4274_v7  ;;  %v14256_v21 = vld [vmem:[#allocation2 + $0x168] sm:$0xee]  ;;  %v10721_v25 = vpop.f32.mrb[32].mxu0  ;;  %v14258_v47 = vld [vmem:[#allocation2 + $0x198] sm:$0xff] }
 0x1c7   : > { %v14249_v24 = vsel %vm13846_vm5, %v10217_v52, %v4207_v2  ;;  %v14253_v53 = vsel %vm13846_vm5, %v4213_v48, %v4214_v16  ;;  %v10219_v35 = vrot.slane %v14216_v8, 9  ;;  %v14262_v34 = vadd.f32 %v13986_v51, %v13969_v17  ;;  %v14264_v38 = vld [vmem:[#allocation2 + $0x1bc] sm:$0xff]  ;;  %v14266_v32 = vpop.f32.mrb[29].mxu1 }
 0x1c8   : > { %v16095_v2 = vrot.slane %v14083_v54, 5  ;;  %v16096_v7 = vrot.slane %v14116_v62, 9  ;;  %v4228_v52 = vrot.slane %v3956_v33, 5  ;;  %v14276_v48 = vadd.f32 %v13998_v5, %v13994_v27  ;;  %v14278_v17 = vpop.f32.mrb[30].mxu1  ;;  %v14286_v16 = vld [vmem:[#allocation2 + $0x180] sm:$0x11] }
 0x1c9   : > { %4815 = vmatmul.mubr.bf16.gmra.mrb[120].mxu0 %v10251_v10  ;;  %v4227_v10 = vrot.slane %v4221_v26, 4  ;;  %v4288_v51 = vsel %vm13846_vm5, %v4286_v42, %v4287_v45  ;;  %v4296_v54 = vsel %vm13846_vm5, %v10230_v30, %v4295_v12  ;;  %v4302_v62 = vsel %vm13846_vm5, %v4300_v36, %v4301_v57  ;;  %v14297_v12 = vld [vmem:[#allocation2 + $0x18c] sm:$0xee]  ;;  %v14299_v57 = vld [vmem:[#allocation2 + $0x1a4] sm:$0x11] }
 0x1ca   : > { %4822 = vmatprep.mubr.bf16.mxu0 %v10255_v22  ;;  %v4282_v8 = vsel %vm13846_vm5, %v16096_v7, %v16095_v2  ;;  %v10722_v22 = vpop.f32.mrb[33].mxu0  ;;  %v10855_v7 = vpop.f32.mrb[31].mxu1  ;;  %v10254_v27 = vcombine.low %v14191_v11, %v14195_v63  ;;  %v4314_v5 = vrot.slane %v16028_v50, 4  ;;  %v10258_v42 = vcombine.high %v14249_v24, %v14253_v53 }
 0x1cb   : > { %v14288_v33 = vadd.f32 %v10722_v22, %v10721_v25  ;;  %v10724_v2 = vpop.f32.mrb[34].mxu0  ;;  %v16031_v45 = vrot.slane %v14233_v60, 5  ;;  %v10221_v36 = vrot.slane %v14256_v21, 9  ;;  %v14308_v11 = vadd.f32 %v14010_v40, %v14006_v4  ;;  %v14324_v4 = vld [vmem:[#allocation2 + $0x1c8] sm:$0x11] }
 0x1cc   : > { %11606 = vmatmul.mubr.bf16.gmra.mrb[84].mxu1 %v10268_v59  ;;  %v10725_v30 = vpop.f32.mrb[35].mxu0  ;;  %v14301_v59 = vld [vmem:[#allocation2 + $0x1b0] sm:$0xee]  ;;  %v14312_v63 = vadd.f32 %v14039_v37, %v14023_v14  ;;  %v16030_v25 = vrot.slane %v14258_v47, 5  ;;  %v16029_v22 = vrot.slane %v14264_v38, 5  ;;  %v10274_v28 = vcombine.low %v4282_v8, %v4288_v51  ;;  %v14328_v14 = vld [vmem:[#allocation2 + $0x1e0] sm:$0xff] }
 0x1cd   : > { %11609 = vmatprep.mubr.bf16.mxu1 %v10271_v46  ;;  %v14304_v46 = vadd.f32 %v10725_v30, %v10724_v2  ;;  %v10277_v39 = vcombine.low %v4296_v54, %v4302_v62  ;;  %v14318_v50 = vsel %vm13846_vm5, %v10219_v35, %v4221_v26  ;;  %v14322_v21 = vsel %vm13846_vm5, %v4227_v10, %v4228_v52  ;;  %v14326_v40 = vld [vmem:[#allocation2 + $0x1d4] sm:$0xee]  ;;  %v14330_v37 = vld [vmem:[#allocation2 + $0x1ec] sm:$0x11]  ;;  %v10727_v54 = vpop.f32.mrb[36].mxu0  ;;  %v16100_v30 = vld [vmem:[#allocation30_spill] sm:$0xff] }
 0x1ce   : > { %v4241_v8 = vrot.slane %v16031_v45, 4  ;;  %v4242_v51 = vrot.slane %v14286_v16, 5  ;;  %v14337_v26 = vadd.f32 %v14060_v58, %v14047_v41  ;;  %v14341_v35 = vadd.f32 %v14078_v55, %v14071_v13  ;;  %v16097_v2 = vld [vmem:[#allocation27_spill] sm:$0xff]  ;;  %v10728_v55 = vpop.f32.mrb[37].mxu0  ;;  %v16104_v45 = vld [vmem:[#allocation33_spill] sm:$0xff] }
 0x1cf   : > { %v10223_v10 = vrot.slane %v14297_v12, 9  ;;  %v4256_v52 = vrot.slane %v14299_v57, 5  ;;  %v16098_v16 = vrot.slane %v14197_v20, 5  ;;  %v16099_v41 = vrot.slane %v14182_v1, 9 }
 0x1d0   : > { %v4255_v58 = vrot.slane %v16030_v25, 4  ;;  %v14364_v12 = vadd.f32 %v16100_v30, %v14118_v15  ;;  %v16101_v20 = vrot.slane %v14213_v0, 5  ;;  %v10257_v57 = vcombine.low %v14249_v24, %v14253_v53  ;;  %v16102_v25 = vld [vmem:[#allocation31_spill] sm:$0xff]  ;;  %v16103_v24 = vld [vmem:[#allocation32_spill] sm:$0xff] }
 0x1d1   : > { %4823 = vmatmul.mubr.bf16.gmra.mrb[124].mxu0 %v10254_v27  ;;  %v14348_v27 = vadd.f32 %v14103_v43, %v16097_v2  ;;  %v4310_v13 = vsel %vm13846_vm5, %v16099_v41, %v16098_v16  ;;  %v10857_v43 = vpop.f32.mrb[32].mxu1  ;;  %v10261_v2 = vcombine.high %v14318_v50, %v14322_v21  ;;  %v10729_v16 = vadd.f32 %v10728_v55, %v10727_v54  ;;  %v10730_v41 = vpop.f32.mrb[38].mxu0 }
 0x1d2   : > { %4830 = vmatprep.mubr.bf16.mxu0 %v10258_v42  ;;  %v14360_v42 = vrot.slane %v16029_v22, 4  ;;  %v4316_v1 = vsel %vm13846_vm5, %v4314_v5, %v16101_v20  ;;  %v10858_v62 = vpop.f32.mrb[33].mxu1  ;;  %v10731_v22 = vpop.f32.mrb[39].mxu0  ;;  %v4270_v15 = vrot.slane %v14324_v4, 5  ;;  %v4277_v0 = vrot.slane %v14328_v14, 5 }
 0x1d3   : > { %v10860_v5 = vpop.f32.mrb[34].mxu1  ;;  %v10732_v20 = vadd.f32 %v10731_v22, %v10730_v41  ;;  %v14380_v53 = vadd.f32 %v16103_v24, %v16102_v25  ;;  %v14384_v54 = vadd.f32 %v14163_v9, %v16104_v45  ;;  %v14392_v55 = vadd.f32 %v14266_v32, %v14245_v18  ;;  %v14404_v9 = vld [vmem:[%s16007_s2] ss:$0 sm:$0xff] }
 0x1d4   : > { %11610 = vmatmul.mubr.bf16.gmra.mrb[88].mxu1 %v10274_v28  ;;  %v10227_v28 = vrot.slane %v14326_v40, 9  ;;  %v10861_v4 = vpop.f32.mrb[35].mxu1  ;;  %v14395_v30 = vadd.f32 %v10855_v7, %v14278_v17  ;;  %v10280_v22 = vcombine.low %v4310_v13, %v4316_v1  ;;  %v14397_v25 = vadd.f32 %v10858_v62, %v10857_v43  ;;  %v10733_v17 = vpop.f32.mrb[40].mxu0 }
 0x1d5   : > { %11613 = vmatprep.mubr.bf16.mxu1 %v10277_v39  ;;  %v14388_v39 = vadd.f32 %v14187_v56, %v14173_v49  ;;  %v14399_v41 = vadd.f32 %v10861_v4, %v10860_v5  ;;  %v16105_v49 = vrot.slane %v14233_v60, 5  ;;  %v4243_v18 = vsel %vm13846_vm5, %v4241_v8, %v4242_v51  ;;  %v10863_v7 = vpop.f32.mrb[36].mxu1  ;;  %v10734_v13 = vpop.f32.mrb[41].mxu0 }
 0x1d6   : > { %v10260_v32 = vcombine.low %v14318_v50, %v14322_v21  ;;  %v14415_v45 = vadd.f32 %v10729_v16, %v14404_v9  ;;  %v10864_v43 = vpop.f32.mrb[37].mxu1  ;;  %v14418_v60 = vadd.f32 %v10732_v20, %v14404_v9  ;;  %v10735_v1 = vadd.f32 %v10734_v13, %v10733_v17 }
 0x1d7   : > { %v4236_v56 = vsel %vm13846_vm5, %v10221_v36, %v16105_v49  ;;  %v10736_v36 = vpop.f32.mrb[42].mxu0  ;;  %v10866_v8 = vpop.f32.mrb[38].mxu1  ;;  %v16106_v5 = vrot.slane %v14258_v47, 5  ;;  %v4257_v24 = vsel %vm13846_vm5, %v4255_v58, %v4256_v52  ;;  %v4283_v17 = vrot.slane %v4277_v0, 4 }
 0x1d8   : > { %v10264_v62 = vcombine.high %v4236_v56, %v4243_v18  ;;  %v10737_v51 = vpop.f32.mrb[43].mxu0  ;;  %v14425_v16 = vadd.f32 %v10735_v1, %v14404_v9 }
 0x1d9   : > { %4831 = vmatmul.mubr.bf16.gmra.mrb[128].mxu0 %v10257_v57  ;;  %v14420_v57 = vadd.f32 %v10864_v43, %v10863_v7  ;;  %v10738_v50 = vadd.f32 %v10737_v51, %v10736_v36  ;;  %v4250_v20 = vsel %vm13846_vm5, %v10223_v10, %v16106_v5  ;;  %v16107_v36 = vrot.slane %v14264_v38, 5 }
 0x1da   : > { %4838 = vmatprep.mubr.bf16.mxu0 %v10261_v2  ;;  %v10867_v2 = vpop.f32.mrb[39].mxu1  ;;  %v10267_v49 = vcombine.high %v4250_v20, %v4257_v24  ;;  %v10739_v13 = vpop.f32.mrb[44].mxu0 }
 0x1db   : > { %v14422_v21 = vadd.f32 %v10867_v2, %v10866_v8  ;;  %v14434_v4 = vadd.f32 %v10738_v50, %v14404_v9  ;;  %v10869_v7 = vpop.f32.mrb[40].mxu1  ;;  %v10740_v47 = vpop.f32.mrb[45].mxu0  ;;  %v4271_v8 = vsel %vm13846_vm5, %v14360_v42, %v4270_v15 }
 0x1dc   : > { %11614 = vmatmul.mubr.bf16.gmra.mrb[92].mxu1 %v10280_v22  ;;  %v10263_v22 = vcombine.low %v4236_v56, %v4243_v18  ;;  %v10741_v1 = vadd.f32 %v10740_v47, %v10739_v13  ;;  %v10742_v52 = vpop.f32.mrb[46].mxu0  ;;  %v16108_v56 = vrot.slane %v14301_v59, 9  ;;  %v3986_v13 = vld [vmem:[#allocation2 + $0x210] sm:$0x11] }
 0x1dd   : > { %v10743_v51 = vpop.f32.mrb[47].mxu0 }
 0x1de   : > { %v4264_v18 = vsel %vm13846_vm5, %v16108_v56, %v16107_v36  ;;  %v10744_v5 = vadd.f32 %v10743_v51, %v10742_v52 }
 0x1df   : > { %v10270_v38 = vcombine.high %v4264_v18, %v4271_v8  ;;  %v10269_v51 = vcombine.low %v4264_v18, %v4271_v8  ;;  %v3992_v18 = vld [vmem:[#allocation2 + $0x234] sm:$0x11] }
 0x1e0   : > { %v14455_v59 = vadd.f32 %v10744_v5, %v14404_v9  ;;  %v4298_v5 = vrot.slane %v3986_v13, 5 }
 0x1e1   : > { %4839 = vmatmul.mubr.bf16.gmra.mrb[132].mxu0 %v10260_v32  ;;  %v3982_v32 = vld [vmem:[#allocation2 + $0x1f8] sm:$0xee] }
 0x1e2   : > { %4846 = vmatprep.mubr.bf16.mxu0 %v10264_v62  ;;  %v10870_v62 = vpop.f32.mrb[41].mxu1  ;;  %v10229_v2 = vrot.slane %v3982_v32, 9  ;;  %v4278_v32 = vsel %vm13846_vm5, %v10227_v28, %v4277_v0 }
 0x1e3   : > { %v14438_v43 = vadd.f32 %v10870_v62, %v10869_v7  ;;  %v10872_v10 = vpop.f32.mrb[42].mxu1  ;;  %v10266_v7 = vcombine.low %v4250_v20, %v4257_v24  ;;  %v10745_v42 = vpop.f32.mrb[48].mxu0  ;;  %v16109_v20 = vrot.slane %v14330_v37, 5 }
 0x1e4   : > { %v10873_v58 = vpop.f32.mrb[43].mxu1 }
 0x1e5   : > { %v14449_v50 = vadd.f32 %v10873_v58, %v10872_v10  ;;  %v10875_v47 = vpop.f32.mrb[44].mxu1  ;;  %v4285_v24 = vsel %vm13846_vm5, %v4283_v17, %v16109_v20  ;;  %v10746_v10 = vpop.f32.mrb[49].mxu0  ;;  %v12339_v17 = vld [vmem:[#allocation9 + $0x40] sm:$0xff]  }
 0x1e6   : > { %v10876_v15 = vpop.f32.mrb[45].mxu1  ;;  %v10747_v58 = vadd.f32 %v10746_v10, %v10745_v42  ;;  %v10748_v36 = vpop.f32.mrb[50].mxu0  ;;  %11065 = vmatprep.subr.bf16.mxu0 %v12339_v17 }
 0x1e7   : > { %v10878_v52 = vpop.f32.mrb[46].mxu1  ;;  %v10749_v14 = vpop.f32.mrb[51].mxu0 }
 0x1e8   : > { %v10879_v56 = vpop.f32.mrb[47].mxu1  ;;  %v10750_v28 = vadd.f32 %v10749_v14, %v10748_v36  ;;  %v14472_v37 = vadd.f32 %v10747_v58, %v14404_v9 }
 0x1e9   : > { %4847 = vmatmul.mubr.bf16.gmra.mrb[136].mxu0 %v10263_v22  ;;  %v3984_v22 = vld [vmem:[#allocation2 + $0x204] sm:$0xff]  ;;  %v14469_v40 = vadd.f32 %v10879_v56, %v10878_v52  ;;  %v10272_v56 = vcombine.low %v4278_v32, %v4285_v24 }
 0x1ea   : > { %4854 = vmatprep.mubr.bf16.mxu0 %v10267_v49  ;;  %v14452_v49 = vadd.f32 %v10741_v1, %v14404_v9  ;;  %v4291_v62 = vrot.slane %v3984_v22, 5  ;;  %v14467_v1 = vadd.f32 %v10876_v15, %v10875_v47  ;;  %v3990_v22 = vld [vmem:[#allocation2 + $0x228] sm:$0xff]  ;;  %16110 = vst [vmem:[#allocation27_spill] sm:$0xff] %v14472_v37  ;;  %v3988_v47 = vld [vmem:[#allocation2 + $0x21c] sm:$0xee]  ;;  %v4312_v37 = vrot.slane %v3992_v18, 5 }
 0x1eb   : > { %v4305_v8 = vrot.slane %v3990_v22, 5 }
 0x1ec   : > { %v4297_v0 = vrot.slane %v4291_v62, 4  ;;  %v10751_v13 = vpop.f32.mrb[52].mxu0  ;;  %v4292_v42 = vsel %vm13846_vm5, %v10229_v2, %v4291_v62  ;;  %v10231_v2 = vrot.slane %v3988_v47, 9 }
 0x1ed   : > { %v10752_v20 = vpop.f32.mrb[53].mxu0  ;;  %v4311_v62 = vrot.slane %v4305_v8, 4 }
 0x1ee   : > { %v4299_v15 = vsel %vm13846_vm5, %v4297_v0, %v4298_v5  ;;  %v10881_v10 = vpop.f32.mrb[48].mxu1  ;;  %v10753_v52 = vadd.f32 %v10752_v20, %v10751_v13  ;;  %v10754_v58 = vpop.f32.mrb[54].mxu0 }
 0x1ef   : > { %v10882_v36 = vpop.f32.mrb[49].mxu1  ;;  %v10755_v14 = vpop.f32.mrb[55].mxu0  ;;  %v4313_v13 = vsel %vm13846_vm5, %v4311_v62, %v4312_v37  ;;  %v10275_v18 = vcombine.low %v4292_v42, %v4299_v15  ;;  %v12341_v62 = vld [vmem:[#allocation9 + $0x48] sm:$0xff]  }
 0x1f0   : > { %v10756_v17 = vadd.f32 %v10755_v14, %v10754_v58 }
 0x1f1   : > { %4855 = vmatmul.mubr.bf16.gmra.mrb[140].mxu0 %v10266_v7  ;;  %v10273_v7 = vcombine.high %v4278_v32, %v4285_v24  ;;  %v4306_v24 = vsel %vm13846_vm5, %v10231_v2, %v4305_v8  ;;  %v12340_v8 = vld [vmem:[#allocation9] sm:$0xff]  }
 0x1f2   : > { %4862 = vmatprep.mubr.bf16.mxu0 %v10270_v38  ;;  %v14475_v38 = vadd.f32 %v10750_v28, %v14404_v9  ;;  %v10276_v28 = vcombine.high %v4292_v42, %v4299_v15  ;;  %v14489_v0 = vadd.f32 %v10756_v17, %v14404_v9  ;;  %v10279_v17 = vcombine.high %v4306_v24, %v4313_v13  ;;  %v12342_v42 = vld [vmem:[#allocation9 + $0x8] sm:$0xff]   ;;  %v12343_v15 = vld [vmem:[#allocation9 + $0x50] sm:$0xff]  }
 0x1f3   : > { %11066 = vmatpush3.bf16.msra.mxu0 %v12340_v8 }
 0x1f4   : > { %16111 = vst [vmem:[#allocation30_spill] sm:$0xff] %v14475_v38  ;;  %v14484_v38 = vadd.f32 %v10753_v52, %v14404_v9  ;;  %11067 = vmatprep.subr.bf16.mxu0 %v12341_v62 }
 0x1f5   : > { %v10757_v32 = vpop.f32.mrb[56].mxu0 }
 0x1f6   : > { %v10758_v20 = vpop.f32.mrb[57].mxu0 }
 0x1f7   : > { %v10759_v52 = vadd.f32 %v10758_v20, %v10757_v32  ;;  %v10760_v47 = vpop.f32.mrb[58].mxu0  ;;  %11068 = vmatpush3.bf16.msra.mxu0 %v12342_v42  ;;  %v12344_v32 = vld [vmem:[#allocation9 + $0x10] sm:$0xff]   ;;  %v12347_v20 = vld [vmem:[#allocation9 + $0x80] sm:$0xff]  }
 0x1f8   : > { %11069 = vmatprep.subr.bf16.mxu0 %v12343_v15  ;;  %11617 = vmatprep.subr.bf16.mxu1 %v12347_v20  ;;  %v12349_v15 = vld [vmem:[#allocation9 + $0x20] sm:$0xff]  }
 0x1f9   : > { %4863 = vmatmul.mubr.bf16.gmra.mrb[144].mxu0 %v10269_v51  ;;  %v14481_v51 = vadd.f32 %v10882_v36, %v10881_v10  ;;  %v10761_v36 = vpop.f32.mrb[59].mxu0  ;;  %11618 = vmatpush3.bf16.msra.mxu1 %v12347_v20 }
 0x1fa   : > { %4870 = vmatprep.mubr.bf16.mxu0 %v10273_v7  ;;  %v10884_v7 = vpop.f32.mrb[50].mxu1 }
 0x1fb   : > { %v10885_v22 = vpop.f32.mrb[51].mxu1  ;;  %11070 = vmatpush3.bf16.msra.mxu0 %v12344_v32  ;;  %v12350_v32 = vld [vmem:[#allocation9 + $0x88] sm:$0xff]  }
 0x1fc   : > { %v14486_v5 = vadd.f32 %v10885_v22, %v10884_v7  ;;  %v10887_v10 = vpop.f32.mrb[52].mxu1  ;;  %v14498_v22 = vadd.f32 %v10759_v52, %v14404_v9  ;;  %v12345_v52 = vld [vmem:[#allocation9 + $0x58] sm:$0xff]   ;;  %11619 = vmatprep.subr.bf16.mxu1 %v12350_v32 }
 0x1fd   : > { %v10888_v58 = vpop.f32.mrb[53].mxu1  ;;  %11071 = vmatprep.subr.bf16.mxu0 %v12345_v52  ;;  %v12353_v52 = vld [vmem:[#allocation9 + $0x90] sm:$0xff]   ;;  %11620 = vmatpush3.bf16.msra.mxu1 %v12350_v32 }
 0x1fe   : > { %16112 = vst [vmem:[#allocation31_spill] sm:$0xff] %v14486_v5  ;;  %v14495_v14 = vadd.f32 %v10888_v58, %v10887_v10  ;;  %v10890_v7 = vpop.f32.mrb[54].mxu1  ;;  %16113 = vst [vmem:[#allocation32_spill] sm:$0xff] %v14498_v22  ;;  %v10278_v10 = vcombine.low %v4306_v24, %v4313_v13  ;;  %11621 = vmatprep.subr.bf16.mxu1 %v12353_v52  ;;  %v12356_v22 = vld [vmem:[#allocation9 + $0x98] sm:$0xff]  }
 0x201   : > { %4871 = vmatmul.mubr.bf16.gmra.mrb[148].mxu0 %v10272_v56  ;;  %v10762_v56 = vadd.f32 %v10761_v36, %v10760_v47  ;;  %11622 = vmatpush3.bf16.msra.mxu1 %v12353_v52 }
 0x202   : > { %4878 = vmatprep.mubr.bf16.mxu0 %v10276_v28  ;;  %v10891_v28 = vpop.f32.mrb[55].mxu1  ;;  %11623 = vmatprep.subr.bf16.mxu1 %v12356_v22 }
 0x203   : > { %v14500_v2 = vadd.f32 %v10891_v28, %v10890_v7  ;;  %v14503_v37 = vadd.f32 %v10762_v56, %v14404_v9  ;;  %v10893_v47 = vpop.f32.mrb[56].mxu1  ;;  %v12346_v56 = vld [vmem:[#allocation9 + $0x18] sm:$0xff]  }
 0x204   : > { %v10894_v58 = vpop.f32.mrb[57].mxu1  ;;  %11072 = vmatpush3.bf16.msra.mxu0 %v12346_v56  ;;  %v16120_v56 = vld [vmem:[#allocation18_spill] sm:$0xff] }
 0x205   : > { %16114 = vst [vmem:[#allocation33_spill] sm:$0xff] %v14503_v37  ;;  %v14505_v36 = vadd.f32 %v10894_v58, %v10893_v47  ;;  %v10896_v7 = vpop.f32.mrb[58].mxu1  ;;  %v12351_v47 = vld [vmem:[#allocation9 + $0x68] sm:$0xff]   ;;  %v16119_v58 = vld [vmem:[#allocation21_spill] sm:$0xff]  ;;  %11624 = vmatpush3.bf16.msra.mxu1 %v12356_v22 }
 0x206   : > { %v10897_v28 = vpop.f32.mrb[59].mxu1 }
 0x207   : > { %16115 = vst [vmem:[#allocation36_spill] sm:$0xff] %v14505_v36  ;;  %v14507_v62 = vadd.f32 %v10897_v28, %v10896_v7  ;;  %v11761_v7 = vadd.f32 %v16119_v58, %v14404_v9 }
 0x209   : > { %4879 = vmatmul.mubr.bf16.gmra.mrb[152].mxu0 %v10275_v18  ;;  %v10763_v18 = vpop.f32.mrb[60].mxu0  ;;  %16116 = vst [vmem:[#allocation37_spill] sm:$0xff] %v14507_v62 }
 0x20a   : > { %4886 = vmatprep.mubr.bf16.mxu0 %v10279_v17  ;;  %v12348_v17 = vld [vmem:[#allocation9 + $0x60] sm:$0xff]   ;;  %v10764_v8 = vpop.f32.mrb[61].mxu0 }
 0x20b   : > { %v10765_v24 = vadd.f32 %v10764_v8, %v10763_v18  ;;  %v10766_v13 = vpop.f32.mrb[62].mxu0  ;;  %11073 = vmatprep.subr.bf16.mxu0 %v12348_v17  ;;  %v12352_v18 = vld [vmem:[#allocation9 + $0x28] sm:$0xff]   ;;  %v11766_v8 = vadd.f32 %v16120_v56, %v14404_v9 }
 0x20c   : > { %v10767_v42 = vpop.f32.mrb[63].mxu0  ;;  %11074 = vmatpush3.bf16.msra.mxu0 %v12349_v15  ;;  %v16122_v15 = vld [vmem:[#allocation19_spill] sm:$0xff] }
 0x20d   : > { %v10768_v44 = vadd.f32 %v10767_v42, %v10766_v13  ;;  %v14510_v20 = vadd.f32 %v10765_v24, %v14404_v9  ;;  %11075 = vmatprep.subr.bf16.mxu0 %v12351_v47  ;;  %v12354_v24 = vld [vmem:[#allocation9 + $0x70] sm:$0xff]   ;;  %v16121_v42 = vld [vmem:[#allocation22_spill] sm:$0xff]  ;;  %v11776_v58 = vadd.f32 %v16122_v15, %v14404_v9  ;;  %v12357_v15 = vld [vmem:[#allocation9 + $0x78] sm:$0xff]  }
 0x20f   : > { %16117 = vst [vmem:[#allocation38_spill] sm:$0xff] %v14510_v20  ;;  %v11491_v28 = vpop.f32.mrb[64].mxu0 }
 0x210   : > { %v11762_v17 = vadd.f32 %v11761_v7, %v11491_v28  ;;  %v2037_v13 = vpop.f32.mrb[65].mxu0  ;;  %v10899_v62 = vpop.f32.mrb[60].mxu1  ;;  %11076 = vmatpush3.bf16.msra.mxu0 %v12352_v18  ;;  %v12355_v28 = vld [vmem:[#allocation9 + $0x30] sm:$0xff]  }
 0x211   : > { %4887 = vmatmul.mubr.bf16.gmra.mrb[156].mxu0 %v10278_v10  ;;  %v14513_v10 = vadd.f32 %v10768_v44, %v14404_v9  ;;  %v11771_v44 = vadd.f32 %v16121_v42, %v14404_v9  ;;  %v11767_v37 = vadd.f32 %v11766_v8, %v2037_v13  ;;  %v11492_v36 = vpop.f32.mrb[66].mxu0  ;;  %11077 = vmatprep.subr.bf16.mxu0 %v12354_v24  ;;  %v16124_v24 = vld [vmem:[#allocation23_spill] sm:$0xff] }
 0x212   : > { %v14524_v20 = vadd.f32 %v11762_v17, %v14241_v3  ;;  %v2040_v32 = vpop.f32.mrb[67].mxu0  ;;  %v11786_v52 = vadd.f32 %v16124_v24, %v14404_v9  ;;  %v12366_v24 = vld [vmem:[#allocation9 + $0xb0] sm:$0xff]  }
 0x213   : > { %16118 = vst [vmem:[#allocation39_spill] sm:$0xff] %v14513_v10  ;;  %v10900_v10 = vpop.f32.mrb[61].mxu1  ;;  %v11772_v47 = vadd.f32 %v11771_v44, %v11492_v36  ;;  %v14529_v42 = vadd.f32 %v11767_v37, %v14226_v29  ;;  %v11777_v8 = vadd.f32 %v11776_v58, %v2040_v32  ;;  %v12362_v36 = vld [vmem:[#allocation9 + $0xa0] sm:$0xff]   ;;  %v12358_v29 = vld [vmem:[#allocation9 + $0x38] sm:$0xff]   ;;  %v16126_v32 = vld [vmem:[#allocation24_spill] sm:$0xff] }
 0x214   : > { %v14526_v56 = vadd.f32 %v10900_v10, %v10899_v62  ;;  %v10902_v7 = vpop.f32.mrb[62].mxu1  ;;  %v16123_v10 = vld [vmem:[#allocation25_spill] sm:$0xff]  ;;  %11078 = vmatpush3.bf16.msra.mxu0 %v12355_v28  ;;  %v16125_v44 = vld [vmem:[#allocation26_spill] sm:$0xff]  ;;  %11625 = vmatprep.subr.bf16.mxu1 %v12362_v36 }
 0x215   : > { %v10903_v13 = vpop.f32.mrb[63].mxu1  ;;  %v14532_v5 = vadd.f32 %v11772_v47, %v14262_v34  ;;  %v14537_v62 = vadd.f32 %v11777_v8, %v14237_v19  ;;  %v11781_v18 = vadd.f32 %v16123_v10, %v14404_v9  ;;  %11079 = vmatprep.subr.bf16.mxu0 %v12357_v15  ;;  %v11791_v58 = vadd.f32 %v16125_v44, %v14404_v9 }
 0x216   : > { %v14534_v3 = vadd.f32 %v10903_v13, %v10902_v7  ;;  %v11796_v7 = vadd.f32 %v16126_v32, %v14404_v9  ;;  %11626 = vmatpush3.bf16.msra.mxu1 %v12362_v36  ;;  %v16127_v36 = vld [vmem:[#allocation28_spill] sm:$0xff] }
 0x217   : > { %v11495_v37 = vpop.f32.mrb[68].mxu0 }
 0x218   : > { %v11782_v34 = vadd.f32 %v11781_v18, %v11495_v37  ;;  %v2053_v17 = vpop.f32.mrb[69].mxu0  ;;  %11080 = vmatpush3.bf16.msra.mxu0 %v12358_v29  ;;  %v12363_v37 = vld [vmem:[#allocation9 + $0xa8] sm:$0xff]  }
 0x219   : > { %v11787_v47 = vadd.f32 %v11786_v52, %v2053_v17  ;;  %v11496_v19 = vpop.f32.mrb[70].mxu0  ;;  %11627 = vmatprep.subr.bf16.mxu1 %v12363_v37 }
 0x21a   : > { %v14548_v28 = vadd.f32 %v11782_v34, %v14312_v63  ;;  %v11792_v8 = vadd.f32 %v11791_v58, %v11496_v19  ;;  %v2056_v13 = vpop.f32.mrb[71].mxu0  ;;  %11628 = vmatpush3.bf16.msra.mxu1 %v12363_v37  ;;  %v12369_v63 = vld [vmem:[#allocation9 + $0xb8] sm:$0xff]  }
 0x21b   : > { %v14551_v15 = vadd.f32 %v11787_v47, %v14276_v48  ;;  %v11797_v22 = vadd.f32 %v11796_v7, %v2056_v13  ;;  %11629 = vmatprep.subr.bf16.mxu1 %v12366_v24  ;;  %v11801_v48 = vadd.f32 %v14157_v6, %v14404_v9  ;;  %v16129_v47 = vld [vmem:[#allocation29_spill] sm:$0xff] }
 0x21c   : > { %v14554_v10 = vadd.f32 %v11792_v8, %v14337_v26  ;;  %v11806_v26 = vadd.f32 %v16127_v36, %v14404_v9  ;;  %v11816_v19 = vadd.f32 %v16129_v47, %v14404_v9  ;;  %v11846_v47 = vadd.f32 %v14288_v33, %v14404_v9 }
 0x21d   : > { %v14557_v18 = vadd.f32 %v11797_v22, %v14308_v11  ;;  %v16128_v11 = vld [vmem:[#allocation34_spill] sm:$0xff] }
 0x21e   : > { %11630 = vmatpush3.bf16.msra.mxu1 %v12366_v24  ;;  %v11811_v17 = vadd.f32 %v16128_v11, %v14404_v9  ;;  %v11821_v24 = vadd.f32 %v14218_v61, %v14404_v9 }
 0x21f   : > { %11631 = vmatprep.subr.bf16.mxu1 %v12369_v63 }
 0x222   : > { %11632 = vmatpush3.bf16.msra.mxu1 %v12369_v63 }
 0x22d   : > { %v11499_v29 = vpop.f32.mrb[72].mxu0 }
 0x22e   : > { %v11802_v52 = vadd.f32 %v11801_v48, %v11499_v29  ;;  %v2069_v34 = vpop.f32.mrb[73].mxu0  ;;  %v16130_v48 = vld [vmem:[#allocation35_spill] sm:$0xff] }
 0x22f   : > { %v11807_v44 = vadd.f32 %v11806_v26, %v2069_v34  ;;  %v11500_v58 = vpop.f32.mrb[74].mxu0 }
 0x230   : > { %v14568_v32 = vadd.f32 %v11802_v52, %v14364_v12  ;;  %v11812_v7 = vadd.f32 %v11811_v17, %v11500_v58  ;;  %v2072_v8 = vpop.f32.mrb[75].mxu0  ;;  %v11826_v12 = vadd.f32 %v16130_v48, %v14404_v9 }
 0x231   : > { %v14571_v6 = vadd.f32 %v11807_v44, %v14341_v35  ;;  %v11817_v13 = vadd.f32 %v11816_v19, %v2072_v8  ;;  %v11831_v35 = vadd.f32 %v14220_v23, %v14404_v9 }
 0x232   : > { %v14574_v22 = vadd.f32 %v11812_v7, %v14380_v53  ;;  %v11836_v53 = vadd.f32 %v14205_v31, %v14404_v9 }
 0x233   : > { %v14577_v37 = vadd.f32 %v11817_v13, %v14348_v27 }
 0x235   : > { %v11503_v63 = vpop.f32.mrb[76].mxu0 }
 0x236   : > { %v11822_v29 = vadd.f32 %v11821_v24, %v11503_v63  ;;  %v2085_v36 = vpop.f32.mrb[77].mxu0 }
 0x237   : > { %v11827_v26 = vadd.f32 %v11826_v12, %v2085_v36  ;;  %v11504_v52 = vpop.f32.mrb[78].mxu0 }
 0x238   : > { %v14588_v27 = vadd.f32 %v11822_v29, %v14392_v55  ;;  %v11832_v34 = vadd.f32 %v11831_v35, %v11504_v52  ;;  %v2088_v11 = vpop.f32.mrb[79].mxu0 }
 0x239   : > { %v14591_v61 = vadd.f32 %v11827_v26, %v14384_v54  ;;  %v11837_v17 = vadd.f32 %v11836_v53, %v2088_v11  ;;  %v11856_v54 = vadd.f32 %v14304_v46, %v14404_v9  ;;  %v16131_v26 = vld [vmem:[#allocation27_spill] sm:$0xff] }
 0x23a   : > { %v14594_v44 = vadd.f32 %v11832_v34, %v14395_v30  ;;  %v16133_v11 = vld [vmem:[#allocation31_spill] sm:$0xff] }
 0x23b   : > { %v14597_v58 = vadd.f32 %v11837_v17, %v14388_v39 }
 0x23e   : > { %v11507_v23 = vpop.f32.mrb[80].mxu0 }
 0x23f   : > { %v11842_v31 = vadd.f32 %v14415_v45, %v11507_v23  ;;  %v2101_v55 = vpop.f32.mrb[81].mxu0 }
 0x240   : > { %v11847_v19 = vadd.f32 %v11846_v47, %v2101_v55  ;;  %v11508_v7 = vpop.f32.mrb[82].mxu0  ;;  %v16134_v47 = vld [vmem:[#allocation38_spill] sm:$0xff]  ;;  %v16135_v55 = vld [vmem:[#allocation32_spill] sm:$0xff] }
 0x241   : > { %v14605_v8 = vadd.f32 %v11842_v31, %v14420_v57  ;;  %v11852_v30 = vadd.f32 %v14418_v60, %v11508_v7  ;;  %v2104_v13 = vpop.f32.mrb[83].mxu0 }
 0x242   : > { %v14609_v39 = vadd.f32 %v11847_v19, %v14397_v25  ;;  %v11857_v24 = vadd.f32 %v11856_v54, %v2104_v13  ;;  %v16137_v13 = vld [vmem:[#allocation36_spill] sm:$0xff] }
 0x243   : > { %v14612_v33 = vadd.f32 %v11852_v30, %v14422_v21 }
 0x244   : > { %v14615_v45 = vadd.f32 %v11857_v24, %v14399_v41 }
 0x251   : > { %v11511_v63 = vpop.f32.mrb[84].mxu0 }
 0x252   : > { %v11862_v48 = vadd.f32 %v14452_v49, %v11511_v63  ;;  %v2117_v46 = vpop.f32.mrb[85].mxu0 }
 0x253   : > { %v11867_v9 = vadd.f32 %v14425_v16, %v2117_v46  ;;  %v11512_v57 = vpop.f32.mrb[86].mxu0  ;;  %v16140_v46 = vld [vmem:[#allocation37_spill] sm:$0xff] }
 0x254   : > { %v14620_v60 = vadd.f32 %v11862_v48, %v14467_v1  ;;  %v11872_v25 = vadd.f32 %v14455_v59, %v11512_v57  ;;  %v2120_v12 = vpop.f32.mrb[87].mxu0  ;;  %v14634_v1 = vld [vmem:[#allocation9 + $0x140] sm:$0xff]  }
 0x255   : > { %v14624_v29 = vadd.f32 %v11867_v9, %v14438_v43  ;;  %v11877_v21 = vadd.f32 %v14434_v4, %v2120_v12  ;;  %11665 = vmatprep.subr.bf16.mxu1 %v14634_v1 }
 0x256   : > { %v14628_v41 = vadd.f32 %v11872_v25, %v14469_v40  ;;  %v16132_v40 = vld [vmem:[#allocation30_spill] sm:$0xff] }
 0x257   : > { %v14631_v49 = vadd.f32 %v11877_v21, %v14449_v50 }
 0x25b   : > { %v11515_v36 = vpop.f32.mrb[88].mxu0 }
 0x25c   : > { %v11882_v16 = vadd.f32 %v14484_v38, %v11515_v36  ;;  %v2133_v35 = vpop.f32.mrb[89].mxu0 }
 0x25d   : > { %v11887_v59 = vadd.f32 %v16131_v26, %v2133_v35  ;;  %v11516_v52 = vpop.f32.mrb[90].mxu0 }
 0x25e   : > { %v14638_v43 = vadd.f32 %v11882_v16, %v14495_v14  ;;  %v11892_v4 = vadd.f32 %v14489_v0, %v11516_v52  ;;  %v2136_v53 = vpop.f32.mrb[91].mxu0 }
 0x25f   : > { %v14643_v50 = vadd.f32 %v11887_v59, %v14481_v51  ;;  %v11897_v34 = vadd.f32 %v16132_v40, %v2136_v53  ;;  %v16136_v51 = vld [vmem:[#allocation39_spill] sm:$0xff] }
 0x260   : > { %v14647_v38 = vadd.f32 %v11892_v4, %v14500_v2  ;;  %v16138_v2 = vld [vmem:[#allocation33_spill] sm:$0xff] }
 0x261   : > { %v14650_v17 = vadd.f32 %v11897_v34, %v16133_v11 }
 0x263   : > { %v11519_v23 = vpop.f32.mrb[92].mxu0 }
 0x264   : > { %v11902_v14 = vadd.f32 %v16134_v47, %v11519_v23  ;;  %v2149_v31 = vpop.f32.mrb[93].mxu0 }
 0x265   : > { %v11907_v0 = vadd.f32 %v16135_v55, %v2149_v31  ;;  %v11520_v19 = vpop.f32.mrb[94].mxu0 }
 0x266   : > { %v14655_v7 = vadd.f32 %v11902_v14, %v14526_v56  ;;  %v11912_v54 = vadd.f32 %v16136_v51, %v11520_v19  ;;  %v2152_v30 = vpop.f32.mrb[95].mxu0 }
 0x267   : > { %v14659_v24 = vadd.f32 %v11907_v0, %v16137_v13  ;;  %v11917_v63 = vadd.f32 %v16138_v2, %v2152_v30  ;;  %v12418_v2 = vld [vmem:[#allocation9 + $0x100] sm:$0xff]  }
 0x268   : > { %v14663_v48 = vadd.f32 %v11912_v54, %v14534_v3  ;;  %11201 = vmatprep.subr.bf16.mxu0 %v12418_v2 }
 0x269   : > { %v14666_v9 = vadd.f32 %v11917_v63, %v16140_v46 }
 0x26a   : > { %16139 = vst [vmem:[#allocation21_spill] sm:$0xff] %v14663_v48 }
 0x26c   : > { %v10945_v57 = vpop.f32.mrb[96].mxu0 }
 0x26d   : > { %v10946_v25 = vpop.f32.mrb[97].mxu0 }
 0x26e   : > { %v10947_v12 = vadd.f32 %v10946_v25, %v10945_v57  ;;  %v10948_v21 = vpop.f32.mrb[98].mxu0 }
 0x26f   : > { %v10949_v56 = vpop.f32.mrb[99].mxu0 }
 0x270   : > { %v11769_v36 = vadd.f32 %v14529_v42, %v10947_v12  ;;  %v10950_v16 = vadd.f32 %v10949_v56, %v10948_v21 }
 0x272   : > { %v11779_v35 = vadd.f32 %v14537_v62, %v10950_v16 }
 0x274   : > { %v10951_v26 = vpop.f32.mrb[100].mxu0 }
 0x275   : > { %v10952_v59 = vpop.f32.mrb[101].mxu0 }
 0x276   : > { %v10953_v52 = vadd.f32 %v10952_v59, %v10951_v26  ;;  %v10954_v4 = vpop.f32.mrb[102].mxu0 }
 0x277   : > { %v11587_v53 = vpop.f32.mrb[64].mxu1  ;;  %v10955_v3 = vpop.f32.mrb[103].mxu0 }
 0x278   : > { %v4929_v40 = vpop.f32.mrb[65].mxu1  ;;  %v11764_v34 = vadd.f32 %v14524_v20, %v10953_v52  ;;  %v10956_v11 = vadd.f32 %v10955_v3, %v10954_v4 }
 0x279   : > { %v11770_v23 = vadd.f32 %v11769_v36, %v4929_v40  ;;  %v11588_v47 = vpop.f32.mrb[66].mxu1 }
 0x27a   : > { %v4932_v14 = vpop.f32.mrb[67].mxu1  ;;  %v11765_v31 = vadd.f32 %v11764_v34, %v11587_v53  ;;  %v11774_v55 = vadd.f32 %v14532_v5, %v10956_v11  ;;  %v5575_v5 = vld [vmem:[#allocation2 + $0x24] sm:$0xf] }
 0x27b   : > { %v5152_v42 = vmax.f32 %v11770_v23, 0.0  ;;  %v11780_v0 = vadd.f32 %v11779_v35, %v4932_v14  ;;  %v5705_v53 = vld [vmem:[#allocation2 + $0x4] sm:$0xf]  ;;  %v5579_v23 = vld [vmem:[#allocation2 + $0x3c] sm:$0x1] }
 0x27c   : > { %v5154_v19 = vmax.f32 %v11765_v31, 0.0  ;;  %v11775_v62 = vadd.f32 %v11774_v55, %v11588_v47  ;;  %v10957_v51 = vpop.f32.mrb[104].mxu0  ;;  %v5582_v14 = vld [vmem:[#allocation2 + $0x48] sm:$0xf] }
 0x27d   : > { %v10624_v54 = vpack.c.bf16 %v5152_v42, %v5152_v42  ;;  %v5153_v30 = vmax.f32 %v11780_v0, 0.0  ;;  %v10958_v13 = vpop.f32.mrb[105].mxu0 }
 0x27e   : > { %v10626_v63 = vpack.c.bf16 %v5154_v19, %v5154_v19  ;;  %v5155_v46 = vmax.f32 %v11775_v62, 0.0  ;;  %v10959_v57 = vadd.f32 %v10958_v13, %v10957_v51  ;;  %v10960_v20 = vpop.f32.mrb[106].mxu0  ;;  %v5709_v13 = vld [vmem:[#allocation2 + $0x1c] sm:$0x1] }
 0x27f   : > { %v5276_v25 = vshrl.u32 %v10624_v54, 16  ;;  %v5279_v12 = vshll.u32 %v10624_v54, 16  ;;  %v10625_v21 = vpack.c.bf16 %v5153_v30, %v5153_v30  ;;  %v14672_v56 = vpop.f32.mrb[68].mxu1  ;;  %v10961_v36 = vpop.f32.mrb[107].mxu0  ;;  %v5712_v54 = vld [vmem:[#allocation2 + $0x28] sm:$0xf] }
 0x280   : > { %v5293_v16 = vshrl.u32 %v10626_v63, 16  ;;  %v5296_v35 = vshll.u32 %v10626_v63, 16  ;;  %v4945_v26 = vpop.f32.mrb[69].mxu1  ;;  %v10627_v59 = vpack.c.bf16 %v5155_v46, %v5155_v46  ;;  %v11789_v52 = vadd.f32 %v14551_v15, %v10959_v57  ;;  %v5817_v30 = vld [vmem:[#allocation2 + $0x8] sm:$0xf] }
 0x281   : > { %v5278_v4 = vrot.slane %v5276_v25, 7  ;;  %v5284_v3 = vshrl.u32 %v10625_v21, 16  ;;  %v5287_v40 = vshll.u32 %v10625_v21, 16  ;;  %v14675_v34 = vpop.f32.mrb[70].mxu1  ;;  %v10962_v11 = vadd.f32 %v10961_v36, %v10960_v20 }
 0x282   : > { %v5295_v47 = vrot.slane %v5293_v16, 7  ;;  %v5301_v31 = vshrl.u32 %v10627_v59, 16  ;;  %v5304_v55 = vshll.u32 %v10627_v59, 16  ;;  %v4948_v42 = vpop.f32.mrb[71].mxu1  ;;  %v11790_v0 = vadd.f32 %v11789_v52, %v4945_v26  ;;  %v5586_v26 = vld [vmem:[#allocation2 + $0x60] sm:$0x1] }
 0x283   : > { %v5281_v19 = vor.u32 %v5279_v12, %v5278_v4  ;;  %v5282_v62 = vrot.slane %v5278_v4, 4  ;;  %v5286_v51 = vrot.slane %v5284_v3, 7  ;;  %v11799_v15 = vadd.f32 %v14557_v18, %v10962_v11  ;;  %v5821_v3 = vld [vmem:[#allocation2 + $0x20] sm:$0x1] }
 0x284   : > { %v5298_v2 = vor.u32 %v5296_v35, %v5295_v47  ;;  %v5299_v63 = vrot.slane %v5295_v47, 4  ;;  %v5303_v46 = vrot.slane %v5301_v31, 7  ;;  %v5156_v57 = vmax.f32 %v11790_v0, 0.0  ;;  %v10963_v20 = vpop.f32.mrb[108].mxu0 }
 0x285   : > { %v5576_v21 = vsel %vm12934_vm15, %v5281_v19, %v5575_v5  ;;  %v5706_v36 = vsel %vm12934_vm15, %v5281_v19, %v5705_v53  ;;  %v5289_v16 = vor.u32 %v5287_v40, %v5286_v51  ;;  %v5291_v12 = vrot.slane %v5286_v51, 4  ;;  %v10964_v59 = vpop.f32.mrb[109].mxu0  ;;  %v5716_v5 = vld [vmem:[#allocation2 + $0x40] sm:$0x1] }
 0x286   : > { %5577 = vst [vmem:[#allocation2 + $0x24] sm:$0xf] %v5576_v21  ;;  %5707 = vst [vmem:[#allocation2 + $0x4] sm:$0xf] %v5706_v36  ;;  %v5583_v18 = vsel %vm12934_vm15, %v5298_v2, %v5582_v14  ;;  %v5713_v35 = vsel %vm12934_vm15, %v5298_v2, %v5712_v54  ;;  %v5818_v52 = vsel %vm12934_vm15, %v5298_v2, %v5817_v30  ;;  %v10966_v11 = vpop.f32.mrb[110].mxu0  ;;  %v5308_v14 = vrot.slane %v5303_v46, 4 }
 0x287   : > { %v5306_v4 = vor.u32 %v5304_v55, %v5303_v46  ;;  %v5290_v40 = vsel %vm12922_vm14, %v5282_v62, %v5289_v16  ;;  %v5580_v31 = vsel %vm12866_vm6, %v5291_v12, %v5579_v23  ;;  %v5710_v0 = vsel %vm12866_vm6, %v5291_v12, %v5709_v13  ;;  %5584 = vst [vmem:[#allocation2 + $0x48] sm:$0xf] %v5583_v18  ;;  %v14694_v19 = vpop.f32.mrb[72].mxu1  ;;  %v10967_v51 = vpop.f32.mrb[111].mxu0 }
 0x288   : > { %5714 = vst [vmem:[#allocation2 + $0x28] sm:$0xf] %v5713_v35  ;;  %5819 = vst [vmem:[#allocation2 + $0x8] sm:$0xf] %v5818_v52  ;;  %v10628_v62 = vpack.c.bf16 %v5156_v57, %v5156_v57  ;;  %v14698_v54 = vpop.f32.mrb[73].mxu1  ;;  %v11800_v23 = vadd.f32 %v11799_v15, %v4948_v42  ;;  %v10965_v30 = vadd.f32 %v10964_v59, %v10963_v20 }
 0x289   : > { %5578 = vst [vmem:[#allocation2 + $0x30] sm:$0xf] %v5290_v40  ;;  %5581 = vst [vmem:[#allocation2 + $0x3c] sm:$0x1] %v5580_v31  ;;  %v5307_v55 = vsel %vm12922_vm14, %v5299_v63, %v5306_v4  ;;  %v5587_v13 = vsel %vm12866_vm6, %v5308_v14, %v5586_v26  ;;  %v5717_v2 = vsel %vm12866_vm6, %v5308_v14, %v5716_v5  ;;  %v14706_v21 = vpop.f32.mrb[74].mxu1 }
 0x28a   : > { %5708 = vst [vmem:[#allocation2 + $0x10] sm:$0xf] %v5290_v40  ;;  %5711 = vst [vmem:[#allocation2 + $0x1c] sm:$0x1] %v5710_v0  ;;  %v5822_v46 = vsel %vm12866_vm6, %v5308_v14, %v5821_v3  ;;  %v10968_v63 = vadd.f32 %v10967_v51, %v10966_v11  ;;  %v5310_v42 = vshrl.u32 %v10628_v62, 16  ;;  %v5157_v15 = vmax.f32 %v11800_v23, 0.0 }
 0x28b   : > { %5585 = vst [vmem:[#allocation2 + $0x54] sm:$0xf] %v5307_v55  ;;  %5715 = vst [vmem:[#allocation2 + $0x34] sm:$0xf] %v5307_v55  ;;  %v14708_v57 = vpop.f32.mrb[75].mxu1  ;;  %v11784_v20 = vadd.f32 %v14548_v28, %v10965_v30  ;;  %v5313_v12 = vshll.u32 %v10628_v62, 16 }
 0x28c   : > { %5820 = vst [vmem:[#allocation2 + $0x14] sm:$0xf] %v5307_v55  ;;  %5588 = vst [vmem:[#allocation2 + $0x60] sm:$0x1] %v5587_v13  ;;  %v11794_v36 = vadd.f32 %v14554_v10, %v10968_v63  ;;  %v5312_v16 = vrot.slane %v5310_v42, 7  ;;  %v10629_v59 = vpack.c.bf16 %v5157_v15, %v5157_v15  ;;  %v10969_v35 = vpop.f32.mrb[112].mxu0 }
 0x28d   : > { %5718 = vst [vmem:[#allocation2 + $0x40] sm:$0x1] %v5717_v2  ;;  %5823 = vst [vmem:[#allocation2 + $0x20] sm:$0x1] %v5822_v46  ;;  %v5589_v26 = vld [vmem:[#allocation2 + $0x6c] sm:$0xf]  ;;  %v11785_v18 = vadd.f32 %v11784_v20, %v14672_v56 }
 0x28e   : > { %v5719_v52 = vld [vmem:[#allocation2 + $0x4c] sm:$0xf]  ;;  %v11795_v5 = vadd.f32 %v11794_v36, %v14675_v34  ;;  %v10970_v3 = vpop.f32.mrb[113].mxu0  ;;  %v5315_v11 = vor.u32 %v5313_v12, %v5312_v16  ;;  %v5316_v40 = vrot.slane %v5312_v16, 4  ;;  %v5318_v31 = vshrl.u32 %v10629_v59, 16  ;;  %v12420_v13 = vld [vmem:[#allocation9 + $0xc0] sm:$0xff]  }
 0x28f   : > { %v5824_v4 = vld [vmem:[#allocation2 + $0x2c] sm:$0xf]  ;;  %v5321_v0 = vshll.u32 %v10629_v59, 16  ;;  %v10972_v14 = vpop.f32.mrb[114].mxu0  ;;  %v5593_v28 = vld [vmem:[#allocation2 + $0x84] sm:$0x1]  ;;  %v10971_v56 = vadd.f32 %v10970_v3, %v10969_v35 }
 0x290   : > { %v5723_v51 = vld [vmem:[#allocation2 + $0x64] sm:$0x1]  ;;  %v14714_v55 = vpop.f32.mrb[76].mxu1  ;;  %v5158_v62 = vmax.f32 %v11785_v18, 0.0  ;;  %v5159_v23 = vmax.f32 %v11795_v5, 0.0  ;;  %v5590_v2 = vsel %vm12934_vm15, %v5315_v11, %v5589_v26  ;;  %v5720_v34 = vsel %vm12934_vm15, %v5315_v11, %v5719_v52  ;;  %v10973_v20 = vpop.f32.mrb[115].mxu0 }
 0x291   : > { %v5828_v10 = vld [vmem:[#allocation2 + $0x44] sm:$0x1]  ;;  %v12359_v30 = vld [vmem:[#allocation2] ss:$12 sps:$4 sm:$0xff]   ;;  %v5825_v46 = vsel %vm12934_vm15, %v5315_v11, %v5824_v4  ;;  %v5320_v63 = vrot.slane %v5318_v31, 7  ;;  %v14722_v42 = vpop.f32.mrb[77].mxu1  ;;  %v11809_v26 = vadd.f32 %v14571_v6, %v10971_v56  ;;  %v10974_v59 = vadd.f32 %v10973_v20, %v10972_v14 }
 0x292   : > { %v12361_v15 = vld [vmem:[#allocation2 + $0x4] ss:$12 sps:$4 sm:$0xff]   ;;  %5591 = vst [vmem:[#allocation2 + $0x6c] sm:$0xf] %v5590_v2  ;;  %5721 = vst [vmem:[#allocation2 + $0x4c] sm:$0xf] %v5720_v34  ;;  %v10630_v36 = vpack.c.bf16 %v5158_v62, %v5158_v62  ;;  %v10631_v12 = vpack.c.bf16 %v5159_v23, %v5159_v23 }
 0x293   : > { %5826 = vst [vmem:[#allocation2 + $0x2c] sm:$0xf] %v5825_v46  ;;  %v14724_v16 = vpop.f32.mrb[78].mxu1  ;;  %v12364_v18 = vld [vmem:[#allocation2 + $0x28] ss:$12 sps:$4 sm:$0xff]   ;;  %v5323_v52 = vor.u32 %v5321_v0, %v5320_v63  ;;  %v5325_v5 = vrot.slane %v5320_v63, 4  ;;  %6601 = vmatprep.mubr.bf16.mxu0 %v12361_v15  ;;  %v11810_v15 = vadd.f32 %v11809_v26, %v14698_v54 }
 0x294   : > { %v12421_v35 = vld [vmem:[#allocation9 + $0x108] sm:$0xff]   ;;  %v14727_v4 = vpop.f32.mrb[79].mxu1  ;;  %v5327_v11 = vshrl.u32 %v10630_v36, 16  ;;  %v5330_v31 = vshll.u32 %v10630_v36, 16  ;;  %v5335_v2 = vshrl.u32 %v10631_v12, 16  ;;  %v5338_v34 = vshll.u32 %v10631_v12, 16  ;;  %6602 = vmatmul.mubr.bf16.vlgmr.msra.gmra.mrb[160].mxu0 %v12359_v30 }
 0x295   : > { %v12367_v3 = vld [vmem:[#allocation2 + $0x8] ss:$12 sps:$4 sm:$0xff]   ;;  %v5324_v62 = vsel %vm12922_vm14, %v5316_v40, %v5323_v52  ;;  %v5594_v6 = vsel %vm12866_vm6, %v5325_v5, %v5593_v28  ;;  %v5724_v14 = vsel %vm12866_vm6, %v5325_v5, %v5723_v51  ;;  %v5829_v0 = vsel %vm12866_vm6, %v5325_v5, %v5828_v10  ;;  %v5596_v23 = vld [vmem:[#allocation2 + $0x90] sm:$0xf]  ;;  %6609 = vmatprep.mubr.bf16.mxu0 %v12364_v18  ;;  %v10975_v63 = vpop.f32.mrb[116].mxu0 }
 0x296   : > { %v5726_v56 = vld [vmem:[#allocation2 + $0x70] sm:$0xf]  ;;  %5592 = vst [vmem:[#allocation2 + $0x78] sm:$0xf] %v5324_v62  ;;  %5595 = vst [vmem:[#allocation2 + $0x84] sm:$0x1] %v5594_v6  ;;  %v11819_v51 = vadd.f32 %v14577_v37, %v10974_v59  ;;  %11633 = vmatprep.mubr.bf16.mxu1 %v12367_v3  ;;  %11202 = vmatpush3.bf16.msra.mxu0 %v12420_v13 }
 0x297   : > { %v5831_v46 = vld [vmem:[#allocation2 + $0x50] sm:$0xf]  ;;  %5722 = vst [vmem:[#allocation2 + $0x58] sm:$0xf] %v5324_v62  ;;  %5725 = vst [vmem:[#allocation2 + $0x64] sm:$0x1] %v5724_v14  ;;  %11203 = vmatprep.subr.bf16.mxu0 %v12421_v35 }
 0x298   : > { %5827 = vst [vmem:[#allocation2 + $0x38] sm:$0xf] %v5324_v62  ;;  %5830 = vst [vmem:[#allocation2 + $0x44] sm:$0x1] %v5829_v0  ;;  %v5329_v40 = vrot.slane %v5327_v11, 7  ;;  %v5337_v30 = vrot.slane %v5335_v2, 7  ;;  %v11820_v13 = vadd.f32 %v11819_v51, %v14708_v57 }
 0x299   : > { %v5600_v28 = vld [vmem:[#allocation2 + $0xa8] sm:$0x1]  ;;  %v10976_v10 = vpop.f32.mrb[117].mxu0  ;;  %v12427_v5 = vld [vmem:[#allocation9 + $0x110] sm:$0xff]   ;;  %v14739_v2 = vpop.f32.mrb[80].mxu1  ;;  %v5160_v26 = vmax.f32 %v11810_v15, 0.0 }
 0x29a   : > { %v12422_v20 = vld [vmem:[#allocation9 + $0xc8] sm:$0xff]   ;;  %v10977_v18 = vadd.f32 %v10976_v10, %v10975_v63  ;;  %v10978_v52 = vpop.f32.mrb[118].mxu0  ;;  %v5332_v6 = vor.u32 %v5330_v31, %v5329_v40  ;;  %v5333_v62 = vrot.slane %v5329_v40, 4  ;;  %v5340_v14 = vor.u32 %v5338_v34, %v5337_v30  ;;  %v12368_v0 = vld [vmem:[#allocation2 + $0x24] ss:$12 sps:$4 sm:$0xff]   ;;  %v14741_v37 = vpop.f32.mrb[81].mxu1 }
 0x29b   : > { %v5730_v36 = vld [vmem:[#allocation2 + $0x88] sm:$0x1]  ;;  %v5342_v11 = vrot.slane %v5337_v30, 4  ;;  %v10979_v54 = vpop.f32.mrb[119].mxu0  ;;  %v14753_v40 = vpop.f32.mrb[82].mxu1  ;;  %11204 = vmatpush3.bf16.msra.mxu0 %v12422_v20  ;;  %v12429_v30 = vld [vmem:[#allocation9 + $0xd0] sm:$0xff]  }
 0x29c   : > { %v5835_v12 = vld [vmem:[#allocation2 + $0x68] sm:$0x1]  ;;  %v11804_v59 = vadd.f32 %v14568_v32, %v10977_v18  ;;  %v10980_v3 = vadd.f32 %v10979_v54, %v10978_v52  ;;  %v5597_v35 = vsel %vm12934_vm15, %v5332_v6, %v5596_v23  ;;  %v5727_v31 = vsel %vm12934_vm15, %v5332_v6, %v5726_v56  ;;  %11205 = vmatprep.subr.bf16.mxu0 %v12427_v5  ;;  %v12430_v15 = vld [vmem:[#allocation9 + $0x118] sm:$0xff]   ;;  %v10981_v52 = vpop.f32.mrb[120].mxu0 }
 0x29d   : > { %v5832_v34 = vsel %vm12934_vm15, %v5332_v6, %v5831_v46  ;;  %v5341_v63 = vsel %vm12922_vm14, %v5333_v62, %v5340_v14  ;;  %5598 = vst [vmem:[#allocation2 + $0x90] sm:$0xf] %v5597_v35  ;;  %5728 = vst [vmem:[#allocation2 + $0x70] sm:$0xf] %v5727_v31  ;;  %v5601_v32 = vsel %vm12866_vm6, %v5342_v11, %v5600_v28  ;;  %v14761_v46 = vpop.f32.mrb[83].mxu1  ;;  %v5161_v51 = vmax.f32 %v11820_v13, 0.0 }
 0x29e   : > { %5833 = vst [vmem:[#allocation2 + $0x50] sm:$0xf] %v5832_v34  ;;  %5599 = vst [vmem:[#allocation2 + $0x9c] sm:$0xf] %v5341_v63  ;;  %v5731_v57 = vsel %vm12866_vm6, %v5342_v11, %v5730_v36  ;;  %v5836_v23 = vsel %vm12866_vm6, %v5342_v11, %v5835_v12  ;;  %v10632_v56 = vpack.c.bf16 %v5160_v26, %v5160_v26  ;;  %6610 = vmatmul.mubr.bf16.gmra.mrb[164].mxu0 %v12368_v0  ;;  %v14765_v20 = vld [vmem:[#allocation9 + $0x148] sm:$0xff]   ;;  %v12431_v12 = vld [vmem:[#allocation9 + $0xd8] sm:$0xff]  }
 0x29f   : > { %5729 = vst [vmem:[#allocation2 + $0x7c] sm:$0xf] %v5341_v63  ;;  %5834 = vst [vmem:[#allocation2 + $0x5c] sm:$0xf] %v5341_v63  ;;  %v11805_v28 = vadd.f32 %v11804_v59, %v14694_v19  ;;  %v11814_v10 = vadd.f32 %v14574_v22, %v10980_v3  ;;  %v12370_v18 = vld [vmem:[#allocation2 + $0x4c] ss:$12 sps:$4 sm:$0xff]   ;;  %v10633_v14 = vpack.c.bf16 %v5161_v51, %v5161_v51  ;;  %11206 = vmatpush3.bf16.msra.mxu0 %v12429_v30 }
 0x2a0   : > { %5602 = vst [vmem:[#allocation2 + $0xa8] sm:$0x1] %v5601_v32  ;;  %5732 = vst [vmem:[#allocation2 + $0x88] sm:$0x1] %v5731_v57  ;;  %v5344_v36 = vshrl.u32 %v10632_v56, 16  ;;  %v10982_v26 = vpop.f32.mrb[121].mxu0  ;;  %6617 = vmatprep.mubr.bf16.mxu0 %v12370_v18  ;;  %11207 = vmatprep.subr.bf16.mxu0 %v12430_v15 }
 0x2a1   : > { %5837 = vst [vmem:[#allocation2 + $0x68] sm:$0x1] %v5836_v23  ;;  %v5603_v6 = vld [vmem:[#allocation2 + $0xb4] sm:$0xf]  ;;  %v5162_v5 = vmax.f32 %v11805_v28, 0.0  ;;  %v11815_v11 = vadd.f32 %v11814_v10, %v14706_v21  ;;  %v5347_v13 = vshll.u32 %v10632_v56, 16  ;;  %v10983_v22 = vadd.f32 %v10982_v26, %v10981_v52 }
 0x2a2   : > { %v5733_v62 = vld [vmem:[#allocation2 + $0x94] sm:$0xf]  ;;  %v12372_v54 = vld [vmem:[#allocation2 + $0x2c] ss:$12 sps:$4 sm:$0xff]   ;;  %v5346_v0 = vrot.slane %v5344_v36, 7  ;;  %v10984_v59 = vpop.f32.mrb[122].mxu0 }
 0x2a3   : > { %v5838_v19 = vld [vmem:[#allocation2 + $0x74] sm:$0xf]  ;;  %v12436_v3 = vld [vmem:[#allocation9 + $0x120] sm:$0xff]   ;;  %v5352_v35 = vshrl.u32 %v10633_v14, 16  ;;  %v14768_v31 = vpop.f32.mrb[84].mxu1  ;;  %v14770_v34 = vpack.c.bf16 %v5162_v5, %v5162_v5  ;;  %v5163_v63 = vmax.f32 %v11815_v11, 0.0  ;;  %11634 = vmatmul.mubr.bf16.vlgmr.msra.gmra.mrb[96].mxu1 %v12372_v54  ;;  %v11829_v10 = vadd.f32 %v14591_v61, %v10983_v22  ;;  %11208 = vmatpush3.bf16.msra.mxu0 %v12431_v12 }
 0x2a4   : > { %v12373_v32 = vld [vmem:[#allocation2 + $0x48] ss:$12 sps:$4 sm:$0xff]   ;;  %v10985_v21 = vpop.f32.mrb[123].mxu0  ;;  %v5349_v57 = vor.u32 %v5347_v13, %v5346_v0  ;;  %v5355_v23 = vshll.u32 %v10633_v14, 16  ;;  %v5607_v30 = vld [vmem:[#allocation2 + $0xcc] sm:$0x1]  ;;  %11666 = vmatpush3.bf16.msra.mxu1 %v14634_v1  ;;  %11209 = vmatprep.subr.bf16.mxu0 %v12436_v3 }
 0x2a5   : > { %v5737_v51 = vld [vmem:[#allocation2 + $0xac] sm:$0x1]  ;;  %v14772_v28 = vpop.f32.mrb[85].mxu1  ;;  %v10986_v15 = vadd.f32 %v10985_v21, %v10984_v59  ;;  %v14776_v36 = vld [vmem:[#allocation9 + $0x150] sm:$0xff]   ;;  %v5350_v18 = vrot.slane %v5346_v0, 4  ;;  %v5354_v52 = vrot.slane %v5352_v35, 7  ;;  %v14781_v54 = vpack.c.bf16 %v5163_v63, %v5163_v63  ;;  %11667 = vmatprep.subr.bf16.mxu1 %v14765_v20 }
 0x2a6   : > { %v5842_v56 = vld [vmem:[#allocation2 + $0x8c] sm:$0x1]  ;;  %v5361_v5 = vshrl.u32 %v14770_v34, 16  ;;  %v14779_v11 = vpop.f32.mrb[86].mxu1  ;;  %v5604_v14 = vsel %vm12934_vm15, %v5349_v57, %v5603_v6  ;;  %v5734_v61 = vsel %vm12934_vm15, %v5349_v57, %v5733_v62  ;;  %v5839_v1 = vsel %vm12934_vm15, %v5349_v57, %v5838_v19  ;;  %v12374_v13 = vld [vmem:[#allocation2 + $0x70] ss:$12 sps:$4 sm:$0xff]   ;;  %6618 = vmatmul.mubr.bf16.gmra.mrb[168].mxu0 %v12373_v32 }
 0x2a7   : > { %v14790_v26 = vpop.f32.mrb[87].mxu1  ;;  %v11830_v0 = vadd.f32 %v11829_v10, %v14722_v42  ;;  %v12438_v22 = vld [vmem:[#allocation9 + $0xe0] sm:$0xff]   ;;  %5605 = vst [vmem:[#allocation2 + $0xb4] sm:$0xf] %v5604_v14  ;;  %5735 = vst [vmem:[#allocation2 + $0x94] sm:$0xf] %v5734_v61  ;;  %v5357_v12 = vor.u32 %v5355_v23, %v5354_v52  ;;  %v11839_v42 = vadd.f32 %v14597_v58, %v10986_v15  ;;  %6625 = vmatprep.mubr.bf16.mxu0 %v12374_v13 }
 0x2a8   : > { %5840 = vst [vmem:[#allocation2 + $0x74] sm:$0xf] %v5839_v1  ;;  %v5359_v59 = vrot.slane %v5354_v52, 4  ;;  %v14793_v35 = vrot.slane %v5361_v5, 7  ;;  %v5610_v6 = vld [vmem:[#allocation2 + $0xd8] sm:$0xf]  ;;  %11668 = vmatpush3.bf16.msra.mxu1 %v14765_v20  ;;  %11210 = vmatpush3.bf16.msra.mxu0 %v12438_v22 }
 0x2a9   : > { %v5369_v62 = vshrl.u32 %v14781_v54, 16  ;;  %v12439_v63 = vld [vmem:[#allocation9 + $0x128] sm:$0xff]   ;;  %v5364_v19 = vshll.u32 %v14770_v34, 16  ;;  %v5164_v21 = vmax.f32 %v11830_v0, 0.0  ;;  %v12376_v3 = vld [vmem:[#allocation2 + $0x50] ss:$12 sps:$4 sm:$0xff]   ;;  %v5358_v23 = vsel %vm12922_vm14, %v5350_v18, %v5357_v12  ;;  %11669 = vmatprep.subr.bf16.mxu1 %v14776_v36 }
 0x2aa   : > { %v10987_v57 = vpop.f32.mrb[124].mxu0  ;;  %v5608_v10 = vsel %vm12866_vm6, %v5359_v59, %v5607_v30  ;;  %v5738_v32 = vsel %vm12866_vm6, %v5359_v59, %v5737_v51  ;;  %v5843_v34 = vsel %vm12866_vm6, %v5359_v59, %v5842_v56  ;;  %v5740_v52 = vld [vmem:[#allocation2 + $0xb8] sm:$0xf]  ;;  %5606 = vst [vmem:[#allocation2 + $0xc0] sm:$0xf] %v5358_v23  ;;  %v5372_v51 = vshll.u32 %v14781_v54, 16  ;;  %11637 = vmatprep.mubr.bf16.mxu1 %v12376_v3 }
 0x2ab   : > { %v5845_v5 = vld [vmem:[#allocation2 + $0x98] sm:$0xf]  ;;  %v10988_v58 = vpop.f32.mrb[125].mxu0  ;;  %5609 = vst [vmem:[#allocation2 + $0xcc] sm:$0x1] %v5608_v10  ;;  %v5366_v20 = vor.u32 %v5364_v19, %v14793_v35  ;;  %v5371_v30 = vrot.slane %v5369_v62, 7  ;;  %v14812_v56 = vpack.c.bf16 %v5164_v21, %v5164_v21  ;;  %v11840_v13 = vadd.f32 %v11839_v42, %v14727_v4  ;;  %11211 = vmatprep.subr.bf16.mxu0 %v12439_v63 }
 0x2ac   : > { %v14808_v15 = vld [vmem:[#allocation9 + $0x158] sm:$0xff]   ;;  %5736 = vst [vmem:[#allocation2 + $0xa0] sm:$0xf] %v5358_v23  ;;  %5739 = vst [vmem:[#allocation2 + $0xac] sm:$0x1] %v5738_v32  ;;  %v10990_v14 = vpop.f32.mrb[126].mxu0  ;;  %v10989_v59 = vadd.f32 %v10988_v58, %v10987_v57  ;;  %11670 = vmatpush3.bf16.msra.mxu1 %v14776_v36 }
 0x2ad   : > { %5841 = vst [vmem:[#allocation2 + $0x80] sm:$0xf] %v5358_v23  ;;  %5844 = vst [vmem:[#allocation2 + $0x8c] sm:$0x1] %v5843_v34  ;;  %v5614_v18 = vld [vmem:[#allocation2 + $0xf0] sm:$0x1]  ;;  %v5611_v54 = vsel %vm12934_vm15, %v5366_v20, %v5610_v6  ;;  %v5741_v19 = vsel %vm12934_vm15, %v5366_v20, %v5740_v52  ;;  %v5846_v22 = vsel %vm12934_vm15, %v5366_v20, %v5845_v5  ;;  %11671 = vmatprep.subr.bf16.mxu1 %v14808_v15 }
 0x2ae   : > { %v12440_v61 = vld [vmem:[#allocation9 + $0xe8] sm:$0xff]   ;;  %v5367_v1 = vrot.slane %v14793_v35, 4  ;;  %v14815_v0 = vpop.f32.mrb[88].mxu1  ;;  %v10991_v23 = vpop.f32.mrb[127].mxu0  ;;  %v12446_v62 = vld [vmem:[#allocation9 + $0x130] sm:$0xff]   ;;  %v5374_v21 = vor.u32 %v5372_v51, %v5371_v30  ;;  %v5376_v4 = vrot.slane %v5371_v30, 4  ;;  %v11824_v58 = vadd.f32 %v14588_v27, %v10989_v59 }
 0x2af   : > { %v12377_v12 = vld [vmem:[#allocation2 + $0x6c] ss:$12 sps:$4 sm:$0xff]   ;;  %v5744_v35 = vld [vmem:[#allocation2 + $0xd0] sm:$0x1]  ;;  %v14824_v10 = vpop.f32.mrb[89].mxu1  ;;  %v5378_v63 = vshrl.u32 %v14812_v56, 16  ;;  %v10992_v20 = vadd.f32 %v10991_v23, %v10990_v14  ;;  %11212 = vmatpush3.bf16.msra.mxu0 %v12440_v61 }
 0x2b0   : > { %v5849_v3 = vld [vmem:[#allocation2 + $0xb0] sm:$0x1]  ;;  %5612 = vst [vmem:[#allocation2 + $0xd8] sm:$0xf] %v5611_v54  ;;  %5742 = vst [vmem:[#allocation2 + $0xb8] sm:$0xf] %v5741_v19  ;;  %v5375_v34 = vsel %vm12922_vm14, %v5367_v1, %v5374_v21  ;;  %v5615_v51 = vsel %vm12866_vm6, %v5376_v4, %v5614_v18  ;;  %6626 = vmatmul.mubr.bf16.gmra.mrb[172].mxu0 %v12377_v12  ;;  %11213 = vmatprep.subr.bf16.mxu0 %v12446_v62 }
 0x2b1   : > { %5847 = vst [vmem:[#allocation2 + $0x98] sm:$0xf] %v5846_v22  ;;  %v14828_v6 = vpop.f32.mrb[90].mxu1  ;;  %v5165_v42 = vmax.f32 %v11840_v13, 0.0  ;;  %v14831_v57 = vld [vmem:[#allocation9 + $0x160] sm:$0xff]   ;;  %v5381_v36 = vshll.u32 %v14812_v56, 16  ;;  %v5745_v13 = vsel %vm12866_vm6, %v5376_v4, %v5744_v35  ;;  %v5850_v56 = vsel %vm12866_vm6, %v5376_v4, %v5849_v3  ;;  %11672 = vmatpush3.bf16.msra.mxu1 %v14808_v15 }
 0x2b2   : > { %v14833_v32 = vld [vmem:[#allocation2] sm:$0xff]  ;;  %v5617_v52 = vld [vmem:[#allocation2 + $0xfc] sm:$0xf]  ;;  %v14838_v5 = vpop.f32.mrb[91].mxu1  ;;  %v12448_v30 = vld [vmem:[#allocation9 + $0xf0] sm:$0xff]   ;;  %v14847_v1 = vrot.slane %v5378_v63, 7  ;;  %v11825_v14 = vadd.f32 %v11824_v58, %v14714_v55  ;;  %v11834_v61 = vadd.f32 %v14594_v44, %v10992_v20  ;;  %11673 = vmatprep.subr.bf16.mxu1 %v14831_v57 }
 0x2b3   : > { %5613 = vst [vmem:[#allocation2 + $0xe4] sm:$0xf] %v5375_v34  ;;  %5743 = vst [vmem:[#allocation2 + $0xc4] sm:$0xf] %v5375_v34  ;;  %v5747_v54 = vld [vmem:[#allocation2 + $0xdc] sm:$0xf]  ;;  %v10637_v18 = vpack.c.bf16 %v5165_v42, %v5165_v42  ;;  %11214 = vmatpush3.bf16.msra.mxu0 %v12448_v30 }
 0x2b4   : > { %5848 = vst [vmem:[#allocation2 + $0xa4] sm:$0xf] %v5375_v34  ;;  %v5852_v19 = vld [vmem:[#allocation2 + $0xbc] sm:$0xf]  ;;  %v14849_v27 = vld [vmem:[#allocation2 + $0xc] sm:$0xff]  ;;  %v10993_v59 = vpop.f32.mrb[128].mxu0  ;;  %v5383_v62 = vor.u32 %v5381_v36, %v14847_v1  ;;  %v11835_v44 = vadd.f32 %v11834_v61, %v14724_v16 }
 0x2b5   : > { %5616 = vst [vmem:[#allocation2 + $0xf0] sm:$0x1] %v5615_v51  ;;  %5746 = vst [vmem:[#allocation2 + $0xd0] sm:$0x1] %v5745_v13  ;;  %v14854_v23 = vld [vmem:[#allocation9 + $0x168] sm:$0xff]   ;;  %v7052_v22 = vshrl.u32 %v14833_v32, 16  ;;  %11674 = vmatpush3.bf16.msra.mxu1 %v14831_v57 }
 0x2b6   : > { %5851 = vst [vmem:[#allocation2 + $0xb0] sm:$0x1] %v5850_v56  ;;  %v12449_v21 = vld [vmem:[#allocation9 + $0x138] sm:$0xff]   ;;  %v12378_v35 = vld [vmem:[#allocation2 + $0x94] ss:$12 sps:$4 sm:$0xff]   ;;  %v7055_v3 = vshll.u32 %v14833_v32, 16  ;;  %v5618_v34 = vsel %vm12934_vm15, %v5383_v62, %v5617_v52  ;;  %v5748_v36 = vsel %vm12934_vm15, %v5383_v62, %v5747_v54  ;;  %v5853_v58 = vsel %vm12934_vm15, %v5383_v62, %v5852_v19  ;;  %11675 = vmatprep.subr.bf16.mxu1 %v14854_v23 }
 0x2b7   : > { %v12450_v12 = vld [vmem:[#allocation9 + $0xf8] sm:$0xff]   ;;  %v5386_v4 = vshrl.u32 %v10637_v18, 16  ;;  %v5166_v55 = vmax.f32 %v11825_v14, 0.0  ;;  %v12380_v63 = vld [vmem:[#allocation2 + $0x74] ss:$12 sps:$4 sm:$0xff]   ;;  %v10994_v42 = vpop.f32.mrb[129].mxu0  ;;  %6633 = vmatprep.mubr.bf16.mxu0 %v12378_v35  ;;  %11215 = vmatprep.subr.bf16.mxu0 %v12449_v21 }
 0x2b8   : > { %v5621_v20 = vld [vmem:[#allocation2 + $0x114] sm:$0x1]  ;;  %v14868_v13 = vpop.f32.mrb[92].mxu1  ;;  %v12381_v16 = vld [vmem:[#allocation2 + $0x90] ss:$12 sps:$4 sm:$0xff]   ;;  %v10995_v56 = vadd.f32 %v10994_v42, %v10993_v59  ;;  %v10996_v30 = vpop.f32.mrb[130].mxu0  ;;  %11638 = vmatmul.mubr.bf16.gmra.mrb[100].mxu1 %v12380_v63  ;;  %11216 = vmatpush3.bf16.msra.mxu0 %v12450_v12 }
 0x2b9   : > { %v5751_v32 = vld [vmem:[#allocation2 + $0xf4] sm:$0x1]  ;;  %5619 = vst [vmem:[#allocation2 + $0xfc] sm:$0xf] %v5618_v34  ;;  %5749 = vst [vmem:[#allocation2 + $0xdc] sm:$0xf] %v5748_v36  ;;  %v10638_v61 = vpack.c.bf16 %v5166_v55, %v5166_v55  ;;  %6634 = vmatmul.mubr.bf16.gmra.mrb[176].mxu0 %v12381_v16  ;;  %11676 = vmatpush3.bf16.msra.mxu1 %v14854_v23 }
 0x2ba   : > { %v5856_v51 = vld [vmem:[#allocation2 + $0xd4] sm:$0x1]  ;;  %5854 = vst [vmem:[#allocation2 + $0xbc] sm:$0xf] %v5853_v58  ;;  %v5388_v14 = vrot.slane %v5386_v4, 7  ;;  %v5389_v52 = vshll.u32 %v10637_v18, 16  ;;  %v11849_v48 = vadd.f32 %v14609_v39, %v10995_v56 }
 0x2bb   : > { %v14870_v15 = vpop.f32.mrb[93].mxu1  ;;  %v5167_v54 = vmax.f32 %v11835_v44, 0.0  ;;  %v10997_v19 = vpop.f32.mrb[131].mxu0  ;;  %v14876_v59 = vrot.slane %v7052_v22, 4  ;;  %v14878_v42 = vrot.slane %v7055_v3, 5  ;;  %v5384_v18 = vrot.slane %v14847_v1, 4 }
 0x2bc   : > { %v14872_v62 = vpop.f32.mrb[94].mxu1  ;;  %v10998_v35 = vadd.f32 %v10997_v19, %v10996_v30  ;;  %v5391_v4 = vor.u32 %v5389_v52, %v5388_v14  ;;  %v5393_v55 = vrot.slane %v5388_v14, 4  ;;  %v5395_v34 = vshrl.u32 %v10638_v61, 16  ;;  %v12437_v21 = vld [vmem:[#allocation9 + $0x170] sm:$0xff]   ;;  %v12382_v22 = vld [vmem:[#allocation2 + $0xb8] ss:$12 sps:$4 sm:$0xff]  }
 0x2bd   : > { %v14881_v44 = vpop.f32.mrb[95].mxu1  ;;  %v10639_v63 = vpack.c.bf16 %v5167_v54, %v5167_v54  ;;  %v11850_v39 = vadd.f32 %v11849_v48, %v14741_v37  ;;  %v12384_v3 = vld [vmem:[#allocation2 + $0x98] ss:$12 sps:$4 sm:$0xff]   ;;  %v5624_v56 = vld [vmem:[#allocation2 + $0x120] sm:$0xf]  ;;  %v10999_v48 = vpop.f32.mrb[132].mxu0  ;;  %6641 = vmatprep.mubr.bf16.mxu0 %v12382_v22  ;;  %11677 = vmatprep.subr.bf16.mxu1 %v12437_v21 }
 0x2be   : > { %v11859_v57 = vadd.f32 %v14615_v45, %v10998_v35  ;;  %v5392_v1 = vsel %vm12922_vm14, %v5384_v18, %v5391_v4  ;;  %v5622_v36 = vsel %vm12866_vm6, %v5393_v55, %v5621_v20  ;;  %v5752_v58 = vsel %vm12866_vm6, %v5393_v55, %v5751_v32  ;;  %v5754_v16 = vld [vmem:[#allocation2 + $0x100] sm:$0xf]  ;;  %11641 = vmatprep.mubr.bf16.mxu1 %v12384_v3  ;;  %v11000_v32 = vpop.f32.mrb[133].mxu0  ;;  %v12447_v35 = vld [vmem:[#allocation9 + $0x178] sm:$0xff]  }
 0x2bf   : > { %v5857_v12 = vsel %vm12866_vm6, %v5393_v55, %v5856_v51  ;;  %v5859_v30 = vld [vmem:[#allocation2 + $0xe0] sm:$0xf]  ;;  %5620 = vst [vmem:[#allocation2 + $0x108] sm:$0xf] %v5392_v1  ;;  %5623 = vst [vmem:[#allocation2 + $0x114] sm:$0x1] %v5622_v36  ;;  %v11001_v54 = vadd.f32 %v11000_v32, %v10999_v48  ;;  %11678 = vmatpush3.bf16.msra.mxu1 %v12437_v21 }
 0x2c0   : > { %5750 = vst [vmem:[#allocation2 + $0xe8] sm:$0xf] %v5392_v1  ;;  %5753 = vst [vmem:[#allocation2 + $0xf4] sm:$0x1] %v5752_v58  ;;  %v5397_v45 = vrot.slane %v5395_v34, 7  ;;  %v5398_v37 = vshll.u32 %v10638_v61, 16  ;;  %v11860_v52 = vadd.f32 %v11859_v57, %v14761_v46  ;;  %11679 = vmatprep.subr.bf16.mxu1 %v12447_v35 }
 0x2c1   : > { %5855 = vst [vmem:[#allocation2 + $0xc8] sm:$0xf] %v5392_v1  ;;  %5858 = vst [vmem:[#allocation2 + $0xd4] sm:$0x1] %v5857_v12  ;;  %v5403_v14 = vshrl.u32 %v10639_v63, 16  ;;  %v5168_v20 = vmax.f32 %v11850_v39, 0.0  ;;  %v11844_v57 = vadd.f32 %v14605_v8, %v11001_v54 }
 0x2c2   : > { %v12385_v51 = vld [vmem:[#allocation2 + $0xb4] ss:$12 sps:$4 sm:$0xff]   ;;  %v11002_v19 = vpop.f32.mrb[134].mxu0  ;;  %v16144_v18 = vshll.u32 %v14849_v27, 16  ;;  %v7079_v55 = vshrl.u32 %v14849_v27, 16  ;;  %v5400_v61 = vor.u32 %v5398_v37, %v5397_v45  ;;  %v5406_v39 = vshll.u32 %v10639_v63, 16 }
 0x2c3   : > { %v5405_v34 = vrot.slane %v5403_v14, 7  ;;  %v10640_v22 = vpack.c.bf16 %v5168_v20, %v5168_v20  ;;  %v11003_v3 = vpop.f32.mrb[135].mxu0  ;;  %v5401_v1 = vrot.slane %v5397_v45, 4  ;;  %v5169_v46 = vmax.f32 %v11860_v52, 0.0  ;;  %v5628_v48 = vld [vmem:[#allocation2 + $0x138] sm:$0x1]  ;;  %6642 = vmatmul.mubr.bf16.gmra.mrb[180].mxu0 %v12385_v51  ;;  %11680 = vmatpush3.bf16.msra.mxu1 %v12447_v35 }
 0x2c4   : > { %v14898_v4 = vrot.slane %v16144_v18, 5  ;;  %v11004_v36 = vadd.f32 %v11003_v3, %v11002_v19  ;;  %v5625_v23 = vsel %vm12934_vm15, %v5400_v61, %v5624_v56  ;;  %v5755_v58 = vsel %vm12934_vm15, %v5400_v61, %v5754_v16  ;;  %v5758_v63 = vld [vmem:[#allocation2 + $0x118] sm:$0x1]  ;;  %v5631_v32 = vld [vmem:[#allocation2 + $0x144] sm:$0xf] }
 0x2c5   : > { %v5860_v27 = vsel %vm12934_vm15, %v5400_v61, %v5859_v30  ;;  %v5408_v12 = vor.u32 %v5406_v39, %v5405_v34  ;;  %v5863_v37 = vld [vmem:[#allocation2 + $0xf8] sm:$0x1]  ;;  %5626 = vst [vmem:[#allocation2 + $0x120] sm:$0xf] %v5625_v23  ;;  %5756 = vst [vmem:[#allocation2 + $0x100] sm:$0xf] %v5755_v58  ;;  %v10641_v8 = vpack.c.bf16 %v5169_v46, %v5169_v46 }
 0x2c6   : > { %5861 = vst [vmem:[#allocation2 + $0xe0] sm:$0xf] %v5860_v27  ;;  %v5410_v45 = vrot.slane %v5405_v34, 4  ;;  %v5412_v14 = vshrl.u32 %v10640_v22, 16  ;;  %v14908_v20 = vrot.slane %v7079_v55, 4  ;;  %v5415_v16 = vshll.u32 %v10640_v22, 16 }
 0x2c7   : > { %v5409_v56 = vsel %vm12922_vm14, %v5401_v1, %v5408_v12  ;;  %v5761_v52 = vld [vmem:[#allocation2 + $0x124] sm:$0xf]  ;;  %v11845_v54 = vadd.f32 %v11844_v57, %v14739_v2  ;;  %v11854_v19 = vadd.f32 %v14612_v33, %v11004_v36  ;;  %v14914_v18 = vld [vmem:[#allocation2 + $0x18] sm:$0x11]  ;;  %v5420_v33 = vshrl.u32 %v10641_v8, 16  ;;  %v11005_v1 = vpop.f32.mrb[136].mxu0 }
 0x2c8   : > { %v5866_v30 = vld [vmem:[#allocation2 + $0x104] sm:$0xf]  ;;  %5627 = vst [vmem:[#allocation2 + $0x12c] sm:$0xf] %v5409_v56  ;;  %v5629_v21 = vsel %vm12866_vm6, %v5410_v45, %v5628_v48  ;;  %5757 = vst [vmem:[#allocation2 + $0x10c] sm:$0xf] %v5409_v56  ;;  %v5759_v55 = vsel %vm12866_vm6, %v5410_v45, %v5758_v63  ;;  %v5864_v51 = vsel %vm12866_vm6, %v5410_v45, %v5863_v37 }
 0x2c9   : > { %v12451_v61 = vld [vmem:[#allocation9 + $0x1c0] sm:$0xff]   ;;  %5862 = vst [vmem:[#allocation2 + $0xec] sm:$0xf] %v5409_v56  ;;  %v5414_v34 = vrot.slane %v5412_v14, 7  ;;  %v12386_v2 = vld [vmem:[#allocation2 + $0xdc] ss:$12 sps:$4 sm:$0xff]   ;;  %v11855_v22 = vadd.f32 %v11854_v19, %v14753_v40  ;;  %v7058_v58 = vor.u32 %v14878_v42, %v14876_v59  ;;  %v7082_v27 = vor.u32 %v14908_v20, %v14898_v4 }
 0x2ca   : > { %5630 = vst [vmem:[#allocation2 + $0x138] sm:$0x1] %v5629_v21  ;;  %5760 = vst [vmem:[#allocation2 + $0x118] sm:$0x1] %v5759_v55  ;;  %v5170_v39 = vmax.f32 %v11845_v54, 0.0  ;;  %v5423_v57 = vshll.u32 %v10641_v8, 16  ;;  %6649 = vmatprep.mubr.bf16.mxu0 %v12386_v2  ;;  %11337 = vmatprep.subr.bf16.mxu1 %v12451_v61 }
 0x2cb   : > { %5865 = vst [vmem:[#allocation2 + $0xf8] sm:$0x1] %v5864_v51  ;;  %v12388_v3 = vld [vmem:[#allocation2 + $0xbc] ss:$12 sps:$4 sm:$0xff]   ;;  %v5417_v46 = vor.u32 %v5415_v16, %v5414_v34  ;;  %v11006_v23 = vpop.f32.mrb[137].mxu0  ;;  %v5422_v12 = vrot.slane %v5420_v33, 7 }
 0x2cc   : > { %v5635_v36 = vld [vmem:[#allocation2 + $0x15c] sm:$0x1]  ;;  %v10642_v48 = vpack.c.bf16 %v5170_v39, %v5170_v39  ;;  %v5171_v63 = vmax.f32 %v11855_v22, 0.0  ;;  %11642 = vmatmul.mubr.bf16.gmra.mrb[104].mxu1 %v12388_v3  ;;  %v12389_v37 = vld [vmem:[#allocation2 + $0xd8] ss:$12 sps:$4 sm:$0xff]   ;;  %v11007_v40 = vadd.f32 %v11006_v23, %v11005_v1  ;;  %v11008_v45 = vpop.f32.mrb[138].mxu0 }
 0x2cd   : > { %v5632_v14 = vsel %vm12934_vm15, %v5417_v46, %v5631_v32  ;;  %v5762_v8 = vsel %vm12934_vm15, %v5417_v46, %v5761_v52  ;;  %v5867_v59 = vsel %vm12934_vm15, %v5417_v46, %v5866_v30  ;;  %v5765_v42 = vld [vmem:[#allocation2 + $0x13c] sm:$0x1]  ;;  %v11009_v35 = vpop.f32.mrb[139].mxu0  ;;  %v7085_v56 = vshll.u32 %v14914_v18, 16  ;;  %v14935_v51 = vld [vmem:[#allocation2 + $0x8] sm:$0xf]  ;;  %6650 = vmatmul.mubr.bf16.gmra.mrb[184].mxu0 %v12389_v37 }
 0x2ce   : > { %v5870_v20 = vld [vmem:[#allocation2 + $0x11c] sm:$0x1]  ;;  %v5418_v16 = vrot.slane %v5414_v34, 4  ;;  %5633 = vst [vmem:[#allocation2 + $0x144] sm:$0xf] %v5632_v14  ;;  %v5425_v54 = vor.u32 %v5423_v57, %v5422_v12  ;;  %v5427_v19 = vrot.slane %v5422_v12, 4  ;;  %v10643_v21 = vpack.c.bf16 %v5171_v63, %v5171_v63 }
 0x2cf   : > { %5763 = vst [vmem:[#allocation2 + $0x124] sm:$0xf] %v5762_v8  ;;  %5868 = vst [vmem:[#allocation2 + $0x104] sm:$0xf] %v5867_v59  ;;  %v5429_v61 = vshrl.u32 %v10642_v48, 16  ;;  %v11869_v32 = vadd.f32 %v14624_v29, %v11007_v40  ;;  %v11010_v55 = vadd.f32 %v11009_v35, %v11008_v45  ;;  %v7059_v52 = vrot.slane %v7058_v58, 4 }
 0x2d0   : > { %v5426_v30 = vsel %vm12922_vm14, %v5418_v16, %v5425_v54  ;;  %v5636_v18 = vsel %vm12866_vm6, %v5427_v19, %v5635_v36  ;;  %v5766_v34 = vsel %vm12866_vm6, %v5427_v19, %v5765_v42  ;;  %v5871_v2 = vsel %vm12866_vm6, %v5427_v19, %v5870_v20  ;;  %v5638_v33 = vld [vmem:[#allocation2 + $0x168] sm:$0xf]  ;;  %v12390_v29 = vld [vmem:[#allocation2 + $0x100] ss:$12 sps:$4 sm:$0xff]   ;;  %v11011_v36 = vpop.f32.mrb[140].mxu0 }
 0x2d1   : > { %v5768_v39 = vld [vmem:[#allocation2 + $0x148] sm:$0xf]  ;;  %5634 = vst [vmem:[#allocation2 + $0x150] sm:$0xf] %v5426_v30  ;;  %5637 = vst [vmem:[#allocation2 + $0x15c] sm:$0x1] %v5636_v18  ;;  %v11870_v46 = vadd.f32 %v11869_v32, %v14772_v28  ;;  %v11879_v58 = vadd.f32 %v14631_v49, %v11010_v55  ;;  %6657 = vmatprep.mubr.bf16.mxu0 %v12390_v29 }
 0x2d2   : > { %5764 = vst [vmem:[#allocation2 + $0x130] sm:$0xf] %v5426_v30  ;;  %5767 = vst [vmem:[#allocation2 + $0x13c] sm:$0x1] %v5766_v34  ;;  %v5431_v22 = vrot.slane %v5429_v61, 7  ;;  %v5432_v3 = vshll.u32 %v10642_v48, 16 }
 0x2d3   : > { %5869 = vst [vmem:[#allocation2 + $0x110] sm:$0xf] %v5426_v30  ;;  %5872 = vst [vmem:[#allocation2 + $0x11c] sm:$0x1] %v5871_v2  ;;  %v5437_v1 = vshrl.u32 %v10643_v21, 16  ;;  %v11012_v12 = vpop.f32.mrb[141].mxu0  ;;  %v11880_v35 = vadd.f32 %v11879_v58, %v14790_v26 }
 0x2d4   : > { %v12392_v57 = vld [vmem:[#allocation2 + $0xe0] ss:$12 sps:$4 sm:$0xff]   ;;  %v5873_v23 = vld [vmem:[#allocation2 + $0x128] sm:$0xf]  ;;  %v7083_v63 = vrot.slane %v7082_v27, 4  ;;  %v7087_v37 = vrot.slane %v7085_v56, 5  ;;  %v5434_v45 = vor.u32 %v5432_v3, %v5431_v22  ;;  %v11013_v54 = vadd.f32 %v11012_v12, %v11011_v36 }
 0x2d5   : > { %v7066_v40 = vshrl.u32 %v14935_v51, 16  ;;  %v5439_v14 = vrot.slane %v5437_v1, 7  ;;  %v5440_v8 = vshll.u32 %v10643_v21, 16  ;;  %v5642_v59 = vld [vmem:[#allocation2 + $0x180] sm:$0x1]  ;;  %v5172_v48 = vmax.f32 %v11870_v46, 0.0  ;;  %11645 = vmatprep.mubr.bf16.mxu1 %v12392_v57 }
 0x2d6   : > { %v5772_v42 = vld [vmem:[#allocation2 + $0x160] sm:$0x1]  ;;  %v11014_v20 = vpop.f32.mrb[142].mxu0  ;;  %v5435_v28 = vrot.slane %v5431_v22, 4  ;;  %v12393_v16 = vld [vmem:[#allocation2 + $0xfc] ss:$12 sps:$4 sm:$0xff]   ;;  %v5639_v27 = vsel %vm12934_vm15, %v5434_v45, %v5638_v33  ;;  %v5769_v56 = vsel %vm12934_vm15, %v5434_v45, %v5768_v39  ;;  %v5874_v61 = vsel %vm12934_vm15, %v5434_v45, %v5873_v23 }
 0x2d7   : > { %v11015_v49 = vpop.f32.mrb[143].mxu0  ;;  %v7069_v19 = vshll.u32 %v14935_v51, 16  ;;  %v5442_v21 = vor.u32 %v5440_v8, %v5439_v14  ;;  %v5877_v32 = vld [vmem:[#allocation2 + $0x140] sm:$0x1]  ;;  %5640 = vst [vmem:[#allocation2 + $0x168] sm:$0xf] %v5639_v27  ;;  %v10644_v55 = vpack.c.bf16 %v5172_v48, %v5172_v48  ;;  %v11864_v18 = vadd.f32 %v14620_v60, %v11013_v54  ;;  %6658 = vmatmul.mubr.bf16.gmra.mrb[188].mxu0 %v12393_v16 }
 0x2d8   : > { %5770 = vst [vmem:[#allocation2 + $0x148] sm:$0xf] %v5769_v56  ;;  %5875 = vst [vmem:[#allocation2 + $0x128] sm:$0xf] %v5874_v61  ;;  %v5444_v26 = vrot.slane %v5439_v14, 4  ;;  %v5173_v30 = vmax.f32 %v11880_v35, 0.0  ;;  %v11016_v34 = vadd.f32 %v11015_v49, %v11014_v20  ;;  %v14962_v33 = vsel %vm13015_vm2, %v7059_v52, %v14898_v4 }
 0x2d9   : > { %v5443_v51 = vsel %vm12922_vm14, %v5435_v28, %v5442_v21  ;;  %v14966_v39 = vsel %vm13015_vm2, %v7083_v63, %v7087_v37  ;;  %v14968_v29 = vld [vmem:[#allocation2 + $0x14] sm:$0xf]  ;;  %v5446_v4 = vshrl.u32 %v10644_v55, 16  ;;  %v12394_v52 = vld [vmem:[#allocation2 + $0x124] ss:$12 sps:$4 sm:$0xff]   ;;  %v11865_v57 = vadd.f32 %v11864_v18, %v14768_v31  ;;  %v11017_v58 = vpop.f32.mrb[144].mxu0 }
 0x2da   : > { %5641 = vst [vmem:[#allocation2 + $0x174] sm:$0xf] %v5443_v51  ;;  %v5643_v22 = vsel %vm12866_vm6, %v5444_v26, %v5642_v59  ;;  %5771 = vst [vmem:[#allocation2 + $0x154] sm:$0xf] %v5443_v51  ;;  %v5773_v60 = vsel %vm12866_vm6, %v5444_v26, %v5772_v42  ;;  %v5878_v3 = vsel %vm12866_vm6, %v5444_v26, %v5877_v32  ;;  %v5645_v1 = vld [vmem:[#allocation2 + $0x18c] sm:$0xf]  ;;  %6665 = vmatprep.mubr.bf16.mxu0 %v12394_v52 }
 0x2db   : > { %5876 = vst [vmem:[#allocation2 + $0x134] sm:$0xf] %v5443_v51  ;;  %5644 = vst [vmem:[#allocation2 + $0x180] sm:$0x1] %v5643_v22  ;;  %v10645_v46 = vpack.c.bf16 %v5173_v30, %v5173_v30  ;;  %v11874_v36 = vadd.f32 %v14628_v41, %v11016_v34  ;;  %v12396_v23 = vld [vmem:[#allocation2 + $0x104] ss:$12 sps:$4 sm:$0xff]   ;;  %v10410_v8 = vcombine.low %v14962_v33, %v14966_v39 }
 0x2dc   : > { %5774 = vst [vmem:[#allocation2 + $0x160] sm:$0x1] %v5773_v60  ;;  %5879 = vst [vmem:[#allocation2 + $0x140] sm:$0x1] %v5878_v3  ;;  %v14978_v12 = vrot.slane %v7066_v40, 4  ;;  %v5448_v63 = vrot.slane %v5446_v4, 7  ;;  %11646 = vmatmul.mubr.bf16.gmra.mrb[108].mxu1 %v12396_v23 }
 0x2dd   : > { %v5449_v37 = vshll.u32 %v10644_v55, 16  ;;  %v5775_v45 = vld [vmem:[#allocation2 + $0x16c] sm:$0xf]  ;;  %v11018_v14 = vpop.f32.mrb[145].mxu0  ;;  %v14982_v59 = vrot.slane %v7069_v19, 5  ;;  %v5454_v48 = vshrl.u32 %v10645_v46, 16  ;;  %v11875_v31 = vadd.f32 %v11874_v36, %v14779_v11 }
 0x2de   : > { %v5880_v42 = vld [vmem:[#allocation2 + $0x14c] sm:$0xf]  ;;  %v5174_v20 = vmax.f32 %v11865_v57, 0.0  ;;  %v11020_v41 = vpop.f32.mrb[146].mxu0  ;;  %v7075_v40 = vshll.u32 %v14968_v29, 16  ;;  %v5457_v35 = vshll.u32 %v10645_v46, 16  ;;  %v11019_v54 = vadd.f32 %v11018_v14, %v11017_v58 }
 0x2df   : > { %v5451_v28 = vor.u32 %v5449_v37, %v5448_v63  ;;  %v12397_v16 = vld [vmem:[#allocation2 + $0x120] ss:$12 sps:$4 sm:$0xff]   ;;  %v11021_v49 = vpop.f32.mrb[147].mxu0  ;;  %v7089_v27 = vshrl.u32 %v14968_v29, 16  ;;  %v5456_v56 = vrot.slane %v5454_v48, 7  ;;  %v5175_v19 = vmax.f32 %v11875_v31, 0.0 }
 0x2e0   : > { %v10646_v61 = vpack.c.bf16 %v5174_v20, %v5174_v20  ;;  %v11022_v21 = vadd.f32 %v11021_v49, %v11020_v41  ;;  %v5649_v55 = vld [vmem:[#allocation2 + $0x1a4] sm:$0x1]  ;;  %v11889_v51 = vadd.f32 %v14643_v50, %v11019_v54  ;;  %v5452_v34 = vrot.slane %v5448_v63, 4  ;;  %6666 = vmatmul.mubr.bf16.gmra.mrb[192].mxu0 %v12397_v16  ;;  %v5652_v63 = vld [vmem:[#allocation2 + $0x1b0] sm:$0xf] }
 0x2e1   : > { %v5646_v32 = vsel %vm12934_vm15, %v5451_v28, %v5645_v1  ;;  %v5776_v11 = vsel %vm12934_vm15, %v5451_v28, %v5775_v45  ;;  %v5881_v26 = vsel %vm12934_vm15, %v5451_v28, %v5880_v42  ;;  %v5779_v30 = vld [vmem:[#allocation2 + $0x184] sm:$0x1]  ;;  %v5459_v29 = vor.u32 %v5457_v35, %v5456_v56  ;;  %v12399_v3 = vld [vmem:[#allocation2 + $0x148] ss:$12 sps:$4 sm:$0xff]   ;;  %v5887_v37 = vld [vmem:[#allocation2 + $0x170] sm:$0xf] }
 0x2e2   : > { %v5884_v18 = vld [vmem:[#allocation2 + $0x164] sm:$0x1]  ;;  %5647 = vst [vmem:[#allocation2 + $0x18c] sm:$0xf] %v5646_v32  ;;  %5777 = vst [vmem:[#allocation2 + $0x16c] sm:$0xf] %v5776_v11  ;;  %v10647_v4 = vpack.c.bf16 %v5175_v19, %v5175_v19  ;;  %v11890_v52 = vadd.f32 %v11889_v51, %v14824_v10  ;;  %v11899_v1 = vadd.f32 %v14650_v17, %v11022_v21  ;;  %6673 = vmatprep.mubr.bf16.mxu0 %v12399_v3 }
 0x2e3   : > { %5882 = vst [vmem:[#allocation2 + $0x14c] sm:$0xf] %v5881_v26  ;;  %v5461_v22 = vrot.slane %v5456_v56, 4  ;;  %v5463_v60 = vshrl.u32 %v10646_v61, 16  ;;  %v12401_v46 = vld [vmem:[#allocation2 + $0x128] ss:$12 sps:$4 sm:$0xff]   ;;  %v7072_v57 = vor.u32 %v14982_v59, %v14978_v12  ;;  %v5460_v50 = vsel %vm12922_vm14, %v5452_v34, %v5459_v29 }
 0x2e4   : > { %v5782_v10 = vld [vmem:[#allocation2 + $0x190] sm:$0xf]  ;;  %v11023_v17 = vpop.f32.mrb[148].mxu0  ;;  %5648 = vst [vmem:[#allocation2 + $0x198] sm:$0xf] %v5460_v50  ;;  %v5466_v14 = vshll.u32 %v10646_v61, 16  ;;  %11649 = vmatprep.mubr.bf16.mxu1 %v12401_v46  ;;  %v11900_v31 = vadd.f32 %v11899_v1, %v14838_v5 }
 0x2e5   : > { %v5650_v36 = vsel %vm12866_vm6, %v5461_v22, %v5649_v55  ;;  %v5780_v23 = vsel %vm12866_vm6, %v5461_v22, %v5779_v30  ;;  %v5885_v58 = vsel %vm12866_vm6, %v5461_v22, %v5884_v18  ;;  %5778 = vst [vmem:[#allocation2 + $0x178] sm:$0xf] %v5460_v50  ;;  %5883 = vst [vmem:[#allocation2 + $0x158] sm:$0xf] %v5460_v50  ;;  %v5465_v45 = vrot.slane %v5463_v60, 7  ;;  %v11024_v20 = vpop.f32.mrb[149].mxu0 }
 0x2e6   : > { %5651 = vst [vmem:[#allocation2 + $0x1a4] sm:$0x1] %v5650_v36  ;;  %5781 = vst [vmem:[#allocation2 + $0x184] sm:$0x1] %v5780_v23  ;;  %v5471_v42 = vshrl.u32 %v10647_v4, 16  ;;  %v5176_v48 = vmax.f32 %v11890_v52, 0.0  ;;  %v11025_v41 = vadd.f32 %v11024_v20, %v11023_v17 }
 0x2e7   : > { %5886 = vst [vmem:[#allocation2 + $0x164] sm:$0x1] %v5885_v58  ;;  %v11026_v28 = vpop.f32.mrb[150].mxu0  ;;  %v15007_v35 = vrot.slane %v7075_v40, 5  ;;  %v15009_v16 = vrot.slane %v7089_v27, 4  ;;  %v5468_v49 = vor.u32 %v5466_v14, %v5465_v45  ;;  %v5474_v19 = vshll.u32 %v10647_v4, 16 }
 0x2e8   : > { %v15011_v54 = vld [vmem:[#allocation2 + $0x2c] sm:$0xf]  ;;  %v5473_v56 = vrot.slane %v5471_v42, 7  ;;  %v10648_v21 = vpack.c.bf16 %v5176_v48, %v5176_v48  ;;  %v12402_v32 = vld [vmem:[#allocation2 + $0x144] ss:$12 sps:$4 sm:$0xff]   ;;  %v11027_v61 = vpop.f32.mrb[151].mxu0  ;;  %v11884_v5 = vadd.f32 %v14638_v43, %v11025_v41 }
 0x2e9   : > { %v5469_v11 = vrot.slane %v5465_v45, 4  ;;  %v5656_v26 = vld [vmem:[#allocation2 + $0x1c8] sm:$0x1]  ;;  %v5177_v30 = vmax.f32 %v11900_v31, 0.0  ;;  %v11028_v18 = vadd.f32 %v11027_v61, %v11026_v28  ;;  %v5653_v40 = vsel %vm12934_vm15, %v5468_v49, %v5652_v63  ;;  %v5659_v1 = vld [vmem:[#allocation2 + $0x1d4] sm:$0xf]  ;;  %6674 = vmatmul.mubr.bf16.gmra.mrb[196].mxu0 %v12402_v32 }
 0x2ea   : > { %v5786_v55 = vld [vmem:[#allocation2 + $0x1a8] sm:$0x1]  ;;  %v5783_v27 = vsel %vm12934_vm15, %v5468_v49, %v5782_v10  ;;  %v5888_v51 = vsel %vm12934_vm15, %v5468_v49, %v5887_v37  ;;  %v5476_v34 = vor.u32 %v5474_v19, %v5473_v56  ;;  %5654 = vst [vmem:[#allocation2 + $0x1b0] sm:$0xf] %v5653_v40  ;;  %v5478_v22 = vrot.slane %v5473_v56, 4  ;;  %v11029_v42 = vpop.f32.mrb[152].mxu0 }
 0x2eb   : > { %v5891_v29 = vld [vmem:[#allocation2 + $0x188] sm:$0x1]  ;;  %5784 = vst [vmem:[#allocation2 + $0x190] sm:$0xf] %v5783_v27  ;;  %5889 = vst [vmem:[#allocation2 + $0x170] sm:$0xf] %v5888_v51  ;;  %v10649_v3 = vpack.c.bf16 %v5177_v30, %v5177_v30  ;;  %v11885_v36 = vadd.f32 %v11884_v5, %v14815_v0  ;;  %v11894_v23 = vadd.f32 %v14647_v38, %v11028_v18 }
 0x2ec   : > { %v5480_v60 = vshrl.u32 %v10648_v21, 16  ;;  %v7114_v43 = vshrl.u32 %v15011_v54, 16  ;;  %v5477_v4 = vsel %vm12922_vm14, %v5469_v11, %v5476_v34  ;;  %v5483_v52 = vshll.u32 %v10648_v21, 16  ;;  %v5789_v46 = vld [vmem:[#allocation2 + $0x1b4] sm:$0xf]  ;;  %v11030_v28 = vpop.f32.mrb[153].mxu0 }
 0x2ed   : > { %v5894_v50 = vld [vmem:[#allocation2 + $0x194] sm:$0xf]  ;;  %5655 = vst [vmem:[#allocation2 + $0x1bc] sm:$0xf] %v5477_v4  ;;  %v5657_v58 = vsel %vm12866_vm6, %v5478_v22, %v5656_v26  ;;  %5785 = vst [vmem:[#allocation2 + $0x19c] sm:$0xf] %v5477_v4  ;;  %v5787_v63 = vsel %vm12866_vm6, %v5478_v22, %v5786_v55  ;;  %v5892_v10 = vsel %vm12866_vm6, %v5478_v22, %v5891_v29 }
 0x2ee   : > { %5890 = vst [vmem:[#allocation2 + $0x17c] sm:$0xf] %v5477_v4  ;;  %v5482_v37 = vrot.slane %v5480_v60, 7  ;;  %v12404_v17 = vld [vmem:[#allocation2 + $0x16c] ss:$12 sps:$4 sm:$0xff]   ;;  %v5488_v0 = vshrl.u32 %v10649_v3, 16  ;;  %v11895_v38 = vadd.f32 %v11894_v23, %v14828_v6  ;;  %v7092_v49 = vor.u32 %v15009_v16, %v15007_v35 }
 0x2ef   : > { %5658 = vst [vmem:[#allocation2 + $0x1c8] sm:$0x1] %v5657_v58  ;;  %5788 = vst [vmem:[#allocation2 + $0x1a8] sm:$0x1] %v5787_v63  ;;  %v5178_v45 = vmax.f32 %v11885_v36, 0.0  ;;  %v15035_v48 = vrot.slane %v7072_v57, 4  ;;  %6681 = vmatprep.mubr.bf16.mxu0 %v12404_v17  ;;  %v11031_v61 = vadd.f32 %v11030_v28, %v11029_v42 }
 0x2f0   : > { %5893 = vst [vmem:[#allocation2 + $0x188] sm:$0x1] %v5892_v10  ;;  %v12406_v14 = vld [vmem:[#allocation2 + $0x14c] ss:$12 sps:$4 sm:$0xff]   ;;  %v5485_v20 = vor.u32 %v5483_v52, %v5482_v37  ;;  %v5491_v31 = vshll.u32 %v10649_v3, 16  ;;  %v7117_v56 = vshll.u32 %v15011_v54, 16 }
 0x2f1   : > { %v5663_v41 = vld [vmem:[#allocation2 + $0x1ec] sm:$0x1]  ;;  %v5490_v19 = vrot.slane %v5488_v0, 7  ;;  %v10650_v21 = vpack.c.bf16 %v5178_v45, %v5178_v45  ;;  %v5179_v6 = vmax.f32 %v11895_v38, 0.0  ;;  %11650 = vmatmul.mubr.bf16.gmra.mrb[112].mxu1 %v12406_v14  ;;  %v12407_v32 = vld [vmem:[#allocation2 + $0x168] ss:$12 sps:$4 sm:$0xff]   ;;  %v11909_v34 = vadd.f32 %v14659_v24, %v11031_v61 }
 0x2f2   : > { %v11032_v11 = vpop.f32.mrb[154].mxu0  ;;  %v5660_v12 = vsel %vm12934_vm15, %v5485_v20, %v5659_v1  ;;  %v5790_v59 = vsel %vm12934_vm15, %v5485_v20, %v5789_v46  ;;  %v5895_v57 = vsel %vm12934_vm15, %v5485_v20, %v5894_v50  ;;  %v5793_v26 = vld [vmem:[#allocation2 + $0x1cc] sm:$0x1]  ;;  %v15046_v54 = vrot.slane %v7114_v43, 4  ;;  %v15049_v22 = vld [vmem:[#allocation2 + $0x20] sm:$0x1]  ;;  %6682 = vmatmul.mubr.bf16.gmra.mrb[200].mxu0 %v12407_v32 }
 0x2f3   : > { %v5898_v55 = vld [vmem:[#allocation2 + $0x1ac] sm:$0x1]  ;;  %v11033_v30 = vpop.f32.mrb[155].mxu0  ;;  %v5486_v5 = vrot.slane %v5482_v37, 4  ;;  %5661 = vst [vmem:[#allocation2 + $0x1d4] sm:$0xf] %v5660_v12  ;;  %v5493_v18 = vor.u32 %v5491_v31, %v5490_v19  ;;  %v10651_v51 = vpack.c.bf16 %v5179_v6, %v5179_v6  ;;  %v11910_v63 = vadd.f32 %v11909_v34, %v14870_v15 }
 0x2f4   : > { %5791 = vst [vmem:[#allocation2 + $0x1b4] sm:$0xf] %v5790_v59  ;;  %5896 = vst [vmem:[#allocation2 + $0x194] sm:$0xf] %v5895_v57  ;;  %v5495_v40 = vrot.slane %v5490_v19, 4  ;;  %v5497_v27 = vshrl.u32 %v10650_v21, 16  ;;  %v11034_v29 = vadd.f32 %v11033_v30, %v11032_v11 }
 0x2f5   : > { %v6964_v60 = vld [vmem:[#allocation2 + $0x38] sm:$0xf]  ;;  %v15051_v3 = vrot.slane %v7117_v56, 5  ;;  %v5494_v43 = vsel %vm12922_vm14, %v5486_v5, %v5493_v18  ;;  %v12409_v50 = vld [vmem:[#allocation2 + $0x190] ss:$12 sps:$4 sm:$0xff]   ;;  %v5500_v23 = vshll.u32 %v10650_v21, 16 }
 0x2f6   : > { %v5664_v4 = vsel %vm12866_vm6, %v5495_v40, %v5663_v41  ;;  %v5794_v52 = vsel %vm12866_vm6, %v5495_v40, %v5793_v26  ;;  %v5899_v1 = vsel %vm12866_vm6, %v5495_v40, %v5898_v55  ;;  %v5666_v46 = vld [vmem:[#allocation2 + $0x1f8] sm:$0xf]  ;;  %5662 = vst [vmem:[#allocation2 + $0x1e0] sm:$0xf] %v5494_v43  ;;  %5792 = vst [vmem:[#allocation2 + $0x1c0] sm:$0xf] %v5494_v43  ;;  %6689 = vmatprep.mubr.bf16.mxu0 %v12409_v50 }
 0x2f7   : > { %v5796_v24 = vld [vmem:[#allocation2 + $0x1d8] sm:$0xf]  ;;  %5665 = vst [vmem:[#allocation2 + $0x1ec] sm:$0x1] %v5664_v4  ;;  %5795 = vst [vmem:[#allocation2 + $0x1cc] sm:$0x1] %v5794_v52  ;;  %v11919_v45 = vadd.f32 %v14666_v9, %v11034_v29  ;;  %v7120_v9 = vor.u32 %v15051_v3, %v15046_v54 }
 0x2f8   : > { %5897 = vst [vmem:[#allocation2 + $0x1a0] sm:$0xf] %v5494_v43  ;;  %5900 = vst [vmem:[#allocation2 + $0x1ac] sm:$0x1] %v5899_v1  ;;  %v5499_v36 = vrot.slane %v5497_v27, 7  ;;  %v5505_v58 = vshrl.u32 %v10651_v51, 16 }
 0x2f9   : > { %v12411_v10 = vld [vmem:[#allocation2 + $0x170] ss:$12 sps:$4 sm:$0xff]   ;;  %v11035_v37 = vpop.f32.mrb[156].mxu0  ;;  %v5901_v17 = vld [vmem:[#allocation2 + $0x1b8] sm:$0xf]  ;;  %v5508_v0 = vshll.u32 %v10651_v51, 16  ;;  %v11920_v6 = vadd.f32 %v11919_v45, %v14881_v44 }
 0x2fa   : > { %v11036_v38 = vpop.f32.mrb[157].mxu0  ;;  %v7095_v14 = vshll.u32 %v15049_v22, 16  ;;  %v7123_v42 = vshll.u32 %v6964_v60, 16  ;;  %v5502_v20 = vor.u32 %v5500_v23, %v5499_v36  ;;  %v5507_v31 = vrot.slane %v5505_v58, 7  ;;  %v5670_v41 = vld [vmem:[#allocation2 + $0x210] sm:$0x1]  ;;  %11653 = vmatprep.mubr.bf16.mxu1 %v12411_v10 }
 0x2fb   : > { %v5180_v28 = vmax.f32 %v11910_v63, 0.0  ;;  %v11038_v56 = vpop.f32.mrb[158].mxu0  ;;  %v7137_v19 = vshrl.u32 %v6964_v60, 16  ;;  %v5503_v21 = vrot.slane %v5499_v36, 4  ;;  %v5800_v15 = vld [vmem:[#allocation2 + $0x1f0] sm:$0x1]  ;;  %v11037_v61 = vadd.f32 %v11036_v38, %v11035_v37 }
 0x2fc   : > { %v12412_v32 = vld [vmem:[#allocation2 + $0x18c] ss:$12 sps:$4 sm:$0xff]   ;;  %v11039_v11 = vpop.f32.mrb[159].mxu0  ;;  %v5667_v12 = vsel %vm12934_vm15, %v5502_v20, %v5666_v46  ;;  %v5797_v59 = vsel %vm12934_vm15, %v5502_v20, %v5796_v24  ;;  %v5902_v57 = vsel %vm12934_vm15, %v5502_v20, %v5901_v17  ;;  %v5510_v26 = vor.u32 %v5508_v0, %v5507_v31  ;;  %v5905_v55 = vld [vmem:[#allocation2 + $0x1d0] sm:$0x1]  ;;  %v15094_v36 = vld [vmem:[#allocation2 + $0x24] sm:$0xff] }
 0x2fd   : > { %5668 = vst [vmem:[#allocation2 + $0x1f8] sm:$0xf] %v5667_v12  ;;  %5798 = vst [vmem:[#allocation2 + $0x1d8] sm:$0xf] %v5797_v59  ;;  %v5512_v44 = vrot.slane %v5507_v31, 4  ;;  %v10652_v30 = vpack.c.bf16 %v5180_v28, %v5180_v28  ;;  %v5181_v5 = vmax.f32 %v11920_v6, 0.0  ;;  %v11904_v18 = vadd.f32 %v14655_v7, %v11037_v61  ;;  %6690 = vmatmul.mubr.bf16.gmra.mrb[204].mxu0 %v12412_v32 }
 0x2fe   : > { %5903 = vst [vmem:[#allocation2 + $0x1b8] sm:$0xf] %v5902_v57  ;;  %v5511_v54 = vsel %vm12922_vm14, %v5503_v21, %v5510_v26  ;;  %v11040_v40 = vadd.f32 %v11039_v11, %v11038_v56  ;;  %v15076_v27 = vrot.slane %v7123_v42, 5  ;;  %v15078_v51 = vrot.slane %v7137_v19, 4  ;;  %v12414_v60 = vld [vmem:[#allocation2 + $0x1b4] ss:$12 sps:$4 sm:$0xff]  }
 0x2ff   : > { %5669 = vst [vmem:[#allocation2 + $0x204] sm:$0xf] %v5511_v54  ;;  %v5671_v34 = vsel %vm12866_vm6, %v5512_v44, %v5670_v41  ;;  %5799 = vst [vmem:[#allocation2 + $0x1e4] sm:$0xf] %v5511_v54  ;;  %v5801_v29 = vsel %vm12866_vm6, %v5512_v44, %v5800_v15  ;;  %v5906_v7 = vsel %vm12866_vm6, %v5512_v44, %v5905_v55  ;;  %v5514_v22 = vshrl.u32 %v10652_v30, 16  ;;  %v16146_v52 = vld [vmem:[#allocation21_spill] sm:$0xff] }
 0x300   : > { %5904 = vst [vmem:[#allocation2 + $0x1c4] sm:$0xf] %v5511_v54  ;;  %5672 = vst [vmem:[#allocation2 + $0x210] sm:$0x1] %v5671_v34  ;;  %v5673_v3 = vld [vmem:[#allocation2 + $0x21c] sm:$0xf]  ;;  %v10653_v43 = vpack.c.bf16 %v5181_v5, %v5181_v5  ;;  %v11905_v4 = vadd.f32 %v11904_v18, %v14868_v13  ;;  %v11914_v1 = vadd.f32 %v16146_v52, %v11040_v40  ;;  %6697 = vmatprep.mubr.bf16.mxu0 %v12414_v60 }
 0x301   : > { %5802 = vst [vmem:[#allocation2 + $0x1f0] sm:$0x1] %v5801_v29  ;;  %5907 = vst [vmem:[#allocation2 + $0x1d0] sm:$0x1] %v5906_v7  ;;  %v12416_v46 = vld [vmem:[#allocation2 + $0x194] ss:$12 sps:$4 sm:$0xff]   ;;  %v7078_v24 = vsel %vm13015_vm2, %v15035_v48, %v15007_v35  ;;  %v7140_v28 = vor.u32 %v15078_v51, %v15076_v27 }
 0x302   : > { %v15092_v50 = vld [vmem:[#allocation2 + $0x44] sm:$0x1]  ;;  %v5516_v23 = vrot.slane %v5514_v22, 7  ;;  %v5517_v58 = vshll.u32 %v10652_v30, 16  ;;  %v5803_v63 = vld [vmem:[#allocation2 + $0x1fc] sm:$0xf]  ;;  %v11915_v45 = vadd.f32 %v11914_v1, %v14872_v62  ;;  %11654 = vmatmul.mubr.bf16.gmra.mrb[116].mxu1 %v12416_v46 }
 0x303   : > { %v15099_v13 = vrot.slane %v7092_v49, 4  ;;  %v15101_v10 = vrot.slane %v7095_v14, 5  ;;  %v5908_v37 = vld [vmem:[#allocation2 + $0x1dc] sm:$0xf]  ;;  %v5522_v17 = vshrl.u32 %v10653_v43, 16  ;;  %v5182_v0 = vmax.f32 %v11905_v4, 0.0 }
 0x304   : > { %v15104_v38 = vrot.slane %v7120_v9, 4  ;;  %v5519_v42 = vor.u32 %v5517_v58, %v5516_v23  ;;  %v5677_v20 = vld [vmem:[#allocation2 + $0x234] sm:$0x1]  ;;  %v12417_v41 = vld [vmem:[#allocation2 + $0x1b0] ss:$12 sps:$4 sm:$0xff]   ;;  %v7143_v16 = vshll.u32 %v15092_v50, 16 }
 0x305   : > { %v5807_v31 = vld [vmem:[#allocation2 + $0x214] sm:$0x1]  ;;  %v7100_v49 = vshrl.u32 %v15094_v36, 16  ;;  %v5524_v14 = vrot.slane %v5522_v17, 7  ;;  %v5525_v56 = vshll.u32 %v10653_v43, 16  ;;  %v10654_v19 = vpack.c.bf16 %v5182_v0, %v5182_v0  ;;  %6698 = vmatmul.mubr.bf16.gmra.mrb[208].mxu0 %v12417_v41 }
 0x306   : > { %v5183_v21 = vmax.f32 %v11915_v45, 0.0  ;;  %v5674_v62 = vsel %vm12934_vm15, %v5519_v42, %v5673_v3  ;;  %v5804_v15 = vsel %vm12934_vm15, %v5519_v42, %v5803_v63  ;;  %v5909_v6 = vsel %vm12934_vm15, %v5519_v42, %v5908_v37  ;;  %v5912_v32 = vld [vmem:[#allocation2 + $0x1f4] sm:$0x1]  ;;  %v15117_v9 = vld [vmem:[#allocation2 + $0x50] sm:$0xf] }
 0x307   : > { %v6963_v61 = vld [vmem:[#allocation2 + $0x30] sm:$0xff]  ;;  %v7103_v11 = vshll.u32 %v15094_v36, 16  ;;  %v5520_v12 = vrot.slane %v5516_v23, 4  ;;  %5675 = vst [vmem:[#allocation2 + $0x21c] sm:$0xf] %v5674_v62  ;;  %v5527_v59 = vor.u32 %v5525_v56, %v5524_v14  ;;  %v5529_v57 = vrot.slane %v5524_v14, 4 }
 0x308   : > { %5805 = vst [vmem:[#allocation2 + $0x1fc] sm:$0xf] %v5804_v15  ;;  %5910 = vst [vmem:[#allocation2 + $0x1dc] sm:$0xf] %v5909_v6  ;;  %v5686_v26 = vshrl.u32 %v10654_v19, 16  ;;  %v10655_v44 = vpack.c.bf16 %v5183_v21, %v5183_v21  ;;  %v7098_v5 = vsel %vm13015_vm2, %v15099_v13, %v15101_v10  ;;  %v15123_v18 = vrot.slane %v7140_v28, 4 }
 0x309   : > { %v12423_v55 = vld [vmem:[#allocation2 + $0x1d8] ss:$12 sps:$4 sm:$0xff]   ;;  %v15125_v54 = vrot.slane %v7100_v49, 4  ;;  %v5528_v40 = vsel %vm12922_vm14, %v5520_v12, %v5527_v59  ;;  %v5678_v51 = vsel %vm12866_vm6, %v5529_v57, %v5677_v20  ;;  %v5808_v34 = vsel %vm12866_vm6, %v5529_v57, %v5807_v31  ;;  %v5810_v7 = vld [vmem:[#allocation2 + $0x220] sm:$0xf] }
 0x30a   : > { %v12425_v30 = vld [vmem:[#allocation2 + $0x1b8] ss:$12 sps:$4 sm:$0xff]   ;;  %v5913_v29 = vsel %vm12866_vm6, %v5529_v57, %v5912_v32  ;;  %6705 = vmatprep.mubr.bf16.mxu0 %v12423_v55  ;;  %v6965_v22 = vld [vmem:[#allocation2 + $0x3c] sm:$0x11]  ;;  %5676 = vst [vmem:[#allocation2 + $0x228] sm:$0xf] %v5528_v40  ;;  %v15155_v53 = vcombine.low %v7078_v24, %v7098_v5 }
 0x30b   : > { %5679 = vst [vmem:[#allocation2 + $0x234] sm:$0x1] %v5678_v51  ;;  %5806 = vst [vmem:[#allocation2 + $0x208] sm:$0xf] %v5528_v40  ;;  %v5688_v60 = vrot.slane %v5686_v26, 7  ;;  %v5689_v3 = vshll.u32 %v10654_v19, 16  ;;  %11657 = vmatprep.mubr.bf16.mxu1 %v12425_v30 }
 0x30c   : > { %5809 = vst [vmem:[#allocation2 + $0x214] sm:$0x1] %v5808_v34  ;;  %5911 = vst [vmem:[#allocation2 + $0x1e8] sm:$0xf] %v5528_v40  ;;  %v5915_v43 = vld [vmem:[#allocation2 + $0x200] sm:$0xf] }
 0x30d   : > { %5914 = vst [vmem:[#allocation2 + $0x1f4] sm:$0x1] %v5913_v29  ;;  %v5694_v4 = vshrl.u32 %v10655_v44, 16  ;;  %v7105_v52 = vrot.slane %v7103_v11, 5  ;;  %v5814_v1 = vld [vmem:[#allocation2 + $0x238] sm:$0x1]  ;;  %v5691_v63 = vor.u32 %v5689_v3, %v5688_v60 }
 0x30e   : > { %v7145_v46 = vrot.slane %v7143_v16, 5  ;;  %v7109_v50 = vshll.u32 %v6963_v61, 16  ;;  %v7127_v36 = vshrl.u32 %v6963_v61, 16  ;;  %v6970_v23 = vld [vmem:[#allocation2 + $0x5c] sm:$0xf]  ;;  %v7162_v58 = vshrl.u32 %v15117_v9, 16 }
 0x30f   : > { %v5696_v13 = vrot.slane %v5694_v4, 7  ;;  %v5697_v10 = vshll.u32 %v10655_v44, 16  ;;  %v12426_v37 = vld [vmem:[#allocation2 + $0x1d4] ss:$12 sps:$4 sm:$0xff]   ;;  %v7133_v17 = vshll.u32 %v6965_v22, 16  ;;  %v5692_v0 = vrot.slane %v5688_v60, 4 }
 0x310   : > { %v5919_v45 = vld [vmem:[#allocation2 + $0x218] sm:$0x1]  ;;  %v7106_v42 = vor.u32 %v7105_v52, %v15125_v54  ;;  %v7111_v20 = vrot.slane %v7109_v50, 5  ;;  %v7129_v31 = vrot.slane %v7127_v36, 4  ;;  %v5811_v41 = vsel %vm12934_vm15, %v5691_v63, %v5810_v7  ;;  %v6972_v56 = vld [vmem:[#allocation2 + $0x68] sm:$0x1]  ;;  %6706 = vmatmul.mubr.bf16.gmra.mrb[212].mxu0 %v12426_v37 }
 0x311   : > { %v5916_v28 = vsel %vm12934_vm15, %v5691_v63, %v5915_v43  ;;  %v5699_v16 = vor.u32 %v5697_v10, %v5696_v13  ;;  %v5701_v49 = vrot.slane %v5696_v13, 4  ;;  %5812 = vst [vmem:[#allocation2 + $0x220] sm:$0xf] %v5811_v41  ;;  %v7164_v19 = vrot.slane %v7162_v58, 4  ;;  %v6974_v61 = vld [vmem:[#allocation2 + $0x74] sm:$0xf] }
 0x312   : > { %5917 = vst [vmem:[#allocation2 + $0x200] sm:$0xf] %v5916_v28  ;;  %v7130_v14 = vor.u32 %v7129_v31, %v7111_v20  ;;  %v7165_v21 = vshll.u32 %v15117_v9, 16  ;;  %v7171_v62 = vshll.u32 %v6970_v23, 16  ;;  %v7185_v32 = vshrl.u32 %v6970_v23, 16  ;;  %v6967_v7 = vld [vmem:[#allocation2 + $0x48] sm:$0xff] }
 0x313   : > { %v5700_v15 = vsel %vm12922_vm14, %v5692_v0, %v5699_v16  ;;  %v5815_v6 = vsel %vm12866_vm6, %v5701_v49, %v5814_v1  ;;  %v5920_v25 = vsel %vm12866_vm6, %v5701_v49, %v5919_v45  ;;  %v6976_v11 = vld [vmem:[#allocation2 + $0x80] sm:$0xf]  ;;  %v12432_v12 = vld [vmem:[#allocation2 + $0x1fc] ss:$12 sps:$4 sm:$0xff]   ;;  %v10411_v9 = vcombine.high %v14962_v33, %v14966_v39  ;;  %v12435_v24 = vld [vmem:[#allocation2 + $0x1f8] ss:$12 sps:$4 sm:$0xff]  }
 0x314   : > { %5813 = vst [vmem:[#allocation2 + $0x22c] sm:$0xf] %v5700_v15  ;;  %5816 = vst [vmem:[#allocation2 + $0x238] sm:$0x1] %v5815_v6  ;;  %v7146_v47 = vsel %vm13015_vm2, %v15123_v18, %v7145_v46  ;;  %v7131_v59 = vrot.slane %v7130_v14, 4  ;;  %v7107_v26 = vrot.slane %v7106_v42, 4  ;;  %6713 = vmatprep.mubr.bf16.mxu0 %v12432_v12  ;;  %v7126_v54 = vsel %vm13015_vm2, %v15104_v38, %v15076_v27 }
 0x315   : > { %5918 = vst [vmem:[#allocation2 + $0x20c] sm:$0xf] %v5700_v15  ;;  %5921 = vst [vmem:[#allocation2 + $0x218] sm:$0x1] %v5920_v25  ;;  %v12434_v57 = vld [vmem:[#allocation2 + $0x1dc] ss:$12 sps:$4 sm:$0xff]   ;;  %v15164_v5 = vcombine.low %v7126_v54, %v7146_v47 }
 0x316   : > { %v7135_v55 = vrot.slane %v7133_v17, 5  ;;  %v7167_v44 = vrot.slane %v7165_v21, 5  ;;  %v7173_v30 = vrot.slane %v7171_v62, 5  ;;  %v7187_v40 = vrot.slane %v7185_v32, 4  ;;  %11658 = vmatmul.mubr.bf16.gmra.mrb[120].mxu1 %v12434_v57  ;;  %v6978_v34 = vld [vmem:[#allocation2 + $0x8c] sm:$0x1] }
 0x317   : > { %v7191_v35 = vshll.u32 %v6972_v56, 16  ;;  %v7210_v48 = vshrl.u32 %v6974_v61, 16  ;;  %v7213_v29 = vshll.u32 %v6974_v61, 16  ;;  %v7219_v43 = vshll.u32 %v6976_v11, 16  ;;  %v12445_v27 = vld [vmem:[#allocation2 + $0x224] ss:$12 sps:$4 sm:$0xff]  }
 0x318   : > { %v15168_v18 = vsel %vm13015_vm2, %v7131_v59, %v7135_v55  ;;  %v7168_v51 = vor.u32 %v7167_v44, %v7164_v19  ;;  %v7188_v22 = vor.u32 %v7187_v40, %v7173_v30  ;;  %v15172_v38 = vsel %vm13015_vm2, %v7107_v26, %v7111_v20  ;;  %v6969_v46 = vld [vmem:[#allocation2 + $0x54] sm:$0xff]  ;;  %v6971_v50 = vld [vmem:[#allocation2 + $0x60] sm:$0x11]  ;;  %6714 = vmatmul.mubr.bf16.gmra.mrb[216].mxu0 %v12435_v24  ;;  %v6984_v6 = vld [vmem:[#allocation2 + $0xb0] sm:$0x1] }
 0x319   : > { %v7193_v60 = vrot.slane %v7191_v35, 5  ;;  %v7212_v3 = vrot.slane %v7210_v48, 4  ;;  %v7215_v52 = vrot.slane %v7213_v29, 5  ;;  %v7233_v1 = vshrl.u32 %v6976_v11, 16  ;;  %v6980_v13 = vld [vmem:[#allocation2 + $0x98] sm:$0xf] }
 0x31a   : > { %v7169_v4 = vrot.slane %v7168_v51, 4  ;;  %v7189_v36 = vrot.slane %v7188_v22, 4  ;;  %v7221_v23 = vrot.slane %v7219_v43, 5  ;;  %v7239_v58 = vshll.u32 %v6978_v34, 16  ;;  %v6982_v19 = vld [vmem:[#allocation2 + $0xa4] sm:$0xf] }
 0x31b   : > { %v7148_v63 = vshrl.u32 %v6967_v7, 16  ;;  %v12441_v10 = vld [vmem:[#allocation2 + $0x220] ss:$12 sps:$4 sm:$0xff]   ;;  %v10414_v37 = vcombine.high %v15172_v38, %v15168_v18  ;;  %v10413_v17 = vcombine.low %v15172_v38, %v15168_v18  ;;  %v7216_v0 = vor.u32 %v7215_v52, %v7212_v3  ;;  %v12444_v32 = vld [vmem:[#allocation2 + $0x21c] ss:$12 sps:$4 sm:$0xff]  }
 0x31c   : > { %v7235_v45 = vrot.slane %v7233_v1, 4  ;;  %v12443_v42 = vld [vmem:[#allocation2 + $0x200] ss:$12 sps:$4 sm:$0xff]   ;;  %v7174_v20 = vsel %vm13015_vm2, %v7169_v4, %v7173_v30  ;;  %v7194_v31 = vsel %vm13015_vm2, %v7189_v36, %v7193_v60  ;;  %v7241_v41 = vrot.slane %v7239_v58, 5  ;;  %6721 = vmatprep.mubr.bf16.mxu0 %v12441_v10  ;;  %v6986_v44 = vld [vmem:[#allocation2 + $0xbc] sm:$0xf] }
 0x31d   : > { %v7150_v28 = vrot.slane %v7148_v63, 4  ;;  %v10418_v16 = vcombine.low %v7174_v20, %v7194_v31  ;;  %v7217_v49 = vrot.slane %v7216_v0, 4  ;;  %v7151_v56 = vshll.u32 %v6967_v7, 16  ;;  %11661 = vmatprep.mubr.bf16.mxu1 %v12443_v42  ;;  %v6988_v29 = vld [vmem:[#allocation2 + $0xc8] sm:$0xf]  ;;  %v12452_v3 = vld [vmem:[#allocation9 + $0x180] sm:$0xff]  }
 0x31e   : > { %v7236_v14 = vor.u32 %v7235_v45, %v7221_v23  ;;  %v7157_v21 = vshll.u32 %v6969_v46, 16  ;;  %v7175_v62 = vshrl.u32 %v6969_v46, 16  ;;  %v7181_v15 = vshll.u32 %v6971_v50, 16  ;;  %11662 = vmatmul.mubr.bf16.gmra.mrb[124].mxu1 %v12445_v27  ;;  %v12453_v1 = vld [vmem:[#allocation9 + $0x1c8] sm:$0xff]   ;;  %v6990_v36 = vld [vmem:[#allocation2 + $0xd4] sm:$0x1] }
 0x31f   : > { %v7258_v25 = vshrl.u32 %v6980_v13, 16  ;;  %v7222_v61 = vsel %vm13015_vm2, %v7217_v49, %v7221_v23  ;;  %v7153_v12 = vrot.slane %v7151_v56, 5  ;;  %v7261_v47 = vshll.u32 %v6980_v13, 16  ;;  %11681 = vmatprep.mubr.bf16.mxu1 %v15155_v53  ;;  %v6973_v0 = vld [vmem:[#allocation2 + $0x6c] sm:$0xff]  ;;  %v15200_v45 = vld [vmem:[#allocation2 + $0x78] sm:$0xff]  ;;  %v12460_v18 = vld [vmem:[#allocation9 + $0x1a0] sm:$0xff]  }
 0x320   : > { %v7237_v11 = vrot.slane %v7236_v14, 4  ;;  %v7159_v59 = vrot.slane %v7157_v21, 5  ;;  %v7177_v57 = vrot.slane %v7175_v62, 4  ;;  %v7183_v26 = vrot.slane %v7181_v15, 5  ;;  %6722 = vmatmul.mubr.bf16.gmra.mrb[220].mxu0 %v12444_v32  ;;  %v12454_v49 = vld [vmem:[#allocation9 + $0x188] sm:$0xff]   ;;  %v12455_v21 = vld [vmem:[#allocation9 + $0x1d0] sm:$0xff]  }
 0x321   : > { %v7260_v55 = vrot.slane %v7258_v25, 4  ;;  %v7154_v54 = vor.u32 %v7153_v12, %v7150_v28  ;;  %v7263_v40 = vrot.slane %v7261_v47, 5  ;;  %v7267_v35 = vshll.u32 %v6982_v19, 16  ;;  %8268 = vmatprep.mubr.bf16.mxu0 %v10411_v9  ;;  %v6992_v12 = vld [vmem:[#allocation2 + $0xe0] sm:$0xf] }
 0x322   : > { %v7242_v30 = vsel %vm13015_vm2, %v7237_v11, %v7241_v41  ;;  %v7178_v24 = vor.u32 %v7177_v57, %v7159_v59  ;;  %v7281_v51 = vshrl.u32 %v6982_v19, 16  ;;  %v7287_v34 = vshll.u32 %v6984_v6, 16  ;;  %v6994_v47 = vld [vmem:[#allocation2 + $0xec] sm:$0xf]  ;;  %v6996_v33 = vld [vmem:[#allocation2 + $0xf8] sm:$0x1] }
 0x323   : > { %v15187_v48 = vcombine.low %v7222_v61, %v7242_v30  ;;  %v7155_v7 = vrot.slane %v7154_v54, 4  ;;  %v7264_v53 = vor.u32 %v7263_v40, %v7260_v55  ;;  %v7269_v22 = vrot.slane %v7267_v35, 5  ;;  %v12456_v35 = vld [vmem:[#allocation9 + $0x190] sm:$0xff]   ;;  %v8674_v2 = vld [vmem:[#allocation2 + $0x138] sm:$0x11] }
 0x324   : > { %v7306_v60 = vshrl.u32 %v6986_v44, 16  ;;  %v7179_v43 = vrot.slane %v7178_v24, 4  ;;  %v7283_v27 = vrot.slane %v7281_v51, 4  ;;  %v7289_v4 = vrot.slane %v7287_v34, 5  ;;  %v12457_v34 = vld [vmem:[#allocation9 + $0x1d8] sm:$0xff]  }
 0x325   : > { %v7309_v52 = vshll.u32 %v6986_v44, 16  ;;  %v15194_v46 = vsel %vm13015_vm2, %v7155_v7, %v7159_v59  ;;  %v7265_v50 = vrot.slane %v7264_v53, 4  ;;  %v7315_v58 = vshll.u32 %v6988_v29, 16 }
 0x326   : > { %v7308_v23 = vrot.slane %v7306_v60, 4  ;;  %v15198_v63 = vsel %vm13015_vm2, %v7179_v43, %v7183_v26  ;;  %v7284_v13 = vor.u32 %v7283_v27, %v7269_v22  ;;  %v7329_v10 = vshrl.u32 %v6988_v29, 16  ;;  %11682 = vmatmul.mubr.bf16.vlgmr.msra.gmra.mrb[96].mxu1 %v15164_v5  ;;  %v6977_v5 = vld [vmem:[#allocation2 + $0x84] sm:$0x11] }
 0x327   : > { %v7311_v9 = vrot.slane %v7309_v52, 5  ;;  %v10417_v42 = vcombine.high %v15194_v46, %v15198_v63  ;;  %v7270_v20 = vsel %vm13015_vm2, %v7265_v50, %v7269_v22  ;;  %v10416_v31 = vcombine.low %v15194_v46, %v15198_v63  ;;  %11685 = vmatprep.mubr.bf16.mxu1 %v10418_v16  ;;  %11338 = vmatpush3.bf16.msra.mxu1 %v12452_v3  ;;  %v6998_v22 = vld [vmem:[#allocation2 + $0x104] sm:$0xf] }
 0x328   : > { %v7317_v41 = vrot.slane %v7315_v58, 5  ;;  %v7285_v28 = vrot.slane %v7284_v13, 4  ;;  %v7331_v56 = vrot.slane %v7329_v10, 4  ;;  %v7335_v19 = vshll.u32 %v6990_v36, 16  ;;  %11339 = vmatprep.subr.bf16.mxu1 %v12453_v1  ;;  %8269 = vmatmul.mubr.bf16.vlgmr.msra.gmra.mrb[224].mxu0 %v10410_v8 }
 0x329   : > { %v7312_v14 = vor.u32 %v7311_v9, %v7308_v23  ;;  %v7196_v62 = vshrl.u32 %v6973_v0, 16  ;;  %v7199_v15 = vshll.u32 %v6973_v0, 16  ;;  %v7205_v6 = vshll.u32 %v15200_v45, 16  ;;  %8276 = vmatprep.mubr.bf16.mxu0 %v10414_v37  ;;  %v12458_v23 = vld [vmem:[#allocation9 + $0x198] sm:$0xff]  }
 0x32a   : > { %v7223_v25 = vshrl.u32 %v15200_v45, 16  ;;  %v7290_v32 = vsel %vm13015_vm2, %v7285_v28, %v7289_v4  ;;  %v7332_v16 = vor.u32 %v7331_v56, %v7317_v41  ;;  %v7337_v11 = vrot.slane %v7335_v19, 5  ;;  %v7000_v4 = vld [vmem:[#allocation2 + $0x110] sm:$0xf]  ;;  %v7002_v28 = vld [vmem:[#allocation2 + $0x11c] sm:$0x1] }
 0x32b   : > { %v7313_v61 = vrot.slane %v7312_v14, 4  ;;  %v10424_v59 = vcombine.low %v7270_v20, %v7290_v32  ;;  %v7198_v57 = vrot.slane %v7196_v62, 4  ;;  %v7201_v26 = vrot.slane %v7199_v15, 5  ;;  %11340 = vmatpush3.bf16.msra.mxu1 %v12454_v49  ;;  %v6979_v14 = vld [vmem:[#allocation2 + $0x90] sm:$0xff]  ;;  %v15239_v62 = vld [vmem:[#allocation2 + $0x9c] sm:$0xff] }
 0x32c   : > { %v7207_v55 = vrot.slane %v7205_v6, 5  ;;  %v7333_v30 = vrot.slane %v7332_v16, 4  ;;  %v7225_v54 = vrot.slane %v7223_v25, 4  ;;  %v7229_v40 = vshll.u32 %v6977_v5, 16  ;;  %11341 = vmatprep.subr.bf16.mxu1 %v12455_v21 }
 0x32d   : > { %v7318_v44 = vsel %vm13015_vm2, %v7313_v61, %v7317_v41  ;;  %v7202_v24 = vor.u32 %v7201_v26, %v7198_v57  ;;  %v7354_v39 = vshrl.u32 %v6992_v12, 16  ;;  %v7357_v8 = vshll.u32 %v6992_v12, 16  ;;  %v7004_v26 = vld [vmem:[#allocation2 + $0x128] sm:$0xf] }
 0x32e   : > { %v7363_v51 = vshll.u32 %v6994_v47, 16  ;;  %v7338_v29 = vsel %vm13015_vm2, %v7333_v30, %v7337_v11  ;;  %v7226_v7 = vor.u32 %v7225_v54, %v7207_v55  ;;  %v7231_v37 = vrot.slane %v7229_v40, 5  ;;  %11686 = vmatmul.mubr.bf16.gmra.mrb[100].mxu1 %v15187_v48  ;;  %v12459_v48 = vld [vmem:[#allocation9 + $0x1e0] sm:$0xff]   ;;  %v12461_v11 = vld [vmem:[#allocation9 + $0x1e8] sm:$0xff]   ;;  %v7006_v40 = vld [vmem:[#allocation2 + $0x134] sm:$0xf] }
 0x32f   : > { %v7377_v53 = vshrl.u32 %v6994_v47, 16  ;;  %v10427_v60 = vcombine.low %v7318_v44, %v7338_v29  ;;  %v7203_v3 = vrot.slane %v7202_v24, 4  ;;  %v7356_v43 = vrot.slane %v7354_v39, 4  ;;  %11689 = vmatprep.mubr.bf16.mxu1 %v10424_v59  ;;  %11342 = vmatpush3.bf16.msra.mxu1 %v12456_v35 }
 0x330   : > { %v7359_v27 = vrot.slane %v7357_v8, 5  ;;  %v7227_v52 = vrot.slane %v7226_v7, 4  ;;  %v7365_v1 = vrot.slane %v7363_v51, 5  ;;  %v7383_v36 = vshll.u32 %v6996_v33, 16  ;;  %11343 = vmatprep.subr.bf16.mxu1 %v12457_v34  ;;  %8277 = vmatmul.mubr.bf16.gmra.mrb[228].mxu0 %v10413_v17  ;;  %v12462_v8 = vld [vmem:[#allocation9 + $0x1a8] sm:$0xff]  }
 0x331   : > { %v7379_v50 = vrot.slane %v7377_v53, 4  ;;  %v15226_v58 = vsel %vm13015_vm2, %v7203_v3, %v7207_v55  ;;  %v7402_v9 = vshrl.u32 %v6998_v22, 16  ;;  %v7405_v10 = vshll.u32 %v6998_v22, 16  ;;  %8284 = vmatprep.mubr.bf16.mxu0 %v10417_v42  ;;  %v6983_v42 = vld [vmem:[#allocation2 + $0xa8] sm:$0x11] }
 0x332   : > { %v7360_v13 = vor.u32 %v7359_v27, %v7356_v43  ;;  %v15230_v0 = vsel %vm13015_vm2, %v7227_v52, %v7231_v37  ;;  %v7385_v41 = vrot.slane %v7383_v36, 5  ;;  %v7411_v49 = vshll.u32 %v7000_v4, 16  ;;  %v12463_v37 = vld [vmem:[#allocation9 + $0x1f0] sm:$0xff]   ;;  %v7008_v3 = vld [vmem:[#allocation2 + $0x140] sm:$0x1] }
 0x333   : > { %v7380_v20 = vor.u32 %v7379_v50, %v7365_v1  ;;  %v10420_v56 = vcombine.high %v15226_v58, %v15230_v0  ;;  %v10419_v21 = vcombine.low %v15226_v58, %v15230_v0  ;;  %v7404_v5 = vrot.slane %v7402_v9, 4  ;;  %11344 = vmatpush3.bf16.msra.mxu1 %v12458_v23  ;;  %v7010_v50 = vld [vmem:[#allocation2 + $0x14c] sm:$0xf] }
 0x334   : > { %v7361_v19 = vrot.slane %v7360_v13, 4  ;;  %v7407_v6 = vrot.slane %v7405_v10, 5  ;;  %v7413_v25 = vrot.slane %v7411_v49, 5  ;;  %v7425_v32 = vshrl.u32 %v7000_v4, 16  ;;  %11345 = vmatprep.subr.bf16.mxu1 %v12459_v48  ;;  %v7012_v10 = vld [vmem:[#allocation2 + $0x158] sm:$0xf] }
 0x335   : > { %v7381_v15 = vrot.slane %v7380_v20, 4  ;;  %v7431_v17 = vshll.u32 %v7002_v28, 16  ;;  %v7244_v61 = vshrl.u32 %v6979_v14, 16  ;;  %v7247_v16 = vshll.u32 %v6979_v14, 16  ;;  %v12464_v48 = vld [vmem:[#allocation9 + $0x1b0] sm:$0xff]  }
 0x336   : > { %v7366_v38 = vsel %vm13015_vm2, %v7361_v19, %v7365_v1  ;;  %v7408_v47 = vor.u32 %v7407_v6, %v7404_v5  ;;  %v7427_v59 = vrot.slane %v7425_v32, 4  ;;  %v7253_v57 = vshll.u32 %v15239_v62, 16  ;;  %11690 = vmatmul.mubr.bf16.gmra.mrb[104].mxu1 %v10427_v60 }
 0x337   : > { %v7386_v12 = vsel %vm13015_vm2, %v7381_v15, %v7385_v41  ;;  %v7433_v44 = vrot.slane %v7431_v17, 5  ;;  %v7246_v30 = vrot.slane %v7244_v61, 4  ;;  %v7249_v54 = vrot.slane %v7247_v16, 5  ;;  %11346 = vmatpush3.bf16.msra.mxu1 %v12460_v18  ;;  %v12465_v41 = vld [vmem:[#allocation9 + $0x1f8] sm:$0xff]   ;;  %v7014_v15 = vld [vmem:[#allocation2 + $0x164] sm:$0x1] }
 0x338   : > { %v10430_v55 = vcombine.low %v7366_v38, %v7386_v12  ;;  %v7409_v35 = vrot.slane %v7408_v47, 4  ;;  %v7428_v24 = vor.u32 %v7427_v59, %v7413_v25  ;;  %v7255_v33 = vrot.slane %v7253_v57, 5  ;;  %11347 = vmatprep.subr.bf16.mxu1 %v12461_v11  ;;  %8285 = vmatmul.mubr.bf16.gmra.mrb[232].mxu0 %v10416_v31  ;;  %v6985_v61 = vld [vmem:[#allocation2 + $0xb4] sm:$0xff]  ;;  %v15263_v16 = vld [vmem:[#allocation2 + $0xc0] sm:$0xff] }
 0x339   : > { %v7271_v39 = vshrl.u32 %v15239_v62, 16  ;;  %v7250_v51 = vor.u32 %v7249_v54, %v7246_v30  ;;  %v7277_v34 = vshll.u32 %v6983_v42, 16  ;;  %v7450_v29 = vshrl.u32 %v7004_v26, 16  ;;  %8292 = vmatprep.mubr.bf16.mxu0 %v10420_v56  ;;  %v12466_v11 = vld [vmem:[#allocation9 + $0x1b8] sm:$0xff]   ;;  %v15269_v57 = vld [vmem:[#allocation9 + $0x200] sm:$0xff]  }
 0x33a   : > { %11693 = vmatprep.mubr.bf16.mxu1 %v10430_v55  ;;  %v7453_v7 = vshll.u32 %v7004_v26, 16  ;;  %v7414_v53 = vsel %vm13015_vm2, %v7409_v35, %v7413_v25  ;;  %v7429_v22 = vrot.slane %v7428_v24, 4  ;;  %v7459_v43 = vshll.u32 %v7006_v40, 16  ;;  %v6989_v54 = vld [vmem:[#allocation2 + $0xcc] sm:$0x11] }
 0x33b   : > { %v7273_v60 = vrot.slane %v7271_v39, 4  ;;  %v7251_v27 = vrot.slane %v7250_v51, 4  ;;  %v7279_v4 = vrot.slane %v7277_v34, 5  ;;  %v7452_v52 = vrot.slane %v7450_v29, 4  ;;  %11348 = vmatpush3.bf16.msra.mxu1 %v12462_v8  ;;  %v7016_v29 = vld [vmem:[#allocation2 + $0x170] sm:$0xf] }
 0x33c   : > { %v7455_v1 = vrot.slane %v7453_v7, 5  ;;  %v7434_v36 = vsel %vm13015_vm2, %v7429_v22, %v7433_v44  ;;  %v7461_v13 = vrot.slane %v7459_v43, 5  ;;  %v7473_v9 = vshrl.u32 %v7006_v40, 16  ;;  %11349 = vmatprep.subr.bf16.mxu1 %v12463_v37  ;;  %v7018_v7 = vld [vmem:[#allocation2 + $0x17c] sm:$0xf] }
 0x33d   : > { %v7274_v23 = vor.u32 %v7273_v60, %v7255_v33  ;;  %v10433_v20 = vcombine.low %v7414_v53, %v7434_v36  ;;  %v15259_v46 = vsel %vm13015_vm2, %v7251_v27, %v7255_v33  ;;  %v7479_v31 = vshll.u32 %v7008_v3, 16  ;;  %v7020_v27 = vld [vmem:[#allocation2 + $0x188] sm:$0x1] }
 0x33e   : > { %v7456_v63 = vor.u32 %v7455_v1, %v7452_v52  ;;  %v7475_v49 = vrot.slane %v7473_v9, 4  ;;  %v7498_v14 = vshrl.u32 %v7010_v50, 16  ;;  %v7501_v56 = vshll.u32 %v7010_v50, 16  ;;  %v7022_v9 = vld [vmem:[#allocation2 + $0x194] sm:$0xf] }
 0x33f   : > { %v7275_v28 = vrot.slane %v7274_v23, 4  ;;  %11694 = vmatmul.mubr.bf16.gmra.mrb[108].mxu1 %v10433_v20  ;;  %v7481_v5 = vrot.slane %v7479_v31, 5  ;;  %v7507_v6 = vshll.u32 %v7012_v10, 16  ;;  %v7521_v25 = vshrl.u32 %v7012_v10, 16 }
 0x340   : > { %v7457_v19 = vrot.slane %v7456_v63, 4  ;;  %v7476_v18 = vor.u32 %v7475_v49, %v7461_v13  ;;  %v7500_v38 = vrot.slane %v7498_v14, 4  ;;  %v7503_v17 = vrot.slane %v7501_v56, 5  ;;  %11350 = vmatpush3.bf16.msra.mxu1 %v12464_v48  ;;  %8293 = vmatmul.mubr.bf16.gmra.mrb[236].mxu0 %v10419_v21  ;;  %v7024_v63 = vld [vmem:[#allocation2 + $0x1a0] sm:$0xf] }
 0x341   : > { %v7280_v32 = vsel %vm13015_vm2, %v7275_v28, %v7279_v4  ;;  %v7509_v42 = vrot.slane %v7507_v6, 5  ;;  %11351 = vmatprep.subr.bf16.mxu1 %v12465_v41  ;;  %v7523_v44 = vrot.slane %v7521_v25, 4  ;;  %v7527_v30 = vshll.u32 %v7014_v15, 16 }
 0x342   : > { %v10423_v12 = vcombine.high %v15259_v46, %v7280_v32  ;;  %v7462_v47 = vsel %vm13015_vm2, %v7457_v19, %v7461_v13  ;;  %v10422_v59 = vcombine.low %v15259_v46, %v7280_v32  ;;  %v7477_v26 = vrot.slane %v7476_v18, 4  ;;  %v7026_v32 = vld [vmem:[#allocation2 + $0x1ac] sm:$0x1] }
 0x343   : > { %v7504_v55 = vor.u32 %v7503_v17, %v7500_v38  ;;  %v7292_v40 = vshrl.u32 %v6985_v61, 16  ;;  %v7295_v35 = vshll.u32 %v6985_v61, 16  ;;  %v7301_v24 = vshll.u32 %v15263_v16, 16  ;;  %v6991_v38 = vld [vmem:[#allocation2 + $0xd8] sm:$0xff] }
 0x344   : > { %v7319_v33 = vshrl.u32 %v15263_v16, 16  ;;  %8300 = vmatprep.mubr.bf16.mxu0 %v10423_v12  ;;  %v7482_v39 = vsel %vm13015_vm2, %v7477_v26, %v7481_v5  ;;  %v7524_v51 = vor.u32 %v7523_v44, %v7509_v42  ;;  %v7529_v34 = vrot.slane %v7527_v30, 5  ;;  %11352 = vmatpush3.bf16.msra.mxu1 %v12466_v11 }
 0x345   : > { %v7505_v8 = vrot.slane %v7504_v55, 4  ;;  %v10436_v37 = vcombine.low %v7462_v47, %v7482_v39  ;;  %v7294_v58 = vrot.slane %v7292_v40, 4  ;;  %v7297_v0 = vrot.slane %v7295_v35, 5  ;;  %11713 = vmatprep.subr.bf16.mxu1 %v15269_v57  ;;  %v15287_v47 = vld [vmem:[#allocation2 + $0xe4] sm:$0xff]  ;;  %v6995_v39 = vld [vmem:[#allocation2 + $0xf0] sm:$0x11] }
 0x346   : > { %v7303_v21 = vrot.slane %v7301_v24, 5  ;;  %v7525_v22 = vrot.slane %v7524_v51, 4  ;;  %v7321_v60 = vrot.slane %v7319_v33, 4  ;;  %v7325_v3 = vshll.u32 %v6989_v54, 16  ;;  %v7028_v51 = vld [vmem:[#allocation2 + $0x1b8] sm:$0xf] }
 0x347   : > { %v7510_v53 = vsel %vm13015_vm2, %v7505_v8, %v7509_v42  ;;  %11697 = vmatprep.mubr.bf16.mxu1 %v10436_v37  ;;  %v7298_v43 = vor.u32 %v7297_v0, %v7294_v58  ;;  %v7546_v4 = vshrl.u32 %v7016_v29, 16  ;;  %v7549_v52 = vshll.u32 %v7016_v29, 16  ;;  %v7030_v58 = vld [vmem:[#allocation2 + $0x1c4] sm:$0xf] }
 0x348   : > { %v7555_v1 = vshll.u32 %v7018_v7, 16  ;;  %v7530_v50 = vsel %vm13015_vm2, %v7525_v22, %v7529_v34  ;;  %v7322_v36 = vor.u32 %v7321_v60, %v7303_v21  ;;  %v7327_v23 = vrot.slane %v7325_v3, 5  ;;  %8301 = vmatmul.mubr.bf16.gmra.mrb[240].mxu0 %v10422_v59 }
 0x349   : > { %v7569_v13 = vshrl.u32 %v7018_v7, 16  ;;  %v10439_v10 = vcombine.low %v7510_v53, %v7530_v50  ;;  %v7299_v48 = vrot.slane %v7298_v43, 4  ;;  %v7548_v20 = vrot.slane %v7546_v4, 4  ;;  %v7032_v50 = vld [vmem:[#allocation2 + $0x1d0] sm:$0x1] }
 0x34a   : > { %v7551_v46 = vrot.slane %v7549_v52, 5  ;;  %v7323_v31 = vrot.slane %v7322_v36, 4  ;;  %v7557_v41 = vrot.slane %v7555_v1, 5  ;;  %v7575_v49 = vshll.u32 %v7020_v27, 16 }
 0x34b   : > { %v7571_v28 = vrot.slane %v7569_v13, 4  ;;  %11698 = vmatmul.mubr.bf16.gmra.mrb[112].mxu1 %v10439_v10  ;;  %v7304_v14 = vsel %vm13015_vm2, %v7299_v48, %v7303_v21  ;;  %v7594_v19 = vshrl.u32 %v7022_v9, 16  ;;  %v7597_v5 = vshll.u32 %v7022_v9, 16  ;;  %v7034_v48 = vld [vmem:[#allocation2 + $0x1dc] sm:$0xf] }
 0x34c   : > { %v7552_v56 = vor.u32 %v7551_v46, %v7548_v20  ;;  %v7328_v15 = vsel %vm13015_vm2, %v7323_v31, %v7327_v23  ;;  %v7577_v25 = vrot.slane %v7575_v49, 5  ;;  %v7603_v18 = vshll.u32 %v7024_v63, 16 }
 0x34d   : > { %v7572_v6 = vor.u32 %v7571_v28, %v7557_v41  ;;  %v10426_v17 = vcombine.high %v7304_v14, %v7328_v15  ;;  %v10425_v11 = vcombine.low %v7304_v14, %v7328_v15  ;;  %v7596_v12 = vrot.slane %v7594_v19, 4 }
 0x34e   : > { %v7553_v61 = vrot.slane %v7552_v56, 4  ;;  %v7599_v42 = vrot.slane %v7597_v5, 5  ;;  %v7605_v26 = vrot.slane %v7603_v18, 5  ;;  %v7617_v55 = vshrl.u32 %v7024_v63, 16  ;;  %v7038_v18 = vld [vmem:[#allocation2 + $0x1f4] sm:$0x1] }
 0x34f   : > { %v7573_v59 = vrot.slane %v7572_v6, 4  ;;  %8308 = vmatprep.mubr.bf16.mxu0 %v10426_v17  ;;  %v7623_v30 = vshll.u32 %v7026_v32, 16  ;;  %v7340_v54 = vshrl.u32 %v6991_v38, 16  ;;  %v7343_v40 = vshll.u32 %v6991_v38, 16 }
 0x350   : > { %v7558_v44 = vsel %vm13015_vm2, %v7553_v61, %v7557_v41  ;;  %v7600_v24 = vor.u32 %v7599_v42, %v7596_v12  ;;  %v7619_v33 = vrot.slane %v7617_v55, 4  ;;  %v7349_v8 = vshll.u32 %v15287_v47, 16  ;;  %8309 = vmatmul.mubr.bf16.gmra.mrb[244].mxu0 %v10425_v11  ;;  %v7036_v41 = vld [vmem:[#allocation2 + $0x1e8] sm:$0xf]  ;;  %v6997_v42 = vld [vmem:[#allocation2 + $0xfc] sm:$0xff] }
 0x351   : > { %v7578_v35 = vsel %vm13015_vm2, %v7573_v59, %v7577_v25  ;;  %v7625_v29 = vrot.slane %v7623_v30, 5  ;;  %v7342_v7 = vrot.slane %v7340_v54, 4  ;;  %v7345_v37 = vrot.slane %v7343_v40, 5 }
 0x352   : > { %v10442_v34 = vcombine.low %v7558_v44, %v7578_v35  ;;  %v7601_v0 = vrot.slane %v7600_v24, 4  ;;  %v7620_v21 = vor.u32 %v7619_v33, %v7605_v26  ;;  %v7351_v53 = vrot.slane %v7349_v8, 5 }
 0x353   : > { %v7367_v22 = vshrl.u32 %v15287_v47, 16  ;;  %v7346_v60 = vor.u32 %v7345_v37, %v7342_v7  ;;  %v7373_v3 = vshll.u32 %v6995_v39, 16  ;;  %v7642_v43 = vshrl.u32 %v7028_v51, 16  ;;  %v7001_v39 = vld [vmem:[#allocation2 + $0x114] sm:$0x11] }
 0x354   : > { %11701 = vmatprep.mubr.bf16.mxu1 %v10442_v34  ;;  %v7645_v27 = vshll.u32 %v7028_v51, 16  ;;  %v7606_v4 = vsel %vm13015_vm2, %v7601_v0, %v7605_v26  ;;  %v7621_v52 = vrot.slane %v7620_v21, 4  ;;  %v7651_v36 = vshll.u32 %v7030_v58, 16  ;;  %v15303_v26 = vld [vmem:[#allocation2 + $0x108] sm:$0xff]  ;;  %v7040_v21 = vld [vmem:[#allocation2 + $0x200] sm:$0xf] }
 0x355   : > { %v7369_v1 = vrot.slane %v7367_v22, 4  ;;  %v7347_v23 = vrot.slane %v7346_v60, 4  ;;  %v7375_v13 = vrot.slane %v7373_v3, 5  ;;  %v7644_v9 = vrot.slane %v7642_v43, 4 }
 0x356   : > { %v7647_v10 = vrot.slane %v7645_v27, 5  ;;  %v7626_v20 = vsel %vm13015_vm2, %v7621_v52, %v7625_v29  ;;  %v7653_v63 = vrot.slane %v7651_v36, 5  ;;  %v7665_v31 = vshrl.u32 %v7030_v58, 16  ;;  %v7044_v36 = vld [vmem:[#allocation2 + $0x218] sm:$0x1] }
 0x357   : > { %v7370_v46 = vor.u32 %v7369_v1, %v7351_v53  ;;  %v10445_v28 = vcombine.low %v7606_v4, %v7626_v20  ;;  %v7352_v49 = vsel %vm13015_vm2, %v7347_v23, %v7351_v53  ;;  %v7671_v56 = vshll.u32 %v7032_v50, 16  ;;  %v7042_v53 = vld [vmem:[#allocation2 + $0x20c] sm:$0xf] }
 0x358   : > { %v7648_v14 = vor.u32 %v7647_v10, %v7644_v9  ;;  %v7667_v5 = vrot.slane %v7665_v31, 4  ;;  %v7690_v15 = vshrl.u32 %v7034_v48, 16  ;;  %v7693_v6 = vshll.u32 %v7034_v48, 16 }
 0x359   : > { %v7371_v19 = vrot.slane %v7370_v46, 4  ;;  %11702 = vmatmul.mubr.bf16.gmra.mrb[116].mxu1 %v10445_v28  ;;  %v7673_v32 = vrot.slane %v7671_v56, 5  ;;  %v7699_v38 = vshll.u32 %v7036_v41, 16  ;;  %v7713_v17 = vshrl.u32 %v7036_v41, 16 }
 0x35a   : > { %v7649_v25 = vrot.slane %v7648_v14, 4  ;;  %v7668_v11 = vor.u32 %v7667_v5, %v7653_v63  ;;  %v7692_v12 = vrot.slane %v7690_v15, 4  ;;  %v7695_v59 = vrot.slane %v7693_v6, 5  ;;  %v7048_v14 = vld [vmem:[#allocation2 + $0x230] sm:$0xf] }
 0x35b   : > { %v7376_v61 = vsel %vm13015_vm2, %v7371_v19, %v7375_v13  ;;  %v7701_v54 = vrot.slane %v7699_v38, 5  ;;  %v7715_v24 = vrot.slane %v7713_v17, 4  ;;  %v7719_v33 = vshll.u32 %v7038_v18, 16 }
 0x35c   : > { %v10429_v55 = vcombine.high %v7352_v49, %v7376_v61  ;;  %v7654_v44 = vsel %vm13015_vm2, %v7649_v25, %v7653_v63  ;;  %v10428_v30 = vcombine.low %v7352_v49, %v7376_v61  ;;  %v7669_v40 = vrot.slane %v7668_v11, 4  ;;  %v7046_v63 = vld [vmem:[#allocation2 + $0x224] sm:$0xf]  ;;  %v7050_v11 = vld [vmem:[#allocation2 + $0x23c] sm:$0x1] }
 0x35d   : > { %v7696_v35 = vor.u32 %v7695_v59, %v7692_v12  ;;  %v7388_v8 = vshrl.u32 %v6997_v42, 16  ;;  %v7391_v51 = vshll.u32 %v6997_v42, 16  ;;  %v7397_v34 = vshll.u32 %v15303_v26, 16  ;;  %v7003_v59 = vld [vmem:[#allocation2 + $0x120] sm:$0xff] }
 0x35e   : > { %8316 = vmatprep.mubr.bf16.mxu0 %v10429_v55  ;;  %v7415_v29 = vshrl.u32 %v15303_v26, 16  ;;  %v7674_v7 = vsel %vm13015_vm2, %v7669_v40, %v7673_v32  ;;  %v7716_v58 = vor.u32 %v7715_v24, %v7701_v54  ;;  %v7721_v0 = vrot.slane %v7719_v33, 5 }
 0x35f   : > { %8317 = vmatmul.mubr.bf16.gmra.mrb[248].mxu0 %v10428_v30  ;;  %v7697_v37 = vrot.slane %v7696_v35, 4  ;;  %v10448_v22 = vcombine.low %v7654_v44, %v7674_v7  ;;  %v7390_v60 = vrot.slane %v7388_v8, 4  ;;  %v7393_v3 = vrot.slane %v7391_v51, 5 }
 0x360   : > { %v7399_v43 = vrot.slane %v7397_v34, 5  ;;  %v7717_v4 = vrot.slane %v7716_v58, 4  ;;  %v7417_v52 = vrot.slane %v7415_v29, 4  ;;  %v7421_v1 = vshll.u32 %v7001_v39, 16 }
 0x361   : > { %v7702_v27 = vsel %vm13015_vm2, %v7697_v37, %v7701_v54  ;;  %11705 = vmatprep.mubr.bf16.mxu1 %v10448_v22  ;;  %v7394_v50 = vor.u32 %v7393_v3, %v7390_v60  ;;  %v7738_v23 = vshrl.u32 %v7040_v21, 16  ;;  %v7741_v13 = vshll.u32 %v7040_v21, 16  ;;  %v15319_v54 = vld [vmem:[#allocation2 + $0x12c] sm:$0xff]  ;;  %v7007_v60 = vld [vmem:[#allocation2 + $0x138] sm:$0x11] }
 0x362   : > { %v7747_v9 = vshll.u32 %v7042_v53, 16  ;;  %v7722_v10 = vsel %vm13015_vm2, %v7717_v4, %v7721_v0  ;;  %v7418_v48 = vor.u32 %v7417_v52, %v7399_v43  ;;  %v7423_v20 = vrot.slane %v7421_v1, 5  ;;  %v8622_v0 = vld [vmem:[#allocation2] sm:$0xee]  ;;  %v8624_v21 = vld [vmem:[#allocation2 + $0xc] sm:$0xff] }
 0x363   : > { %v7761_v46 = vshrl.u32 %v7042_v53, 16  ;;  %v10451_v31 = vcombine.low %v7702_v27, %v7722_v10  ;;  %v7395_v41 = vrot.slane %v7394_v50, 4  ;;  %v7740_v28 = vrot.slane %v7738_v23, 4  ;;  %v8626_v50 = vld [vmem:[#allocation2 + $0x18] sm:$0x11] }
 0x364   : > { %v7743_v49 = vrot.slane %v7741_v13, 5  ;;  %v7419_v56 = vrot.slane %v7418_v48, 4  ;;  %v7749_v19 = vrot.slane %v7747_v9, 5  ;;  %v7767_v15 = vshll.u32 %v7044_v36, 16  ;;  %v7009_v13 = vld [vmem:[#allocation2 + $0x144] sm:$0xff] }
 0x365   : > { %v7763_v5 = vrot.slane %v7761_v46, 4  ;;  %11706 = vmatmul.mubr.bf16.gmra.mrb[120].mxu1 %v10451_v31  ;;  %v7400_v6 = vsel %vm13015_vm2, %v7395_v41, %v7399_v43  ;;  %v7786_v32 = vshrl.u32 %v7046_v63, 16  ;;  %v7789_v18 = vshll.u32 %v7046_v63, 16  ;;  %v15329_v46 = vld [vmem:[#allocation2 + $0x150] sm:$0xff] }
 0x366   : > { %v7744_v25 = vor.u32 %v7743_v49, %v7740_v28  ;;  %v7424_v38 = vsel %vm13015_vm2, %v7419_v56, %v7423_v20  ;;  %v7769_v61 = vrot.slane %v7767_v15, 5  ;;  %v7795_v12 = vshll.u32 %v7048_v14, 16 }
 0x367   : > { %v7764_v17 = vor.u32 %v7763_v5, %v7749_v19  ;;  %v10432_v42 = vcombine.high %v7400_v6, %v7424_v38  ;;  %v10431_v44 = vcombine.low %v7400_v6, %v7424_v38  ;;  %v7788_v30 = vrot.slane %v7786_v32, 4  ;;  %v7013_v32 = vld [vmem:[#allocation2 + $0x15c] sm:$0x11]  ;;  %v8630_v38 = vld [vmem:[#allocation2 + $0x30] sm:$0xff] }
 0x368   : > { %v7745_v55 = vrot.slane %v7744_v25, 4  ;;  %v7791_v35 = vrot.slane %v7789_v18, 5  ;;  %v7797_v24 = vrot.slane %v7795_v12, 5  ;;  %v7809_v33 = vshrl.u32 %v7048_v14, 16 }
 0x369   : > { %v7765_v40 = vrot.slane %v7764_v17, 4  ;;  %8324 = vmatprep.mubr.bf16.mxu0 %v10432_v42  ;;  %v7815_v8 = vshll.u32 %v7050_v11, 16  ;;  %v7436_v51 = vshrl.u32 %v7003_v59, 16  ;;  %v7439_v34 = vshll.u32 %v7003_v59, 16  ;;  %v8628_v59 = vld [vmem:[#allocation2 + $0x24] sm:$0xee] }
 0x36a   : > { %v7750_v39 = vsel %vm13015_vm2, %v7745_v55, %v7749_v19  ;;  %8325 = vmatmul.mubr.bf16.gmra.mrb[252].mxu0 %v10431_v44  ;;  %v7792_v7 = vor.u32 %v7791_v35, %v7788_v30  ;;  %v7811_v37 = vrot.slane %v7809_v33, 4  ;;  %v7445_v58 = vshll.u32 %v15319_v54, 16  ;;  %v8632_v30 = vld [vmem:[#allocation2 + $0x3c] sm:$0x11] }
 0x36b   : > { %v7770_v29 = vsel %vm13015_vm2, %v7765_v40, %v7769_v61  ;;  %v7817_v22 = vrot.slane %v7815_v8, 5  ;;  %v7438_v3 = vrot.slane %v7436_v51, 4  ;;  %v7441_v43 = vrot.slane %v7439_v34, 5  ;;  %v7015_v40 = vld [vmem:[#allocation2 + $0x168] sm:$0xff]  ;;  %v15343_v8 = vld [vmem:[#allocation2 + $0x174] sm:$0xff] }
 0x36c   : > { %v10454_v53 = vcombine.low %v7750_v39, %v7770_v29  ;;  %v7793_v27 = vrot.slane %v7792_v7, 4  ;;  %v7812_v4 = vor.u32 %v7811_v37, %v7797_v24  ;;  %v7447_v52 = vrot.slane %v7445_v58, 5 }
 0x36d   : > { %v7463_v1 = vshrl.u32 %v15319_v54, 16  ;;  %v7442_v36 = vor.u32 %v7441_v43, %v7438_v3  ;;  %v8816_v23 = vrot.slane %v8624_v21, 5  ;;  %v7469_v20 = vshll.u32 %v7007_v60, 16  ;;  %v7019_v21 = vld [vmem:[#allocation2 + $0x180] sm:$0x11] }
 0x36e   : > { %11709 = vmatprep.mubr.bf16.mxu1 %v10454_v53  ;;  %v7798_v9 = vsel %vm13015_vm2, %v7793_v27, %v7797_v24  ;;  %v7813_v10 = vrot.slane %v7812_v4, 4  ;;  %v10482_v31 = vrot.slane %v8622_v0, 9  ;;  %v8823_v28 = vrot.slane %v8626_v50, 5  ;;  %v8636_v27 = vld [vmem:[#allocation2 + $0x54] sm:$0xff] }
 0x36f   : > { %v7465_v48 = vrot.slane %v7463_v1, 4  ;;  %v7443_v63 = vrot.slane %v7442_v36, 4  ;;  %v8822_v41 = vrot.slane %v8816_v23, 4  ;;  %v7484_v56 = vshrl.u32 %v7009_v13, 16  ;;  %v8634_v36 = vld [vmem:[#allocation2 + $0x48] sm:$0xee] }
 0x370   : > { %v7818_v49 = vsel %vm13015_vm2, %v7813_v10, %v7817_v22  ;;  %v7487_v19 = vshll.u32 %v7009_v13, 16  ;;  %v8817_v6 = vsel %vm13846_vm5, %v10482_v31, %v8816_v23  ;;  %v7493_v18 = vshll.u32 %v15329_v46, 16  ;;  %v8638_v23 = vld [vmem:[#allocation2 + $0x60] sm:$0x11] }
 0x371   : > { %v7466_v14 = vor.u32 %v7465_v48, %v7447_v52  ;;  %v10457_v5 = vcombine.low %v7798_v9, %v7818_v49  ;;  %v8824_v25 = vsel %vm13846_vm5, %v8822_v41, %v8823_v28  ;;  %v7471_v61 = vrot.slane %v7469_v20, 5  ;;  %v12468_v20 = vld [vmem:[#allocation9 + $0x208] sm:$0xff]  }
 0x372   : > { %v10515_v11 = vcombine.high %v8817_v6, %v8824_v25  ;;  %v7486_v12 = vrot.slane %v7484_v56, 4  ;;  %v7489_v42 = vrot.slane %v7487_v19, 5  ;;  %v7495_v55 = vrot.slane %v7493_v18, 5 }
 0x373   : > { %v7467_v17 = vrot.slane %v7466_v14, 4  ;;  %11710 = vmatmul.mubr.bf16.gmra.mrb[124].mxu1 %v10457_v5  ;;  %v7511_v44 = vshrl.u32 %v15329_v46, 16  ;;  %v7448_v35 = vsel %vm13015_vm2, %v7443_v63, %v7447_v52  ;;  %v7517_v33 = vshll.u32 %v7013_v32, 16  ;;  %v7021_v63 = vld [vmem:[#allocation2 + $0x18c] sm:$0xff] }
 0x374   : > { %9487 = vmatprep.mubr.bf16.mxu1 %v10515_v11  ;;  %v8830_v39 = vrot.slane %v8630_v38, 5  ;;  %v7490_v34 = vor.u32 %v7489_v42, %v7486_v12  ;;  %v10484_v7 = vrot.slane %v8628_v59, 9  ;;  %v8837_v0 = vrot.slane %v8632_v30, 5  ;;  %v7025_v12 = vld [vmem:[#allocation2 + $0x1a4] sm:$0x11]  ;;  %v12469_v42 = vld [vmem:[#allocation9 + $0x210] sm:$0xff]  }
 0x375   : > { %v7472_v24 = vsel %vm13015_vm2, %v7467_v17, %v7471_v61  ;;  %v7513_v29 = vrot.slane %v7511_v44, 4  ;;  %v7532_v53 = vshrl.u32 %v7015_v40, 16  ;;  %v7535_v3 = vshll.u32 %v7015_v40, 16 }
 0x376   : > { %v10435_v51 = vcombine.high %v7448_v35, %v7472_v24  ;;  %v10434_v37 = vcombine.low %v7448_v35, %v7472_v24  ;;  %v8836_v58 = vrot.slane %v8830_v39, 4  ;;  %v7491_v22 = vrot.slane %v7490_v34, 4  ;;  %v11081_v35 = vpop.f32.mrb[160].mxu0 }
 0x377   : > { %v7514_v60 = vor.u32 %v7513_v29, %v7495_v55  ;;  %v7541_v43 = vshll.u32 %v15343_v8, 16  ;;  %v10514_v4 = vcombine.low %v8817_v6, %v8824_v25  ;;  %v7534_v1 = vrot.slane %v7532_v53, 4  ;;  %v15358_v6 = vld [vmem:[#allocation2 + $0x198] sm:$0xff] }
 0x378   : > { %8332 = vmatprep.mubr.bf16.mxu0 %v10435_v51  ;;  %v15348_v52 = vsel %vm13846_vm5, %v8836_v58, %v8837_v0  ;;  %v7559_v50 = vshrl.u32 %v15343_v8, 16  ;;  %v7519_v9 = vrot.slane %v7517_v33, 5  ;;  %v8831_v10 = vsel %vm13846_vm5, %v10484_v7, %v8830_v39  ;;  %v11082_v51 = vpop.f32.mrb[161].mxu0 }
 0x379   : > { %8333 = vmatmul.mubr.bf16.gmra.mrb[0].mxu0 %v10434_v37  ;;  %v7515_v13 = vrot.slane %v7514_v60, 4  ;;  %v7565_v48 = vshll.u32 %v7019_v21, 16  ;;  %v10518_v31 = vcombine.high %v8831_v10, %v15348_v52  ;;  %v7537_v41 = vrot.slane %v7535_v3, 5  ;;  %v11084_v58 = vpop.f32.mrb[162].mxu0  ;;  %v8644_v60 = vld [vmem:[#allocation2 + $0x84] sm:$0x11] }
 0x37a   : > { %v7543_v28 = vrot.slane %v7541_v43, 5  ;;  %v7561_v49 = vrot.slane %v7559_v50, 4  ;;  %v7496_v14 = vsel %vm13015_vm2, %v7491_v22, %v7495_v55  ;;  %v10486_v19 = vrot.slane %v8634_v36, 9  ;;  %v11085_v3 = vpop.f32.mrb[163].mxu0  ;;  %v7027_v43 = vld [vmem:[#allocation2 + $0x1b0] sm:$0xff] }
 0x37b   : > { %9488 = vmatmul.mubr.bf16.vlgmr.msra.gmra.mrb[128].mxu1 %v10514_v4  ;;  %v7520_v56 = vsel %vm13015_vm2, %v7515_v13, %v7519_v9  ;;  %v8844_v5 = vrot.slane %v8636_v27, 5  ;;  %v7538_v32 = vor.u32 %v7537_v41, %v7534_v1  ;;  %v8851_v18 = vrot.slane %v8638_v23, 5  ;;  %v12470_v1 = vld [vmem:[#allocation9 + $0x218] sm:$0xff]   ;;  %v8640_v23 = vld [vmem:[#allocation2 + $0x6c] sm:$0xee] }
 0x37c   : > { %v10438_v25 = vcombine.high %v7496_v14, %v7520_v56  ;;  %9495 = vmatprep.mubr.bf16.mxu1 %v10518_v31  ;;  %11714 = vmatpush3.bf16.msra.mxu1 %v15269_v57  ;;  %v7580_v38 = vshrl.u32 %v7021_v63, 16  ;;  %v10437_v17 = vcombine.low %v7496_v14, %v7520_v56  ;;  %v7562_v61 = vor.u32 %v7561_v49, %v7543_v28  ;;  %v15381_v9 = vld [vmem:[#allocation2 + $0x1bc] sm:$0xff] }
 0x37d   : > { %v8850_v11 = vrot.slane %v8844_v5, 4  ;;  %11715 = vmatprep.subr.bf16.mxu1 %v12468_v20  ;;  %v7583_v59 = vshll.u32 %v7021_v63, 16  ;;  %v7539_v55 = vrot.slane %v7538_v32, 4  ;;  %v7589_v30 = vshll.u32 %v15358_v6, 16 }
 0x37e   : > { %8340 = vmatprep.mubr.bf16.mxu0 %v10438_v25  ;;  %v7582_v44 = vrot.slane %v7580_v38, 4  ;;  %v7607_v40 = vshrl.u32 %v15358_v6, 16  ;;  %v7563_v24 = vrot.slane %v7562_v61, 4  ;;  %v7567_v57 = vrot.slane %v7565_v48, 5  ;;  %v12471_v25 = vld [vmem:[#allocation9 + $0x220] sm:$0xff]  }
 0x37f   : > { %v15365_v33 = vsel %vm13846_vm5, %v8850_v11, %v8851_v18  ;;  %v7585_v39 = vrot.slane %v7583_v59, 5  ;;  %v10517_v34 = vcombine.low %v8831_v10, %v15348_v52  ;;  %v15370_v29 = vsel %vm13846_vm5, %v10486_v19, %v8844_v5  ;;  %v11087_v5 = vpop.f32.mrb[164].mxu0  ;;  %v7031_v38 = vld [vmem:[#allocation2 + $0x1c8] sm:$0x11] }
 0x380   : > { %v7591_v7 = vrot.slane %v7589_v30, 5  ;;  %v7613_v37 = vshll.u32 %v7025_v12, 16  ;;  %11716 = vmatpush3.bf16.msra.mxu1 %v12468_v20  ;;  %v7544_v0 = vsel %vm13015_vm2, %v7539_v55, %v7543_v28  ;;  %v7568_v21 = vsel %vm13015_vm2, %v7563_v24, %v7567_v57  ;;  %v11088_v61 = vpop.f32.mrb[165].mxu0  ;;  %v7033_v57 = vld [vmem:[#allocation2 + $0x1d4] sm:$0xff] }
 0x381   : > { %8341 = vmatmul.mubr.bf16.gmra.mrb[4].mxu0 %v10437_v17  ;;  %v7586_v53 = vor.u32 %v7585_v39, %v7582_v44  ;;  %v7609_v22 = vrot.slane %v7607_v40, 4  ;;  %11717 = vmatprep.subr.bf16.mxu1 %v12469_v42  ;;  %v10441_v27 = vcombine.high %v7544_v0, %v7568_v21  ;;  %v10521_v4 = vcombine.high %v15370_v29, %v15365_v33  ;;  %v11090_v55 = vpop.f32.mrb[166].mxu0 }
 0x382   : > { %v8858_v52 = vrot.slane %v15200_v45, 5  ;;  %v15379_v13 = vadd.f32 %v11082_v51, %v11081_v35  ;;  %v8865_v48 = vrot.slane %v8644_v60, 5  ;;  %v15383_v20 = vadd.f32 %v11085_v3, %v11084_v58  ;;  %v11091_v24 = vpop.f32.mrb[167].mxu0  ;;  %v15408_v58 = vld [vmem:[#allocation2 + $0x1e0] sm:$0xff] }
 0x383   : > { %9496 = vmatmul.mubr.bf16.gmra.mrb[132].mxu1 %v10517_v34  ;;  %v7587_v50 = vrot.slane %v7586_v53, 4  ;;  %v7610_v36 = vor.u32 %v7609_v22, %v7591_v7  ;;  %8348 = vmatprep.mubr.bf16.mxu0 %v10441_v27  ;;  %v7628_v63 = vshrl.u32 %v7027_v43, 16  ;;  %v10440_v31 = vcombine.low %v7544_v0, %v7568_v21  ;;  %v8650_v34 = vld [vmem:[#allocation2 + $0xa8] sm:$0x11] }
 0x384   : > { %9503 = vmatprep.mubr.bf16.mxu1 %v10521_v4  ;;  %v8864_v10 = vrot.slane %v8858_v52, 4  ;;  %v7615_v28 = vrot.slane %v7613_v37, 5  ;;  %v7631_v45 = vshll.u32 %v7027_v43, 16  ;;  %11718 = vmatpush3.bf16.msra.mxu1 %v12469_v42  ;;  %v10488_v49 = vrot.slane %v8640_v23, 9  ;;  %v7037_v43 = vld [vmem:[#allocation2 + $0x1ec] sm:$0x11] }
 0x385   : > { %v7611_v41 = vrot.slane %v7610_v36, 4  ;;  %v7630_v56 = vrot.slane %v7628_v63, 4  ;;  %v7637_v19 = vshll.u32 %v15381_v9, 16  ;;  %11719 = vmatprep.subr.bf16.mxu1 %v12470_v1  ;;  %v7592_v32 = vsel %vm13015_vm2, %v7587_v50, %v7591_v7  ;;  %v11093_v23 = vpop.f32.mrb[168].mxu0 }
 0x386   : > { %v15387_v14 = vsel %vm13846_vm5, %v8864_v10, %v8865_v48  ;;  %v7633_v17 = vrot.slane %v7631_v45, 5  ;;  %v15396_v12 = vsel %vm13846_vm5, %v10488_v49, %v8858_v52  ;;  %v7655_v42 = vshrl.u32 %v15381_v9, 16  ;;  %v12473_v10 = vld [vmem:[#allocation9 + $0x230] sm:$0xff]  }
 0x387   : > { %v7616_v18 = vsel %vm13015_vm2, %v7611_v41, %v7615_v28  ;;  %v7639_v59 = vrot.slane %v7637_v19, 5  ;;  %v10520_v44 = vcombine.low %v15370_v29, %v15365_v33  ;;  %v10524_v30 = vcombine.high %v15396_v12, %v15387_v14  ;;  %v12472_v33 = vld [vmem:[#allocation9 + $0x228] sm:$0xff]   ;;  %v8646_v29 = vld [vmem:[#allocation2 + $0x90] sm:$0xee]  ;;  %v11094_v28 = vpop.f32.mrb[169].mxu0 }
 0x388   : > { %v10444_v11 = vcombine.high %v7592_v32, %v7616_v18  ;;  %v7634_v40 = vor.u32 %v7633_v17, %v7630_v56  ;;  %v8872_v35 = vrot.slane %v15239_v62, 5  ;;  %11720 = vmatpush3.bf16.msra.mxu1 %v12470_v1  ;;  %v7657_v39 = vrot.slane %v7655_v42, 4  ;;  %v11096_v19 = vpop.f32.mrb[170].mxu0  ;;  %v12474_v42 = vld [vmem:[#allocation9 + $0x238] sm:$0xff]  }
 0x389   : > { %8349 = vmatmul.mubr.bf16.gmra.mrb[8].mxu0 %v10440_v31  ;;  %v7661_v51 = vshll.u32 %v7031_v38, 16  ;;  %v15404_v7 = vadd.f32 %v11088_v61, %v11087_v5  ;;  %v15406_v37 = vadd.f32 %v11091_v24, %v11090_v55  ;;  %11721 = vmatprep.subr.bf16.mxu1 %v12471_v25  ;;  %v10523_v62 = vcombine.low %v15396_v12, %v15387_v14  ;;  %v8656_v38 = vld [vmem:[#allocation2 + $0xcc] sm:$0x11]  ;;  %v11097_v17 = vpop.f32.mrb[171].mxu0  ;;  %v7039_v61 = vld [vmem:[#allocation2 + $0x1f8] sm:$0xff] }
 0x38a   : > { %8356 = vmatprep.mubr.bf16.mxu0 %v10444_v11  ;;  %v8878_v0 = vrot.slane %v8872_v35, 4  ;;  %v7635_v21 = vrot.slane %v7634_v40, 4  ;;  %v7658_v53 = vor.u32 %v7657_v39, %v7639_v59  ;;  %v7676_v22 = vshrl.u32 %v7033_v57, 16  ;;  %v8652_v12 = vld [vmem:[#allocation2 + $0xb4] sm:$0xee] }
 0x38b   : > { %9504 = vmatmul.mubr.bf16.gmra.mrb[136].mxu1 %v10520_v44  ;;  %v10443_v60 = vcombine.low %v7592_v32, %v7616_v18  ;;  %v8879_v3 = vrot.slane %v8650_v34, 5  ;;  %v7679_v27 = vshll.u32 %v7033_v57, 16  ;;  %v7685_v4 = vshll.u32 %v15408_v58, 16 }
 0x38c   : > { %9511 = vmatprep.mubr.bf16.mxu1 %v10524_v30  ;;  %11722 = vmatpush3.bf16.msra.mxu1 %v12471_v25  ;;  %v7659_v52 = vrot.slane %v7658_v53, 4  ;;  %v7663_v1 = vrot.slane %v7661_v51, 5  ;;  %v10490_v50 = vrot.slane %v8646_v29, 9  ;;  %v7678_v36 = vrot.slane %v7676_v22, 4  ;;  %v11099_v53 = vpop.f32.mrb[172].mxu0 }
 0x38d   : > { %11723 = vmatprep.subr.bf16.mxu1 %v12472_v33  ;;  %v15415_v48 = vsel %vm13846_vm5, %v8878_v0, %v8879_v3  ;;  %v7681_v63 = vrot.slane %v7679_v27, 5  ;;  %v7687_v31 = vrot.slane %v7685_v4, 5  ;;  %v7703_v41 = vshrl.u32 %v15408_v58, 16  ;;  %v7043_v0 = vld [vmem:[#allocation2 + $0x210] sm:$0x11]  ;;  %v11100_v27 = vpop.f32.mrb[173].mxu0 }
 0x38e   : > { %v7640_v45 = vsel %vm13015_vm2, %v7635_v21, %v7639_v59  ;;  %v7664_v49 = vsel %vm13015_vm2, %v7659_v52, %v7663_v1  ;;  %v8873_v14 = vsel %vm13846_vm5, %v10490_v50, %v8872_v35  ;;  %v8886_v56 = vrot.slane %v15263_v16, 5  ;;  %v15430_v35 = vld [vmem:[#allocation2 + $0x204] sm:$0xff] }
 0x38f   : > { %v10447_v5 = vcombine.high %v7640_v45, %v7664_v49  ;;  %v7682_v25 = vor.u32 %v7681_v63, %v7678_v36  ;;  %v7705_v32 = vrot.slane %v7703_v41, 4  ;;  %v7709_v18 = vshll.u32 %v7037_v43, 16  ;;  %v8662_v36 = vld [vmem:[#allocation2 + $0xf0] sm:$0x11] }
 0x390   : > { %11724 = vmatpush3.bf16.msra.mxu1 %v12472_v33  ;;  %v10527_v11 = vcombine.high %v8873_v14, %v15415_v48  ;;  %v8892_v59 = vrot.slane %v8886_v56, 4  ;;  %v15426_v16 = vadd.f32 %v11094_v28, %v11093_v23  ;;  %v8893_v30 = vrot.slane %v8656_v38, 5  ;;  %v11102_v23 = vpop.f32.mrb[174].mxu0 }
 0x391   : > { %8357 = vmatmul.mubr.bf16.gmra.mrb[12].mxu0 %v10443_v60  ;;  %11725 = vmatprep.subr.bf16.mxu1 %v12473_v10  ;;  %v7683_v55 = vrot.slane %v7682_v25, 4  ;;  %v7706_v44 = vor.u32 %v7705_v32, %v7687_v31  ;;  %v15428_v40 = vadd.f32 %v11097_v17, %v11096_v19  ;;  %v7724_v24 = vshrl.u32 %v7039_v61, 16  ;;  %v11103_v28 = vpop.f32.mrb[175].mxu0 }
 0x392   : > { %8364 = vmatprep.mubr.bf16.mxu0 %v10447_v5  ;;  %v7727_v57 = vshll.u32 %v7039_v61, 16  ;;  %v7711_v51 = vrot.slane %v7709_v18, 5  ;;  %v10492_v34 = vrot.slane %v8652_v12, 9  ;;  %v10446_v33 = vcombine.low %v7640_v45, %v7664_v49  ;;  %v7045_v45 = vld [vmem:[#allocation2 + $0x21c] sm:$0xff] }
 0x393   : > { %9512 = vmatmul.mubr.bf16.gmra.mrb[140].mxu1 %v10523_v62  ;;  %v7707_v39 = vrot.slane %v7706_v44, 4  ;;  %v15434_v29 = vsel %vm13846_vm5, %v8892_v59, %v8893_v30  ;;  %v7726_v62 = vrot.slane %v7724_v24, 4  ;;  %v7688_v22 = vsel %vm13015_vm2, %v7683_v55, %v7687_v31  ;;  %v8658_v5 = vld [vmem:[#allocation2 + $0xd8] sm:$0xee]  ;;  %v7049_v44 = vld [vmem:[#allocation2 + $0x234] sm:$0x11] }
 0x394   : > { %9519 = vmatprep.mubr.bf16.mxu1 %v10527_v11  ;;  %11726 = vmatpush3.bf16.msra.mxu1 %v12473_v10  ;;  %v7729_v21 = vrot.slane %v7727_v57, 5  ;;  %v7733_v3 = vshll.u32 %v15430_v35, 16  ;;  %v7751_v43 = vshrl.u32 %v15430_v35, 16  ;;  %v10526_v4 = vcombine.low %v8873_v14, %v15415_v48  ;;  %v15449_v14 = vld [vmem:[#allocation2 + $0x228] sm:$0xff]  ;;  %v11105_v24 = vpop.f32.mrb[176].mxu0 }
 0x395   : > { %11727 = vmatprep.subr.bf16.mxu1 %v12474_v42  ;;  %v7712_v60 = vsel %vm13015_vm2, %v7707_v39, %v7711_v51  ;;  %v8887_v1 = vsel %vm13846_vm5, %v10492_v34, %v8886_v56  ;;  %v7757_v31 = vshll.u32 %v7043_v0, 16  ;;  %v8900_v41 = vrot.slane %v15287_v47, 5 }
 0x396   : > { %v10450_v52 = vcombine.high %v7688_v22, %v7712_v60  ;;  %v7730_v50 = vor.u32 %v7729_v21, %v7726_v62  ;;  %v7735_v10 = vrot.slane %v7733_v3, 5  ;;  %v7753_v63 = vrot.slane %v7751_v43, 4 }
 0x397   : > { %v10530_v49 = vcombine.high %v8887_v1, %v15434_v29  ;;  %v15447_v48 = vadd.f32 %v11100_v27, %v11099_v53  ;;  %v8906_v25 = vrot.slane %v8900_v41, 4  ;;  %v10449_v32 = vcombine.low %v7688_v22, %v7712_v60 }
 0x398   : > { %11728 = vmatpush3.bf16.msra.mxu1 %v12474_v42  ;;  %v7731_v19 = vrot.slane %v7730_v50, 4  ;;  %v7754_v56 = vor.u32 %v7753_v63, %v7735_v10  ;;  %v8907_v18 = vrot.slane %v8662_v36, 5  ;;  %v15451_v38 = vadd.f32 %v11103_v28, %v11102_v23 }
 0x399   : > { %8365 = vmatmul.mubr.bf16.gmra.mrb[16].mxu0 %v10446_v33  ;;  %v7772_v47 = vshrl.u32 %v7045_v45, 16  ;;  %v7759_v61 = vrot.slane %v7757_v31, 5  ;;  %v7775_v11 = vshll.u32 %v7045_v45, 16  ;;  %v7781_v12 = vshll.u32 %v15449_v14, 16  ;;  %v11106_v33 = vpop.f32.mrb[177].mxu0 }
 0x39a   : > { %8372 = vmatprep.mubr.bf16.mxu0 %v10450_v52  ;;  %v7755_v17 = vrot.slane %v7754_v56, 4  ;;  %v7736_v59 = vsel %vm13015_vm2, %v7731_v19, %v7735_v10  ;;  %v10494_v42 = vrot.slane %v8658_v5, 9  ;;  %v8908_v55 = vsel %vm13846_vm5, %v8906_v25, %v8907_v18  ;;  %v11108_v53 = vpop.f32.mrb[178].mxu0  ;;  %v8668_v52 = vld [vmem:[#allocation2 + $0x114] sm:$0x11] }
 0x39b   : > { %9520 = vmatmul.mubr.bf16.gmra.mrb[144].mxu1 %v10526_v4  ;;  %v7774_v30 = vrot.slane %v7772_v47, 4  ;;  %v7777_v39 = vrot.slane %v7775_v11, 5  ;;  %v7783_v51 = vrot.slane %v7781_v12, 5  ;;  %v7799_v34 = vshrl.u32 %v15449_v14, 16  ;;  %v11109_v27 = vpop.f32.mrb[179].mxu0 }
 0x39c   : > { %9527 = vmatprep.mubr.bf16.mxu1 %v10530_v49  ;;  %v7760_v57 = vsel %vm13015_vm2, %v7755_v17, %v7759_v61  ;;  %v10529_v0 = vcombine.low %v8887_v1, %v15434_v29  ;;  %v8901_v21 = vsel %vm13846_vm5, %v10494_v42, %v8900_v41  ;;  %v7805_v3 = vshll.u32 %v7049_v44, 16  ;;  %v8664_v29 = vld [vmem:[#allocation2 + $0xfc] sm:$0xee] }
 0x39d   : > { %v10453_v62 = vcombine.high %v7736_v59, %v7760_v57  ;;  %v7778_v22 = vor.u32 %v7777_v39, %v7774_v30  ;;  %v7801_v60 = vrot.slane %v7799_v34, 4  ;;  %v8914_v43 = vrot.slane %v15303_v26, 5  ;;  %v11111_v26 = vpop.f32.mrb[180].mxu0 }
 0x39e   : > { %v10533_v4 = vcombine.high %v8901_v21, %v8908_v55  ;;  %v15465_v50 = vadd.f32 %v11106_v33, %v11105_v24  ;;  %v15467_v10 = vadd.f32 %v11109_v27, %v11108_v53  ;;  %v7807_v31 = vrot.slane %v7805_v3, 5  ;;  %v11112_v25 = vpop.f32.mrb[181].mxu0 }
 0x39f   : > { %v7779_v36 = vrot.slane %v7778_v22, 4  ;;  %v7802_v23 = vor.u32 %v7801_v60, %v7783_v51  ;;  %v8920_v1 = vrot.slane %v8914_v43, 4  ;;  %v8921_v41 = vrot.slane %v8668_v52, 5  ;;  %v11114_v47 = vpop.f32.mrb[182].mxu0  ;;  %v8680_v22 = vld [vmem:[#allocation2 + $0x15c] sm:$0x11] }
 0x3a0   : > { %v10452_v28 = vcombine.low %v7736_v59, %v7760_v57  ;;  %v10496_v45 = vrot.slane %v8664_v29, 9  ;;  %v8928_v5 = vrot.slane %v15319_v54, 5  ;;  %v15476_v18 = vadd.f32 %v11112_v25, %v11111_v26  ;;  %v11115_v11 = vpop.f32.mrb[183].mxu0  ;;  %v8670_v54 = vld [vmem:[#allocation2 + $0x120] sm:$0xee] }
 0x3a1   : > { %8373 = vmatmul.mubr.bf16.gmra.mrb[20].mxu0 %v10449_v32  ;;  %v7803_v63 = vrot.slane %v7802_v23, 4  ;;  %v7784_v49 = vsel %vm13015_vm2, %v7779_v36, %v7783_v51  ;;  %v8922_v56 = vsel %vm13846_vm5, %v8920_v1, %v8921_v41  ;;  %v10532_v17 = vcombine.low %v8901_v21, %v8908_v55  ;;  %v11117_v24 = vpop.f32.mrb[184].mxu0 }
 0x3a2   : > { %8380 = vmatprep.mubr.bf16.mxu0 %v10453_v62  ;;  %v8915_v61 = vsel %vm13846_vm5, %v10496_v45, %v8914_v43  ;;  %v15480_v59 = vadd.f32 %v11115_v11, %v11114_v47  ;;  %v8934_v42 = vrot.slane %v8928_v5, 4  ;;  %v8935_v44 = vrot.slane %v8674_v2, 5  ;;  %v11118_v51 = vpop.f32.mrb[185].mxu0  ;;  %v8676_v43 = vld [vmem:[#allocation2 + $0x144] sm:$0xee] }
 0x3a3   : > { %9528 = vmatmul.mubr.bf16.gmra.mrb[148].mxu1 %v10529_v0  ;;  %v7808_v19 = vsel %vm13015_vm2, %v7803_v63, %v7807_v31  ;;  %v10536_v12 = vcombine.high %v8915_v61, %v8922_v56  ;;  %v10498_v57 = vrot.slane %v8670_v54, 9  ;;  %v8942_v39 = vrot.slane %v15329_v46, 5  ;;  %v11120_v33 = vpop.f32.mrb[186].mxu0  ;;  %v8686_v45 = vld [vmem:[#allocation2 + $0x180] sm:$0x11] }
 0x3a4   : > { %9535 = vmatprep.mubr.bf16.mxu1 %v10533_v4  ;;  %v10456_v32 = vcombine.high %v7784_v49, %v7808_v19  ;;  %v10455_v30 = vcombine.low %v7784_v49, %v7808_v19  ;;  %v8936_v55 = vsel %vm13846_vm5, %v8934_v42, %v8935_v44  ;;  %v15485_v34 = vadd.f32 %v11118_v51, %v11117_v24  ;;  %v11121_v21 = vpop.f32.mrb[187].mxu0  ;;  %v8682_v19 = vld [vmem:[#allocation2 + $0x168] sm:$0xee]  ;;  %v8692_v54 = vld [vmem:[#allocation2 + $0x1a4] sm:$0x11] }
 0x3a5   : > { %v10535_v0 = vcombine.low %v8915_v61, %v8922_v56  ;;  %v8929_v62 = vsel %vm13846_vm5, %v10498_v57, %v8928_v5  ;;  %v15489_v60 = vadd.f32 %v11121_v21, %v11120_v33  ;;  %v8948_v3 = vrot.slane %v8942_v39, 4  ;;  %v8688_v24 = vld [vmem:[#allocation2 + $0x18c] sm:$0xee] }
 0x3a6   : > { %v10539_v53 = vcombine.high %v8929_v62, %v8936_v55  ;;  %v8949_v27 = vrot.slane %v8680_v22, 5  ;;  %v10500_v4 = vrot.slane %v8676_v43, 9  ;;  %v8956_v36 = vrot.slane %v15343_v8, 5  ;;  %v8698_v43 = vld [vmem:[#allocation2 + $0x1c8] sm:$0x11] }
 0x3a7   : > { %v10538_v63 = vcombine.low %v8929_v62, %v8936_v55  ;;  %v8963_v56 = vrot.slane %v8686_v45, 5  ;;  %v10502_v8 = vrot.slane %v8682_v19, 9  ;;  %v8977_v57 = vrot.slane %v8692_v54, 5 }
 0x3a8   : > { %v8950_v52 = vsel %vm13846_vm5, %v8948_v3, %v8949_v27  ;;  %v8943_v31 = vsel %vm13846_vm5, %v10500_v4, %v8942_v39  ;;  %v8962_v49 = vrot.slane %v8956_v36, 4  ;;  %v8984_v51 = vrot.slane %v15381_v9, 5  ;;  %v8694_v4 = vld [vmem:[#allocation2 + $0x1b0] sm:$0xee] }
 0x3a9   : > { %8381 = vmatmul.mubr.bf16.gmra.mrb[24].mxu0 %v10452_v28  ;;  %v10542_v28 = vcombine.high %v8943_v31, %v8950_v52  ;;  %v10541_v11 = vcombine.low %v8943_v31, %v8950_v52  ;;  %v8991_v52 = vrot.slane %v8698_v43, 5  ;;  %v10506_v9 = vrot.slane %v8694_v4, 9 }
 0x3aa   : > { %8388 = vmatprep.mubr.bf16.mxu0 %v10456_v32  ;;  %v11123_v46 = vpop.f32.mrb[188].mxu0  ;;  %v8964_v25 = vsel %vm13846_vm5, %v8962_v49, %v8963_v56  ;;  %v8970_v32 = vrot.slane %v15358_v6, 5  ;;  %v10504_v6 = vrot.slane %v8688_v24, 9  ;;  %v8704_v56 = vld [vmem:[#allocation2 + $0x1ec] sm:$0x11] }
 0x3ab   : > { %9536 = vmatmul.mubr.bf16.gmra.mrb[152].mxu1 %v10532_v17  ;;  %v11124_v23 = vpop.f32.mrb[189].mxu0  ;;  %v8985_v45 = vsel %vm13846_vm5, %v10506_v9, %v8984_v51  ;;  %v8716_v9 = vld [vmem:[#allocation2 + $0x234] sm:$0x11] }
 0x3ac   : > { %9543 = vmatprep.mubr.bf16.mxu1 %v10536_v12  ;;  %v15494_v29 = vadd.f32 %v11124_v23, %v11123_v46  ;;  %v11126_v1 = vpop.f32.mrb[190].mxu0  ;;  %v8957_v12 = vsel %vm13846_vm5, %v10502_v8, %v8956_v36  ;;  %v8990_v46 = vrot.slane %v8984_v51, 4  ;;  %v8706_v51 = vld [vmem:[#allocation2 + $0x1f8] sm:$0xee] }
 0x3ad   : > { %v11127_v41 = vpop.f32.mrb[191].mxu0  ;;  %v10545_v42 = vcombine.high %v8957_v12, %v8964_v25  ;;  %v10544_v21 = vcombine.low %v8957_v12, %v8964_v25  ;;  %v8700_v25 = vld [vmem:[#allocation2 + $0x1d4] sm:$0xee] }
 0x3ae   : > { %v15498_v26 = vadd.f32 %v11127_v41, %v11126_v1  ;;  %v8992_v23 = vsel %vm13846_vm5, %v8990_v46, %v8991_v52  ;;  %v8998_v1 = vrot.slane %v15408_v58, 5  ;;  %v10508_v58 = vrot.slane %v8700_v25, 9 }
 0x3af   : > { %v10551_v19 = vcombine.high %v8985_v45, %v8992_v23  ;;  %v10550_v54 = vcombine.low %v8985_v45, %v8992_v23 }
 0x3b0   : > { %v9004_v8 = vrot.slane %v8998_v1, 4 }
 0x3b1   : > { %8389 = vmatmul.mubr.bf16.gmra.mrb[28].mxu0 %v10455_v30  ;;  %v8976_v30 = vrot.slane %v8970_v32, 4 }
 0x3b3   : > { %9544 = vmatmul.mubr.bf16.gmra.mrb[156].mxu1 %v10535_v0  ;;  %v11129_v5 = vpop.f32.mrb[192].mxu0  ;;  %v8978_v39 = vsel %vm13846_vm5, %v8976_v30, %v8977_v57  ;;  %v8999_v30 = vsel %vm13846_vm5, %v10508_v58, %v8998_v1 }
 0x3b4   : > { %9551 = vmatprep.mubr.bf16.mxu1 %v10539_v53  ;;  %v11130_v47 = vpop.f32.mrb[193].mxu0  ;;  %v8971_v53 = vsel %vm13846_vm5, %v10504_v6, %v8970_v32  ;;  %v9005_v32 = vrot.slane %v8704_v56, 5 }
 0x3b5   : > { %v15503_v17 = vadd.f32 %v11130_v47, %v11129_v5  ;;  %v11132_v61 = vpop.f32.mrb[194].mxu0  ;;  %v10548_v3 = vcombine.high %v8971_v53, %v8978_v39 }
 0x3b6   : > { %v11133_v2 = vpop.f32.mrb[195].mxu0 }
 0x3b7   : > { %v15507_v44 = vadd.f32 %v11133_v2, %v11132_v61  ;;  %v9006_v61 = vsel %vm13846_vm5, %v9004_v8, %v9005_v32 }
 0x3b8   : > { %v10554_v57 = vcombine.high %v8999_v30, %v9006_v61  ;;  %v10553_v46 = vcombine.low %v8999_v30, %v9006_v61  ;;  %v8623_v30 = vld [vmem:[#allocation2 + $0x8] sm:$0xe] }
 0x3bb   : > { %9552 = vmatmul.mubr.bf16.gmra.mrb[160].mxu1 %v10538_v63 }
 0x3bc   : > { %9559 = vmatprep.mubr.bf16.mxu1 %v10542_v28  ;;  %v11135_v55 = vpop.f32.mrb[196].mxu0  ;;  %v10547_v28 = vcombine.low %v8971_v53, %v8978_v39  ;;  %v9026_v53 = vrot.slane %v15449_v14, 5 }
 0x3bd   : > { %v11136_v33 = vpop.f32.mrb[197].mxu0 }
 0x3be   : > { %v15512_v0 = vadd.f32 %v11136_v33, %v11135_v55  ;;  %v11138_v62 = vpop.f32.mrb[198].mxu0  ;;  %v8710_v55 = vld [vmem:[#allocation2 + $0x210] sm:$0x11]  ;;  %v9032_v1 = vrot.slane %v9026_v53, 4 }
 0x3bf   : > { %v11139_v22 = vpop.f32.mrb[199].mxu0  ;;  %v9019_v33 = vrot.slane %v8710_v55, 5 }
 0x3c0   : > { %v15516_v27 = vadd.f32 %v11139_v22, %v11138_v62 }
 0x3c3   : > { %9560 = vmatmul.mubr.bf16.gmra.mrb[164].mxu1 %v10541_v11  ;;  %v9012_v11 = vrot.slane %v15430_v35, 5  ;;  %v10510_v35 = vrot.slane %v8706_v51, 9  ;;  %v10483_v51 = vrot.slane %v8623_v30, 9 }
 0x3c4   : > { %9567 = vmatprep.mubr.bf16.mxu1 %v10545_v42 }
 0x3c5   : > { %v11141_v36 = vpop.f32.mrb[200].mxu0  ;;  %v9018_v39 = vrot.slane %v9012_v11, 4  ;;  %v9013_v4 = vsel %vm13846_vm5, %v10510_v35, %v9012_v11  ;;  %v8627_v11 = vld [vmem:[#allocation2 + $0x20] sm:$0x1] }
 0x3c6   : > { %v11142_v63 = vpop.f32.mrb[201].mxu0 }
 0x3c7   : > { %v15521_v31 = vadd.f32 %v11142_v63, %v11141_v36  ;;  %v11144_v41 = vpop.f32.mrb[202].mxu0  ;;  %v8712_v63 = vld [vmem:[#allocation2 + $0x21c] sm:$0xee] }
 0x3c8   : > { %v11145_v49 = vpop.f32.mrb[203].mxu0  ;;  %v10512_v45 = vrot.slane %v8712_v63, 9  ;;  %v8629_v63 = vld [vmem:[#allocation2 + $0x2c] sm:$0xe] }
 0x3c9   : > { %v15525_v5 = vadd.f32 %v11145_v49, %v11144_v41  ;;  %v8625_v41 = vld [vmem:[#allocation2 + $0x14] sm:$0xf] }
 0x3cb   : > { %9568 = vmatmul.mubr.bf16.gmra.mrb[168].mxu1 %v10544_v21  ;;  %v9020_v21 = vsel %vm13846_vm5, %v9018_v39, %v9019_v33 }
 0x3cc   : > { %9575 = vmatprep.mubr.bf16.mxu1 %v10548_v3  ;;  %v10557_v36 = vcombine.high %v9013_v4, %v9020_v21  ;;  %v10556_v32 = vcombine.low %v9013_v4, %v9020_v21 }
 0x3d0   : > { %v11147_v47 = vpop.f32.mrb[204].mxu0 }
 0x3d1   : > { %v11148_v12 = vpop.f32.mrb[205].mxu0 }
 0x3d2   : > { %v15530_v2 = vadd.f32 %v11148_v12, %v11147_v47  ;;  %v11150_v42 = vpop.f32.mrb[206].mxu0  ;;  %v9027_v47 = vsel %vm13846_vm5, %v10512_v45, %v9026_v53  ;;  %v8635_v45 = vld [vmem:[#allocation2 + $0x50] sm:$0xe] }
 0x3d3   : > { %9576 = vmatmul.mubr.bf16.gmra.mrb[172].mxu1 %v10547_v28  ;;  %v11151_v24 = vpop.f32.mrb[207].mxu0  ;;  %v9033_v28 = vrot.slane %v8716_v9, 5  ;;  %v8639_v9 = vld [vmem:[#allocation2 + $0x68] sm:$0x1] }
 0x3d4   : > { %9583 = vmatprep.mubr.bf16.mxu1 %v10551_v19  ;;  %v15534_v6 = vadd.f32 %v11151_v24, %v11150_v42  ;;  %v8820_v19 = vrot.slane %v8625_v41, 5  ;;  %v8637_v24 = vld [vmem:[#allocation2 + $0x5c] sm:$0xf] }
 0x3d5   : > { %v9034_v49 = vsel %vm13846_vm5, %v9032_v1, %v9033_v28  ;;  %v8643_v28 = vld [vmem:[#allocation2 + $0x80] sm:$0xf] }
 0x3d6   : > { %v10560_v61 = vcombine.high %v9027_v47, %v9034_v49  ;;  %v8825_v42 = vrot.slane %v8820_v19, 4 }
 0x3d8   : > { %v11153_v62 = vpop.f32.mrb[208].mxu0 }
 0x3d9   : > { %v11154_v22 = vpop.f32.mrb[209].mxu0 }
 0x3da   : > { %v15539_v3 = vadd.f32 %v11154_v22, %v11153_v62  ;;  %v11156_v43 = vpop.f32.mrb[210].mxu0  ;;  %v8848_v62 = vrot.slane %v8637_v24, 5  ;;  %v10559_v22 = vcombine.low %v9027_v47, %v9034_v49  ;;  %v8854_v49 = vrot.slane %v8639_v9, 5  ;;  %v8655_v9 = vld [vmem:[#allocation2 + $0xc8] sm:$0xf] }
 0x3db   : > { %9584 = vmatmul.mubr.bf16.gmra.mrb[176].mxu1 %v10550_v54  ;;  %v11157_v52 = vpop.f32.mrb[211].mxu0  ;;  %v8631_v54 = vld [vmem:[#allocation2 + $0x38] sm:$0xf] }
 0x3dc   : > { %9591 = vmatprep.mubr.bf16.mxu1 %v10554_v57  ;;  %v15543_v23 = vadd.f32 %v11157_v52, %v11156_v43  ;;  %v8826_v57 = vrot.slane %v8627_v11, 5  ;;  %v8834_v55 = vrot.slane %v8631_v54, 5  ;;  %v8821_v43 = vsel %vm13846_vm5, %v10483_v51, %v8820_v19 }
 0x3dd   : > { %v8853_v41 = vrot.slane %v8848_v62, 4 }
 0x3de   : > { %v8827_v33 = vsel %vm13846_vm5, %v8825_v42, %v8826_v57  ;;  %v5922_v57 = vld [vmem:[%s12853_s6] sm:$0xff] }
 0x3df   : > { %v10516_v52 = vcombine.low %v8821_v43, %v8827_v33 }
 0x3e3   : > { %9592 = vmatmul.mubr.bf16.gmra.mrb[180].mxu1 %v10553_v46  ;;  %v11159_v14 = vpop.f32.mrb[212].mxu0  ;;  %v8633_v46 = vld [vmem:[#allocation2 + $0x44] sm:$0x1] }
 0x3e4   : > { %9599 = vmatprep.mubr.bf16.mxu1 %v10557_v36  ;;  %v11160_v56 = vpop.f32.mrb[213].mxu0  ;;  %v8839_v36 = vrot.slane %v8834_v55, 4 }
 0x3e5   : > { %v15547_v8 = vadd.f32 %v11160_v56, %v11159_v14  ;;  %v11162_v25 = vpop.f32.mrb[214].mxu0  ;;  %v8840_v14 = vrot.slane %v8633_v46, 5  ;;  %v8649_v56 = vld [vmem:[#allocation2 + $0xa4] sm:$0xf] }
 0x3e6   : > { %v11163_v58 = vpop.f32.mrb[215].mxu0  ;;  %v8876_v11 = vrot.slane %v8649_v56, 5 }
 0x3e7   : > { %v15551_v12 = vadd.f32 %v11163_v58, %v11162_v25  ;;  %v10485_v25 = vrot.slane %v8629_v63, 9  ;;  %v8841_v19 = vsel %vm13846_vm5, %v8839_v36, %v8840_v14  ;;  %v10487_v58 = vrot.slane %v8635_v45, 9  ;;  %v8661_v14 = vld [vmem:[#allocation2 + $0xec] sm:$0xf] }
 0x3e8   : > { %v8881_v36 = vrot.slane %v8876_v11, 4 }
 0x3e9   : > { %v8835_v54 = vsel %vm13846_vm5, %v10485_v25, %v8834_v55  ;;  %v8849_v33 = vsel %vm13846_vm5, %v10487_v58, %v8848_v62  ;;  %v8890_v25 = vrot.slane %v8655_v9, 5  ;;  %v8663_v9 = vld [vmem:[#allocation2 + $0xf8] sm:$0x1] }
 0x3ea   : > { %v10519_v51 = vcombine.low %v8835_v54, %v8841_v19 }
 0x3eb   : > { %9600 = vmatmul.mubr.bf16.gmra.mrb[184].mxu1 %v10556_v32  ;;  %v11165_v39 = vpop.f32.mrb[216].mxu0  ;;  %v8862_v32 = vrot.slane %v8643_v28, 5  ;;  %v8647_v28 = vld [vmem:[#allocation2 + $0x98] sm:$0xe] }
 0x3ec   : > { %9607 = vmatprep.mubr.bf16.mxu1 %v10560_v61  ;;  %v11166_v35 = vpop.f32.mrb[217].mxu0  ;;  %v8855_v61 = vsel %vm13846_vm5, %v8853_v41, %v8854_v49 }
 0x3ed   : > { %v15555_v21 = vadd.f32 %v11166_v35, %v11165_v39  ;;  %v11168_v53 = vpop.f32.mrb[218].mxu0  ;;  %v15573_v39 = vld [vmem:[%s16009_s4] ss:$0 sm:$0xff]  ;;  %v8645_v35 = vld [vmem:[#allocation2 + $0x8c] sm:$0x1]  ;;  %v10522_v43 = vcombine.low %v8849_v33, %v8855_v61  ;;  %v8867_v46 = vrot.slane %v8862_v32, 4 }
 0x3ee   : > { %v11169_v4 = vpop.f32.mrb[219].mxu0  ;;  %v5961_v63 = vadd.f32 %v15573_v39, %v5922_v57  ;;  %v8868_v41 = vrot.slane %v8645_v35, 5  ;;  %v8904_v61 = vrot.slane %v8661_v14, 5  ;;  %v5924_v35 = vld [vmem:[%s12853_s6 + $0x10] sm:$0xff] }
 0x3ef   : > { %v15559_v1 = vadd.f32 %v11169_v4, %v11168_v53  ;;  %v8651_v4 = vld [vmem:[#allocation2 + $0xb0] sm:$0x1] }
 0x3f0   : > { %v8882_v45 = vrot.slane %v8651_v4, 5  ;;  %v8869_v49 = vsel %vm13846_vm5, %v8867_v46, %v8868_v41  ;;  %v11925_v54 = vadd.f32 %v15379_v13, %v5961_v63  ;;  %v5925_v4 = vld [vmem:[%s12853_s6 + $0x18] sm:$0xff]  ;;  %v8909_v63 = vrot.slane %v8904_v61, 4 }
 0x3f2   : > { %v8883_v58 = vsel %vm13846_vm5, %v8881_v36, %v8882_v45  ;;  %v8895_v36 = vrot.slane %v8890_v25, 4 }
 0x3f3   : > { %9608 = vmatmul.mubr.bf16.gmra.mrb[188].mxu1 %v10559_v22  ;;  %v11171_v47 = vpop.f32.mrb[220].mxu0  ;;  %v5923_v22 = vld [vmem:[%s12853_s6 + $0x8] sm:$0xff] }
 0x3f4   : > { %11729 = vmatprep.mubr.bf16.mxu1 %v10516_v52  ;;  %v11172_v42 = vpop.f32.mrb[221].mxu0  ;;  %v8641_v52 = vld [vmem:[#allocation2 + $0x74] sm:$0xe]  ;;  %v5962_v62 = vadd.f32 %v15573_v39, %v5923_v22 }
 0x3f5   : > { %v15567_v30 = vadd.f32 %v11172_v42, %v11171_v47  ;;  %v11174_v24 = vpop.f32.mrb[222].mxu0  ;;  %v10489_v56 = vrot.slane %v8641_v52, 9  ;;  %v10491_v47 = vrot.slane %v8647_v28, 9  ;;  %v8667_v28 = vld [vmem:[#allocation2 + $0x110] sm:$0xf] }
 0x3f6   : > { %v11175_v53 = vpop.f32.mrb[223].mxu0  ;;  %v11933_v33 = vadd.f32 %v15383_v20, %v5962_v62  ;;  %v5963_v20 = vadd.f32 %v15573_v39, %v5924_v35  ;;  %v8659_v62 = vld [vmem:[#allocation2 + $0xe0] sm:$0xe] }
 0x3f7   : > { %v15578_v55 = vadd.f32 %v11175_v53, %v11174_v24  ;;  %v8863_v24 = vsel %vm13846_vm5, %v10489_v56, %v8862_v32  ;;  %v8877_v22 = vsel %vm13846_vm5, %v10491_v47, %v8876_v11  ;;  %v8653_v32 = vld [vmem:[#allocation2 + $0xbc] sm:$0xe]  ;;  %v8673_v11 = vld [vmem:[#allocation2 + $0x134] sm:$0xf]  ;;  %v5964_v56 = vadd.f32 %v15573_v39, %v5925_v4 }
 0x3f8   : > { %v10525_v53 = vcombine.low %v8863_v24, %v8869_v49  ;;  %v10528_v52 = vcombine.low %v8877_v22, %v8883_v58  ;;  %v8910_v49 = vrot.slane %v8663_v9, 5  ;;  %v8918_v58 = vrot.slane %v8667_v28, 5  ;;  %v8675_v28 = vld [vmem:[#allocation2 + $0x140] sm:$0x1] }
 0x3fa   : > { %v8911_v24 = vsel %vm13846_vm5, %v8909_v63, %v8910_v49  ;;  %v8923_v63 = vrot.slane %v8918_v58, 4 }
 0x3fb   : > { %11730 = vmatmul.mubr.bf16.vlgmr.msra.gmra.mrb[96].mxu1 %v10519_v51  ;;  %v11217_v19 = vpop.f32.mrb[224].mxu0 }
 0x3fc   : > { %11733 = vmatprep.mubr.bf16.mxu1 %v10522_v43  ;;  %v11218_v42 = vpop.f32.mrb[225].mxu0  ;;  %v8657_v43 = vld [vmem:[#allocation2 + $0xd4] sm:$0x1] }
 0x3fd   : > { %v11219_v57 = vadd.f32 %v11218_v42, %v11217_v19  ;;  %v11220_v51 = vpop.f32.mrb[226].mxu0  ;;  %v8896_v14 = vrot.slane %v8657_v43, 5  ;;  %v10493_v19 = vrot.slane %v8653_v32, 9  ;;  %v11929_v43 = vadd.f32 %v15406_v37, %v5964_v56  ;;  %v8671_v56 = vld [vmem:[#allocation2 + $0x128] sm:$0xe] }
 0x3fe   : > { %v11221_v46 = vpop.f32.mrb[227].mxu0 }
 0x3ff   : > { %v15594_v41 = vadd.f32 %v11925_v54, %v11219_v57  ;;  %v11222_v13 = vadd.f32 %v11221_v46, %v11220_v51  ;;  %v8897_v47 = vsel %vm13846_vm5, %v8895_v36, %v8896_v14  ;;  %v10495_v54 = vrot.slane %v8659_v62, 9  ;;  %v5926_v46 = vld [vmem:[%s12853_s6 + $0x20] sm:$0xff]  ;;  %v8669_v36 = vld [vmem:[#allocation2 + $0x11c] sm:$0x1]  ;;  %v8679_v62 = vld [vmem:[#allocation2 + $0x158] sm:$0xf] }
 0x400   : > { %v8932_v57 = vrot.slane %v8673_v11, 5  ;;  %v8891_v35 = vsel %vm13846_vm5, %v10493_v19, %v8890_v25  ;;  %v8665_v25 = vld [vmem:[#allocation2 + $0x104] sm:$0xe]  ;;  %v5965_v37 = vadd.f32 %v15573_v39, %v5926_v46  ;;  %v8924_v11 = vrot.slane %v8669_v36, 5 }
 0x401   : > { %v15597_v45 = vadd.f32 %v11933_v33, %v11222_v13  ;;  %v11921_v33 = vadd.f32 %v15404_v7, %v5963_v20  ;;  %v10531_v4 = vcombine.low %v8891_v35, %v8897_v47  ;;  %v5927_v13 = vld [vmem:[%s12853_s6 + $0x28] sm:$0xff]  ;;  %v8938_v47 = vrot.slane %v8675_v28, 5 }
 0x402   : > { %v8937_v20 = vrot.slane %v8932_v57, 4  ;;  %v5966_v19 = vadd.f32 %v15573_v39, %v5927_v13 }
 0x403   : > { %11734 = vmatmul.mubr.bf16.gmra.mrb[100].mxu1 %v10525_v53  ;;  %v11223_v42 = vpop.f32.mrb[228].mxu0 }
 0x404   : > { %11737 = vmatprep.mubr.bf16.mxu1 %v10528_v52  ;;  %v11224_v51 = vpop.f32.mrb[229].mxu0  ;;  %v8905_v52 = vsel %vm13846_vm5, %v10495_v54, %v8904_v61  ;;  %v8685_v61 = vld [vmem:[#allocation2 + $0x17c] sm:$0xf]  ;;  %v8925_v54 = vsel %vm13846_vm5, %v8923_v63, %v8924_v11  ;;  %v8939_v35 = vsel %vm13846_vm5, %v8937_v20, %v8938_v47  ;;  %v11949_v36 = vadd.f32 %v15428_v40, %v5966_v19  ;;  %v8681_v63 = vld [vmem:[#allocation2 + $0x164] sm:$0x1] }
 0x405   : > { %v11225_v53 = vadd.f32 %v11224_v51, %v11223_v42  ;;  %v11226_v22 = vpop.f32.mrb[230].mxu0  ;;  %v10534_v32 = vcombine.low %v8905_v52, %v8911_v24  ;;  %v10497_v42 = vrot.slane %v8665_v25, 9  ;;  %v8946_v24 = vrot.slane %v8679_v62, 5  ;;  %v8687_v62 = vld [vmem:[#allocation2 + $0x188] sm:$0x1] }
 0x406   : > { %v11227_v9 = vpop.f32.mrb[231].mxu0  ;;  %v8683_v19 = vld [vmem:[#allocation2 + $0x170] sm:$0xe] }
 0x407   : > { %v15612_v14 = vadd.f32 %v11921_v33, %v11225_v53  ;;  %v11228_v7 = vadd.f32 %v11227_v9, %v11226_v22  ;;  %v10499_v33 = vrot.slane %v8671_v56, 9  ;;  %v8960_v53 = vrot.slane %v8685_v61, 5  ;;  %v5928_v9 = vld [vmem:[%s12853_s6 + $0x30] sm:$0xff]  ;;  %v8691_v56 = vld [vmem:[#allocation2 + $0x1a0] sm:$0xf] }
 0x408   : > { %v8919_v46 = vsel %vm13846_vm5, %v10497_v42, %v8918_v58  ;;  %v8951_v20 = vrot.slane %v8946_v24, 4  ;;  %v8677_v58 = vld [vmem:[#allocation2 + $0x14c] sm:$0xe]  ;;  %v5967_v40 = vadd.f32 %v15573_v39, %v5928_v9  ;;  %v8952_v61 = vrot.slane %v8681_v63, 5 }
 0x409   : > { %v15615_v49 = vadd.f32 %v11929_v43, %v11228_v7  ;;  %v11941_v43 = vadd.f32 %v15426_v16, %v5965_v37  ;;  %v10537_v13 = vcombine.low %v8919_v46, %v8925_v54  ;;  %v5929_v7 = vld [vmem:[%s12853_s6 + $0x38] sm:$0xff]  ;;  %v8965_v37 = vrot.slane %v8960_v53, 4 }
 0x40a   : > { %v5968_v42 = vadd.f32 %v15573_v39, %v5929_v7  ;;  %v8966_v54 = vrot.slane %v8687_v62, 5 }
 0x40b   : > { %11738 = vmatmul.mubr.bf16.gmra.mrb[104].mxu1 %v10531_v4  ;;  %v11229_v51 = vpop.f32.mrb[232].mxu0 }
 0x40c   : > { %11741 = vmatprep.mubr.bf16.mxu1 %v10534_v32  ;;  %v11230_v22 = vpop.f32.mrb[233].mxu0  ;;  %v8933_v32 = vsel %vm13846_vm5, %v10499_v33, %v8932_v57  ;;  %v8697_v57 = vld [vmem:[#allocation2 + $0x1c4] sm:$0xf]  ;;  %v8953_v33 = vsel %vm13846_vm5, %v8951_v20, %v8952_v61  ;;  %v8967_v46 = vsel %vm13846_vm5, %v8965_v37, %v8966_v54  ;;  %v11945_v63 = vadd.f32 %v15451_v38, %v5968_v42  ;;  %v8693_v20 = vld [vmem:[#allocation2 + $0x1ac] sm:$0x1] }
 0x40d   : > { %v11231_v4 = vadd.f32 %v11230_v22, %v11229_v51  ;;  %v11232_v52 = vpop.f32.mrb[234].mxu0  ;;  %v10540_v25 = vcombine.low %v8933_v32, %v8939_v35  ;;  %v10501_v51 = vrot.slane %v8677_v58, 9  ;;  %v8974_v35 = vrot.slane %v8691_v56, 5  ;;  %v8699_v56 = vld [vmem:[#allocation2 + $0x1d0] sm:$0x1] }
 0x40e   : > { %v11233_v28 = vpop.f32.mrb[235].mxu0  ;;  %v8695_v42 = vld [vmem:[#allocation2 + $0x1b8] sm:$0xe]  ;;  %v8709_v54 = vld [vmem:[#allocation2 + $0x20c] sm:$0xf] }
 0x40f   : > { %v15630_v11 = vadd.f32 %v11941_v43, %v11231_v4  ;;  %v11234_v16 = vadd.f32 %v11233_v28, %v11232_v52  ;;  %v10503_v43 = vrot.slane %v8683_v19, 9  ;;  %v8988_v4 = vrot.slane %v8697_v57, 5  ;;  %v5930_v28 = vld [vmem:[%s12853_s6 + $0x40] sm:$0xff]  ;;  %v8703_v19 = vld [vmem:[#allocation2 + $0x1e8] sm:$0xf] }
 0x410   : > { %v8947_v9 = vsel %vm13846_vm5, %v10501_v51, %v8946_v24  ;;  %v8979_v37 = vrot.slane %v8974_v35, 4  ;;  %v8689_v24 = vld [vmem:[#allocation2 + $0x194] sm:$0xe]  ;;  %v5969_v38 = vadd.f32 %v15573_v39, %v5930_v28  ;;  %v8980_v57 = vrot.slane %v8693_v20, 5 }
 0x411   : > { %v15633_v47 = vadd.f32 %v11949_v36, %v11234_v16  ;;  %v11937_v36 = vadd.f32 %v15447_v48, %v5967_v40  ;;  %v10543_v7 = vcombine.low %v8947_v9, %v8953_v33  ;;  %v5931_v16 = vld [vmem:[%s12853_s6 + $0x48] sm:$0xff]  ;;  %v8993_v40 = vrot.slane %v8988_v4, 4 }
 0x412   : > { %v5970_v51 = vadd.f32 %v15573_v39, %v5931_v16  ;;  %v8994_v33 = vrot.slane %v8699_v56, 5  ;;  %v11957_v28 = vadd.f32 %v15465_v50, %v5969_v38  ;;  %v8711_v50 = vld [vmem:[#allocation2 + $0x218] sm:$0x1] }
 0x413   : > { %11742 = vmatmul.mubr.bf16.gmra.mrb[108].mxu1 %v10537_v13  ;;  %v11235_v22 = vpop.f32.mrb[236].mxu0 }
 0x414   : > { %11745 = vmatprep.mubr.bf16.mxu1 %v10540_v25  ;;  %v11236_v52 = vpop.f32.mrb[237].mxu0  ;;  %v8961_v25 = vsel %vm13846_vm5, %v10503_v43, %v8960_v53  ;;  %v8981_v43 = vsel %vm13846_vm5, %v8979_v37, %v8980_v57  ;;  %v8995_v9 = vsel %vm13846_vm5, %v8993_v40, %v8994_v33  ;;  %v8705_v37 = vld [vmem:[#allocation2 + $0x1f4] sm:$0x1]  ;;  %v8701_v40 = vld [vmem:[#allocation2 + $0x1dc] sm:$0xe] }
 0x415   : > { %v11237_v13 = vadd.f32 %v11236_v52, %v11235_v22  ;;  %v11238_v32 = vpop.f32.mrb[238].mxu0  ;;  %v10546_v58 = vcombine.low %v8961_v25, %v8967_v46  ;;  %v10505_v22 = vrot.slane %v8689_v24, 9  ;;  %v9002_v46 = vrot.slane %v8703_v19, 5 }
 0x416   : > { %v11239_v62 = vpop.f32.mrb[239].mxu0 }
 0x417   : > { %v15648_v61 = vadd.f32 %v11937_v36, %v11237_v13  ;;  %v11240_v48 = vadd.f32 %v11239_v62, %v11238_v32  ;;  %v10507_v36 = vrot.slane %v8695_v42, 9  ;;  %v9016_v13 = vrot.slane %v8709_v54, 5  ;;  %v5933_v42 = vld [vmem:[%s12853_s6 + $0x58] sm:$0xff] }
 0x418   : > { %v11965_v62 = vadd.f32 %v15467_v10, %v5970_v51  ;;  %v9007_v19 = vrot.slane %v9002_v46, 4  ;;  %v9008_v10 = vrot.slane %v8705_v37, 5  ;;  %v8707_v51 = vld [vmem:[#allocation2 + $0x200] sm:$0xe] }
 0x419   : > { %v15651_v53 = vadd.f32 %v11945_v63, %v11240_v48  ;;  %v5932_v63 = vld [vmem:[%s12853_s6 + $0x50] sm:$0xff]  ;;  %v9021_v54 = vrot.slane %v9016_v13, 4 }
 0x41a   : > { %v8715_v48 = vld [vmem:[#allocation2 + $0x230] sm:$0xf] }
 0x41b   : > { %11746 = vmatmul.mubr.bf16.gmra.mrb[112].mxu1 %v10543_v7  ;;  %v11241_v52 = vpop.f32.mrb[240].mxu0  ;;  %v8975_v7 = vsel %vm13846_vm5, %v10505_v22, %v8974_v35  ;;  %v5971_v35 = vadd.f32 %v15573_v39, %v5932_v63  ;;  %v10509_v22 = vrot.slane %v8701_v40, 9 }
 0x41c   : > { %11749 = vmatprep.mubr.bf16.mxu1 %v10546_v58  ;;  %v11242_v32 = vpop.f32.mrb[241].mxu0  ;;  %v10549_v16 = vcombine.low %v8975_v7, %v8981_v43  ;;  %v8989_v58 = vsel %vm13846_vm5, %v10507_v36, %v8988_v4  ;;  %v9030_v4 = vrot.slane %v8715_v48, 5  ;;  %v9022_v43 = vrot.slane %v8711_v50, 5  ;;  %v8717_v36 = vld [vmem:[#allocation2 + $0x23c] sm:$0x1] }
 0x41d   : > { %v11243_v25 = vadd.f32 %v11242_v32, %v11241_v52  ;;  %v11244_v20 = vpop.f32.mrb[242].mxu0  ;;  %v10552_v24 = vcombine.low %v8989_v58, %v8995_v9  ;;  %v8713_v52 = vld [vmem:[#allocation2 + $0x224] sm:$0xe]  ;;  %v5972_v9 = vadd.f32 %v15573_v39, %v5933_v42  ;;  %v9009_v32 = vsel %vm13846_vm5, %v9007_v19, %v9008_v10 }
 0x41e   : > { %v11245_v56 = vpop.f32.mrb[243].mxu0  ;;  %v11953_v63 = vadd.f32 %v15476_v18, %v5971_v35  ;;  %v9003_v7 = vsel %vm13846_vm5, %v10509_v22, %v9002_v46  ;;  %v9035_v58 = vrot.slane %v9030_v4, 4  ;;  %v9036_v37 = vrot.slane %v8717_v36, 5  ;;  %v5934_v35 = vld [vmem:[%s12853_s6 + $0x60] sm:$0xff] }
 0x41f   : > { %v15665_v38 = vadd.f32 %v11957_v28, %v11243_v25  ;;  %v11246_v57 = vadd.f32 %v11245_v56, %v11244_v20  ;;  %v10511_v25 = vrot.slane %v8707_v51, 9  ;;  %v9023_v20 = vsel %vm13846_vm5, %v9021_v54, %v9022_v43 }
 0x420   : > { %v11961_v19 = vadd.f32 %v15480_v59, %v5972_v9  ;;  %v9037_v54 = vsel %vm13846_vm5, %v9035_v58, %v9036_v37  ;;  %v5973_v59 = vadd.f32 %v15573_v39, %v5934_v35 }
 0x421   : > { %v15669_v33 = vadd.f32 %v11965_v62, %v11246_v57  ;;  %v9017_v40 = vsel %vm13846_vm5, %v10511_v25, %v9016_v13  ;;  %v5935_v13 = vld [vmem:[%s12853_s6 + $0x68] sm:$0xff]  ;;  %v5936_v25 = vld [vmem:[%s12853_s6 + $0x70] sm:$0xff] }
 0x422   : > { %v10558_v46 = vcombine.low %v9017_v40, %v9023_v20  ;;  %v5974_v22 = vadd.f32 %v15573_v39, %v5935_v13  ;;  %v11973_v36 = vadd.f32 %v15485_v34, %v5973_v59  ;;  %v5937_v20 = vld [vmem:[%s12853_s6 + $0x78] sm:$0xff] }
 0x423   : > { %11750 = vmatmul.mubr.bf16.gmra.mrb[116].mxu1 %v10549_v16  ;;  %v11247_v28 = vpop.f32.mrb[244].mxu0  ;;  %v10513_v16 = vrot.slane %v8713_v52, 9 }
 0x424   : > { %11753 = vmatprep.mubr.bf16.mxu1 %v10552_v24  ;;  %v11248_v62 = vpop.f32.mrb[245].mxu0  ;;  %v10555_v24 = vcombine.low %v9003_v7, %v9009_v32  ;;  %v11981_v15 = vadd.f32 %v15489_v60, %v5974_v22  ;;  %v5940_v22 = vld [vmem:[%s12853_s6 + $0x90] sm:$0xff] }
 0x425   : > { %v11249_v56 = vadd.f32 %v11248_v62, %v11247_v28  ;;  %v11250_v48 = vpop.f32.mrb[246].mxu0  ;;  %v9031_v42 = vsel %vm13846_vm5, %v10513_v16, %v9030_v4  ;;  %v5975_v62 = vadd.f32 %v15573_v39, %v5936_v25  ;;  %v5976_v16 = vadd.f32 %v15573_v39, %v5937_v20 }
 0x426   : > { %v11251_v18 = vpop.f32.mrb[247].mxu0  ;;  %v10561_v51 = vcombine.low %v9031_v42, %v9037_v54  ;;  %v5979_v25 = vadd.f32 %v15573_v39, %v5940_v22 }
 0x427   : > { %v15682_v50 = vadd.f32 %v11953_v63, %v11249_v56  ;;  %v11252_v57 = vadd.f32 %v11251_v18, %v11250_v48  ;;  %v11969_v37 = vadd.f32 %v15494_v29, %v5975_v62 }
 0x429   : > { %v15689_v10 = vadd.f32 %v11961_v19, %v11252_v57  ;;  %v5939_v57 = vld [vmem:[%s12853_s6 + $0x88] sm:$0xff] }
 0x42a   : > { %v5978_v42 = vadd.f32 %v15573_v39, %v5939_v57 }
 0x42b   : > { %11754 = vmatmul.mubr.bf16.gmra.mrb[120].mxu1 %v10555_v24  ;;  %v11977_v24 = vadd.f32 %v15498_v26, %v5976_v16 }
 0x42c   : > { %11757 = vmatprep.mubr.bf16.mxu1 %v10558_v46  ;;  %v5938_v46 = vld [vmem:[%s12853_s6 + $0x80] sm:$0xff] }
 0x42d   : > { %v5977_v35 = vadd.f32 %v15573_v39, %v5938_v46 }
 0x42f   : > { %v11989_v13 = vadd.f32 %v15503_v17, %v5977_v35 }
 0x432   : > { %v11253_v43 = vpop.f32.mrb[248].mxu0 }
 0x433   : > { %v11254_v52 = vpop.f32.mrb[249].mxu0  ;;  %11758 = vmatmul.mubr.bf16.gmra.mrb[124].mxu1 %v10561_v51 }
 0x434   : > { %v11255_v9 = vadd.f32 %v11254_v52, %v11253_v43  ;;  %v11256_v4 = vpop.f32.mrb[250].mxu0  ;;  %v11997_v52 = vadd.f32 %v15507_v44, %v5978_v42 }
 0x435   : > { %v11257_v32 = vpop.f32.mrb[251].mxu0 }
 0x436   : > { %v15696_v28 = vadd.f32 %v11973_v36, %v11255_v9  ;;  %v11258_v63 = vadd.f32 %v11257_v32, %v11256_v4  ;;  %v5941_v32 = vld [vmem:[%s12853_s6 + $0x98] sm:$0xff] }
 0x437   : > { %v5980_v44 = vadd.f32 %v15573_v39, %v5941_v32 }
 0x438   : > { %v15698_v7 = vadd.f32 %v11981_v15, %v11258_v63 }
 0x439   : > { %v11993_v57 = vadd.f32 %v15516_v27, %v5980_v44 }
 0x43d   : > { %v11259_v34 = vpop.f32.mrb[252].mxu0 }
 0x43e   : > { %v11260_v58 = vpop.f32.mrb[253].mxu0 }
 0x43f   : > { %v11261_v56 = vadd.f32 %v11260_v58, %v11259_v34  ;;  %v11262_v60 = vpop.f32.mrb[254].mxu0 }
 0x440   : > { %v11263_v48 = vpop.f32.mrb[255].mxu0 }
 0x441   : > { %v15706_v40 = vadd.f32 %v11969_v37, %v11261_v56  ;;  %v11264_v18 = vadd.f32 %v11263_v48, %v11262_v60  ;;  %v11985_v56 = vadd.f32 %v15512_v0, %v5979_v25 }
 0x443   : > { %v15708_v19 = vadd.f32 %v11977_v24, %v11264_v18  ;;  %v5942_v24 = vld [vmem:[%s12853_s6 + $0xa0] sm:$0xff] }
 0x44c   : > { %v11265_v54 = vpop.f32.mrb[0].mxu0 }
 0x44d   : > { %v11266_v29 = vpop.f32.mrb[1].mxu0 }
 0x44e   : > { %v11267_v59 = vadd.f32 %v11266_v29, %v11265_v54  ;;  %v11268_v51 = vpop.f32.mrb[2].mxu0  ;;  %v11353_v26 = vpop.f32.mrb[128].mxu1  ;;  %v5943_v54 = vld [vmem:[%s12853_s6 + $0xa8] sm:$0xff] }
 0x44f   : > { %v11269_v43 = vpop.f32.mrb[3].mxu0  ;;  %v11354_v9 = vpop.f32.mrb[129].mxu1  ;;  %v5982_v27 = vadd.f32 %v15573_v39, %v5943_v54 }
 0x450   : > { %v15717_v36 = vadd.f32 %v11989_v13, %v11267_v59  ;;  %v11270_v4 = vadd.f32 %v11269_v43, %v11268_v51  ;;  %v11355_v15 = vadd.f32 %v11354_v9, %v11353_v26  ;;  %v11356_v63 = vpop.f32.mrb[130].mxu1 }
 0x451   : > { %v11357_v17 = vpop.f32.mrb[131].mxu1 }
 0x452   : > { %v15721_v20 = vadd.f32 %v11997_v52, %v11270_v4  ;;  %v11358_v62 = vadd.f32 %v11357_v17, %v11356_v63  ;;  %v15724_v16 = vadd.f32 %v15594_v41, %v11355_v15  ;;  %v5944_v15 = vld [vmem:[%s12853_s6 + $0xb0] sm:$0xff]  ;;  %v12013_v17 = vadd.f32 %v15525_v5, %v5982_v27 }
 0x454   : > { %v11271_v34 = vpop.f32.mrb[4].mxu0  ;;  %v15728_v37 = vadd.f32 %v15597_v45, %v11358_v62  ;;  %v5981_v45 = vadd.f32 %v15573_v39, %v5942_v24 }
 0x455   : > { %v11272_v58 = vpop.f32.mrb[5].mxu0 }
 0x456   : > { %v11273_v60 = vadd.f32 %v11272_v58, %v11271_v34  ;;  %v11274_v48 = vpop.f32.mrb[6].mxu0  ;;  %v11359_v18 = vpop.f32.mrb[132].mxu1  ;;  %v12005_v9 = vadd.f32 %v15521_v31, %v5981_v45  ;;  %v5945_v34 = vld [vmem:[%s12853_s6 + $0xb8] sm:$0xff] }
 0x457   : > { %v11275_v46 = vpop.f32.mrb[7].mxu0  ;;  %v11360_v41 = vpop.f32.mrb[133].mxu1  ;;  %v5984_v5 = vadd.f32 %v15573_v39, %v5945_v34 }
 0x458   : > { %v15733_v35 = vadd.f32 %v11985_v56, %v11273_v60  ;;  %v11276_v42 = vadd.f32 %v11275_v46, %v11274_v48  ;;  %v11361_v29 = vadd.f32 %v11360_v41, %v11359_v18  ;;  %v11362_v13 = vpop.f32.mrb[134].mxu1 }
 0x459   : > { %v11363_v0 = vpop.f32.mrb[135].mxu1 }
 0x45a   : > { %v15737_v59 = vadd.f32 %v11993_v57, %v11276_v42  ;;  %v11364_v51 = vadd.f32 %v11363_v0, %v11362_v13  ;;  %v15740_v22 = vadd.f32 %v15612_v14, %v11361_v29  ;;  %v5946_v29 = vld [vmem:[%s12853_s6 + $0xc0] sm:$0xff]  ;;  %v12009_v0 = vadd.f32 %v15534_v6, %v5984_v5 }
 0x45c   : > { %v11277_v26 = vpop.f32.mrb[8].mxu0  ;;  %v15744_v52 = vadd.f32 %v15615_v49, %v11364_v51  ;;  %v5983_v49 = vadd.f32 %v15573_v39, %v5944_v15 }
 0x45d   : > { %v11278_v43 = vpop.f32.mrb[9].mxu0 }
 0x45e   : > { %v11279_v4 = vadd.f32 %v11278_v43, %v11277_v26  ;;  %v11280_v32 = vpop.f32.mrb[10].mxu0  ;;  %v11365_v63 = vpop.f32.mrb[136].mxu1  ;;  %v12001_v41 = vadd.f32 %v15530_v2, %v5983_v49  ;;  %v5947_v26 = vld [vmem:[%s12853_s6 + $0xc8] sm:$0xff] }
 0x45f   : > { %v11281_v25 = vpop.f32.mrb[11].mxu0  ;;  %v11366_v14 = vpop.f32.mrb[137].mxu1  ;;  %v5986_v6 = vadd.f32 %v15573_v39, %v5947_v26 }
 0x460   : > { %v15749_v62 = vadd.f32 %v12005_v9, %v11279_v4  ;;  %v11282_v44 = vadd.f32 %v11281_v25, %v11280_v32  ;;  %v11367_v58 = vadd.f32 %v11366_v14, %v11365_v63  ;;  %v11368_v56 = vpop.f32.mrb[138].mxu1 }
 0x461   : > { %v11369_v31 = vpop.f32.mrb[139].mxu1 }
 0x462   : > { %v15753_v60 = vadd.f32 %v12013_v17, %v11282_v44  ;;  %v11370_v48 = vadd.f32 %v11369_v31, %v11368_v56  ;;  %v15756_v24 = vadd.f32 %v15630_v11, %v11367_v58  ;;  %v5948_v58 = vld [vmem:[%s12853_s6 + $0xd0] sm:$0xff]  ;;  %v12029_v31 = vadd.f32 %v15543_v23, %v5986_v6 }
 0x464   : > { %v11283_v18 = vpop.f32.mrb[12].mxu0  ;;  %v15760_v57 = vadd.f32 %v15633_v47, %v11370_v48  ;;  %v5985_v47 = vadd.f32 %v15573_v39, %v5946_v29 }
 0x465   : > { %v11284_v46 = vpop.f32.mrb[13].mxu0 }
 0x466   : > { %v11285_v42 = vadd.f32 %v11284_v46, %v11283_v18  ;;  %v11286_v54 = vpop.f32.mrb[14].mxu0  ;;  %v11371_v13 = vpop.f32.mrb[140].mxu1  ;;  %v12021_v14 = vadd.f32 %v15539_v3, %v5985_v47  ;;  %v5949_v18 = vld [vmem:[%s12853_s6 + $0xd8] sm:$0xff] }
 0x467   : > { %v11287_v45 = vpop.f32.mrb[15].mxu0  ;;  %v11372_v11 = vpop.f32.mrb[141].mxu1  ;;  %v5988_v23 = vadd.f32 %v15573_v39, %v5949_v18 }
 0x468   : > { %v15765_v51 = vadd.f32 %v12001_v41, %v11285_v42  ;;  %v11288_v27 = vadd.f32 %v11287_v45, %v11286_v54  ;;  %v11373_v43 = vadd.f32 %v11372_v11, %v11371_v13  ;;  %v11374_v9 = vpop.f32.mrb[142].mxu1 }
 0x469   : > { %v11375_v2 = vpop.f32.mrb[143].mxu1 }
 0x46a   : > { %v15769_v4 = vadd.f32 %v12009_v0, %v11288_v27  ;;  %v11376_v32 = vadd.f32 %v11375_v2, %v11374_v9  ;;  %v15772_v15 = vadd.f32 %v15648_v61, %v11373_v43  ;;  %v5950_v43 = vld [vmem:[%s12853_s6 + $0xe0] sm:$0xff]  ;;  %v12025_v2 = vadd.f32 %v15551_v12, %v5988_v23 }
 0x46c   : > { %v11289_v63 = vpop.f32.mrb[16].mxu0  ;;  %v15776_v17 = vadd.f32 %v15651_v53, %v11376_v32  ;;  %v5987_v53 = vadd.f32 %v15573_v39, %v5948_v58 }
 0x46d   : > { %v11290_v25 = vpop.f32.mrb[17].mxu0 }
 0x46e   : > { %v11291_v44 = vadd.f32 %v11290_v25, %v11289_v63  ;;  %v11292_v34 = vpop.f32.mrb[18].mxu0  ;;  %v11377_v56 = vpop.f32.mrb[144].mxu1  ;;  %v12017_v11 = vadd.f32 %v15547_v8, %v5987_v53  ;;  %v5951_v63 = vld [vmem:[%s12853_s6 + $0xe8] sm:$0xff] }
 0x46f   : > { %v11293_v49 = vpop.f32.mrb[19].mxu0  ;;  %v11378_v61 = vpop.f32.mrb[145].mxu1  ;;  %v5990_v12 = vadd.f32 %v15573_v39, %v5951_v63 }
 0x470   : > { %v15781_v48 = vadd.f32 %v12021_v14, %v11291_v44  ;;  %v11294_v5 = vadd.f32 %v11293_v49, %v11292_v34  ;;  %v11379_v46 = vadd.f32 %v11378_v61, %v11377_v56  ;;  %v11380_v41 = vpop.f32.mrb[146].mxu1 }
 0x471   : > { %v11381_v3 = vpop.f32.mrb[147].mxu1 }
 0x472   : > { %v15785_v42 = vadd.f32 %v12029_v31, %v11294_v5  ;;  %v11382_v54 = vadd.f32 %v11381_v3, %v11380_v41  ;;  %v15788_v29 = vadd.f32 %v15665_v38, %v11379_v46  ;;  %v5952_v46 = vld [vmem:[%s12853_s6 + $0xf0] sm:$0xff]  ;;  %v12045_v3 = vadd.f32 %v15559_v1, %v5990_v12 }
 0x474   : > { %v11295_v13 = vpop.f32.mrb[20].mxu0  ;;  %v15792_v0 = vadd.f32 %v15669_v33, %v11382_v54  ;;  %v5989_v33 = vadd.f32 %v15573_v39, %v5950_v43 }
 0x475   : > { %v11296_v45 = vpop.f32.mrb[21].mxu0 }
 0x476   : > { %v11297_v27 = vadd.f32 %v11296_v45, %v11295_v13  ;;  %v11298_v26 = vpop.f32.mrb[22].mxu0  ;;  %v11383_v9 = vpop.f32.mrb[148].mxu1  ;;  %v12037_v61 = vadd.f32 %v15555_v21, %v5989_v33  ;;  %v5953_v13 = vld [vmem:[%s12853_s6 + $0xf8] sm:$0xff] }
 0x477   : > { %v11299_v47 = vpop.f32.mrb[23].mxu0  ;;  %v11384_v38 = vpop.f32.mrb[149].mxu1 }
 0x478   : > { %v15797_v32 = vadd.f32 %v12017_v11, %v11297_v27  ;;  %v11300_v6 = vadd.f32 %v11299_v47, %v11298_v26  ;;  %v11385_v25 = vadd.f32 %v11384_v38, %v11383_v9  ;;  %v11386_v14 = vpop.f32.mrb[150].mxu1  ;;  %v5991_v27 = vadd.f32 %v15573_v39, %v5952_v46 }
 0x479   : > { %v11387_v8 = vpop.f32.mrb[151].mxu1  ;;  %v5992_v9 = vadd.f32 %v15573_v39, %v5953_v13 }
 0x47a   : > { %v15801_v44 = vadd.f32 %v12025_v2, %v11300_v6  ;;  %v11388_v34 = vadd.f32 %v11387_v8, %v11386_v14  ;;  %v15804_v58 = vadd.f32 %v15682_v50, %v11385_v25  ;;  %v12033_v38 = vadd.f32 %v15567_v30, %v5991_v27 }
 0x47b   : > { %v12041_v33 = vadd.f32 %v15578_v55, %v5992_v9 }
 0x47c   : > { %v11301_v56 = vpop.f32.mrb[24].mxu0  ;;  %v15808_v31 = vadd.f32 %v15689_v10, %v11388_v34 }
 0x47d   : > { %v11302_v49 = vpop.f32.mrb[25].mxu0 }
 0x47e   : > { %v11303_v5 = vadd.f32 %v11302_v49, %v11301_v56  ;;  %v11304_v18 = vpop.f32.mrb[26].mxu0  ;;  %v11389_v41 = vpop.f32.mrb[152].mxu1 }
 0x47f   : > { %v11305_v53 = vpop.f32.mrb[27].mxu0  ;;  %v11390_v50 = vpop.f32.mrb[153].mxu1 }
 0x480   : > { %v15813_v54 = vadd.f32 %v12037_v61, %v11303_v5  ;;  %v11306_v23 = vadd.f32 %v11305_v53, %v11304_v18  ;;  %v11391_v45 = vadd.f32 %v11390_v50, %v11389_v41  ;;  %v11392_v11 = vpop.f32.mrb[154].mxu1 }
 0x481   : > { %v11393_v26 = vpop.f32.mrb[155].mxu1 }
 0x482   : > { %v15817_v10 = vadd.f32 %v12045_v3, %v11306_v23  ;;  %v11394_v21 = vadd.f32 %v11393_v26, %v11392_v11  ;;  %v15820_v43 = vadd.f32 %v15696_v28, %v11391_v45 }
 0x484   : > { %v11307_v47 = vpop.f32.mrb[28].mxu0  ;;  %v15824_v2 = vadd.f32 %v15698_v7, %v11394_v21 }
 0x485   : > { %v11308_v1 = vpop.f32.mrb[29].mxu0 }
 0x486   : > { %v11309_v6 = vadd.f32 %v11308_v1, %v11307_v47  ;;  %v11310_v63 = vpop.f32.mrb[30].mxu0  ;;  %v11395_v25 = vpop.f32.mrb[156].mxu1 }
 0x487   : > { %v11311_v14 = vpop.f32.mrb[31].mxu0  ;;  %v11396_v34 = vpop.f32.mrb[157].mxu1 }
 0x488   : > { %v15828_v8 = vadd.f32 %v12033_v38, %v11309_v6  ;;  %v11312_v28 = vadd.f32 %v11311_v14, %v11310_v63  ;;  %v11397_v12 = vadd.f32 %v11396_v34, %v11395_v25  ;;  %v11398_v56 = vpop.f32.mrb[158].mxu1 }
 0x489   : > { %v11399_v49 = vpop.f32.mrb[159].mxu1 }
 0x48a   : > { %v15830_v39 = vadd.f32 %v12041_v33, %v11312_v28  ;;  %v11400_v61 = vadd.f32 %v11399_v49, %v11398_v56  ;;  %v15833_v7 = vadd.f32 %v15706_v40, %v11397_v12 }
 0x48c   : > { %v15836_v30 = vadd.f32 %v15708_v19, %v11400_v61 }
 0x48e   : > { %v11401_v5 = vpop.f32.mrb[160].mxu1 }
 0x48f   : > { %v11402_v18 = vpop.f32.mrb[161].mxu1 }
 0x490   : > { %v11403_v46 = vadd.f32 %v11402_v18, %v11401_v5  ;;  %v11404_v55 = vpop.f32.mrb[162].mxu1 }
 0x491   : > { %v11405_v41 = vpop.f32.mrb[163].mxu1 }
 0x492   : > { %v11406_v53 = vadd.f32 %v11405_v41, %v11404_v55  ;;  %v15839_v3 = vadd.f32 %v15717_v36, %v11403_v46 }
 0x494   : > { %v15842_v50 = vadd.f32 %v15721_v20, %v11406_v53 }
 0x496   : > { %v11407_v23 = vpop.f32.mrb[164].mxu1 }
 0x497   : > { %v11408_v13 = vpop.f32.mrb[165].mxu1 }
 0x498   : > { %v11409_v45 = vadd.f32 %v11408_v13, %v11407_v23  ;;  %v11410_v40 = vpop.f32.mrb[166].mxu1 }
 0x499   : > { %v11411_v11 = vpop.f32.mrb[167].mxu1 }
 0x49a   : > { %v11412_v27 = vadd.f32 %v11411_v11, %v11410_v40  ;;  %v15845_v19 = vadd.f32 %v15733_v35, %v11409_v45 }
 0x49c   : > { %v15848_v26 = vadd.f32 %v15737_v59, %v11412_v27 }
 0x49e   : > { %v11413_v21 = vpop.f32.mrb[168].mxu1 }
 0x49f   : > { %v11414_v9 = vpop.f32.mrb[169].mxu1 }
 0x4a0   : > { %v11415_v47 = vadd.f32 %v11414_v9, %v11413_v21  ;;  %v11416_v36 = vpop.f32.mrb[170].mxu1 }
 0x4a1   : > { %v11417_v1 = vpop.f32.mrb[171].mxu1 }
 0x4a2   : > { %v11418_v38 = vadd.f32 %v11417_v1, %v11416_v36  ;;  %v15851_v20 = vadd.f32 %v15749_v62, %v11415_v47 }
 0x4a4   : > { %v15854_v6 = vadd.f32 %v15753_v60, %v11418_v38 }
 0x4a6   : > { %v11419_v63 = vpop.f32.mrb[172].mxu1 }
 0x4a7   : > { %v11420_v25 = vpop.f32.mrb[173].mxu1 }
 0x4a8   : > { %v11421_v14 = vadd.f32 %v11420_v25, %v11419_v63  ;;  %v11422_v35 = vpop.f32.mrb[174].mxu1 }
 0x4a9   : > { %v11423_v33 = vpop.f32.mrb[175].mxu1 }
 0x4aa   : > { %v11424_v34 = vadd.f32 %v11423_v33, %v11422_v35  ;;  %v15857_v59 = vadd.f32 %v15765_v51, %v11421_v14 }
 0x4ac   : > { %v15860_v28 = vadd.f32 %v15769_v4, %v11424_v34 }
 0x4ae   : > { %v11425_v12 = vpop.f32.mrb[176].mxu1 }
 0x4af   : > { %v11426_v56 = vpop.f32.mrb[177].mxu1 }
 0x4b0   : > { %v11427_v49 = vadd.f32 %v11426_v56, %v11425_v12  ;;  %v11428_v62 = vpop.f32.mrb[178].mxu1 }
 0x4b1   : > { %v11429_v61 = vpop.f32.mrb[179].mxu1 }
 0x4b2   : > { %v11430_v5 = vadd.f32 %v11429_v61, %v11428_v62  ;;  %v15863_v60 = vadd.f32 %v15781_v48, %v11427_v49 }
 0x4b4   : > { %v15866_v18 = vadd.f32 %v15785_v42, %v11430_v5 }
 0x4b6   : > { %v11431_v46 = vpop.f32.mrb[180].mxu1 }
 0x4b7   : > { %v11432_v55 = vpop.f32.mrb[181].mxu1 }
 0x4b8   : > { %v11433_v41 = vadd.f32 %v11432_v55, %v11431_v46  ;;  %v11434_v51 = vpop.f32.mrb[182].mxu1 }
 0x4b9   : > { %v11435_v53 = vpop.f32.mrb[183].mxu1 }
 0x4ba   : > { %v11436_v23 = vadd.f32 %v11435_v53, %v11434_v51  ;;  %v15869_v4 = vadd.f32 %v15797_v32, %v11433_v41 }
 0x4bc   : > { %v15872_v13 = vadd.f32 %v15801_v44, %v11436_v23 }
 0x4be   : > { %v11437_v45 = vpop.f32.mrb[184].mxu1 }
 0x4bf   : > { %v11438_v40 = vpop.f32.mrb[185].mxu1 }
 0x4c0   : > { %v11439_v11 = vadd.f32 %v11438_v40, %v11437_v45  ;;  %v11440_v48 = vpop.f32.mrb[186].mxu1 }
 0x4c1   : > { %v11441_v27 = vpop.f32.mrb[187].mxu1 }
 0x4c2   : > { %v11442_v21 = vadd.f32 %v11441_v27, %v11440_v48  ;;  %v15875_v42 = vadd.f32 %v15813_v54, %v11439_v11 }
 0x4c4   : > { %v15878_v9 = vadd.f32 %v15817_v10, %v11442_v21 }
 0x4c6   : > { %v11443_v47 = vpop.f32.mrb[188].mxu1 }
 0x4c7   : > { %v11444_v36 = vpop.f32.mrb[189].mxu1 }
 0x4c8   : > { %v11445_v32 = vadd.f32 %v11444_v36, %v11443_v47  ;;  %v11446_v1 = vpop.f32.mrb[190].mxu1 }
 0x4c9   : > { %v11447_v38 = vpop.f32.mrb[191].mxu1 }
 0x4ca   : > { %v11448_v44 = vadd.f32 %v11447_v38, %v11446_v1  ;;  %v15881_v63 = vadd.f32 %v15828_v8, %v11445_v32 }
 0x4cc   : > { %v15884_v25 = vadd.f32 %v15830_v39, %v11448_v44 }
 0x4ce   : > { %v11731_v14 = vpop.f32.mrb[96].mxu1 }
 0x4cf   : > { %v11924_v35 = vadd.f32 %v15740_v22, %v11731_v14  ;;  %v9650_v54 = vpop.f32.mrb[97].mxu1 }
 0x4d0   : > { %v11928_v33 = vadd.f32 %v15724_v16, %v9650_v54  ;;  %v11732_v10 = vpop.f32.mrb[98].mxu1 }
 0x4d1   : > { %9875 = vst [vmem:[%s15890_s11 + $0x10] sm:$0xff] %v11924_v35  ;;  %v11932_v8 = vadd.f32 %v15744_v52, %v11732_v10  ;;  %v9653_v39 = vpop.f32.mrb[99].mxu1 }
 0x4d2   : > { %9873 = vst [vmem:[%s15890_s11] sm:$0xff] %v11928_v33  ;;  %v11936_v22 = vadd.f32 %v15728_v37, %v9653_v39 }
 0x4d3   : > { %9876 = vst [vmem:[%s15890_s11 + $0x18] sm:$0xff] %v11932_v8 }
 0x4d4   : > { %9874 = vst [vmem:[%s15890_s11 + $0x8] sm:$0xff] %v11936_v22 }
 0x4d6   : > { %v11735_v16 = vpop.f32.mrb[100].mxu1 }
 0x4d7   : > { %v11940_v34 = vadd.f32 %v15772_v15, %v11735_v16  ;;  %v9666_v12 = vpop.f32.mrb[101].mxu1 }
 0x4d8   : > { %v11944_v56 = vadd.f32 %v15756_v24, %v9666_v12  ;;  %v11736_v49 = vpop.f32.mrb[102].mxu1 }
 0x4d9   : > { %9879 = vst [vmem:[%s15890_s11 + $0x30] sm:$0xff] %v11940_v34  ;;  %v11948_v52 = vadd.f32 %v15776_v17, %v11736_v49  ;;  %v9669_v62 = vpop.f32.mrb[103].mxu1 }
 0x4da   : > { %9877 = vst [vmem:[%s15890_s11 + $0x20] sm:$0xff] %v11944_v56  ;;  %v11952_v37 = vadd.f32 %v15760_v57, %v9669_v62 }
 0x4db   : > { %9880 = vst [vmem:[%s15890_s11 + $0x38] sm:$0xff] %v11948_v52 }
 0x4dc   : > { %9878 = vst [vmem:[%s15890_s11 + $0x28] sm:$0xff] %v11952_v37 }
 0x4de   : > { %v11739_v61 = vpop.f32.mrb[104].mxu1 }
 0x4df   : > { %v11956_v15 = vadd.f32 %v15804_v58, %v11739_v61  ;;  %v9682_v5 = vpop.f32.mrb[105].mxu1 }
 0x4e0   : > { %v11960_v24 = vadd.f32 %v15788_v29, %v9682_v5  ;;  %v11740_v46 = vpop.f32.mrb[106].mxu1 }
 0x4e1   : > { %9883 = vst [vmem:[%s15890_s11 + $0x50] sm:$0xff] %v11956_v15  ;;  %v11964_v17 = vadd.f32 %v15808_v31, %v11740_v46  ;;  %v9685_v55 = vpop.f32.mrb[107].mxu1 }
 0x4e2   : > { %9881 = vst [vmem:[%s15890_s11 + $0x40] sm:$0xff] %v11960_v24  ;;  %v11968_v57 = vadd.f32 %v15792_v0, %v9685_v55 }
 0x4e3   : > { %9884 = vst [vmem:[%s15890_s11 + $0x58] sm:$0xff] %v11964_v17 }
 0x4e4   : > { %9882 = vst [vmem:[%s15890_s11 + $0x48] sm:$0xff] %v11968_v57 }
 0x4e6   : > { %v11743_v41 = vpop.f32.mrb[108].mxu1 }
 0x4e7   : > { %v11972_v58 = vadd.f32 %v15833_v7, %v11743_v41  ;;  %v9698_v51 = vpop.f32.mrb[109].mxu1 }
 0x4e8   : > { %v11976_v29 = vadd.f32 %v15820_v43, %v9698_v51  ;;  %v11744_v53 = vpop.f32.mrb[110].mxu1 }
 0x4e9   : > { %9887 = vst [vmem:[%s15890_s11 + $0x70] sm:$0xff] %v11972_v58  ;;  %v11980_v31 = vadd.f32 %v15836_v30, %v11744_v53  ;;  %v9701_v23 = vpop.f32.mrb[111].mxu1 }
 0x4ea   : > { %9885 = vst [vmem:[%s15890_s11 + $0x60] sm:$0xff] %v11976_v29  ;;  %v11984_v0 = vadd.f32 %v15824_v2, %v9701_v23 }
 0x4eb   : > { %9888 = vst [vmem:[%s15890_s11 + $0x78] sm:$0xff] %v11980_v31 }
 0x4ec   : > { %9886 = vst [vmem:[%s15890_s11 + $0x68] sm:$0xff] %v11984_v0 }
 0x4ee   : > { %v11747_v45 = vpop.f32.mrb[112].mxu1 }
 0x4ef   : > { %v11988_v7 = vadd.f32 %v15845_v19, %v11747_v45  ;;  %v9714_v40 = vpop.f32.mrb[113].mxu1 }
 0x4f0   : > { %v11992_v43 = vadd.f32 %v15839_v3, %v9714_v40  ;;  %v11748_v11 = vpop.f32.mrb[114].mxu1 }
 0x4f1   : > { %9891 = vst [vmem:[%s15890_s11 + $0x90] sm:$0xff] %v11988_v7  ;;  %v11996_v30 = vadd.f32 %v15848_v26, %v11748_v11  ;;  %v9717_v48 = vpop.f32.mrb[115].mxu1 }
 0x4f2   : > { %9889 = vst [vmem:[%s15890_s11 + $0x80] sm:$0xff] %v11992_v43  ;;  %v12000_v2 = vadd.f32 %v15842_v50, %v9717_v48 }
 0x4f3   : > { %9892 = vst [vmem:[%s15890_s11 + $0x98] sm:$0xff] %v11996_v30 }
 0x4f4   : > { %9890 = vst [vmem:[%s15890_s11 + $0x88] sm:$0xff] %v12000_v2 }
 0x4f6   : > { %v11751_v27 = vpop.f32.mrb[116].mxu1 }
 0x4f7   : > { %v12004_v19 = vadd.f32 %v15857_v59, %v11751_v27  ;;  %v9730_v21 = vpop.f32.mrb[117].mxu1 }
 0x4f8   : > { %v12008_v3 = vadd.f32 %v15851_v20, %v9730_v21  ;;  %v11752_v47 = vpop.f32.mrb[118].mxu1 }
 0x4f9   : > { %9895 = vst [vmem:[%s15890_s11 + $0xb0] sm:$0xff] %v12004_v19  ;;  %v12012_v26 = vadd.f32 %v15860_v28, %v11752_v47  ;;  %v9733_v36 = vpop.f32.mrb[119].mxu1 }
 0x4fa   : > { %9893 = vst [vmem:[%s15890_s11 + $0xa0] sm:$0xff] %v12008_v3  ;;  %v12016_v50 = vadd.f32 %v15854_v6, %v9733_v36 }
 0x4fb   : > { %9896 = vst [vmem:[%s15890_s11 + $0xb8] sm:$0xff] %v12012_v26 }
 0x4fc   : > { %9894 = vst [vmem:[%s15890_s11 + $0xa8] sm:$0xff] %v12016_v50 }
 0x4fe   : > { %v11755_v59 = vpop.f32.mrb[120].mxu1 }
 0x4ff   : > { %v12020_v32 = vadd.f32 %v15869_v4, %v11755_v59  ;;  %v9746_v1 = vpop.f32.mrb[121].mxu1 }
 0x500   : > { %v12024_v20 = vadd.f32 %v15863_v60, %v9746_v1  ;;  %v11756_v38 = vpop.f32.mrb[122].mxu1 }
 0x501   : > { %9899 = vst [vmem:[%s15890_s11 + $0xd0] sm:$0xff] %v12020_v32  ;;  %v12028_v28 = vadd.f32 %v15872_v13, %v11756_v38  ;;  %v9749_v44 = vpop.f32.mrb[123].mxu1 }
 0x502   : > { %9897 = vst [vmem:[%s15890_s11 + $0xc0] sm:$0xff] %v12024_v20  ;;  %v12032_v6 = vadd.f32 %v15866_v18, %v9749_v44 }
 0x503   : > { %9900 = vst [vmem:[%s15890_s11 + $0xd8] sm:$0xff] %v12028_v28 }
 0x504   : > { %9898 = vst [vmem:[%s15890_s11 + $0xc8] sm:$0xff] %v12032_v6 }
 0x506   : > { %v11759_v14 = vpop.f32.mrb[124].mxu1 }
 0x507   : > { %v12036_v60 = vadd.f32 %v15881_v63, %v11759_v14  ;;  %v9762_v4 = vpop.f32.mrb[125].mxu1 }
 0x508   : > { %v12040_v35 = vadd.f32 %v15875_v42, %v9762_v4  ;;  %v11760_v13 = vpop.f32.mrb[126].mxu1 }
 0x509   : > { %9903 = vst [vmem:[%s15890_s11 + $0xf0] sm:$0xff] %v12036_v60  ;;  %v12044_v54 = vadd.f32 %v15884_v25, %v11760_v13  ;;  %v9765_v33 = vpop.f32.mrb[127].mxu1 }
 0x50a   : > { %9901 = vst [vmem:[%s15890_s11 + $0xe0] sm:$0xff] %v12040_v35  ;;  %v12048_v18 = vadd.f32 %v15878_v9, %v9765_v33 }
 0x50b   : > { %9904 = vst [vmem:[%s15890_s11 + $0xf8] sm:$0xff] %v12044_v54 }
 0x50c   : > { %9902 = vst [vmem:[%s15890_s11 + $0xe8] sm:$0xff] %v12048_v18 }
 0x50d   : > { %12575 = shalt.err (!%p12572_p2)
}
 0x50e   : > { %s12576_s6 = scalar_lea.hbm %s15955_s9, 4096  ;;  %s12580_s8 = scalar_lea.hbm %s16010_s5, 8192 }
 0x50f   : > { %p12577_p13 = scmp.ne.s32.totalorder %s15955_s9, %s12576_s6  ;;  %p12581_p4 = scmp.lt.u32.totalorder %s15955_s9, %s16010_s5 }
 0x510   : > { %p12582_p5 = scmp.lt.u32.totalorder %s12580_s8, %s12576_s6  ;;  %p12584_p11 = scmp.lt.u32.totalorder %s12576_s6, %s15955_s9 }
 0x511   : > { %p12578_p6 = pnand %p12577_p13, %p16148_p0 }
 0x512   : > { %p12583_p8 = por %p12582_p5, %p12581_p4 }
 0x513   : > { %p12579_p10 = pneg %p12578_p6 }
 0x514   : > { %p12585_p1 = por %p12584_p11, %p12583_p8 }
 0x516   : > { %p12586_p3 = pnand %p12585_p1, %p12579_p10 }
 0x518   : > { %12589 = shalt.err (!%p12586_p3)
}
 0x519   : > { %s12643_s28 = smov 128   ;;  %s12644_s15 = smov 8  }
 0x51a   : > { %12155 = dma.vmem_to_hbm [thread:$0]  (%p16148_p0), %s15957_s30, 4096, %s15955_s9, %s9906_s22, %s12643_s28, %s12643_s28, %s12644_s15  }
 0x51b PF: > { %s9934_s16 = sand.u32 1, %s12620_s18   ;;  %p16149_p7 = scmp.ne.s32.totalorder %s16035_s25, 0 }
 0x51c   : > { %p16150_p9 = scmp.ge.s32.totalorder %s12632_s21, 2  ;;  %s9935_s12 = scalar_lea.sflag [#allocation6], %s9934_s16 }
 0x51e   : > { %p12169_p12 = pnand %p16150_p9, %p16149_p7 }
 0x520   : > { %12615 = dma.done.wait (!%p12169_p12), %s9935_s12, 4096  }
 0x521   : > { %12617 = vsyncadd (!%p12169_p12), %s9935_s12, 4294963200  ;;  %p19_p2 = scmp.ge.s32.totalorder %s12785_s14, 4   ;;  %s16151_s18 = smov %s12624_s19 }
 0x522   : > { %s16152_s19 = smov %s12628_s20  ;;  %s16153_s20 = smov %s12801_s27 }
 0x523   : > { %s16154_s21 = smov %s12785_s14  ;;  %21 = sbr.rel (!%p19_p2) target bundleno = 6 (0x6), region = 99 }
 0x52a   :  { %9940 = vsyncpa [#allocation5], 1 }
 0x52b   :  { %9942 = vsyncpa [#allocation5 + $0x1], 1 }
 0x52c   :  { %9943 = vsyncpa [#allocation8], 1 }
 0x52d   :  { %9944 = vsyncpa [#allocation6], 1 }
 0x52e   :  { %9946 = vsyncpa [#allocation6 + $0x1], 1 }

</bundles_post_ra>
